<compile_context>
chip_gen: v5e
topology: v5e:2x2
jax: 0.10.0
libtpu: 0.0.40
codegen_flags: <defaults>
</compile_context>

<pallas_src>
import functools

import jax
import jax.numpy as jnp
from jax.experimental import pallas as pl
from jax.experimental.pallas import tpu as pltpu


VMEM_LIMIT = 32 * 1024 * 1024  # explicit scoped-VMEM budget, safe on v5e/v6e/v7x


# ------------------- fused Conv3d + GroupNorm (+ReLU, +residual) -------------------

def _conv_gn_kernel(*refs, eps, relu, inv_count, has_res):
    """One grid step = one sample.

    x_ref : (1, K, S)   bf16   tap-stacked im2col columns for this sample
    w_ref : (C, K)      bf16   tap-stacked weights
    g_ref : (C, 1)      f32    GroupNorm gamma
    b_ref : (C, 1)      f32    GroupNorm beta
    a_ref : (G, C)      f32    channel -> group combine matrix
    at_ref: (C, G)      f32    group -> channel broadcast matrix
    r_ref : (1, C, S)   f32    optional residual (added before ReLU)
    o_ref : (1, C, S)   f32
    """
    if has_res:
        x_ref, w_ref, g_ref, b_ref, a_ref, at_ref, r_ref, o_ref = refs
    else:
        x_ref, w_ref, g_ref, b_ref, a_ref, at_ref, o_ref = refs
        r_ref = None

    # Single long-K MXU contraction (implicit-GEMM conv), f32 accumulation.
    acc = jnp.dot(w_ref[...], x_ref[0], preferred_element_type=jnp.float32)   # (C, S)

    # Single-pass GroupNorm statistics: lane reductions + tiny group matmuls.
    s1 = jnp.sum(acc, axis=1, keepdims=True)                                  # (C, 1)
    s2 = jnp.sum(acc * acc, axis=1, keepdims=True)                            # (C, 1)
    gm = jnp.dot(a_ref[...], s1, preferred_element_type=jnp.float32) * inv_count      # (G, 1)
    gv = jnp.dot(a_ref[...], s2, preferred_element_type=jnp.float32) * inv_count - gm * gm
    gv = jnp.maximum(gv, 0.0)                         # clamp: E[x^2]-m^2 can go < 0 in f32
    ginv = jax.lax.rsqrt(gv + eps)                    # (G, 1), EUP
    mean_c = jnp.dot(at_ref[...], gm, preferred_element_type=jnp.float32)     # (C, 1)
    inv_c = jnp.dot(at_ref[...], ginv, preferred_element_type=jnp.float32)    # (C, 1)

    # Affine folded into one FMA: y = x * scale_c + shift_c.
    scale_c = inv_c * g_ref[...]
    shift_c = b_ref[...] - mean_c * scale_c
    y = acc * scale_c + shift_c
    if r_ref is not None:
        y = y + r_ref[0]
    if relu:
        y = jnp.maximum(y, 0.0)
    o_ref[0] = y


def conv_gn(x, w, gamma, beta, *, stride, pad, groups=16, eps=1e-5,
            relu=True, residual=None):
    """Conv3d(bias=False) + GroupNorm(num_groups=16) [+ residual add] [+ ReLU].

    x: (N, Cin, D, H, W) f32, w: (Cout, Cin, kd, kh, kw) f32.
    residual (optional): (N, Cout, Do, Ho, Wo) f32, added before the ReLU.
    Returns (N, Cout, Do, Ho, Wo) f32.
    """
    N, Cin, D, H, W = (int(s) for s in x.shape)
    Cout = int(w.shape[0])
    kd, kh, kw = (int(s) for s in w.shape[2:])
    sd, sh, sw = stride
    pd, ph, pw = pad
    Do = (D + 2 * pd - kd) // sd + 1
    Ho = (H + 2 * ph - kh) // sh + 1
    Wo = (W + 2 * pw - kw) // sw + 1
    S = Do * Ho * Wo
    T = kd * kh * kw
    K = T * Cin

    # Spatial zero-padding only; layout stays NCDHW -> no transposes below.
    if pd or ph or pw:
        xp = jnp.pad(x, ((0, 0), (0, 0), (pd, pd), (ph, ph), (pw, pw)))
    else:
        xp = x

    # Tap-stacked im2col: (N, T, Cin, Do, Ho, Wo) -> (N, K, S), bf16 MXU operand.
    cols = []
    for td in range(kd):
        for th in range(kh):
            for tw in range(kw):
                cols.append(xp[:, :,
                               td:td + Do * sd:sd,
                               th:th + Ho * sh:sh,
                               tw:tw + Wo * sw:sw])          # (N, Cin, Do, Ho, Wo)
    xcol = jnp.stack(cols, axis=1).reshape(N, K, S).astype(jnp.bfloat16)

    # Matching weight layout: (Cout, kd, kh, kw, Cin) -> (Cout, K), pre-cast to bf16.
    wk = jnp.transpose(w, (0, 2, 3, 4, 1)).reshape(Cout, K).astype(jnp.bfloat16)

    # Tiny group-combine matrices and affine params.
    cpg = Cout // groups
    a = (jnp.arange(Cout, dtype=jnp.int32)[None, :] // cpg
         == jnp.arange(groups, dtype=jnp.int32)[:, None]).astype(jnp.float32)  # (G, C)
    at = jnp.transpose(a)                                                       # (C, G)
    g2 = gamma.reshape(Cout, 1).astype(jnp.float32)
    b2 = beta.reshape(Cout, 1).astype(jnp.float32)

    args = [xcol, wk, g2, b2, a, at]
    in_specs = [
        pl.BlockSpec((1, K, S), lambda n: (n, 0, 0)),
        pl.BlockSpec((Cout, K), lambda n: (0, 0)),
        pl.BlockSpec((Cout, 1), lambda n: (0, 0)),
        pl.BlockSpec((Cout, 1), lambda n: (0, 0)),
        pl.BlockSpec((groups, Cout), lambda n: (0, 0)),
        pl.BlockSpec((Cout, groups), lambda n: (0, 0)),
    ]
    if residual is not None:
        args.append(residual.reshape(N, Cout, S).astype(jnp.float32))
        in_specs.append(pl.BlockSpec((1, Cout, S), lambda n: (n, 0, 0)))

    out = pl.pallas_call(
        functools.partial(_conv_gn_kernel, eps=eps, relu=relu,
                          inv_count=1.0 / float(cpg * S),
                          has_res=residual is not None),
        out_shape=jax.ShapeDtypeStruct((N, Cout, S), jnp.float32),
        grid=(N,),                                   # per-sample GN; 2 TCs on v7x
        in_specs=in_specs,
        out_specs=pl.BlockSpec((1, Cout, S), lambda n: (n, 0, 0)),
        compiler_params=pltpu.CompilerParams(
            dimension_semantics=("parallel",),
            vmem_limit_bytes=VMEM_LIMIT),
    )(*args)
    return out.reshape(N, Cout, Do, Ho, Wo)


# ----------------------------- fused VAE head -----------------------------

def _head_kernel(x_ref, wm_ref, wv_ref, bm_ref, bv_ref, eps_ref,
                 z_ref, mu_ref, lv_ref):
    x = x_ref[...]                                        # (B, F) bf16
    mu = jnp.dot(x, wm_ref[...], preferred_element_type=jnp.float32) + bm_ref[...]
    lv = jnp.dot(x, wv_ref[...], preferred_element_type=jnp.float32) + bv_ref[...]
    z_ref[...] = eps_ref[...] * jnp.exp(0.5 * lv) + mu    # reparameterize
    mu_ref[...] = mu
    lv_ref[...] = lv


def vae_head(emb_flat, mu_w, mu_b, var_w, var_b, eps):
    """conv_mu / conv_var (4x4 full-window Conv2d == dense) + bias + reparam
    in one pallas_call.  Two small K=F dots are kept (single-GEMM fusion would
    need an unaligned lane split of the 2*z_dim output for negligible gain)."""
    B, F = emb_flat.shape
    z_dim = int(mu_w.shape[0])
    x = emb_flat.astype(jnp.bfloat16)
    wm = mu_w.reshape(z_dim, F).T.astype(jnp.bfloat16)
    wv = var_w.reshape(z_dim, F).T.astype(jnp.bfloat16)
    z, mu, lv = pl.pallas_call(
        _head_kernel,
        out_shape=(jax.ShapeDtypeStruct((B, z_dim), jnp.float32),) * 3,
        compiler_params=pltpu.CompilerParams(vmem_limit_bytes=VMEM_LIMIT),
    )(x, wm, wv, mu_b.reshape(1, z_dim).astype(jnp.float32),
      var_b.reshape(1, z_dim).astype(jnp.float32), eps.astype(jnp.float32))
    return z, mu, lv


# ----------------------------- model -----------------------------

def basic_block(x, p, stride):
    s3 = (stride, stride, stride)
    h = conv_gn(x, p['conv1_w'], p['gn1_g'], p['gn1_b'],
                stride=s3, pad=(1, 1, 1), relu=True)
    if 'ds_w' in p:
        res = conv_gn(x, p['ds_w'], p['ds_g'], p['ds_b'],
                      stride=s3, pad=(0, 0, 0), relu=False)   # 1x1x1 conv + GN
    else:
        res = x
    # conv2 + GroupNorm + residual add + ReLU, all fused in one kernel.
    return conv_gn(h, p['conv2_w'], p['gn2_g'], p['gn2_b'],
                   stride=(1, 1, 1), pad=(1, 1, 1), relu=True, residual=res)


def init_params(key, channels, z_dim):
    keys = iter(jax.random.split(key, 64))

    def conv3d_w(cout, cin, k):
        fan_out = cout * k[0] * k[1] * k[2]               # kaiming_normal_ fan_out
        std = (2.0 / fan_out) ** 0.5
        return std * jax.random.normal(next(keys), (cout, cin) + k, jnp.float32)

    def gn(c):
        return jnp.ones((c,), jnp.float32), jnp.zeros((c,), jnp.float32)

    params = {'conv1_w': conv3d_w(channels[0], 3, (3, 7, 7))}
    params['bn1_g'], params['bn1_b'] = gn(channels[0])

    def make_block(inp, planes, stride):
        p = {'conv1_w': conv3d_w(planes, inp, (3, 3, 3))}
        p['gn1_g'], p['gn1_b'] = gn(planes)
        p['conv2_w'] = conv3d_w(planes, planes, (3, 3, 3))
        p['gn2_g'], p['gn2_b'] = gn(planes)
        if stride != 1 or inp != planes:
            p['ds_w'] = conv3d_w(planes, inp, (1, 1, 1))
            p['ds_g'], p['ds_b'] = gn(planes)
        return p

    inplanes = channels[0]
    blocks = []
    for planes, stride in [(channels[1], 1), (channels[2], 2), (channels[3], 2)]:
        blocks.append((make_block(inplanes, planes, stride), stride))
        inplanes = planes
    params['blocks'] = blocks

    fan_in = inplanes * 4 * 4
    std = 1.0 / (fan_in ** 0.5)
    params['mu_w'] = std * jax.random.normal(next(keys), (z_dim, inplanes, 4, 4), jnp.float32)
    params['mu_b'] = std * jax.random.normal(next(keys), (z_dim,), jnp.float32)
    params['var_w'] = std * jax.random.normal(next(keys), (z_dim, inplanes, 4, 4), jnp.float32)
    params['var_b'] = std * jax.random.normal(next(keys), (z_dim,), jnp.float32)
    return params


def resnet_forward(params, x, eps):
    # conv1 + GroupNorm + ReLU (one fused call)
    x = conv_gn(x, params['conv1_w'], params['bn1_g'], params['bn1_b'],
                stride=(2, 2, 2), pad=(1, 3, 3), relu=True)
    # layer1..layer3 (img_size=32 -> layer4/layer5 are skipped, as in the module)
    for p, stride in params['blocks']:
        x = basic_block(x, p, stride)
    # TODO(synk): torch does x.squeeze(2); the downsampled temporal dim is 1 for
    #             (img_size=32, T=8), so flattening (N, C, 1, 4, 4) is equivalent.
    flat = x.reshape(x.shape[0], -1)
    # TODO(synk): torch draws eps with FloatTensor(...).normal_().cuda(); here a
    #             deterministic jax.random.normal draw is passed in by the caller.
    return vae_head(flat, params['mu_w'], params['mu_b'],
                    params['var_w'], params['var_b'], eps)


# ----------------------------- main -----------------------------

if __name__ == "__main__":
    dic = {'img_size': 32, 'ENC_M_channels': [16, 16, 32, 32], 'z_dim': 16}
    key = jax.random.PRNGKey(0)
    k_param, k_x, k_eps = jax.random.split(key, 3)

    params = init_params(k_param, dic['ENC_M_channels'], dic['z_dim'])

    # Input video: (N=2, C=3, T=8, H=32, W=32) -> final feature (2, 32, 1, 4, 4)
    x = jax.random.normal(k_x, (2, 3, 8, dic['img_size'], dic['img_size']),
                          jnp.float32)
    eps = jax.random.normal(k_eps, (2, dic['z_dim']), jnp.float32)

    fwd = jax.jit(lambda xx, ee: resnet_forward(params, xx, ee))
    z, mu, logvar = fwd(x, eps)
    jax.block_until_ready((z, mu, logvar))

    assert z.shape == (2, dic['z_dim'])
    assert mu.shape == (2, dic['z_dim'])
    assert logvar.shape == (2, dic['z_dim'])
    assert bool(jnp.all(jnp.isfinite(z)))
    assert bool(jnp.all(jnp.isfinite(mu)))
    assert bool(jnp.all(jnp.isfinite(logvar)))
    print("KERNEL_OK")
</pallas_src>

<mosaic_0001>
module attributes {stable_mosaic.version = 11 : i64} {
  func.func @_conv_gn_kernel(%arg0: i32, %arg1: memref<1x441x1024xbf16, #tpu.memory_space<vmem>>, %arg2: memref<16x441xbf16, #tpu.memory_space<vmem>>, %arg3: memref<16x1xf32, #tpu.memory_space<vmem>>, %arg4: memref<16x1xf32, #tpu.memory_space<vmem>>, %arg5: memref<16x16xf32, #tpu.memory_space<vmem>>, %arg6: memref<16x16xf32, #tpu.memory_space<vmem>>, %arg7: memref<1x16x1024xf32, #tpu.memory_space<vmem>>) attributes {dimension_semantics = [#tpu.dimension_semantics<parallel>], iteration_bounds = array<i64: 2>, scalar_prefetch = 0 : i64, scratch_operands = 0 : i64, tpu.core_type = #tpu.core_type<tc>, window_params = [{transform_indices = @transform_0, window_bounds = array<i64: 1, 441, 1024>}, {pipeline_mode = #tpu.pipeline_mode<synchronous>, transform_indices = @transform_1, window_bounds = array<i64: 16, 441>}, {pipeline_mode = #tpu.pipeline_mode<synchronous>, transform_indices = @transform_2, window_bounds = array<i64: 16, 1>}, {pipeline_mode = #tpu.pipeline_mode<synchronous>, transform_indices = @transform_3, window_bounds = array<i64: 16, 1>}, {pipeline_mode = #tpu.pipeline_mode<synchronous>, transform_indices = @transform_4, window_bounds = array<i64: 16, 16>}, {pipeline_mode = #tpu.pipeline_mode<synchronous>, transform_indices = @transform_5, window_bounds = array<i64: 16, 16>}, {transform_indices = @transform_6, window_bounds = array<i64: 1, 16, 1024>}]} {
    %c0 = arith.constant 0 : index
    %c0_0 = arith.constant 0 : index
    %0 = vector.load %arg2[%c0, %c0_0] : memref<16x441xbf16, #tpu.memory_space<vmem>>, vector<16x441xbf16>
    %c0_1 = arith.constant 0 : index
    %c0_2 = arith.constant 0 : index
    %c0_3 = arith.constant 0 : index
    %1 = vector.load %arg1[%c0_1, %c0_2, %c0_3] : memref<1x441x1024xbf16, #tpu.memory_space<vmem>>, vector<1x441x1024xbf16>
    %2 = vector.shape_cast %1 : vector<1x441x1024xbf16> to vector<441x1024xbf16>
    %cst = arith.constant dense<0.000000e+00> : vector<16x1024xf32>
    %3 = tpu.matmul %0, %2, %cst {dimension_numbers = #tpu.dot_dimension_numbers<[1], [0], [0], [1], [0, 0, 1, 1], [], []>} : vector<16x441xbf16>, vector<441x1024xbf16>, vector<16x1024xf32> -> vector<16x1024xf32>
    %cst_4 = arith.constant dense<0.000000e+00> : vector<16xf32>
    %4 = vector.multi_reduction <add>, %3, %cst_4 [1] : vector<16x1024xf32> to vector<16xf32>
    %5 = vector.shape_cast %4 : vector<16xf32> to vector<16x1xf32>
    %6 = arith.mulf %3, %3 : vector<16x1024xf32>
    %cst_5 = arith.constant dense<0.000000e+00> : vector<16xf32>
    %7 = vector.multi_reduction <add>, %6, %cst_5 [1] : vector<16x1024xf32> to vector<16xf32>
    %8 = vector.shape_cast %7 : vector<16xf32> to vector<16x1xf32>
    %c0_6 = arith.constant 0 : index
    %c0_7 = arith.constant 0 : index
    %9 = vector.load %arg5[%c0_6, %c0_7] : memref<16x16xf32, #tpu.memory_space<vmem>>, vector<16x16xf32>
    %cst_8 = arith.constant dense<0.000000e+00> : vector<16x1xf32>
    %10 = tpu.matmul %9, %5, %cst_8 {dimension_numbers = #tpu.dot_dimension_numbers<[1], [0], [0], [1], [0, 0, 1, 1], [], []>} : vector<16x16xf32>, vector<16x1xf32>, vector<16x1xf32> -> vector<16x1xf32>
    %cst_9 = arith.constant 9.765625E-4 : f32
    %11 = vector.broadcast %cst_9 : f32 to vector<16x1xf32>
    %12 = arith.mulf %10, %11 : vector<16x1xf32>
    %c0_10 = arith.constant 0 : index
    %c0_11 = arith.constant 0 : index
    %13 = vector.load %arg5[%c0_10, %c0_11] : memref<16x16xf32, #tpu.memory_space<vmem>>, vector<16x16xf32>
    %cst_12 = arith.constant dense<0.000000e+00> : vector<16x1xf32>
    %14 = tpu.matmul %13, %8, %cst_12 {dimension_numbers = #tpu.dot_dimension_numbers<[1], [0], [0], [1], [0, 0, 1, 1], [], []>} : vector<16x16xf32>, vector<16x1xf32>, vector<16x1xf32> -> vector<16x1xf32>
    %cst_13 = arith.constant 9.765625E-4 : f32
    %15 = vector.broadcast %cst_13 : f32 to vector<16x1xf32>
    %16 = arith.mulf %14, %15 : vector<16x1xf32>
    %17 = arith.mulf %12, %12 : vector<16x1xf32>
    %18 = arith.subf %16, %17 : vector<16x1xf32>
    %cst_14 = arith.constant 0.000000e+00 : f32
    %19 = vector.broadcast %cst_14 : f32 to vector<16x1xf32>
    %20 = arith.maximumf %18, %19 : vector<16x1xf32>
    %cst_15 = arith.constant 9.99999974E-6 : f32
    %21 = vector.broadcast %cst_15 : f32 to vector<16x1xf32>
    %22 = arith.addf %20, %21 : vector<16x1xf32>
    %23 = math.rsqrt %22 : vector<16x1xf32>
    %c0_16 = arith.constant 0 : index
    %c0_17 = arith.constant 0 : index
    %24 = vector.load %arg6[%c0_16, %c0_17] : memref<16x16xf32, #tpu.memory_space<vmem>>, vector<16x16xf32>
    %cst_18 = arith.constant dense<0.000000e+00> : vector<16x1xf32>
    %25 = tpu.matmul %24, %12, %cst_18 {dimension_numbers = #tpu.dot_dimension_numbers<[1], [0], [0], [1], [0, 0, 1, 1], [], []>} : vector<16x16xf32>, vector<16x1xf32>, vector<16x1xf32> -> vector<16x1xf32>
    %c0_19 = arith.constant 0 : index
    %c0_20 = arith.constant 0 : index
    %26 = vector.load %arg6[%c0_19, %c0_20] : memref<16x16xf32, #tpu.memory_space<vmem>>, vector<16x16xf32>
    %cst_21 = arith.constant dense<0.000000e+00> : vector<16x1xf32>
    %27 = tpu.matmul %26, %23, %cst_21 {dimension_numbers = #tpu.dot_dimension_numbers<[1], [0], [0], [1], [0, 0, 1, 1], [], []>} : vector<16x16xf32>, vector<16x1xf32>, vector<16x1xf32> -> vector<16x1xf32>
    %c0_22 = arith.constant 0 : index
    %c0_23 = arith.constant 0 : index
    %28 = vector.load %arg3[%c0_22, %c0_23] : memref<16x1xf32, #tpu.memory_space<vmem>>, vector<16x1xf32>
    %29 = arith.mulf %27, %28 : vector<16x1xf32>
    %c0_24 = arith.constant 0 : index
    %c0_25 = arith.constant 0 : index
    %30 = vector.load %arg4[%c0_24, %c0_25] : memref<16x1xf32, #tpu.memory_space<vmem>>, vector<16x1xf32>
    %31 = arith.mulf %25, %29 : vector<16x1xf32>
    %32 = arith.subf %30, %31 : vector<16x1xf32>
    %33 = vector.broadcast %29 : vector<16x1xf32> to vector<16x1024xf32>
    %34 = arith.mulf %3, %33 : vector<16x1024xf32>
    %35 = vector.broadcast %32 : vector<16x1xf32> to vector<16x1024xf32>
    %36 = arith.addf %34, %35 : vector<16x1024xf32>
    %cst_26 = arith.constant 0.000000e+00 : f32
    %37 = vector.broadcast %cst_26 : f32 to vector<16x1024xf32>
    %38 = arith.maximumf %36, %37 : vector<16x1024xf32>
    %c0_27 = arith.constant 0 : index
    %c0_28 = arith.constant 0 : index
    %c0_29 = arith.constant 0 : index
    %39 = vector.load %arg7[%c0_27, %c0_28, %c0_29] : memref<1x16x1024xf32, #tpu.memory_space<vmem>>, vector<1x16x1024xf32>
    %40 = vector.shape_cast %39 : vector<1x16x1024xf32> to vector<16x1024xf32>
    %41 = vector.shape_cast %38 : vector<16x1024xf32> to vector<1x16x1024xf32>
    tpu.vector_store %arg7[%c0_27, %c0_28, %c0_29], %41 {strides = array<i32>} : memref<1x16x1024xf32, #tpu.memory_space<vmem>>, vector<1x16x1024xf32>,
    return
  }
  func.func @transform_0(%arg0: i32) -> (i32, i32, i32) {
    %c0_i32 = arith.constant 0 : i32
    %c0_i32_0 = arith.constant 0 : i32
    %c0_i32_1 = arith.constant 0 : i32
    return %arg0, %c0_i32, %c0_i32_0 : i32, i32, i32
  }
  func.func @transform_1(%arg0: i32) -> (i32, i32) {
    %c0_i32 = arith.constant 0 : i32
    %c0_i32_0 = arith.constant 0 : i32
    %c0_i32_1 = arith.constant 0 : i32
    return %c0_i32, %c0_i32_0 : i32, i32
  }
  func.func @transform_2(%arg0: i32) -> (i32, i32) {
    %c0_i32 = arith.constant 0 : i32
    %c0_i32_0 = arith.constant 0 : i32
    %c0_i32_1 = arith.constant 0 : i32
    return %c0_i32, %c0_i32_0 : i32, i32
  }
  func.func @transform_3(%arg0: i32) -> (i32, i32) {
    %c0_i32 = arith.constant 0 : i32
    %c0_i32_0 = arith.constant 0 : i32
    %c0_i32_1 = arith.constant 0 : i32
    return %c0_i32, %c0_i32_0 : i32, i32
  }
  func.func @transform_4(%arg0: i32) -> (i32, i32) {
    %c0_i32 = arith.constant 0 : i32
    %c0_i32_0 = arith.constant 0 : i32
    %c0_i32_1 = arith.constant 0 : i32
    return %c0_i32, %c0_i32_0 : i32, i32
  }
  func.func @transform_5(%arg0: i32) -> (i32, i32) {
    %c0_i32 = arith.constant 0 : i32
    %c0_i32_0 = arith.constant 0 : i32
    %c0_i32_1 = arith.constant 0 : i32
    return %c0_i32, %c0_i32_0 : i32, i32
  }
  func.func @transform_6(%arg0: i32) -> (i32, i32, i32) {
    %c0_i32 = arith.constant 0 : i32
    %c0_i32_0 = arith.constant 0 : i32
    %c0_i32_1 = arith.constant 0 : i32
    return %arg0, %c0_i32, %c0_i32_0 : i32, i32, i32
  }
}

module attributes {stable_mosaic.version = 11 : i64} {
  func.func @_conv_gn_kernel(%arg0: i32, %arg1: memref<1x432x1024xbf16, #tpu.memory_space<vmem>>, %arg2: memref<16x432xbf16, #tpu.memory_space<vmem>>, %arg3: memref<16x1xf32, #tpu.memory_space<vmem>>, %arg4: memref<16x1xf32, #tpu.memory_space<vmem>>, %arg5: memref<16x16xf32, #tpu.memory_space<vmem>>, %arg6: memref<16x16xf32, #tpu.memory_space<vmem>>, %arg7: memref<1x16x1024xf32, #tpu.memory_space<vmem>>) attributes {dimension_semantics = [#tpu.dimension_semantics<parallel>], iteration_bounds = array<i64: 2>, scalar_prefetch = 0 : i64, scratch_operands = 0 : i64, tpu.core_type = #tpu.core_type<tc>, window_params = [{transform_indices = @transform_0, window_bounds = array<i64: 1, 432, 1024>}, {pipeline_mode = #tpu.pipeline_mode<synchronous>, transform_indices = @transform_1, window_bounds = array<i64: 16, 432>}, {pipeline_mode = #tpu.pipeline_mode<synchronous>, transform_indices = @transform_2, window_bounds = array<i64: 16, 1>}, {pipeline_mode = #tpu.pipeline_mode<synchronous>, transform_indices = @transform_3, window_bounds = array<i64: 16, 1>}, {pipeline_mode = #tpu.pipeline_mode<synchronous>, transform_indices = @transform_4, window_bounds = array<i64: 16, 16>}, {pipeline_mode = #tpu.pipeline_mode<synchronous>, transform_indices = @transform_5, window_bounds = array<i64: 16, 16>}, {transform_indices = @transform_6, window_bounds = array<i64: 1, 16, 1024>}]} {
    %c0 = arith.constant 0 : index
    %c0_0 = arith.constant 0 : index
    %0 = vector.load %arg2[%c0, %c0_0] : memref<16x432xbf16, #tpu.memory_space<vmem>>, vector<16x432xbf16>
    %c0_1 = arith.constant 0 : index
    %c0_2 = arith.constant 0 : index
    %c0_3 = arith.constant 0 : index
    %1 = vector.load %arg1[%c0_1, %c0_2, %c0_3] : memref<1x432x1024xbf16, #tpu.memory_space<vmem>>, vector<1x432x1024xbf16>
    %2 = vector.shape_cast %1 : vector<1x432x1024xbf16> to vector<432x1024xbf16>
    %cst = arith.constant dense<0.000000e+00> : vector<16x1024xf32>
    %3 = tpu.matmul %0, %2, %cst {dimension_numbers = #tpu.dot_dimension_numbers<[1], [0], [0], [1], [0, 0, 1, 1], [], []>} : vector<16x432xbf16>, vector<432x1024xbf16>, vector<16x1024xf32> -> vector<16x1024xf32>
    %cst_4 = arith.constant dense<0.000000e+00> : vector<16xf32>
    %4 = vector.multi_reduction <add>, %3, %cst_4 [1] : vector<16x1024xf32> to vector<16xf32>
    %5 = vector.shape_cast %4 : vector<16xf32> to vector<16x1xf32>
    %6 = arith.mulf %3, %3 : vector<16x1024xf32>
    %cst_5 = arith.constant dense<0.000000e+00> : vector<16xf32>
    %7 = vector.multi_reduction <add>, %6, %cst_5 [1] : vector<16x1024xf32> to vector<16xf32>
    %8 = vector.shape_cast %7 : vector<16xf32> to vector<16x1xf32>
    %c0_6 = arith.constant 0 : index
    %c0_7 = arith.constant 0 : index
    %9 = vector.load %arg5[%c0_6, %c0_7] : memref<16x16xf32, #tpu.memory_space<vmem>>, vector<16x16xf32>
    %cst_8 = arith.constant dense<0.000000e+00> : vector<16x1xf32>
    %10 = tpu.matmul %9, %5, %cst_8 {dimension_numbers = #tpu.dot_dimension_numbers<[1], [0], [0], [1], [0, 0, 1, 1], [], []>} : vector<16x16xf32>, vector<16x1xf32>, vector<16x1xf32> -> vector<16x1xf32>
    %cst_9 = arith.constant 9.765625E-4 : f32
    %11 = vector.broadcast %cst_9 : f32 to vector<16x1xf32>
    %12 = arith.mulf %10, %11 : vector<16x1xf32>
    %c0_10 = arith.constant 0 : index
    %c0_11 = arith.constant 0 : index
    %13 = vector.load %arg5[%c0_10, %c0_11] : memref<16x16xf32, #tpu.memory_space<vmem>>, vector<16x16xf32>
    %cst_12 = arith.constant dense<0.000000e+00> : vector<16x1xf32>
    %14 = tpu.matmul %13, %8, %cst_12 {dimension_numbers = #tpu.dot_dimension_numbers<[1], [0], [0], [1], [0, 0, 1, 1], [], []>} : vector<16x16xf32>, vector<16x1xf32>, vector<16x1xf32> -> vector<16x1xf32>
    %cst_13 = arith.constant 9.765625E-4 : f32
    %15 = vector.broadcast %cst_13 : f32 to vector<16x1xf32>
    %16 = arith.mulf %14, %15 : vector<16x1xf32>
    %17 = arith.mulf %12, %12 : vector<16x1xf32>
    %18 = arith.subf %16, %17 : vector<16x1xf32>
    %cst_14 = arith.constant 0.000000e+00 : f32
    %19 = vector.broadcast %cst_14 : f32 to vector<16x1xf32>
    %20 = arith.maximumf %18, %19 : vector<16x1xf32>
    %cst_15 = arith.constant 9.99999974E-6 : f32
    %21 = vector.broadcast %cst_15 : f32 to vector<16x1xf32>
    %22 = arith.addf %20, %21 : vector<16x1xf32>
    %23 = math.rsqrt %22 : vector<16x1xf32>
    %c0_16 = arith.constant 0 : index
    %c0_17 = arith.constant 0 : index
    %24 = vector.load %arg6[%c0_16, %c0_17] : memref<16x16xf32, #tpu.memory_space<vmem>>, vector<16x16xf32>
    %cst_18 = arith.constant dense<0.000000e+00> : vector<16x1xf32>
    %25 = tpu.matmul %24, %12, %cst_18 {dimension_numbers = #tpu.dot_dimension_numbers<[1], [0], [0], [1], [0, 0, 1, 1], [], []>} : vector<16x16xf32>, vector<16x1xf32>, vector<16x1xf32> -> vector<16x1xf32>
    %c0_19 = arith.constant 0 : index
    %c0_20 = arith.constant 0 : index
    %26 = vector.load %arg6[%c0_19, %c0_20] : memref<16x16xf32, #tpu.memory_space<vmem>>, vector<16x16xf32>
    %cst_21 = arith.constant dense<0.000000e+00> : vector<16x1xf32>
    %27 = tpu.matmul %26, %23, %cst_21 {dimension_numbers = #tpu.dot_dimension_numbers<[1], [0], [0], [1], [0, 0, 1, 1], [], []>} : vector<16x16xf32>, vector<16x1xf32>, vector<16x1xf32> -> vector<16x1xf32>
    %c0_22 = arith.constant 0 : index
    %c0_23 = arith.constant 0 : index
    %28 = vector.load %arg3[%c0_22, %c0_23] : memref<16x1xf32, #tpu.memory_space<vmem>>, vector<16x1xf32>
    %29 = arith.mulf %27, %28 : vector<16x1xf32>
    %c0_24 = arith.constant 0 : index
    %c0_25 = arith.constant 0 : index
    %30 = vector.load %arg4[%c0_24, %c0_25] : memref<16x1xf32, #tpu.memory_space<vmem>>, vector<16x1xf32>
    %31 = arith.mulf %25, %29 : vector<16x1xf32>
    %32 = arith.subf %30, %31 : vector<16x1xf32>
    %33 = vector.broadcast %29 : vector<16x1xf32> to vector<16x1024xf32>
    %34 = arith.mulf %3, %33 : vector<16x1024xf32>
    %35 = vector.broadcast %32 : vector<16x1xf32> to vector<16x1024xf32>
    %36 = arith.addf %34, %35 : vector<16x1024xf32>
    %cst_26 = arith.constant 0.000000e+00 : f32
    %37 = vector.broadcast %cst_26 : f32 to vector<16x1024xf32>
    %38 = arith.maximumf %36, %37 : vector<16x1024xf32>
    %c0_27 = arith.constant 0 : index
    %c0_28 = arith.constant 0 : index
    %c0_29 = arith.constant 0 : index
    %39 = vector.load %arg7[%c0_27, %c0_28, %c0_29] : memref<1x16x1024xf32, #tpu.memory_space<vmem>>, vector<1x16x1024xf32>
    %40 = vector.shape_cast %39 : vector<1x16x1024xf32> to vector<16x1024xf32>
    %41 = vector.shape_cast %38 : vector<16x1024xf32> to vector<1x16x1024xf32>
    tpu.vector_store %arg7[%c0_27, %c0_28, %c0_29], %41 {strides = array<i32>} : memref<1x16x1024xf32, #tpu.memory_space<vmem>>, vector<1x16x1024xf32>,
    return
  }
  func.func @transform_0(%arg0: i32) -> (i32, i32, i32) {
    %c0_i32 = arith.constant 0 : i32
    %c0_i32_0 = arith.constant 0 : i32
    %c0_i32_1 = arith.constant 0 : i32
    return %arg0, %c0_i32, %c0_i32_0 : i32, i32, i32
  }
  func.func @transform_1(%arg0: i32) -> (i32, i32) {
    %c0_i32 = arith.constant 0 : i32
    %c0_i32_0 = arith.constant 0 : i32
    %c0_i32_1 = arith.constant 0 : i32
    return %c0_i32, %c0_i32_0 : i32, i32
  }
  func.func @transform_2(%arg0: i32) -> (i32, i32) {
    %c0_i32 = arith.constant 0 : i32
    %c0_i32_0 = arith.constant 0 : i32
    %c0_i32_1 = arith.constant 0 : i32
    return %c0_i32, %c0_i32_0 : i32, i32
  }
  func.func @transform_3(%arg0: i32) -> (i32, i32) {
    %c0_i32 = arith.constant 0 : i32
    %c0_i32_0 = arith.constant 0 : i32
    %c0_i32_1 = arith.constant 0 : i32
    return %c0_i32, %c0_i32_0 : i32, i32
  }
  func.func @transform_4(%arg0: i32) -> (i32, i32) {
    %c0_i32 = arith.constant 0 : i32
    %c0_i32_0 = arith.constant 0 : i32
    %c0_i32_1 = arith.constant 0 : i32
    return %c0_i32, %c0_i32_0 : i32, i32
  }
  func.func @transform_5(%arg0: i32) -> (i32, i32) {
    %c0_i32 = arith.constant 0 : i32
    %c0_i32_0 = arith.constant 0 : i32
    %c0_i32_1 = arith.constant 0 : i32
    return %c0_i32, %c0_i32_0 : i32, i32
  }
  func.func @transform_6(%arg0: i32) -> (i32, i32, i32) {
    %c0_i32 = arith.constant 0 : i32
    %c0_i32_0 = arith.constant 0 : i32
    %c0_i32_1 = arith.constant 0 : i32
    return %arg0, %c0_i32, %c0_i32_0 : i32, i32, i32
  }
}

module attributes {stable_mosaic.version = 11 : i64} {
  func.func @_conv_gn_kernel(%arg0: i32, %arg1: memref<1x432x1024xbf16, #tpu.memory_space<vmem>>, %arg2: memref<16x432xbf16, #tpu.memory_space<vmem>>, %arg3: memref<16x1xf32, #tpu.memory_space<vmem>>, %arg4: memref<16x1xf32, #tpu.memory_space<vmem>>, %arg5: memref<16x16xf32, #tpu.memory_space<vmem>>, %arg6: memref<16x16xf32, #tpu.memory_space<vmem>>, %arg7: memref<1x16x1024xf32, #tpu.memory_space<vmem>>, %arg8: memref<1x16x1024xf32, #tpu.memory_space<vmem>>) attributes {dimension_semantics = [#tpu.dimension_semantics<parallel>], iteration_bounds = array<i64: 2>, scalar_prefetch = 0 : i64, scratch_operands = 0 : i64, tpu.core_type = #tpu.core_type<tc>, window_params = [{transform_indices = @transform_0, window_bounds = array<i64: 1, 432, 1024>}, {pipeline_mode = #tpu.pipeline_mode<synchronous>, transform_indices = @transform_1, window_bounds = array<i64: 16, 432>}, {pipeline_mode = #tpu.pipeline_mode<synchronous>, transform_indices = @transform_2, window_bounds = array<i64: 16, 1>}, {pipeline_mode = #tpu.pipeline_mode<synchronous>, transform_indices = @transform_3, window_bounds = array<i64: 16, 1>}, {pipeline_mode = #tpu.pipeline_mode<synchronous>, transform_indices = @transform_4, window_bounds = array<i64: 16, 16>}, {pipeline_mode = #tpu.pipeline_mode<synchronous>, transform_indices = @transform_5, window_bounds = array<i64: 16, 16>}, {transform_indices = @transform_6, window_bounds = array<i64: 1, 16, 1024>}, {transform_indices = @transform_7, window_bounds = array<i64: 1, 16, 1024>}]} {
    %c0 = arith.constant 0 : index
    %c0_0 = arith.constant 0 : index
    %0 = vector.load %arg2[%c0, %c0_0] : memref<16x432xbf16, #tpu.memory_space<vmem>>, vector<16x432xbf16>
    %c0_1 = arith.constant 0 : index
    %c0_2 = arith.constant 0 : index
    %c0_3 = arith.constant 0 : index
    %1 = vector.load %arg1[%c0_1, %c0_2, %c0_3] : memref<1x432x1024xbf16, #tpu.memory_space<vmem>>, vector<1x432x1024xbf16>
    %2 = vector.shape_cast %1 : vector<1x432x1024xbf16> to vector<432x1024xbf16>
    %cst = arith.constant dense<0.000000e+00> : vector<16x1024xf32>
    %3 = tpu.matmul %0, %2, %cst {dimension_numbers = #tpu.dot_dimension_numbers<[1], [0], [0], [1], [0, 0, 1, 1], [], []>} : vector<16x432xbf16>, vector<432x1024xbf16>, vector<16x1024xf32> -> vector<16x1024xf32>
    %cst_4 = arith.constant dense<0.000000e+00> : vector<16xf32>
    %4 = vector.multi_reduction <add>, %3, %cst_4 [1] : vector<16x1024xf32> to vector<16xf32>
    %5 = vector.shape_cast %4 : vector<16xf32> to vector<16x1xf32>
    %6 = arith.mulf %3, %3 : vector<16x1024xf32>
    %cst_5 = arith.constant dense<0.000000e+00> : vector<16xf32>
    %7 = vector.multi_reduction <add>, %6, %cst_5 [1] : vector<16x1024xf32> to vector<16xf32>
    %8 = vector.shape_cast %7 : vector<16xf32> to vector<16x1xf32>
    %c0_6 = arith.constant 0 : index
    %c0_7 = arith.constant 0 : index
    %9 = vector.load %arg5[%c0_6, %c0_7] : memref<16x16xf32, #tpu.memory_space<vmem>>, vector<16x16xf32>
    %cst_8 = arith.constant dense<0.000000e+00> : vector<16x1xf32>
    %10 = tpu.matmul %9, %5, %cst_8 {dimension_numbers = #tpu.dot_dimension_numbers<[1], [0], [0], [1], [0, 0, 1, 1], [], []>} : vector<16x16xf32>, vector<16x1xf32>, vector<16x1xf32> -> vector<16x1xf32>
    %cst_9 = arith.constant 9.765625E-4 : f32
    %11 = vector.broadcast %cst_9 : f32 to vector<16x1xf32>
    %12 = arith.mulf %10, %11 : vector<16x1xf32>
    %c0_10 = arith.constant 0 : index
    %c0_11 = arith.constant 0 : index
    %13 = vector.load %arg5[%c0_10, %c0_11] : memref<16x16xf32, #tpu.memory_space<vmem>>, vector<16x16xf32>
    %cst_12 = arith.constant dense<0.000000e+00> : vector<16x1xf32>
    %14 = tpu.matmul %13, %8, %cst_12 {dimension_numbers = #tpu.dot_dimension_numbers<[1], [0], [0], [1], [0, 0, 1, 1], [], []>} : vector<16x16xf32>, vector<16x1xf32>, vector<16x1xf32> -> vector<16x1xf32>
    %cst_13 = arith.constant 9.765625E-4 : f32
    %15 = vector.broadcast %cst_13 : f32 to vector<16x1xf32>
    %16 = arith.mulf %14, %15 : vector<16x1xf32>
    %17 = arith.mulf %12, %12 : vector<16x1xf32>
    %18 = arith.subf %16, %17 : vector<16x1xf32>
    %cst_14 = arith.constant 0.000000e+00 : f32
    %19 = vector.broadcast %cst_14 : f32 to vector<16x1xf32>
    %20 = arith.maximumf %18, %19 : vector<16x1xf32>
    %cst_15 = arith.constant 9.99999974E-6 : f32
    %21 = vector.broadcast %cst_15 : f32 to vector<16x1xf32>
    %22 = arith.addf %20, %21 : vector<16x1xf32>
    %23 = math.rsqrt %22 : vector<16x1xf32>
    %c0_16 = arith.constant 0 : index
    %c0_17 = arith.constant 0 : index
    %24 = vector.load %arg6[%c0_16, %c0_17] : memref<16x16xf32, #tpu.memory_space<vmem>>, vector<16x16xf32>
    %cst_18 = arith.constant dense<0.000000e+00> : vector<16x1xf32>
    %25 = tpu.matmul %24, %12, %cst_18 {dimension_numbers = #tpu.dot_dimension_numbers<[1], [0], [0], [1], [0, 0, 1, 1], [], []>} : vector<16x16xf32>, vector<16x1xf32>, vector<16x1xf32> -> vector<16x1xf32>
    %c0_19 = arith.constant 0 : index
    %c0_20 = arith.constant 0 : index
    %26 = vector.load %arg6[%c0_19, %c0_20] : memref<16x16xf32, #tpu.memory_space<vmem>>, vector<16x16xf32>
    %cst_21 = arith.constant dense<0.000000e+00> : vector<16x1xf32>
    %27 = tpu.matmul %26, %23, %cst_21 {dimension_numbers = #tpu.dot_dimension_numbers<[1], [0], [0], [1], [0, 0, 1, 1], [], []>} : vector<16x16xf32>, vector<16x1xf32>, vector<16x1xf32> -> vector<16x1xf32>
    %c0_22 = arith.constant 0 : index
    %c0_23 = arith.constant 0 : index
    %28 = vector.load %arg3[%c0_22, %c0_23] : memref<16x1xf32, #tpu.memory_space<vmem>>, vector<16x1xf32>
    %29 = arith.mulf %27, %28 : vector<16x1xf32>
    %c0_24 = arith.constant 0 : index
    %c0_25 = arith.constant 0 : index
    %30 = vector.load %arg4[%c0_24, %c0_25] : memref<16x1xf32, #tpu.memory_space<vmem>>, vector<16x1xf32>
    %31 = arith.mulf %25, %29 : vector<16x1xf32>
    %32 = arith.subf %30, %31 : vector<16x1xf32>
    %33 = vector.broadcast %29 : vector<16x1xf32> to vector<16x1024xf32>
    %34 = arith.mulf %3, %33 : vector<16x1024xf32>
    %35 = vector.broadcast %32 : vector<16x1xf32> to vector<16x1024xf32>
    %36 = arith.addf %34, %35 : vector<16x1024xf32>
    %c0_26 = arith.constant 0 : index
    %c0_27 = arith.constant 0 : index
    %c0_28 = arith.constant 0 : index
    %37 = vector.load %arg7[%c0_26, %c0_27, %c0_28] : memref<1x16x1024xf32, #tpu.memory_space<vmem>>, vector<1x16x1024xf32>
    %38 = vector.shape_cast %37 : vector<1x16x1024xf32> to vector<16x1024xf32>
    %39 = arith.addf %36, %38 : vector<16x1024xf32>
    %cst_29 = arith.constant 0.000000e+00 : f32
    %40 = vector.broadcast %cst_29 : f32 to vector<16x1024xf32>
    %41 = arith.maximumf %39, %40 : vector<16x1024xf32>
    %c0_30 = arith.constant 0 : index
    %c0_31 = arith.constant 0 : index
    %c0_32 = arith.constant 0 : index
    %42 = vector.load %arg8[%c0_30, %c0_31, %c0_32] : memref<1x16x1024xf32, #tpu.memory_space<vmem>>, vector<1x16x1024xf32>
    %43 = vector.shape_cast %42 : vector<1x16x1024xf32> to vector<16x1024xf32>
    %44 = vector.shape_cast %41 : vector<16x1024xf32> to vector<1x16x1024xf32>
    tpu.vector_store %arg8[%c0_30, %c0_31, %c0_32], %44 {strides = array<i32>} : memref<1x16x1024xf32, #tpu.memory_space<vmem>>, vector<1x16x1024xf32>,
    return
  }
  func.func @transform_0(%arg0: i32) -> (i32, i32, i32) {
    %c0_i32 = arith.constant 0 : i32
    %c0_i32_0 = arith.constant 0 : i32
    %c0_i32_1 = arith.constant 0 : i32
    return %arg0, %c0_i32, %c0_i32_0 : i32, i32, i32
  }
  func.func @transform_1(%arg0: i32) -> (i32, i32) {
    %c0_i32 = arith.constant 0 : i32
    %c0_i32_0 = arith.constant 0 : i32
    %c0_i32_1 = arith.constant 0 : i32
    return %c0_i32, %c0_i32_0 : i32, i32
  }
  func.func @transform_2(%arg0: i32) -> (i32, i32) {
    %c0_i32 = arith.constant 0 : i32
    %c0_i32_0 = arith.constant 0 : i32
    %c0_i32_1 = arith.constant 0 : i32
    return %c0_i32, %c0_i32_0 : i32, i32
  }
  func.func @transform_3(%arg0: i32) -> (i32, i32) {
    %c0_i32 = arith.constant 0 : i32
    %c0_i32_0 = arith.constant 0 : i32
    %c0_i32_1 = arith.constant 0 : i32
    return %c0_i32, %c0_i32_0 : i32, i32
  }
  func.func @transform_4(%arg0: i32) -> (i32, i32) {
    %c0_i32 = arith.constant 0 : i32
    %c0_i32_0 = arith.constant 0 : i32
    %c0_i32_1 = arith.constant 0 : i32
    return %c0_i32, %c0_i32_0 : i32, i32
  }
  func.func @transform_5(%arg0: i32) -> (i32, i32) {
    %c0_i32 = arith.constant 0 : i32
    %c0_i32_0 = arith.constant 0 : i32
    %c0_i32_1 = arith.constant 0 : i32
    return %c0_i32, %c0_i32_0 : i32, i32
  }
  func.func @transform_6(%arg0: i32) -> (i32, i32, i32) {
    %c0_i32 = arith.constant 0 : i32
    %c0_i32_0 = arith.constant 0 : i32
    %c0_i32_1 = arith.constant 0 : i32
    return %arg0, %c0_i32, %c0_i32_0 : i32, i32, i32
  }
  func.func @transform_7(%arg0: i32) -> (i32, i32, i32) {
    %c0_i32 = arith.constant 0 : i32
    %c0_i32_0 = arith.constant 0 : i32
    %c0_i32_1 = arith.constant 0 : i32
    return %arg0, %c0_i32, %c0_i32_0 : i32, i32, i32
  }
}

module attributes {stable_mosaic.version = 11 : i64} {
  func.func @_conv_gn_kernel(%arg0: i32, %arg1: memref<1x432x128xbf16, #tpu.memory_space<vmem>>, %arg2: memref<32x432xbf16, #tpu.memory_space<vmem>>, %arg3: memref<32x1xf32, #tpu.memory_space<vmem>>, %arg4: memref<32x1xf32, #tpu.memory_space<vmem>>, %arg5: memref<16x32xf32, #tpu.memory_space<vmem>>, %arg6: memref<32x16xf32, #tpu.memory_space<vmem>>, %arg7: memref<1x32x128xf32, #tpu.memory_space<vmem>>) attributes {dimension_semantics = [#tpu.dimension_semantics<parallel>], iteration_bounds = array<i64: 2>, scalar_prefetch = 0 : i64, scratch_operands = 0 : i64, tpu.core_type = #tpu.core_type<tc>, window_params = [{transform_indices = @transform_0, window_bounds = array<i64: 1, 432, 128>}, {pipeline_mode = #tpu.pipeline_mode<synchronous>, transform_indices = @transform_1, window_bounds = array<i64: 32, 432>}, {pipeline_mode = #tpu.pipeline_mode<synchronous>, transform_indices = @transform_2, window_bounds = array<i64: 32, 1>}, {pipeline_mode = #tpu.pipeline_mode<synchronous>, transform_indices = @transform_3, window_bounds = array<i64: 32, 1>}, {pipeline_mode = #tpu.pipeline_mode<synchronous>, transform_indices = @transform_4, window_bounds = array<i64: 16, 32>}, {pipeline_mode = #tpu.pipeline_mode<synchronous>, transform_indices = @transform_5, window_bounds = array<i64: 32, 16>}, {transform_indices = @transform_6, window_bounds = array<i64: 1, 32, 128>}]} {
    %c0 = arith.constant 0 : index
    %c0_0 = arith.constant 0 : index
    %0 = vector.load %arg2[%c0, %c0_0] : memref<32x432xbf16, #tpu.memory_space<vmem>>, vector<32x432xbf16>
    %c0_1 = arith.constant 0 : index
    %c0_2 = arith.constant 0 : index
    %c0_3 = arith.constant 0 : index
    %1 = vector.load %arg1[%c0_1, %c0_2, %c0_3] : memref<1x432x128xbf16, #tpu.memory_space<vmem>>, vector<1x432x128xbf16>
    %2 = vector.shape_cast %1 : vector<1x432x128xbf16> to vector<432x128xbf16>
    %cst = arith.constant dense<0.000000e+00> : vector<32x128xf32>
    %3 = tpu.matmul %0, %2, %cst {dimension_numbers = #tpu.dot_dimension_numbers<[1], [0], [0], [1], [0, 0, 1, 1], [], []>} : vector<32x432xbf16>, vector<432x128xbf16>, vector<32x128xf32> -> vector<32x128xf32>
    %cst_4 = arith.constant dense<0.000000e+00> : vector<32xf32>
    %4 = vector.multi_reduction <add>, %3, %cst_4 [1] : vector<32x128xf32> to vector<32xf32>
    %5 = vector.shape_cast %4 : vector<32xf32> to vector<32x1xf32>
    %6 = arith.mulf %3, %3 : vector<32x128xf32>
    %cst_5 = arith.constant dense<0.000000e+00> : vector<32xf32>
    %7 = vector.multi_reduction <add>, %6, %cst_5 [1] : vector<32x128xf32> to vector<32xf32>
    %8 = vector.shape_cast %7 : vector<32xf32> to vector<32x1xf32>
    %c0_6 = arith.constant 0 : index
    %c0_7 = arith.constant 0 : index
    %9 = vector.load %arg5[%c0_6, %c0_7] : memref<16x32xf32, #tpu.memory_space<vmem>>, vector<16x32xf32>
    %cst_8 = arith.constant dense<0.000000e+00> : vector<16x1xf32>
    %10 = tpu.matmul %9, %5, %cst_8 {dimension_numbers = #tpu.dot_dimension_numbers<[1], [0], [0], [1], [0, 0, 1, 1], [], []>} : vector<16x32xf32>, vector<32x1xf32>, vector<16x1xf32> -> vector<16x1xf32>
    %cst_9 = arith.constant 3.906250e-03 : f32
    %11 = vector.broadcast %cst_9 : f32 to vector<16x1xf32>
    %12 = arith.mulf %10, %11 : vector<16x1xf32>
    %c0_10 = arith.constant 0 : index
    %c0_11 = arith.constant 0 : index
    %13 = vector.load %arg5[%c0_10, %c0_11] : memref<16x32xf32, #tpu.memory_space<vmem>>, vector<16x32xf32>
    %cst_12 = arith.constant dense<0.000000e+00> : vector<16x1xf32>
    %14 = tpu.matmul %13, %8, %cst_12 {dimension_numbers = #tpu.dot_dimension_numbers<[1], [0], [0], [1], [0, 0, 1, 1], [], []>} : vector<16x32xf32>, vector<32x1xf32>, vector<16x1xf32> -> vector<16x1xf32>
    %cst_13 = arith.constant 3.906250e-03 : f32
    %15 = vector.broadcast %cst_13 : f32 to vector<16x1xf32>
    %16 = arith.mulf %14, %15 : vector<16x1xf32>
    %17 = arith.mulf %12, %12 : vector<16x1xf32>
    %18 = arith.subf %16, %17 : vector<16x1xf32>
    %cst_14 = arith.constant 0.000000e+00 : f32
    %19 = vector.broadcast %cst_14 : f32 to vector<16x1xf32>
    %20 = arith.maximumf %18, %19 : vector<16x1xf32>
    %cst_15 = arith.constant 9.99999974E-6 : f32
    %21 = vector.broadcast %cst_15 : f32 to vector<16x1xf32>
    %22 = arith.addf %20, %21 : vector<16x1xf32>
    %23 = math.rsqrt %22 : vector<16x1xf32>
    %c0_16 = arith.constant 0 : index
    %c0_17 = arith.constant 0 : index
    %24 = vector.load %arg6[%c0_16, %c0_17] : memref<32x16xf32, #tpu.memory_space<vmem>>, vector<32x16xf32>
    %cst_18 = arith.constant dense<0.000000e+00> : vector<32x1xf32>
    %25 = tpu.matmul %24, %12, %cst_18 {dimension_numbers = #tpu.dot_dimension_numbers<[1], [0], [0], [1], [0, 0, 1, 1], [], []>} : vector<32x16xf32>, vector<16x1xf32>, vector<32x1xf32> -> vector<32x1xf32>
    %c0_19 = arith.constant 0 : index
    %c0_20 = arith.constant 0 : index
    %26 = vector.load %arg6[%c0_19, %c0_20] : memref<32x16xf32, #tpu.memory_space<vmem>>, vector<32x16xf32>
    %cst_21 = arith.constant dense<0.000000e+00> : vector<32x1xf32>
    %27 = tpu.matmul %26, %23, %cst_21 {dimension_numbers = #tpu.dot_dimension_numbers<[1], [0], [0], [1], [0, 0, 1, 1], [], []>} : vector<32x16xf32>, vector<16x1xf32>, vector<32x1xf32> -> vector<32x1xf32>
    %c0_22 = arith.constant 0 : index
    %c0_23 = arith.constant 0 : index
    %28 = vector.load %arg3[%c0_22, %c0_23] : memref<32x1xf32, #tpu.memory_space<vmem>>, vector<32x1xf32>
    %29 = arith.mulf %27, %28 : vector<32x1xf32>
    %c0_24 = arith.constant 0 : index
    %c0_25 = arith.constant 0 : index
    %30 = vector.load %arg4[%c0_24, %c0_25] : memref<32x1xf32, #tpu.memory_space<vmem>>, vector<32x1xf32>
    %31 = arith.mulf %25, %29 : vector<32x1xf32>
    %32 = arith.subf %30, %31 : vector<32x1xf32>
    %33 = vector.broadcast %29 : vector<32x1xf32> to vector<32x128xf32>
    %34 = arith.mulf %3, %33 : vector<32x128xf32>
    %35 = vector.broadcast %32 : vector<32x1xf32> to vector<32x128xf32>
    %36 = arith.addf %34, %35 : vector<32x128xf32>
    %cst_26 = arith.constant 0.000000e+00 : f32
    %37 = vector.broadcast %cst_26 : f32 to vector<32x128xf32>
    %38 = arith.maximumf %36, %37 : vector<32x128xf32>
    %c0_27 = arith.constant 0 : index
    %c0_28 = arith.constant 0 : index
    %c0_29 = arith.constant 0 : index
    %39 = vector.load %arg7[%c0_27, %c0_28, %c0_29] : memref<1x32x128xf32, #tpu.memory_space<vmem>>, vector<1x32x128xf32>
    %40 = vector.shape_cast %39 : vector<1x32x128xf32> to vector<32x128xf32>
    %41 = vector.shape_cast %38 : vector<32x128xf32> to vector<1x32x128xf32>
    tpu.vector_store %arg7[%c0_27, %c0_28, %c0_29], %41 {strides = array<i32>} : memref<1x32x128xf32, #tpu.memory_space<vmem>>, vector<1x32x128xf32>,
    return
  }
  func.func @transform_0(%arg0: i32) -> (i32, i32, i32) {
    %c0_i32 = arith.constant 0 : i32
    %c0_i32_0 = arith.constant 0 : i32
    %c0_i32_1 = arith.constant 0 : i32
    return %arg0, %c0_i32, %c0_i32_0 : i32, i32, i32
  }
  func.func @transform_1(%arg0: i32) -> (i32, i32) {
    %c0_i32 = arith.constant 0 : i32
    %c0_i32_0 = arith.constant 0 : i32
    %c0_i32_1 = arith.constant 0 : i32
    return %c0_i32, %c0_i32_0 : i32, i32
  }
  func.func @transform_2(%arg0: i32) -> (i32, i32) {
    %c0_i32 = arith.constant 0 : i32
    %c0_i32_0 = arith.constant 0 : i32
    %c0_i32_1 = arith.constant 0 : i32
    return %c0_i32, %c0_i32_0 : i32, i32
  }
  func.func @transform_3(%arg0: i32) -> (i32, i32) {
    %c0_i32 = arith.constant 0 : i32
    %c0_i32_0 = arith.constant 0 : i32
    %c0_i32_1 = arith.constant 0 : i32
    return %c0_i32, %c0_i32_0 : i32, i32
  }
  func.func @transform_4(%arg0: i32) -> (i32, i32) {
    %c0_i32 = arith.constant 0 : i32
    %c0_i32_0 = arith.constant 0 : i32
    %c0_i32_1 = arith.constant 0 : i32
    return %c0_i32, %c0_i32_0 : i32, i32
  }
  func.func @transform_5(%arg0: i32) -> (i32, i32) {
    %c0_i32 = arith.constant 0 : i32
    %c0_i32_0 = arith.constant 0 : i32
    %c0_i32_1 = arith.constant 0 : i32
    return %c0_i32, %c0_i32_0 : i32, i32
  }
  func.func @transform_6(%arg0: i32) -> (i32, i32, i32) {
    %c0_i32 = arith.constant 0 : i32
    %c0_i32_0 = arith.constant 0 : i32
    %c0_i32_1 = arith.constant 0 : i32
    return %arg0, %c0_i32, %c0_i32_0 : i32, i32, i32
  }
}

module attributes {stable_mosaic.version = 11 : i64} {
  func.func @_conv_gn_kernel(%arg0: i32, %arg1: memref<1x16x128xbf16, #tpu.memory_space<vmem>>, %arg2: memref<32x16xbf16, #tpu.memory_space<vmem>>, %arg3: memref<32x1xf32, #tpu.memory_space<vmem>>, %arg4: memref<32x1xf32, #tpu.memory_space<vmem>>, %arg5: memref<16x32xf32, #tpu.memory_space<vmem>>, %arg6: memref<32x16xf32, #tpu.memory_space<vmem>>, %arg7: memref<1x32x128xf32, #tpu.memory_space<vmem>>) attributes {dimension_semantics = [#tpu.dimension_semantics<parallel>], iteration_bounds = array<i64: 2>, scalar_prefetch = 0 : i64, scratch_operands = 0 : i64, tpu.core_type = #tpu.core_type<tc>, window_params = [{transform_indices = @transform_0, window_bounds = array<i64: 1, 16, 128>}, {pipeline_mode = #tpu.pipeline_mode<synchronous>, transform_indices = @transform_1, window_bounds = array<i64: 32, 16>}, {pipeline_mode = #tpu.pipeline_mode<synchronous>, transform_indices = @transform_2, window_bounds = array<i64: 32, 1>}, {pipeline_mode = #tpu.pipeline_mode<synchronous>, transform_indices = @transform_3, window_bounds = array<i64: 32, 1>}, {pipeline_mode = #tpu.pipeline_mode<synchronous>, transform_indices = @transform_4, window_bounds = array<i64: 16, 32>}, {pipeline_mode = #tpu.pipeline_mode<synchronous>, transform_indices = @transform_5, window_bounds = array<i64: 32, 16>}, {transform_indices = @transform_6, window_bounds = array<i64: 1, 32, 128>}]} {
    %c0 = arith.constant 0 : index
    %c0_0 = arith.constant 0 : index
    %0 = vector.load %arg2[%c0, %c0_0] : memref<32x16xbf16, #tpu.memory_space<vmem>>, vector<32x16xbf16>
    %c0_1 = arith.constant 0 : index
    %c0_2 = arith.constant 0 : index
    %c0_3 = arith.constant 0 : index
    %1 = vector.load %arg1[%c0_1, %c0_2, %c0_3] : memref<1x16x128xbf16, #tpu.memory_space<vmem>>, vector<1x16x128xbf16>
    %2 = vector.shape_cast %1 : vector<1x16x128xbf16> to vector<16x128xbf16>
    %cst = arith.constant dense<0.000000e+00> : vector<32x128xf32>
    %3 = tpu.matmul %0, %2, %cst {dimension_numbers = #tpu.dot_dimension_numbers<[1], [0], [0], [1], [0, 0, 1, 1], [], []>} : vector<32x16xbf16>, vector<16x128xbf16>, vector<32x128xf32> -> vector<32x128xf32>
    %cst_4 = arith.constant dense<0.000000e+00> : vector<32xf32>
    %4 = vector.multi_reduction <add>, %3, %cst_4 [1] : vector<32x128xf32> to vector<32xf32>
    %5 = vector.shape_cast %4 : vector<32xf32> to vector<32x1xf32>
    %6 = arith.mulf %3, %3 : vector<32x128xf32>
    %cst_5 = arith.constant dense<0.000000e+00> : vector<32xf32>
    %7 = vector.multi_reduction <add>, %6, %cst_5 [1] : vector<32x128xf32> to vector<32xf32>
    %8 = vector.shape_cast %7 : vector<32xf32> to vector<32x1xf32>
    %c0_6 = arith.constant 0 : index
    %c0_7 = arith.constant 0 : index
    %9 = vector.load %arg5[%c0_6, %c0_7] : memref<16x32xf32, #tpu.memory_space<vmem>>, vector<16x32xf32>
    %cst_8 = arith.constant dense<0.000000e+00> : vector<16x1xf32>
    %10 = tpu.matmul %9, %5, %cst_8 {dimension_numbers = #tpu.dot_dimension_numbers<[1], [0], [0], [1], [0, 0, 1, 1], [], []>} : vector<16x32xf32>, vector<32x1xf32>, vector<16x1xf32> -> vector<16x1xf32>
    %cst_9 = arith.constant 3.906250e-03 : f32
    %11 = vector.broadcast %cst_9 : f32 to vector<16x1xf32>
    %12 = arith.mulf %10, %11 : vector<16x1xf32>
    %c0_10 = arith.constant 0 : index
    %c0_11 = arith.constant 0 : index
    %13 = vector.load %arg5[%c0_10, %c0_11] : memref<16x32xf32, #tpu.memory_space<vmem>>, vector<16x32xf32>
    %cst_12 = arith.constant dense<0.000000e+00> : vector<16x1xf32>
    %14 = tpu.matmul %13, %8, %cst_12 {dimension_numbers = #tpu.dot_dimension_numbers<[1], [0], [0], [1], [0, 0, 1, 1], [], []>} : vector<16x32xf32>, vector<32x1xf32>, vector<16x1xf32> -> vector<16x1xf32>
    %cst_13 = arith.constant 3.906250e-03 : f32
    %15 = vector.broadcast %cst_13 : f32 to vector<16x1xf32>
    %16 = arith.mulf %14, %15 : vector<16x1xf32>
    %17 = arith.mulf %12, %12 : vector<16x1xf32>
    %18 = arith.subf %16, %17 : vector<16x1xf32>
    %cst_14 = arith.constant 0.000000e+00 : f32
    %19 = vector.broadcast %cst_14 : f32 to vector<16x1xf32>
    %20 = arith.maximumf %18, %19 : vector<16x1xf32>
    %cst_15 = arith.constant 9.99999974E-6 : f32
    %21 = vector.broadcast %cst_15 : f32 to vector<16x1xf32>
    %22 = arith.addf %20, %21 : vector<16x1xf32>
    %23 = math.rsqrt %22 : vector<16x1xf32>
    %c0_16 = arith.constant 0 : index
    %c0_17 = arith.constant 0 : index
    %24 = vector.load %arg6[%c0_16, %c0_17] : memref<32x16xf32, #tpu.memory_space<vmem>>, vector<32x16xf32>
    %cst_18 = arith.constant dense<0.000000e+00> : vector<32x1xf32>
    %25 = tpu.matmul %24, %12, %cst_18 {dimension_numbers = #tpu.dot_dimension_numbers<[1], [0], [0], [1], [0, 0, 1, 1], [], []>} : vector<32x16xf32>, vector<16x1xf32>, vector<32x1xf32> -> vector<32x1xf32>
    %c0_19 = arith.constant 0 : index
    %c0_20 = arith.constant 0 : index
    %26 = vector.load %arg6[%c0_19, %c0_20] : memref<32x16xf32, #tpu.memory_space<vmem>>, vector<32x16xf32>
    %cst_21 = arith.constant dense<0.000000e+00> : vector<32x1xf32>
    %27 = tpu.matmul %26, %23, %cst_21 {dimension_numbers = #tpu.dot_dimension_numbers<[1], [0], [0], [1], [0, 0, 1, 1], [], []>} : vector<32x16xf32>, vector<16x1xf32>, vector<32x1xf32> -> vector<32x1xf32>
    %c0_22 = arith.constant 0 : index
    %c0_23 = arith.constant 0 : index
    %28 = vector.load %arg3[%c0_22, %c0_23] : memref<32x1xf32, #tpu.memory_space<vmem>>, vector<32x1xf32>
    %29 = arith.mulf %27, %28 : vector<32x1xf32>
    %c0_24 = arith.constant 0 : index
    %c0_25 = arith.constant 0 : index
    %30 = vector.load %arg4[%c0_24, %c0_25] : memref<32x1xf32, #tpu.memory_space<vmem>>, vector<32x1xf32>
    %31 = arith.mulf %25, %29 : vector<32x1xf32>
    %32 = arith.subf %30, %31 : vector<32x1xf32>
    %33 = vector.broadcast %29 : vector<32x1xf32> to vector<32x128xf32>
    %34 = arith.mulf %3, %33 : vector<32x128xf32>
    %35 = vector.broadcast %32 : vector<32x1xf32> to vector<32x128xf32>
    %36 = arith.addf %34, %35 : vector<32x128xf32>
    %c0_26 = arith.constant 0 : index
    %c0_27 = arith.constant 0 : index
    %c0_28 = arith.constant 0 : index
    %37 = vector.load %arg7[%c0_26, %c0_27, %c0_28] : memref<1x32x128xf32, #tpu.memory_space<vmem>>, vector<1x32x128xf32>
    %38 = vector.shape_cast %37 : vector<1x32x128xf32> to vector<32x128xf32>
    %39 = vector.shape_cast %36 : vector<32x128xf32> to vector<1x32x128xf32>
    tpu.vector_store %arg7[%c0_26, %c0_27, %c0_28], %39 {strides = array<i32>} : memref<1x32x128xf32, #tpu.memory_space<vmem>>, vector<1x32x128xf32>,
    return
  }
  func.func @transform_0(%arg0: i32) -> (i32, i32, i32) {
    %c0_i32 = arith.constant 0 : i32
    %c0_i32_0 = arith.constant 0 : i32
    %c0_i32_1 = arith.constant 0 : i32
    return %arg0, %c0_i32, %c0_i32_0 : i32, i32, i32
  }
  func.func @transform_1(%arg0: i32) -> (i32, i32) {
    %c0_i32 = arith.constant 0 : i32
    %c0_i32_0 = arith.constant 0 : i32
    %c0_i32_1 = arith.constant 0 : i32
    return %c0_i32, %c0_i32_0 : i32, i32
  }
  func.func @transform_2(%arg0: i32) -> (i32, i32) {
    %c0_i32 = arith.constant 0 : i32
    %c0_i32_0 = arith.constant 0 : i32
    %c0_i32_1 = arith.constant 0 : i32
    return %c0_i32, %c0_i32_0 : i32, i32
  }
  func.func @transform_3(%arg0: i32) -> (i32, i32) {
    %c0_i32 = arith.constant 0 : i32
    %c0_i32_0 = arith.constant 0 : i32
    %c0_i32_1 = arith.constant 0 : i32
    return %c0_i32, %c0_i32_0 : i32, i32
  }
  func.func @transform_4(%arg0: i32) -> (i32, i32) {
    %c0_i32 = arith.constant 0 : i32
    %c0_i32_0 = arith.constant 0 : i32
    %c0_i32_1 = arith.constant 0 : i32
    return %c0_i32, %c0_i32_0 : i32, i32
  }
  func.func @transform_5(%arg0: i32) -> (i32, i32) {
    %c0_i32 = arith.constant 0 : i32
    %c0_i32_0 = arith.constant 0 : i32
    %c0_i32_1 = arith.constant 0 : i32
    return %c0_i32, %c0_i32_0 : i32, i32
  }
  func.func @transform_6(%arg0: i32) -> (i32, i32, i32) {
    %c0_i32 = arith.constant 0 : i32
    %c0_i32_0 = arith.constant 0 : i32
    %c0_i32_1 = arith.constant 0 : i32
    return %arg0, %c0_i32, %c0_i32_0 : i32, i32, i32
  }
}

module attributes {stable_mosaic.version = 11 : i64} {
  func.func @_conv_gn_kernel(%arg0: i32, %arg1: memref<1x864x128xbf16, #tpu.memory_space<vmem>>, %arg2: memref<32x864xbf16, #tpu.memory_space<vmem>>, %arg3: memref<32x1xf32, #tpu.memory_space<vmem>>, %arg4: memref<32x1xf32, #tpu.memory_space<vmem>>, %arg5: memref<16x32xf32, #tpu.memory_space<vmem>>, %arg6: memref<32x16xf32, #tpu.memory_space<vmem>>, %arg7: memref<1x32x128xf32, #tpu.memory_space<vmem>>, %arg8: memref<1x32x128xf32, #tpu.memory_space<vmem>>) attributes {dimension_semantics = [#tpu.dimension_semantics<parallel>], iteration_bounds = array<i64: 2>, scalar_prefetch = 0 : i64, scratch_operands = 0 : i64, tpu.core_type = #tpu.core_type<tc>, window_params = [{transform_indices = @transform_0, window_bounds = array<i64: 1, 864, 128>}, {pipeline_mode = #tpu.pipeline_mode<synchronous>, transform_indices = @transform_1, window_bounds = array<i64: 32, 864>}, {pipeline_mode = #tpu.pipeline_mode<synchronous>, transform_indices = @transform_2, window_bounds = array<i64: 32, 1>}, {pipeline_mode = #tpu.pipeline_mode<synchronous>, transform_indices = @transform_3, window_bounds = array<i64: 32, 1>}, {pipeline_mode = #tpu.pipeline_mode<synchronous>, transform_indices = @transform_4, window_bounds = array<i64: 16, 32>}, {pipeline_mode = #tpu.pipeline_mode<synchronous>, transform_indices = @transform_5, window_bounds = array<i64: 32, 16>}, {transform_indices = @transform_6, window_bounds = array<i64: 1, 32, 128>}, {transform_indices = @transform_7, window_bounds = array<i64: 1, 32, 128>}]} {
    %c0 = arith.constant 0 : index
    %c0_0 = arith.constant 0 : index
    %0 = vector.load %arg2[%c0, %c0_0] : memref<32x864xbf16, #tpu.memory_space<vmem>>, vector<32x864xbf16>
    %c0_1 = arith.constant 0 : index
    %c0_2 = arith.constant 0 : index
    %c0_3 = arith.constant 0 : index
    %1 = vector.load %arg1[%c0_1, %c0_2, %c0_3] : memref<1x864x128xbf16, #tpu.memory_space<vmem>>, vector<1x864x128xbf16>
    %2 = vector.shape_cast %1 : vector<1x864x128xbf16> to vector<864x128xbf16>
    %cst = arith.constant dense<0.000000e+00> : vector<32x128xf32>
    %3 = tpu.matmul %0, %2, %cst {dimension_numbers = #tpu.dot_dimension_numbers<[1], [0], [0], [1], [0, 0, 1, 1], [], []>} : vector<32x864xbf16>, vector<864x128xbf16>, vector<32x128xf32> -> vector<32x128xf32>
    %cst_4 = arith.constant dense<0.000000e+00> : vector<32xf32>
    %4 = vector.multi_reduction <add>, %3, %cst_4 [1] : vector<32x128xf32> to vector<32xf32>
    %5 = vector.shape_cast %4 : vector<32xf32> to vector<32x1xf32>
    %6 = arith.mulf %3, %3 : vector<32x128xf32>
    %cst_5 = arith.constant dense<0.000000e+00> : vector<32xf32>
    %7 = vector.multi_reduction <add>, %6, %cst_5 [1] : vector<32x128xf32> to vector<32xf32>
    %8 = vector.shape_cast %7 : vector<32xf32> to vector<32x1xf32>
    %c0_6 = arith.constant 0 : index
    %c0_7 = arith.constant 0 : index
    %9 = vector.load %arg5[%c0_6, %c0_7] : memref<16x32xf32, #tpu.memory_space<vmem>>, vector<16x32xf32>
    %cst_8 = arith.constant dense<0.000000e+00> : vector<16x1xf32>
    %10 = tpu.matmul %9, %5, %cst_8 {dimension_numbers = #tpu.dot_dimension_numbers<[1], [0], [0], [1], [0, 0, 1, 1], [], []>} : vector<16x32xf32>, vector<32x1xf32>, vector<16x1xf32> -> vector<16x1xf32>
    %cst_9 = arith.constant 3.906250e-03 : f32
    %11 = vector.broadcast %cst_9 : f32 to vector<16x1xf32>
    %12 = arith.mulf %10, %11 : vector<16x1xf32>
    %c0_10 = arith.constant 0 : index
    %c0_11 = arith.constant 0 : index
    %13 = vector.load %arg5[%c0_10, %c0_11] : memref<16x32xf32, #tpu.memory_space<vmem>>, vector<16x32xf32>
    %cst_12 = arith.constant dense<0.000000e+00> : vector<16x1xf32>
    %14 = tpu.matmul %13, %8, %cst_12 {dimension_numbers = #tpu.dot_dimension_numbers<[1], [0], [0], [1], [0, 0, 1, 1], [], []>} : vector<16x32xf32>, vector<32x1xf32>, vector<16x1xf32> -> vector<16x1xf32>
    %cst_13 = arith.constant 3.906250e-03 : f32
    %15 = vector.broadcast %cst_13 : f32 to vector<16x1xf32>
    %16 = arith.mulf %14, %15 : vector<16x1xf32>
    %17 = arith.mulf %12, %12 : vector<16x1xf32>
    %18 = arith.subf %16, %17 : vector<16x1xf32>
    %cst_14 = arith.constant 0.000000e+00 : f32
    %19 = vector.broadcast %cst_14 : f32 to vector<16x1xf32>
    %20 = arith.maximumf %18, %19 : vector<16x1xf32>
    %cst_15 = arith.constant 9.99999974E-6 : f32
    %21 = vector.broadcast %cst_15 : f32 to vector<16x1xf32>
    %22 = arith.addf %20, %21 : vector<16x1xf32>
    %23 = math.rsqrt %22 : vector<16x1xf32>
    %c0_16 = arith.constant 0 : index
    %c0_17 = arith.constant 0 : index
    %24 = vector.load %arg6[%c0_16, %c0_17] : memref<32x16xf32, #tpu.memory_space<vmem>>, vector<32x16xf32>
    %cst_18 = arith.constant dense<0.000000e+00> : vector<32x1xf32>
    %25 = tpu.matmul %24, %12, %cst_18 {dimension_numbers = #tpu.dot_dimension_numbers<[1], [0], [0], [1], [0, 0, 1, 1], [], []>} : vector<32x16xf32>, vector<16x1xf32>, vector<32x1xf32> -> vector<32x1xf32>
    %c0_19 = arith.constant 0 : index
    %c0_20 = arith.constant 0 : index
    %26 = vector.load %arg6[%c0_19, %c0_20] : memref<32x16xf32, #tpu.memory_space<vmem>>, vector<32x16xf32>
    %cst_21 = arith.constant dense<0.000000e+00> : vector<32x1xf32>
    %27 = tpu.matmul %26, %23, %cst_21 {dimension_numbers = #tpu.dot_dimension_numbers<[1], [0], [0], [1], [0, 0, 1, 1], [], []>} : vector<32x16xf32>, vector<16x1xf32>, vector<32x1xf32> -> vector<32x1xf32>
    %c0_22 = arith.constant 0 : index
    %c0_23 = arith.constant 0 : index
    %28 = vector.load %arg3[%c0_22, %c0_23] : memref<32x1xf32, #tpu.memory_space<vmem>>, vector<32x1xf32>
    %29 = arith.mulf %27, %28 : vector<32x1xf32>
    %c0_24 = arith.constant 0 : index
    %c0_25 = arith.constant 0 : index
    %30 = vector.load %arg4[%c0_24, %c0_25] : memref<32x1xf32, #tpu.memory_space<vmem>>, vector<32x1xf32>
    %31 = arith.mulf %25, %29 : vector<32x1xf32>
    %32 = arith.subf %30, %31 : vector<32x1xf32>
    %33 = vector.broadcast %29 : vector<32x1xf32> to vector<32x128xf32>
    %34 = arith.mulf %3, %33 : vector<32x128xf32>
    %35 = vector.broadcast %32 : vector<32x1xf32> to vector<32x128xf32>
    %36 = arith.addf %34, %35 : vector<32x128xf32>
    %c0_26 = arith.constant 0 : index
    %c0_27 = arith.constant 0 : index
    %c0_28 = arith.constant 0 : index
    %37 = vector.load %arg7[%c0_26, %c0_27, %c0_28] : memref<1x32x128xf32, #tpu.memory_space<vmem>>, vector<1x32x128xf32>
    %38 = vector.shape_cast %37 : vector<1x32x128xf32> to vector<32x128xf32>
    %39 = arith.addf %36, %38 : vector<32x128xf32>
    %cst_29 = arith.constant 0.000000e+00 : f32
    %40 = vector.broadcast %cst_29 : f32 to vector<32x128xf32>
    %41 = arith.maximumf %39, %40 : vector<32x128xf32>
    %c0_30 = arith.constant 0 : index
    %c0_31 = arith.constant 0 : index
    %c0_32 = arith.constant 0 : index
    %42 = vector.load %arg8[%c0_30, %c0_31, %c0_32] : memref<1x32x128xf32, #tpu.memory_space<vmem>>, vector<1x32x128xf32>
    %43 = vector.shape_cast %42 : vector<1x32x128xf32> to vector<32x128xf32>
    %44 = vector.shape_cast %41 : vector<32x128xf32> to vector<1x32x128xf32>
    tpu.vector_store %arg8[%c0_30, %c0_31, %c0_32], %44 {strides = array<i32>} : memref<1x32x128xf32, #tpu.memory_space<vmem>>, vector<1x32x128xf32>,
    return
  }
  func.func @transform_0(%arg0: i32) -> (i32, i32, i32) {
    %c0_i32 = arith.constant 0 : i32
    %c0_i32_0 = arith.constant 0 : i32
    %c0_i32_1 = arith.constant 0 : i32
    return %arg0, %c0_i32, %c0_i32_0 : i32, i32, i32
  }
  func.func @transform_1(%arg0: i32) -> (i32, i32) {
    %c0_i32 = arith.constant 0 : i32
    %c0_i32_0 = arith.constant 0 : i32
    %c0_i32_1 = arith.constant 0 : i32
    return %c0_i32, %c0_i32_0 : i32, i32
  }
  func.func @transform_2(%arg0: i32) -> (i32, i32) {
    %c0_i32 = arith.constant 0 : i32
    %c0_i32_0 = arith.constant 0 : i32
    %c0_i32_1 = arith.constant 0 : i32
    return %c0_i32, %c0_i32_0 : i32, i32
  }
  func.func @transform_3(%arg0: i32) -> (i32, i32) {
    %c0_i32 = arith.constant 0 : i32
    %c0_i32_0 = arith.constant 0 : i32
    %c0_i32_1 = arith.constant 0 : i32
    return %c0_i32, %c0_i32_0 : i32, i32
  }
  func.func @transform_4(%arg0: i32) -> (i32, i32) {
    %c0_i32 = arith.constant 0 : i32
    %c0_i32_0 = arith.constant 0 : i32
    %c0_i32_1 = arith.constant 0 : i32
    return %c0_i32, %c0_i32_0 : i32, i32
  }
  func.func @transform_5(%arg0: i32) -> (i32, i32) {
    %c0_i32 = arith.constant 0 : i32
    %c0_i32_0 = arith.constant 0 : i32
    %c0_i32_1 = arith.constant 0 : i32
    return %c0_i32, %c0_i32_0 : i32, i32
  }
  func.func @transform_6(%arg0: i32) -> (i32, i32, i32) {
    %c0_i32 = arith.constant 0 : i32
    %c0_i32_0 = arith.constant 0 : i32
    %c0_i32_1 = arith.constant 0 : i32
    return %arg0, %c0_i32, %c0_i32_0 : i32, i32, i32
  }
  func.func @transform_7(%arg0: i32) -> (i32, i32, i32) {
    %c0_i32 = arith.constant 0 : i32
    %c0_i32_0 = arith.constant 0 : i32
    %c0_i32_1 = arith.constant 0 : i32
    return %arg0, %c0_i32, %c0_i32_0 : i32, i32, i32
  }
}

module attributes {stable_mosaic.version = 11 : i64} {
  func.func @_conv_gn_kernel(%arg0: i32, %arg1: memref<1x864x16xbf16, #tpu.memory_space<vmem>>, %arg2: memref<32x864xbf16, #tpu.memory_space<vmem>>, %arg3: memref<32x1xf32, #tpu.memory_space<vmem>>, %arg4: memref<32x1xf32, #tpu.memory_space<vmem>>, %arg5: memref<16x32xf32, #tpu.memory_space<vmem>>, %arg6: memref<32x16xf32, #tpu.memory_space<vmem>>, %arg7: memref<1x32x16xf32, #tpu.memory_space<vmem>>) attributes {dimension_semantics = [#tpu.dimension_semantics<parallel>], iteration_bounds = array<i64: 2>, scalar_prefetch = 0 : i64, scratch_operands = 0 : i64, tpu.core_type = #tpu.core_type<tc>, window_params = [{transform_indices = @transform_0, window_bounds = array<i64: 1, 864, 16>}, {pipeline_mode = #tpu.pipeline_mode<synchronous>, transform_indices = @transform_1, window_bounds = array<i64: 32, 864>}, {pipeline_mode = #tpu.pipeline_mode<synchronous>, transform_indices = @transform_2, window_bounds = array<i64: 32, 1>}, {pipeline_mode = #tpu.pipeline_mode<synchronous>, transform_indices = @transform_3, window_bounds = array<i64: 32, 1>}, {pipeline_mode = #tpu.pipeline_mode<synchronous>, transform_indices = @transform_4, window_bounds = array<i64: 16, 32>}, {pipeline_mode = #tpu.pipeline_mode<synchronous>, transform_indices = @transform_5, window_bounds = array<i64: 32, 16>}, {transform_indices = @transform_6, window_bounds = array<i64: 1, 32, 16>}]} {
    %c0 = arith.constant 0 : index
    %c0_0 = arith.constant 0 : index
    %0 = vector.load %arg2[%c0, %c0_0] : memref<32x864xbf16, #tpu.memory_space<vmem>>, vector<32x864xbf16>
    %c0_1 = arith.constant 0 : index
    %c0_2 = arith.constant 0 : index
    %c0_3 = arith.constant 0 : index
    %1 = vector.load %arg1[%c0_1, %c0_2, %c0_3] : memref<1x864x16xbf16, #tpu.memory_space<vmem>>, vector<1x864x16xbf16>
    %2 = vector.shape_cast %1 : vector<1x864x16xbf16> to vector<864x16xbf16>
    %cst = arith.constant dense<0.000000e+00> : vector<32x16xf32>
    %3 = tpu.matmul %0, %2, %cst {dimension_numbers = #tpu.dot_dimension_numbers<[1], [0], [0], [1], [0, 0, 1, 1], [], []>} : vector<32x864xbf16>, vector<864x16xbf16>, vector<32x16xf32> -> vector<32x16xf32>
    %cst_4 = arith.constant dense<0.000000e+00> : vector<32xf32>
    %4 = vector.multi_reduction <add>, %3, %cst_4 [1] : vector<32x16xf32> to vector<32xf32>
    %5 = vector.shape_cast %4 : vector<32xf32> to vector<32x1xf32>
    %6 = arith.mulf %3, %3 : vector<32x16xf32>
    %cst_5 = arith.constant dense<0.000000e+00> : vector<32xf32>
    %7 = vector.multi_reduction <add>, %6, %cst_5 [1] : vector<32x16xf32> to vector<32xf32>
    %8 = vector.shape_cast %7 : vector<32xf32> to vector<32x1xf32>
    %c0_6 = arith.constant 0 : index
    %c0_7 = arith.constant 0 : index
    %9 = vector.load %arg5[%c0_6, %c0_7] : memref<16x32xf32, #tpu.memory_space<vmem>>, vector<16x32xf32>
    %cst_8 = arith.constant dense<0.000000e+00> : vector<16x1xf32>
    %10 = tpu.matmul %9, %5, %cst_8 {dimension_numbers = #tpu.dot_dimension_numbers<[1], [0], [0], [1], [0, 0, 1, 1], [], []>} : vector<16x32xf32>, vector<32x1xf32>, vector<16x1xf32> -> vector<16x1xf32>
    %cst_9 = arith.constant 3.125000e-02 : f32
    %11 = vector.broadcast %cst_9 : f32 to vector<16x1xf32>
    %12 = arith.mulf %10, %11 : vector<16x1xf32>
    %c0_10 = arith.constant 0 : index
    %c0_11 = arith.constant 0 : index
    %13 = vector.load %arg5[%c0_10, %c0_11] : memref<16x32xf32, #tpu.memory_space<vmem>>, vector<16x32xf32>
    %cst_12 = arith.constant dense<0.000000e+00> : vector<16x1xf32>
    %14 = tpu.matmul %13, %8, %cst_12 {dimension_numbers = #tpu.dot_dimension_numbers<[1], [0], [0], [1], [0, 0, 1, 1], [], []>} : vector<16x32xf32>, vector<32x1xf32>, vector<16x1xf32> -> vector<16x1xf32>
    %cst_13 = arith.constant 3.125000e-02 : f32
    %15 = vector.broadcast %cst_13 : f32 to vector<16x1xf32>
    %16 = arith.mulf %14, %15 : vector<16x1xf32>
    %17 = arith.mulf %12, %12 : vector<16x1xf32>
    %18 = arith.subf %16, %17 : vector<16x1xf32>
    %cst_14 = arith.constant 0.000000e+00 : f32
    %19 = vector.broadcast %cst_14 : f32 to vector<16x1xf32>
    %20 = arith.maximumf %18, %19 : vector<16x1xf32>
    %cst_15 = arith.constant 9.99999974E-6 : f32
    %21 = vector.broadcast %cst_15 : f32 to vector<16x1xf32>
    %22 = arith.addf %20, %21 : vector<16x1xf32>
    %23 = math.rsqrt %22 : vector<16x1xf32>
    %c0_16 = arith.constant 0 : index
    %c0_17 = arith.constant 0 : index
    %24 = vector.load %arg6[%c0_16, %c0_17] : memref<32x16xf32, #tpu.memory_space<vmem>>, vector<32x16xf32>
    %cst_18 = arith.constant dense<0.000000e+00> : vector<32x1xf32>
    %25 = tpu.matmul %24, %12, %cst_18 {dimension_numbers = #tpu.dot_dimension_numbers<[1], [0], [0], [1], [0, 0, 1, 1], [], []>} : vector<32x16xf32>, vector<16x1xf32>, vector<32x1xf32> -> vector<32x1xf32>
    %c0_19 = arith.constant 0 : index
    %c0_20 = arith.constant 0 : index
    %26 = vector.load %arg6[%c0_19, %c0_20] : memref<32x16xf32, #tpu.memory_space<vmem>>, vector<32x16xf32>
    %cst_21 = arith.constant dense<0.000000e+00> : vector<32x1xf32>
    %27 = tpu.matmul %26, %23, %cst_21 {dimension_numbers = #tpu.dot_dimension_numbers<[1], [0], [0], [1], [0, 0, 1, 1], [], []>} : vector<32x16xf32>, vector<16x1xf32>, vector<32x1xf32> -> vector<32x1xf32>
    %c0_22 = arith.constant 0 : index
    %c0_23 = arith.constant 0 : index
    %28 = vector.load %arg3[%c0_22, %c0_23] : memref<32x1xf32, #tpu.memory_space<vmem>>, vector<32x1xf32>
    %29 = arith.mulf %27, %28 : vector<32x1xf32>
    %c0_24 = arith.constant 0 : index
    %c0_25 = arith.constant 0 : index
    %30 = vector.load %arg4[%c0_24, %c0_25] : memref<32x1xf32, #tpu.memory_space<vmem>>, vector<32x1xf32>
    %31 = arith.mulf %25, %29 : vector<32x1xf32>
    %32 = arith.subf %30, %31 : vector<32x1xf32>
    %33 = vector.broadcast %29 : vector<32x1xf32> to vector<32x16xf32>
    %34 = arith.mulf %3, %33 : vector<32x16xf32>
    %35 = vector.broadcast %32 : vector<32x1xf32> to vector<32x16xf32>
    %36 = arith.addf %34, %35 : vector<32x16xf32>
    %cst_26 = arith.constant 0.000000e+00 : f32
    %37 = vector.broadcast %cst_26 : f32 to vector<32x16xf32>
    %38 = arith.maximumf %36, %37 : vector<32x16xf32>
    %c0_27 = arith.constant 0 : index
    %c0_28 = arith.constant 0 : index
    %c0_29 = arith.constant 0 : index
    %39 = vector.load %arg7[%c0_27, %c0_28, %c0_29] : memref<1x32x16xf32, #tpu.memory_space<vmem>>, vector<1x32x16xf32>
    %40 = vector.shape_cast %39 : vector<1x32x16xf32> to vector<32x16xf32>
    %41 = vector.shape_cast %38 : vector<32x16xf32> to vector<1x32x16xf32>
    tpu.vector_store %arg7[%c0_27, %c0_28, %c0_29], %41 {strides = array<i32>} : memref<1x32x16xf32, #tpu.memory_space<vmem>>, vector<1x32x16xf32>,
    return
  }
  func.func @transform_0(%arg0: i32) -> (i32, i32, i32) {
    %c0_i32 = arith.constant 0 : i32
    %c0_i32_0 = arith.constant 0 : i32
    %c0_i32_1 = arith.constant 0 : i32
    return %arg0, %c0_i32, %c0_i32_0 : i32, i32, i32
  }
  func.func @transform_1(%arg0: i32) -> (i32, i32) {
    %c0_i32 = arith.constant 0 : i32
    %c0_i32_0 = arith.constant 0 : i32
    %c0_i32_1 = arith.constant 0 : i32
    return %c0_i32, %c0_i32_0 : i32, i32
  }
  func.func @transform_2(%arg0: i32) -> (i32, i32) {
    %c0_i32 = arith.constant 0 : i32
    %c0_i32_0 = arith.constant 0 : i32
    %c0_i32_1 = arith.constant 0 : i32
    return %c0_i32, %c0_i32_0 : i32, i32
  }
  func.func @transform_3(%arg0: i32) -> (i32, i32) {
    %c0_i32 = arith.constant 0 : i32
    %c0_i32_0 = arith.constant 0 : i32
    %c0_i32_1 = arith.constant 0 : i32
    return %c0_i32, %c0_i32_0 : i32, i32
  }
  func.func @transform_4(%arg0: i32) -> (i32, i32) {
    %c0_i32 = arith.constant 0 : i32
    %c0_i32_0 = arith.constant 0 : i32
    %c0_i32_1 = arith.constant 0 : i32
    return %c0_i32, %c0_i32_0 : i32, i32
  }
  func.func @transform_5(%arg0: i32) -> (i32, i32) {
    %c0_i32 = arith.constant 0 : i32
    %c0_i32_0 = arith.constant 0 : i32
    %c0_i32_1 = arith.constant 0 : i32
    return %c0_i32, %c0_i32_0 : i32, i32
  }
  func.func @transform_6(%arg0: i32) -> (i32, i32, i32) {
    %c0_i32 = arith.constant 0 : i32
    %c0_i32_0 = arith.constant 0 : i32
    %c0_i32_1 = arith.constant 0 : i32
    return %arg0, %c0_i32, %c0_i32_0 : i32, i32, i32
  }
}

module attributes {stable_mosaic.version = 11 : i64} {
  func.func @_conv_gn_kernel(%arg0: i32, %arg1: memref<1x32x16xbf16, #tpu.memory_space<vmem>>, %arg2: memref<32x32xbf16, #tpu.memory_space<vmem>>, %arg3: memref<32x1xf32, #tpu.memory_space<vmem>>, %arg4: memref<32x1xf32, #tpu.memory_space<vmem>>, %arg5: memref<16x32xf32, #tpu.memory_space<vmem>>, %arg6: memref<32x16xf32, #tpu.memory_space<vmem>>, %arg7: memref<1x32x16xf32, #tpu.memory_space<vmem>>) attributes {dimension_semantics = [#tpu.dimension_semantics<parallel>], iteration_bounds = array<i64: 2>, scalar_prefetch = 0 : i64, scratch_operands = 0 : i64, tpu.core_type = #tpu.core_type<tc>, window_params = [{transform_indices = @transform_0, window_bounds = array<i64: 1, 32, 16>}, {pipeline_mode = #tpu.pipeline_mode<synchronous>, transform_indices = @transform_1, window_bounds = array<i64: 32, 32>}, {pipeline_mode = #tpu.pipeline_mode<synchronous>, transform_indices = @transform_2, window_bounds = array<i64: 32, 1>}, {pipeline_mode = #tpu.pipeline_mode<synchronous>, transform_indices = @transform_3, window_bounds = array<i64: 32, 1>}, {pipeline_mode = #tpu.pipeline_mode<synchronous>, transform_indices = @transform_4, window_bounds = array<i64: 16, 32>}, {pipeline_mode = #tpu.pipeline_mode<synchronous>, transform_indices = @transform_5, window_bounds = array<i64: 32, 16>}, {transform_indices = @transform_6, window_bounds = array<i64: 1, 32, 16>}]} {
    %c0 = arith.constant 0 : index
    %c0_0 = arith.constant 0 : index
    %0 = vector.load %arg2[%c0, %c0_0] : memref<32x32xbf16, #tpu.memory_space<vmem>>, vector<32x32xbf16>
    %c0_1 = arith.constant 0 : index
    %c0_2 = arith.constant 0 : index
    %c0_3 = arith.constant 0 : index
    %1 = vector.load %arg1[%c0_1, %c0_2, %c0_3] : memref<1x32x16xbf16, #tpu.memory_space<vmem>>, vector<1x32x16xbf16>
    %2 = vector.shape_cast %1 : vector<1x32x16xbf16> to vector<32x16xbf16>
    %cst = arith.constant dense<0.000000e+00> : vector<32x16xf32>
    %3 = tpu.matmul %0, %2, %cst {dimension_numbers = #tpu.dot_dimension_numbers<[1], [0], [0], [1], [0, 0, 1, 1], [], []>} : vector<32x32xbf16>, vector<32x16xbf16>, vector<32x16xf32> -> vector<32x16xf32>
    %cst_4 = arith.constant dense<0.000000e+00> : vector<32xf32>
    %4 = vector.multi_reduction <add>, %3, %cst_4 [1] : vector<32x16xf32> to vector<32xf32>
    %5 = vector.shape_cast %4 : vector<32xf32> to vector<32x1xf32>
    %6 = arith.mulf %3, %3 : vector<32x16xf32>
    %cst_5 = arith.constant dense<0.000000e+00> : vector<32xf32>
    %7 = vector.multi_reduction <add>, %6, %cst_5 [1] : vector<32x16xf32> to vector<32xf32>
    %8 = vector.shape_cast %7 : vector<32xf32> to vector<32x1xf32>
    %c0_6 = arith.constant 0 : index
    %c0_7 = arith.constant 0 : index
    %9 = vector.load %arg5[%c0_6, %c0_7] : memref<16x32xf32, #tpu.memory_space<vmem>>, vector<16x32xf32>
    %cst_8 = arith.constant dense<0.000000e+00> : vector<16x1xf32>
    %10 = tpu.matmul %9, %5, %cst_8 {dimension_numbers = #tpu.dot_dimension_numbers<[1], [0], [0], [1], [0, 0, 1, 1], [], []>} : vector<16x32xf32>, vector<32x1xf32>, vector<16x1xf32> -> vector<16x1xf32>
    %cst_9 = arith.constant 3.125000e-02 : f32
    %11 = vector.broadcast %cst_9 : f32 to vector<16x1xf32>
    %12 = arith.mulf %10, %11 : vector<16x1xf32>
    %c0_10 = arith.constant 0 : index
    %c0_11 = arith.constant 0 : index
    %13 = vector.load %arg5[%c0_10, %c0_11] : memref<16x32xf32, #tpu.memory_space<vmem>>, vector<16x32xf32>
    %cst_12 = arith.constant dense<0.000000e+00> : vector<16x1xf32>
    %14 = tpu.matmul %13, %8, %cst_12 {dimension_numbers = #tpu.dot_dimension_numbers<[1], [0], [0], [1], [0, 0, 1, 1], [], []>} : vector<16x32xf32>, vector<32x1xf32>, vector<16x1xf32> -> vector<16x1xf32>
    %cst_13 = arith.constant 3.125000e-02 : f32
    %15 = vector.broadcast %cst_13 : f32 to vector<16x1xf32>
    %16 = arith.mulf %14, %15 : vector<16x1xf32>
    %17 = arith.mulf %12, %12 : vector<16x1xf32>
    %18 = arith.subf %16, %17 : vector<16x1xf32>
    %cst_14 = arith.constant 0.000000e+00 : f32
    %19 = vector.broadcast %cst_14 : f32 to vector<16x1xf32>
    %20 = arith.maximumf %18, %19 : vector<16x1xf32>
    %cst_15 = arith.constant 9.99999974E-6 : f32
    %21 = vector.broadcast %cst_15 : f32 to vector<16x1xf32>
    %22 = arith.addf %20, %21 : vector<16x1xf32>
    %23 = math.rsqrt %22 : vector<16x1xf32>
    %c0_16 = arith.constant 0 : index
    %c0_17 = arith.constant 0 : index
    %24 = vector.load %arg6[%c0_16, %c0_17] : memref<32x16xf32, #tpu.memory_space<vmem>>, vector<32x16xf32>
    %cst_18 = arith.constant dense<0.000000e+00> : vector<32x1xf32>
    %25 = tpu.matmul %24, %12, %cst_18 {dimension_numbers = #tpu.dot_dimension_numbers<[1], [0], [0], [1], [0, 0, 1, 1], [], []>} : vector<32x16xf32>, vector<16x1xf32>, vector<32x1xf32> -> vector<32x1xf32>
    %c0_19 = arith.constant 0 : index
    %c0_20 = arith.constant 0 : index
    %26 = vector.load %arg6[%c0_19, %c0_20] : memref<32x16xf32, #tpu.memory_space<vmem>>, vector<32x16xf32>
    %cst_21 = arith.constant dense<0.000000e+00> : vector<32x1xf32>
    %27 = tpu.matmul %26, %23, %cst_21 {dimension_numbers = #tpu.dot_dimension_numbers<[1], [0], [0], [1], [0, 0, 1, 1], [], []>} : vector<32x16xf32>, vector<16x1xf32>, vector<32x1xf32> -> vector<32x1xf32>
    %c0_22 = arith.constant 0 : index
    %c0_23 = arith.constant 0 : index
    %28 = vector.load %arg3[%c0_22, %c0_23] : memref<32x1xf32, #tpu.memory_space<vmem>>, vector<32x1xf32>
    %29 = arith.mulf %27, %28 : vector<32x1xf32>
    %c0_24 = arith.constant 0 : index
    %c0_25 = arith.constant 0 : index
    %30 = vector.load %arg4[%c0_24, %c0_25] : memref<32x1xf32, #tpu.memory_space<vmem>>, vector<32x1xf32>
    %31 = arith.mulf %25, %29 : vector<32x1xf32>
    %32 = arith.subf %30, %31 : vector<32x1xf32>
    %33 = vector.broadcast %29 : vector<32x1xf32> to vector<32x16xf32>
    %34 = arith.mulf %3, %33 : vector<32x16xf32>
    %35 = vector.broadcast %32 : vector<32x1xf32> to vector<32x16xf32>
    %36 = arith.addf %34, %35 : vector<32x16xf32>
    %c0_26 = arith.constant 0 : index
    %c0_27 = arith.constant 0 : index
    %c0_28 = arith.constant 0 : index
    %37 = vector.load %arg7[%c0_26, %c0_27, %c0_28] : memref<1x32x16xf32, #tpu.memory_space<vmem>>, vector<1x32x16xf32>
    %38 = vector.shape_cast %37 : vector<1x32x16xf32> to vector<32x16xf32>
    %39 = vector.shape_cast %36 : vector<32x16xf32> to vector<1x32x16xf32>
    tpu.vector_store %arg7[%c0_26, %c0_27, %c0_28], %39 {strides = array<i32>} : memref<1x32x16xf32, #tpu.memory_space<vmem>>, vector<1x32x16xf32>,
    return
  }
  func.func @transform_0(%arg0: i32) -> (i32, i32, i32) {
    %c0_i32 = arith.constant 0 : i32
    %c0_i32_0 = arith.constant 0 : i32
    %c0_i32_1 = arith.constant 0 : i32
    return %arg0, %c0_i32, %c0_i32_0 : i32, i32, i32
  }
  func.func @transform_1(%arg0: i32) -> (i32, i32) {
    %c0_i32 = arith.constant 0 : i32
    %c0_i32_0 = arith.constant 0 : i32
    %c0_i32_1 = arith.constant 0 : i32
    return %c0_i32, %c0_i32_0 : i32, i32
  }
  func.func @transform_2(%arg0: i32) -> (i32, i32) {
    %c0_i32 = arith.constant 0 : i32
    %c0_i32_0 = arith.constant 0 : i32
    %c0_i32_1 = arith.constant 0 : i32
    return %c0_i32, %c0_i32_0 : i32, i32
  }
  func.func @transform_3(%arg0: i32) -> (i32, i32) {
    %c0_i32 = arith.constant 0 : i32
    %c0_i32_0 = arith.constant 0 : i32
    %c0_i32_1 = arith.constant 0 : i32
    return %c0_i32, %c0_i32_0 : i32, i32
  }
  func.func @transform_4(%arg0: i32) -> (i32, i32) {
    %c0_i32 = arith.constant 0 : i32
    %c0_i32_0 = arith.constant 0 : i32
    %c0_i32_1 = arith.constant 0 : i32
    return %c0_i32, %c0_i32_0 : i32, i32
  }
  func.func @transform_5(%arg0: i32) -> (i32, i32) {
    %c0_i32 = arith.constant 0 : i32
    %c0_i32_0 = arith.constant 0 : i32
    %c0_i32_1 = arith.constant 0 : i32
    return %c0_i32, %c0_i32_0 : i32, i32
  }
  func.func @transform_6(%arg0: i32) -> (i32, i32, i32) {
    %c0_i32 = arith.constant 0 : i32
    %c0_i32_0 = arith.constant 0 : i32
    %c0_i32_1 = arith.constant 0 : i32
    return %arg0, %c0_i32, %c0_i32_0 : i32, i32, i32
  }
}

module attributes {stable_mosaic.version = 11 : i64} {
  func.func @_head_kernel(%arg0: memref<2x512xbf16, #tpu.memory_space<vmem>>, %arg1: memref<512x16xbf16, #tpu.memory_space<vmem>>, %arg2: memref<512x16xbf16, #tpu.memory_space<vmem>>, %arg3: memref<1x16xf32, #tpu.memory_space<vmem>>, %arg4: memref<1x16xf32, #tpu.memory_space<vmem>>, %arg5: memref<2x16xf32, #tpu.memory_space<vmem>>, %arg6: memref<2x16xf32, #tpu.memory_space<vmem>>, %arg7: memref<2x16xf32, #tpu.memory_space<vmem>>, %arg8: memref<2x16xf32, #tpu.memory_space<vmem>>) attributes {dimension_semantics = [], scalar_prefetch = 0 : i64, scratch_operands = 0 : i64, tpu.core_type = #tpu.core_type<tc>} {
    %c0 = arith.constant 0 : index
    %c0_0 = arith.constant 0 : index
    %0 = vector.load %arg0[%c0, %c0_0] : memref<2x512xbf16, #tpu.memory_space<vmem>>, vector<2x512xbf16>
    %c0_1 = arith.constant 0 : index
    %c0_2 = arith.constant 0 : index
    %1 = vector.load %arg1[%c0_1, %c0_2] : memref<512x16xbf16, #tpu.memory_space<vmem>>, vector<512x16xbf16>
    %cst = arith.constant dense<0.000000e+00> : vector<2x16xf32>
    %2 = tpu.matmul %0, %1, %cst {dimension_numbers = #tpu.dot_dimension_numbers<[1], [0], [0], [1], [0, 0, 1, 1], [], []>} : vector<2x512xbf16>, vector<512x16xbf16>, vector<2x16xf32> -> vector<2x16xf32>
    %c0_3 = arith.constant 0 : index
    %c0_4 = arith.constant 0 : index
    %3 = vector.load %arg3[%c0_3, %c0_4] : memref<1x16xf32, #tpu.memory_space<vmem>>, vector<1x16xf32>
    %4 = vector.broadcast %3 : vector<1x16xf32> to vector<2x16xf32>
    %5 = arith.addf %2, %4 : vector<2x16xf32>
    %c0_5 = arith.constant 0 : index
    %c0_6 = arith.constant 0 : index
    %6 = vector.load %arg2[%c0_5, %c0_6] : memref<512x16xbf16, #tpu.memory_space<vmem>>, vector<512x16xbf16>
    %cst_7 = arith.constant dense<0.000000e+00> : vector<2x16xf32>
    %7 = tpu.matmul %0, %6, %cst_7 {dimension_numbers = #tpu.dot_dimension_numbers<[1], [0], [0], [1], [0, 0, 1, 1], [], []>} : vector<2x512xbf16>, vector<512x16xbf16>, vector<2x16xf32> -> vector<2x16xf32>
    %c0_8 = arith.constant 0 : index
    %c0_9 = arith.constant 0 : index
    %8 = vector.load %arg4[%c0_8, %c0_9] : memref<1x16xf32, #tpu.memory_space<vmem>>, vector<1x16xf32>
    %9 = vector.broadcast %8 : vector<1x16xf32> to vector<2x16xf32>
    %10 = arith.addf %7, %9 : vector<2x16xf32>
    %c0_10 = arith.constant 0 : index
    %c0_11 = arith.constant 0 : index
    %11 = vector.load %arg5[%c0_10, %c0_11] : memref<2x16xf32, #tpu.memory_space<vmem>>, vector<2x16xf32>
    %cst_12 = arith.constant 5.000000e-01 : f32
    %12 = vector.broadcast %cst_12 : f32 to vector<2x16xf32>
    %13 = arith.mulf %12, %10 : vector<2x16xf32>
    %14 = math.exp %13 : vector<2x16xf32>
    %15 = arith.mulf %11, %14 : vector<2x16xf32>
    %16 = arith.addf %15, %5 : vector<2x16xf32>
    %c0_13 = arith.constant 0 : index
    %c0_14 = arith.constant 0 : index
    %17 = vector.load %arg6[%c0_13, %c0_14] : memref<2x16xf32, #tpu.memory_space<vmem>>, vector<2x16xf32>
    tpu.vector_store %arg6[%c0_13, %c0_14], %16 {strides = array<i32>} : memref<2x16xf32, #tpu.memory_space<vmem>>, vector<2x16xf32>,
    %c0_15 = arith.constant 0 : index
    %c0_16 = arith.constant 0 : index
    %18 = vector.load %arg7[%c0_15, %c0_16] : memref<2x16xf32, #tpu.memory_space<vmem>>, vector<2x16xf32>
    tpu.vector_store %arg7[%c0_15, %c0_16], %5 {strides = array<i32>} : memref<2x16xf32, #tpu.memory_space<vmem>>, vector<2x16xf32>,
    %c0_17 = arith.constant 0 : index
    %c0_18 = arith.constant 0 : index
    %19 = vector.load %arg8[%c0_17, %c0_18] : memref<2x16xf32, #tpu.memory_space<vmem>>, vector<2x16xf32>
    tpu.vector_store %arg8[%c0_17, %c0_18], %10 {strides = array<i32>} : memref<2x16xf32, #tpu.memory_space<vmem>>, vector<2x16xf32>,
    return
  }
}

module attributes {stable_mosaic.version = 11 : i64} {
  func.func @_conv_gn_kernel(%arg0: i32, %arg1: memref<1x864x16xbf16, #tpu.memory_space<vmem>>, %arg2: memref<32x864xbf16, #tpu.memory_space<vmem>>, %arg3: memref<32x1xf32, #tpu.memory_space<vmem>>, %arg4: memref<32x1xf32, #tpu.memory_space<vmem>>, %arg5: memref<16x32xf32, #tpu.memory_space<vmem>>, %arg6: memref<32x16xf32, #tpu.memory_space<vmem>>, %arg7: memref<1x32x16xf32, #tpu.memory_space<vmem>>, %arg8: memref<1x32x16xf32, #tpu.memory_space<vmem>>) attributes {dimension_semantics = [#tpu.dimension_semantics<parallel>], iteration_bounds = array<i64: 2>, scalar_prefetch = 0 : i64, scratch_operands = 0 : i64, tpu.core_type = #tpu.core_type<tc>, window_params = [{transform_indices = @transform_0, window_bounds = array<i64: 1, 864, 16>}, {pipeline_mode = #tpu.pipeline_mode<synchronous>, transform_indices = @transform_1, window_bounds = array<i64: 32, 864>}, {pipeline_mode = #tpu.pipeline_mode<synchronous>, transform_indices = @transform_2, window_bounds = array<i64: 32, 1>}, {pipeline_mode = #tpu.pipeline_mode<synchronous>, transform_indices = @transform_3, window_bounds = array<i64: 32, 1>}, {pipeline_mode = #tpu.pipeline_mode<synchronous>, transform_indices = @transform_4, window_bounds = array<i64: 16, 32>}, {pipeline_mode = #tpu.pipeline_mode<synchronous>, transform_indices = @transform_5, window_bounds = array<i64: 32, 16>}, {transform_indices = @transform_6, window_bounds = array<i64: 1, 32, 16>}, {transform_indices = @transform_7, window_bounds = array<i64: 1, 32, 16>}]} {
    %c0 = arith.constant 0 : index
    %c0_0 = arith.constant 0 : index
    %0 = vector.load %arg2[%c0, %c0_0] : memref<32x864xbf16, #tpu.memory_space<vmem>>, vector<32x864xbf16>
    %c0_1 = arith.constant 0 : index
    %c0_2 = arith.constant 0 : index
    %c0_3 = arith.constant 0 : index
    %1 = vector.load %arg1[%c0_1, %c0_2, %c0_3] : memref<1x864x16xbf16, #tpu.memory_space<vmem>>, vector<1x864x16xbf16>
    %2 = vector.shape_cast %1 : vector<1x864x16xbf16> to vector<864x16xbf16>
    %cst = arith.constant dense<0.000000e+00> : vector<32x16xf32>
    %3 = tpu.matmul %0, %2, %cst {dimension_numbers = #tpu.dot_dimension_numbers<[1], [0], [0], [1], [0, 0, 1, 1], [], []>} : vector<32x864xbf16>, vector<864x16xbf16>, vector<32x16xf32> -> vector<32x16xf32>
    %cst_4 = arith.constant dense<0.000000e+00> : vector<32xf32>
    %4 = vector.multi_reduction <add>, %3, %cst_4 [1] : vector<32x16xf32> to vector<32xf32>
    %5 = vector.shape_cast %4 : vector<32xf32> to vector<32x1xf32>
    %6 = arith.mulf %3, %3 : vector<32x16xf32>
    %cst_5 = arith.constant dense<0.000000e+00> : vector<32xf32>
    %7 = vector.multi_reduction <add>, %6, %cst_5 [1] : vector<32x16xf32> to vector<32xf32>
    %8 = vector.shape_cast %7 : vector<32xf32> to vector<32x1xf32>
    %c0_6 = arith.constant 0 : index
    %c0_7 = arith.constant 0 : index
    %9 = vector.load %arg5[%c0_6, %c0_7] : memref<16x32xf32, #tpu.memory_space<vmem>>, vector<16x32xf32>
    %cst_8 = arith.constant dense<0.000000e+00> : vector<16x1xf32>
    %10 = tpu.matmul %9, %5, %cst_8 {dimension_numbers = #tpu.dot_dimension_numbers<[1], [0], [0], [1], [0, 0, 1, 1], [], []>} : vector<16x32xf32>, vector<32x1xf32>, vector<16x1xf32> -> vector<16x1xf32>
    %cst_9 = arith.constant 3.125000e-02 : f32
    %11 = vector.broadcast %cst_9 : f32 to vector<16x1xf32>
    %12 = arith.mulf %10, %11 : vector<16x1xf32>
    %c0_10 = arith.constant 0 : index
    %c0_11 = arith.constant 0 : index
    %13 = vector.load %arg5[%c0_10, %c0_11] : memref<16x32xf32, #tpu.memory_space<vmem>>, vector<16x32xf32>
    %cst_12 = arith.constant dense<0.000000e+00> : vector<16x1xf32>
    %14 = tpu.matmul %13, %8, %cst_12 {dimension_numbers = #tpu.dot_dimension_numbers<[1], [0], [0], [1], [0, 0, 1, 1], [], []>} : vector<16x32xf32>, vector<32x1xf32>, vector<16x1xf32> -> vector<16x1xf32>
    %cst_13 = arith.constant 3.125000e-02 : f32
    %15 = vector.broadcast %cst_13 : f32 to vector<16x1xf32>
    %16 = arith.mulf %14, %15 : vector<16x1xf32>
    %17 = arith.mulf %12, %12 : vector<16x1xf32>
    %18 = arith.subf %16, %17 : vector<16x1xf32>
    %cst_14 = arith.constant 0.000000e+00 : f32
    %19 = vector.broadcast %cst_14 : f32 to vector<16x1xf32>
    %20 = arith.maximumf %18, %19 : vector<16x1xf32>
    %cst_15 = arith.constant 9.99999974E-6 : f32
    %21 = vector.broadcast %cst_15 : f32 to vector<16x1xf32>
    %22 = arith.addf %20, %21 : vector<16x1xf32>
    %23 = math.rsqrt %22 : vector<16x1xf32>
    %c0_16 = arith.constant 0 : index
    %c0_17 = arith.constant 0 : index
    %24 = vector.load %arg6[%c0_16, %c0_17] : memref<32x16xf32, #tpu.memory_space<vmem>>, vector<32x16xf32>
    %cst_18 = arith.constant dense<0.000000e+00> : vector<32x1xf32>
    %25 = tpu.matmul %24, %12, %cst_18 {dimension_numbers = #tpu.dot_dimension_numbers<[1], [0], [0], [1], [0, 0, 1, 1], [], []>} : vector<32x16xf32>, vector<16x1xf32>, vector<32x1xf32> -> vector<32x1xf32>
    %c0_19 = arith.constant 0 : index
    %c0_20 = arith.constant 0 : index
    %26 = vector.load %arg6[%c0_19, %c0_20] : memref<32x16xf32, #tpu.memory_space<vmem>>, vector<32x16xf32>
    %cst_21 = arith.constant dense<0.000000e+00> : vector<32x1xf32>
    %27 = tpu.matmul %26, %23, %cst_21 {dimension_numbers = #tpu.dot_dimension_numbers<[1], [0], [0], [1], [0, 0, 1, 1], [], []>} : vector<32x16xf32>, vector<16x1xf32>, vector<32x1xf32> -> vector<32x1xf32>
    %c0_22 = arith.constant 0 : index
    %c0_23 = arith.constant 0 : index
    %28 = vector.load %arg3[%c0_22, %c0_23] : memref<32x1xf32, #tpu.memory_space<vmem>>, vector<32x1xf32>
    %29 = arith.mulf %27, %28 : vector<32x1xf32>
    %c0_24 = arith.constant 0 : index
    %c0_25 = arith.constant 0 : index
    %30 = vector.load %arg4[%c0_24, %c0_25] : memref<32x1xf32, #tpu.memory_space<vmem>>, vector<32x1xf32>
    %31 = arith.mulf %25, %29 : vector<32x1xf32>
    %32 = arith.subf %30, %31 : vector<32x1xf32>
    %33 = vector.broadcast %29 : vector<32x1xf32> to vector<32x16xf32>
    %34 = arith.mulf %3, %33 : vector<32x16xf32>
    %35 = vector.broadcast %32 : vector<32x1xf32> to vector<32x16xf32>
    %36 = arith.addf %34, %35 : vector<32x16xf32>
    %c0_26 = arith.constant 0 : index
    %c0_27 = arith.constant 0 : index
    %c0_28 = arith.constant 0 : index
    %37 = vector.load %arg7[%c0_26, %c0_27, %c0_28] : memref<1x32x16xf32, #tpu.memory_space<vmem>>, vector<1x32x16xf32>
    %38 = vector.shape_cast %37 : vector<1x32x16xf32> to vector<32x16xf32>
    %39 = arith.addf %36, %38 : vector<32x16xf32>
    %cst_29 = arith.constant 0.000000e+00 : f32
    %40 = vector.broadcast %cst_29 : f32 to vector<32x16xf32>
    %41 = arith.maximumf %39, %40 : vector<32x16xf32>
    %c0_30 = arith.constant 0 : index
    %c0_31 = arith.constant 0 : index
    %c0_32 = arith.constant 0 : index
    %42 = vector.load %arg8[%c0_30, %c0_31, %c0_32] : memref<1x32x16xf32, #tpu.memory_space<vmem>>, vector<1x32x16xf32>
    %43 = vector.shape_cast %42 : vector<1x32x16xf32> to vector<32x16xf32>
    %44 = vector.shape_cast %41 : vector<32x16xf32> to vector<1x32x16xf32>
    tpu.vector_store %arg8[%c0_30, %c0_31, %c0_32], %44 {strides = array<i32>} : memref<1x32x16xf32, #tpu.memory_space<vmem>>, vector<1x32x16xf32>,
    return
  }
  func.func @transform_0(%arg0: i32) -> (i32, i32, i32) {
    %c0_i32 = arith.constant 0 : i32
    %c0_i32_0 = arith.constant 0 : i32
    %c0_i32_1 = arith.constant 0 : i32
    return %arg0, %c0_i32, %c0_i32_0 : i32, i32, i32
  }
  func.func @transform_1(%arg0: i32) -> (i32, i32) {
    %c0_i32 = arith.constant 0 : i32
    %c0_i32_0 = arith.constant 0 : i32
    %c0_i32_1 = arith.constant 0 : i32
    return %c0_i32, %c0_i32_0 : i32, i32
  }
  func.func @transform_2(%arg0: i32) -> (i32, i32) {
    %c0_i32 = arith.constant 0 : i32
    %c0_i32_0 = arith.constant 0 : i32
    %c0_i32_1 = arith.constant 0 : i32
    return %c0_i32, %c0_i32_0 : i32, i32
  }
  func.func @transform_3(%arg0: i32) -> (i32, i32) {
    %c0_i32 = arith.constant 0 : i32
    %c0_i32_0 = arith.constant 0 : i32
    %c0_i32_1 = arith.constant 0 : i32
    return %c0_i32, %c0_i32_0 : i32, i32
  }
  func.func @transform_4(%arg0: i32) -> (i32, i32) {
    %c0_i32 = arith.constant 0 : i32
    %c0_i32_0 = arith.constant 0 : i32
    %c0_i32_1 = arith.constant 0 : i32
    return %c0_i32, %c0_i32_0 : i32, i32
  }
  func.func @transform_5(%arg0: i32) -> (i32, i32) {
    %c0_i32 = arith.constant 0 : i32
    %c0_i32_0 = arith.constant 0 : i32
    %c0_i32_1 = arith.constant 0 : i32
    return %c0_i32, %c0_i32_0 : i32, i32
  }
  func.func @transform_6(%arg0: i32) -> (i32, i32, i32) {
    %c0_i32 = arith.constant 0 : i32
    %c0_i32_0 = arith.constant 0 : i32
    %c0_i32_1 = arith.constant 0 : i32
    return %arg0, %c0_i32, %c0_i32_0 : i32, i32, i32
  }
  func.func @transform_7(%arg0: i32) -> (i32, i32, i32) {
    %c0_i32 = arith.constant 0 : i32
    %c0_i32_0 = arith.constant 0 : i32
    %c0_i32_1 = arith.constant 0 : i32
    return %arg0, %c0_i32, %c0_i32_0 : i32, i32, i32
  }
}

</mosaic_0001>

<bundles_post_ra>
// kernel: _lambda_.10
= control target key start
LH: loop header
LB: loop body
LE: loop exit
PB: predicated region body
PF: predicated region fallthrough
CT: control target
= control target key end

     0   :  { %s3664_s21 = smov 0   ;;  %s4372_s0 = inlined_call_operand.vmem [shape: bf16[2,441,1024], index: 0, kind: input, shape index: {}]   ;;  %s4373_s1 = inlined_call_operand.vmem [shape: bf16[16,441], index: 1, kind: input, shape index: {}]   ;;  %s4374_s2 = inlined_call_operand.vmem [shape: f32[16,1], index: 2, kind: input, shape index: {}]   ;;  %s4375_s3 = inlined_call_operand.vmem [shape: f32[16,1], index: 3, kind: input, shape index: {}]   ;;  %s4376_s4 = inlined_call_operand.vmem [shape: f32[16,16], index: 4, kind: input, shape index: {}]   ;;  %s4377_s5 = inlined_call_operand.vmem [shape: f32[16,16], index: 5, kind: input, shape index: {}]   ;;  %s4378_s6 = inlined_call_operand.vmem [shape: f32[2,16,1024], index: 6, kind: output, shape index: {}]  }
   0x1 LB: > { %s2434_s22 = sadd.s32 4294967295, %s3625_s21   ;;  %p2438_p0 = scmp.ge.s32.totalorder %s3625_s21, 1  ;;  %s3625_s21 = sphi %s3664_s21, %s16_s21  }
   0x2   : > { %p212_p1 = scmp.lt.s32.totalorder %s3625_s21, 3 }
   0x4   : > { %p213_p2 = pnand %p2438_p0, %p212_p1 }
   0x5   : > { %p242_p3 = scmp.lt.s32.totalorder (!%p213_p2), %s2434_s22, 1 }
   0x6   : > { %216 = sbr.rel (%p213_p2) target bundleno = 979 (0x3d3), region = 44 }
   0xb   : > { %vm1616_vm0 = vcmask 1043456   ;;  %s4380_s22 = smov (!%p242_p3, %s2434_s22), 1  ;;  %vm1617_vm1 = vcmask 1044480   ;;  %v3627_v0 = vmov 65535   ;;  %vm1612_vm2 = vcmask 465920  }
   0xc   : > { %v1618_v1 = vsel %vm1616_vm0, 4294967295, %v3627_v0  ;;  %s3601_s23 = smul.u32 1792, %s4380_s22  ;;  %vm2146_vm3 = vcmask 130048   ;;  %s3372_s13 = sshll.u32 %s4380_s22, 7 }
   0xd   : > { %v3680_v2 = vsel %vm1617_vm1, %v1618_v1, 0  ;;  %s4342_s15 = scalar_lea.vmem %s4378_s6, %s3372_s13 }
   0xe   : > { %s3678_s26 = scalar_lea.vmem %s4372_s0, %s3601_s23 }
   0xf   : > { %v2684_v3 = vld [vmem:[%s3678_s26 + $0x1c0] sm:$0xf]  ;;  %v3433_v51 = vld [vmem:[%s3678_s26 + $0x1c4] sm:$0xf] }
  0x10   : > { %v3437_v4 = vld [vmem:[%s3678_s26 + $0x1dc] sm:$0xf0]  ;;  %v2686_v54 = vld [vmem:[%s3678_s26 + $0x1e0] sm:$0xf0] }
  0x11   : > { %v2940_v5 = vld [vmem:[%s3678_s26 + $0x3c0] sm:$0xf]  ;;  %v2685_v6 = vor.u32 %v3437_v4, %v2684_v3  ;;  %v2689_v61 = vor.u32 %v3433_v51, %v2686_v54  ;;  %v3425_v63 = vld [vmem:[%s3678_s26 + $0x184] sm:$0xf]  ;;  %v2452_v54 = vld [vmem:[%s4373_s1 + $0x8] sm:$0xf] }
  0x12   : > { %v3501_v7 = vld [vmem:[%s3678_s26 + $0x3dc] sm:$0xf0]  ;;  %v2654_v4 = vld [vmem:[%s3678_s26 + $0x1a0] sm:$0xf0] }
  0x13   : > { %v3196_v8 = vld [vmem:[%s3678_s26 + $0x5c0] sm:$0xf]  ;;  %v2941_v10 = vor.u32 %v3501_v7, %v2940_v5  ;;  %1644 = vmatpush.bf16.msra.mxu0 %v2685_v6 }
  0x14   : > { %v3565_v9 = vld [vmem:[%s3678_s26 + $0x5dc] sm:$0xf0] }
  0x15   : > { %v3197_v11 = vor.u32 %v3565_v9, %v3196_v8  ;;  %v3324_v12 = vld [vmem:[%s3678_s26 + $0x6c0] sm:$0xf]  ;;  %1658 = vmatpush.bf16.msra.mxu1 %v2941_v10  ;;  %v2657_v10 = vor.u32 %v3425_v63, %v2654_v4  ;;  %v3373_v63 = vld [vmem:[%s4373_s1 + $0x4] sm:$0xf] }
  0x16   : > { %v3597_v13 = vld [vmem:[%s3678_s26 + $0x6dc] sm:$0x10] }
  0x17   : > { %v2652_v14 = vld [vmem:[%s3678_s26 + $0x180] sm:$0xf]  ;;  %v3325_v15 = vor.u32 %v3597_v13, %v3324_v12  ;;  %1672 = vmatpush.bf16.msra.mxu2 %v3197_v11  ;;  %v3417_v12 = vld [vmem:[%s3678_s26 + $0x144] sm:$0xf] }
  0x18   : > { %v3429_v16 = vld [vmem:[%s3678_s26 + $0x19c] sm:$0xf0] }
  0x19   : > { %v2908_v17 = vld [vmem:[%s3678_s26 + $0x380] sm:$0xf]  ;;  %v2653_v19 = vor.u32 %v3429_v16, %v2652_v14  ;;  %v1621_v24 = vand.u32 %v3325_v15, %v3680_v2  ;;  %v2622_v16 = vld [vmem:[%s3678_s26 + $0x160] sm:$0xf0] }
  0x1a   : > { %v3493_v18 = vld [vmem:[%s3678_s26 + $0x39c] sm:$0xf0] }
  0x1b   : > { %v2909_v20 = vor.u32 %v3493_v18, %v2908_v17  ;;  %v3164_v21 = vld [vmem:[%s3678_s26 + $0x580] sm:$0xf]  ;;  %1690 = vmatpush.bf16.msra.mxu3 %v1621_v24  ;;  %1645 = vmatpush.bf16.msra.mxu0 %v2653_v19 }
  0x1c   : > { %v3557_v22 = vld [vmem:[%s3678_s26 + $0x59c] sm:$0xf0] }
  0x1d   : > { %v3292_v23 = vld [vmem:[%s3678_s26 + $0x680] sm:$0xf]  ;;  %v3165_v25 = vor.u32 %v3557_v22, %v3164_v21  ;;  %1659 = vmatpush.bf16.msra.mxu1 %v2909_v20  ;;  %v3409_v22 = vld [vmem:[%s3678_s26 + $0x104] sm:$0xf] }
  0x1e   : > { %v3589_v26 = vld [vmem:[%s3678_s26 + $0x69c] sm:$0xf0] }
  0x1f   : > { %v2620_v27 = vld [vmem:[%s3678_s26 + $0x140] sm:$0xf]  ;;  %v3293_v32 = vor.u32 %v3589_v26, %v3292_v23  ;;  %1673 = vmatpush.bf16.msra.mxu2 %v3165_v25  ;;  %v2590_v23 = vld [vmem:[%s3678_s26 + $0x120] sm:$0xf0] }
  0x20   : > { %v3421_v28 = vld [vmem:[%s3678_s26 + $0x15c] sm:$0xf0]  ;;  %v3593_v25 = vld [vmem:[%s3678_s26 + $0x6c4] sm:$0xf] }
  0x21   : > { %v2876_v29 = vld [vmem:[%s3678_s26 + $0x340] sm:$0xf]  ;;  %v2621_v33 = vor.u32 %v3421_v28, %v2620_v27  ;;  %1691 = vmatpush.bf16.msra.mxu3 %v3293_v32  ;;  %v3326_v26 = vld [vmem:[%s3678_s26 + $0x6e0] sm:$0x10]  ;;  %v2625_v27 = vor.u32 %v3417_v12, %v2622_v16 }
  0x22   : > { %v3485_v30 = vld [vmem:[%s3678_s26 + $0x35c] sm:$0xf0]  ;;  %v3545_v12 = vld [vmem:[%s3678_s26 + $0x544] sm:$0xf] }
  0x23   : > { %v3132_v31 = vld [vmem:[%s3678_s26 + $0x540] sm:$0xf]  ;;  %v2877_v37 = vor.u32 %v3485_v30, %v2876_v29  ;;  %1646 = vmatpush.bf16.msra.mxu0 %v2621_v33 }
  0x24   : > { %v3549_v34 = vld [vmem:[%s3678_s26 + $0x55c] sm:$0xf0] }
  0x25   : > { %v3260_v35 = vld [vmem:[%s3678_s26 + $0x640] sm:$0xf]  ;;  %v3133_v38 = vor.u32 %v3549_v34, %v3132_v31  ;;  %1660 = vmatpush.bf16.msra.mxu1 %v2877_v37  ;;  %v3561_v37 = vld [vmem:[%s3678_s26 + $0x5c4] sm:$0xf] }
  0x26   : > { %v3581_v36 = vld [vmem:[%s3678_s26 + $0x65c] sm:$0xf0] }
  0x27   : > { %v2588_v39 = vld [vmem:[%s3678_s26 + $0x100] sm:$0xf]  ;;  %v3261_v45 = vor.u32 %v3581_v36, %v3260_v35  ;;  %1674 = vmatpush.bf16.msra.mxu2 %v3133_v38  ;;  %v3497_v35 = vld [vmem:[%s3678_s26 + $0x3c4] sm:$0xf] }
  0x28   : > { %v3413_v40 = vld [vmem:[%s3678_s26 + $0x11c] sm:$0xf0]  ;;  %v2942_v36 = vld [vmem:[%s3678_s26 + $0x3e0] sm:$0xf0] }
  0x29   : > { %v2844_v41 = vld [vmem:[%s3678_s26 + $0x300] sm:$0xf]  ;;  %v2589_v46 = vor.u32 %v3413_v40, %v2588_v39  ;;  %1692 = vmatpush.bf16.msra.mxu3 %v3261_v45  ;;  %v3198_v38 = vld [vmem:[%s3678_s26 + $0x5e0] sm:$0xf0]  ;;  %v3329_v39 = vor.u32 %v3593_v25, %v3326_v26  ;;  %v2593_v45 = vor.u32 %v3409_v22, %v2590_v23  ;;  %v2945_v51 = vor.u32 %v3497_v35, %v2942_v36 }
  0x2a   : > { %v3477_v42 = vld [vmem:[%s3678_s26 + $0x31c] sm:$0xf0]  ;;  %v3473_v22 = vld [vmem:[%s3678_s26 + $0x304] sm:$0xf] }
  0x2b   : > { %v3100_v43 = vld [vmem:[%s3678_s26 + $0x500] sm:$0xf]  ;;  %v2845_v49 = vor.u32 %v3477_v42, %v2844_v41  ;;  %1647 = vmatpush.bf16.msra.mxu0 %v2589_v46  ;;  %v3401_v41 = vld [vmem:[%s3678_s26 + $0xc4] sm:$0xf] }
  0x2c   : > { %v3541_v44 = vld [vmem:[%s3678_s26 + $0x51c] sm:$0xf0]  ;;  %v2558_v42 = vld [vmem:[%s3678_s26 + $0xe0] sm:$0xf0] }
  0x2d   : > { %v3228_v47 = vld [vmem:[%s3678_s26 + $0x600] sm:$0xf]  ;;  %v3101_v50 = vor.u32 %v3541_v44, %v3100_v43  ;;  %1661 = vmatpush.bf16.msra.mxu1 %v2845_v49  ;;  %v3374_v43 = vld [vmem:[%s4373_s1 + $0xc] sm:$0xf]  ;;  %v2454_v44 = vld [vmem:[%s4373_s1 + $0x18] sm:$0xf0] }
  0x2e   : > { %v3573_v48 = vld [vmem:[%s3678_s26 + $0x61c] sm:$0xf0]  ;;  %v3763_v49 = vor.u32 %v3374_v43, %v2454_v44  ;;  %v2846_v23 = vld [vmem:[%s3678_s26 + $0x320] sm:$0xf0]  ;;  %v2660_v44 = vld [vmem:[%s3678_s26 + $0x188] sm:$0xf] }
  0x2f   : > { %v2556_v52 = vld [vmem:[%s3678_s26 + $0xc0] sm:$0xf]  ;;  %v3229_v59 = vor.u32 %v3573_v48, %v3228_v47  ;;  %1675 = vmatpush.bf16.msra.mxu2 %v3101_v50  ;;  %v3489_v47 = vld [vmem:[%s3678_s26 + $0x384] sm:$0xf] }
  0x30   : > { %v3405_v53 = vld [vmem:[%s3678_s26 + $0xdc] sm:$0xf0]  ;;  %v2910_v48 = vld [vmem:[%s3678_s26 + $0x3a0] sm:$0xf0] }
  0x31   : > { %v2812_v55 = vld [vmem:[%s3678_s26 + $0x2c0] sm:$0xf]  ;;  %v2557_v60 = vor.u32 %v3405_v53, %v2556_v52  ;;  %1693 = vmatpush.bf16.msra.mxu3 %v3229_v59  ;;  %v3553_v52 = vld [vmem:[%s3678_s26 + $0x584] sm:$0xf] }
  0x32   : > { %v3469_v56 = vld [vmem:[%s3678_s26 + $0x2dc] sm:$0xf0]  ;;  %v3166_v53 = vld [vmem:[%s3678_s26 + $0x5a0] sm:$0xf0] }
  0x33   : > { %v3068_v57 = vld [vmem:[%s3678_s26 + $0x4c0] sm:$0xf]  ;;  %v2813_v62 = vor.u32 %v3469_v56, %v2812_v55  ;;  %1648 = vmatpush.bf16.msra.mxu0 %v2557_v60  ;;  %v3376_v55 = vld [vmem:[%s4373_s1 + $0x14] sm:$0xf0]  ;;  %v3201_v56 = vor.u32 %v3561_v37, %v3198_v38  ;;  %v3375_v60 = vld [vmem:[%s4373_s1 + $0xc] sm:$0xf0] }
  0x34   : > { %v3533_v58 = vld [vmem:[%s3678_s26 + $0x4dc] sm:$0xf0]  ;;  %3354 = vmatmul.msk.bf16.vlgmr.msra.gmra.mxu3 %vm1612_vm2, %v3763_v49  ;;  %v3102_v25 = vld [vmem:[%s3678_s26 + $0x520] sm:$0xf0]  ;;  %v3502_v37 = vld [vmem:[%s3678_s26 + $0x3e4] sm:$0xf0] }
  0x35   : > { %v2524_v0 = vld [vmem:[%s3678_s26 + $0x80] sm:$0xf]  ;;  %v3069_v3 = vor.u32 %v3533_v58, %v3068_v57  ;;  %1700 = vmatpush.bf16.msrb.mxu3 %v2689_v61  ;;  %1662 = vmatpush.bf16.msra.mxu1 %v2813_v62  ;;  %v1624_v57 = vand.u32 %v3329_v39, %v3680_v2  ;;  %v3585_v58 = vld [vmem:[%s3678_s26 + $0x684] sm:$0xf] }
  0x36   : > { %v3397_v1 = vld [vmem:[%s3678_s26 + $0x9c] sm:$0xf0]  ;;  %v3294_v61 = vld [vmem:[%s3678_s26 + $0x6a0] sm:$0xf0] }
  0x37   : > { %v2780_v5 = vld [vmem:[%s3678_s26 + $0x280] sm:$0xf]  ;;  %v2525_v9 = vor.u32 %v3397_v1, %v2524_v0  ;;  %1676 = vmatpush.bf16.msra.mxu2 %v3069_v3  ;;  %v2446_v0 = vld [vmem:[%s4373_s1 + $0x10] sm:$0xf0]  ;;  %v2561_v1 = vor.u32 %v3401_v41, %v2558_v42  ;;  %v3792_v3 = vor.u32 %v3376_v55, %v2452_v54  ;;  %v3569_v26 = vld [vmem:[%s3678_s26 + $0x604] sm:$0xf] }
  0x38   : > { %v3461_v6 = vld [vmem:[%s3678_s26 + $0x29c] sm:$0xf0]  ;;  %v3794_v4 = vor.u32 %v3373_v63, %v2446_v0  ;;  %v3465_v38 = vld [vmem:[%s3678_s26 + $0x2c4] sm:$0xf]  ;;  %v3486_v0 = vld [vmem:[%s3678_s26 + $0x364] sm:$0xf0] }
  0x39   : > { %v3036_v7 = vld [vmem:[%s3678_s26 + $0x480] sm:$0xf]  ;;  %v2781_v11 = vor.u32 %v3461_v6, %v2780_v5  ;;  %1649 = vmatpush.bf16.msra.mxu0 %v2525_v9  ;;  %1701 = vmatpush.bf16.msrb.mxu3 %v2657_v10  ;;  %v2913_v5 = vor.u32 %v3489_v47, %v2910_v48  ;;  %v3393_v6 = vld [vmem:[%s3678_s26 + $0x84] sm:$0xf]  ;;  %v3297_v9 = vor.u32 %v3585_v58, %v3294_v61  ;;  %v2916_v48 = vld [vmem:[%s3678_s26 + $0x388] sm:$0xf] }
  0x3a   : > { %v3525_v8 = vld [vmem:[%s3678_s26 + $0x49c] sm:$0xf0]  ;;  %v3481_v10 = vld [vmem:[%s3678_s26 + $0x344] sm:$0xf]  ;;  %v3422_v58 = vld [vmem:[%s3678_s26 + $0x164] sm:$0xf0] }
  0x3b   : > { %v2492_v13 = vld [vmem:[%s3678_s26 + $0x40] sm:$0xf]  ;;  %v3037_v15 = vor.u32 %v3525_v8, %v3036_v7  ;;  %1663 = vmatpush.bf16.msra.mxu1 %v2781_v11  ;;  %v2526_v7 = vld [vmem:[%s3678_s26 + $0xa0] sm:$0xf0]  ;;  %v3169_v8 = vor.u32 %v3553_v52, %v3166_v53  ;;  %v2884_v61 = vld [vmem:[%s3678_s26 + $0x348] sm:$0xf] }
  0x3c   : > { %v3389_v14 = vld [vmem:[%s3678_s26 + $0x5c] sm:$0xf0]  ;;  %v2878_v11 = vld [vmem:[%s3678_s26 + $0x360] sm:$0xf0]  ;;  %v2529_v16 = vor.u32 %v3393_v6, %v2526_v7 }
  0x3d   : > { %v2748_v17 = vld [vmem:[%s3678_s26 + $0x240] sm:$0xf]  ;;  %v2493_v21 = vor.u32 %v3389_v14, %v2492_v13  ;;  %1677 = vmatpush.bf16.msra.mxu2 %v3037_v15  ;;  %1702 = vmatpush.bf16.msrb.mxu3 %v2625_v27  ;;  %v3134_v13 = vld [vmem:[%s3678_s26 + $0x560] sm:$0xf0] }
  0x3e   : > { %v3453_v18 = vld [vmem:[%s3678_s26 + $0x25c] sm:$0xf0]  ;;  %v3577_v14 = vld [vmem:[%s3678_s26 + $0x644] sm:$0xf] }
  0x3f   : > { %v3004_v19 = vld [vmem:[%s3678_s26 + $0x440] sm:$0xf]  ;;  %v2749_v28 = vor.u32 %v3453_v18, %v2748_v17  ;;  %1650 = vmatpush.bf16.msra.mxu0 %v2493_v21  ;;  %v3262_v15 = vld [vmem:[%s3678_s26 + $0x660] sm:$0xf0]  ;;  %v2881_v17 = vor.u32 %v3481_v10, %v2878_v11  ;;  %v3414_v10 = vld [vmem:[%s3678_s26 + $0x124] sm:$0xf0] }
  0x40   : > { %v3517_v20 = vld [vmem:[%s3678_s26 + $0x45c] sm:$0xf0]  ;;  %v3385_v18 = vld [vmem:[%s3678_s26 + $0x44] sm:$0xf]  ;;  %v3265_v21 = vor.u32 %v3577_v14, %v3262_v15  ;;  %v3332_v11 = vld [vmem:[%s3678_s26 + $0x6c8] sm:$0xf] }
  0x41   : > { %v2460_v24 = vld [vmem:[%s3678_s26] sm:$0xf]  ;;  %v3005_v32 = vor.u32 %v3517_v20, %v3004_v19  ;;  %1664 = vmatpush.bf16.msra.mxu1 %v2749_v28  ;;  %1703 = vmatpush.bf16.msrb.mxu3 %v2593_v45  ;;  %v2494_v19 = vld [vmem:[%s3678_s26 + $0x60] sm:$0xf0]  ;;  %v3137_v20 = vor.u32 %v3545_v12, %v3134_v13  ;;  %v3430_v45 = vld [vmem:[%s3678_s26 + $0x1a4] sm:$0xf0]  ;;  %v2885_v13 = vor.u32 %v3486_v0, %v2884_v61 }
  0x42   : > { %v3381_v29 = vld [vmem:[%s3678_s26 + $0x1c] sm:$0xf0]  ;;  %v3230_v27 = vld [vmem:[%s3678_s26 + $0x620] sm:$0xf0]  ;;  %v2497_v28 = vor.u32 %v3385_v18, %v2494_v19  ;;  %v2661_v54 = vor.u32 %v3430_v45, %v2660_v44  ;;  %v3598_v12 = vld [vmem:[%s3678_s26 + $0x6e4] sm:$0x10] }
  0x43   : > { %v2716_v30 = vld [vmem:[%s3678_s26 + $0x200] sm:$0xf]  ;;  %v2461_v40 = vor.u32 %v3381_v29, %v2460_v24  ;;  %1678 = vmatpush.bf16.msra.mxu2 %v3005_v32  ;;  %v3537_v24 = vld [vmem:[%s3678_s26 + $0x504] sm:$0xf]  ;;  %v2692_v29 = vld [vmem:[%s3678_s26 + $0x1c8] sm:$0xf]  ;;  %v3233_v36 = vor.u32 %v3569_v26, %v3230_v27 }
  0x44   : > { %v3445_v31 = vld [vmem:[%s3678_s26 + $0x21c] sm:$0xf0]  ;;  %v3377_v32 = vld [vmem:[%s3678_s26 + $0x4] sm:$0xf]  ;;  %v3105_v35 = vor.u32 %v3537_v24, %v3102_v25  ;;  %v2852_v15 = vld [vmem:[%s3678_s26 + $0x308] sm:$0xf]  ;;  %v3333_v25 = vor.u32 %v3598_v12, %v3332_v11 }
  0x45   : > { %v2972_v33 = vld [vmem:[%s3678_s26 + $0x400] sm:$0xf]  ;;  %v2717_v46 = vor.u32 %v3445_v31, %v2716_v30  ;;  %1651 = vmatpush.bf16.msra.mxu0 %v2461_v40  ;;  %1704 = vmatpush.bf16.msrb.mxu3 %v2561_v1  ;;  %v3438_v30 = vld [vmem:[%s3678_s26 + $0x1e4] sm:$0xf0]  ;;  %v2849_v31 = vor.u32 %v3473_v22, %v2846_v23  ;;  %v2814_v39 = vld [vmem:[%s3678_s26 + $0x2e0] sm:$0xf0] }
  0x46   : > { %v3509_v34 = vld [vmem:[%s3678_s26 + $0x41c] sm:$0xf0]  ;;  %v2693_v40 = vor.u32 %v3438_v30, %v2692_v29  ;;  %v3529_v41 = vld [vmem:[%s3678_s26 + $0x4c4] sm:$0xf]  ;;  %v2817_v47 = vor.u32 %v3465_v38, %v2814_v39  ;;  %v3204_v23 = vld [vmem:[%s3678_s26 + $0x5c8] sm:$0xf] }
  0x47   : > { %v2973_v50 = vor.u32 %v3509_v34, %v2972_v33  ;;  %v2444_v59 = vld [vmem:[%s4373_s1] sm:$0xf]  ;;  %1665 = vmatpush.bf16.msra.mxu1 %v2717_v46  ;;  %v2462_v33 = vld [vmem:[%s3678_s26 + $0x20] sm:$0xf0]  ;;  %v2948_v34 = vld [vmem:[%s3678_s26 + $0x3c8] sm:$0xf] }
  0x48   : > { %v3784_v62 = vor.u32 %v3375_v60, %v2444_v59  ;;  %v3070_v42 = vld [vmem:[%s3678_s26 + $0x4e0] sm:$0xf0]  ;;  %v2465_v43 = vor.u32 %v3377_v32, %v2462_v33  ;;  %v2949_v46 = vor.u32 %v3502_v37, %v2948_v34  ;;  %v3566_v24 = vld [vmem:[%s3678_s26 + $0x5e4] sm:$0xf0]  ;;  %v2950_v11 = vld [vmem:[%s3678_s26 + $0x3e8] sm:$0xf0] }
  0x49   : > { %1679 = vmatpush.bf16.msra.mxu2 %v2973_v50  ;;  %1714 = vmatpush.bf16.msrb.mxu0 %v2945_v51  ;;  %v3073_v50 = vor.u32 %v3529_v41, %v3070_v42  ;;  %v3494_v51 = vld [vmem:[%s3678_s26 + $0x3a4] sm:$0xf0]  ;;  %v3457_v52 = vld [vmem:[%s3678_s26 + $0x284] sm:$0xf] }
  0x4a   : > { %1652 = vmatmul.bf16.vlgmr.msra.gmra.mxu0 %v3784_v62  ;;  %1666 = vmatmul.bf16.vlgmr.msra.gmra.mxu1 %v3794_v4  ;;  %v2782_v53 = vld [vmem:[%s3678_s26 + $0x2a0] sm:$0xf0]  ;;  %v2917_v59 = vor.u32 %v3494_v51, %v2916_v48  ;;  %v2564_v26 = vld [vmem:[%s3678_s26 + $0xc8] sm:$0xf] }
  0x4b   : > { %1728 = vmatpush.bf16.msrb.mxu1 %v3201_v56  ;;  %1705 = vmatpush.bf16.msrb.mxu3 %v2529_v16  ;;  %v3521_v55 = vld [vmem:[%s3678_s26 + $0x484] sm:$0xf]  ;;  %v2785_v60 = vor.u32 %v3457_v52, %v2782_v53  ;;  %v3478_v16 = vld [vmem:[%s3678_s26 + $0x324] sm:$0xf0] }
  0x4c   : > { %1680 = vmatmul.bf16.vlgmr.msra.gmra.mxu2 %v3792_v3  ;;  %v3038_v56 = vld [vmem:[%s3678_s26 + $0x4a0] sm:$0xf0]  ;;  %v3406_v27 = vld [vmem:[%s3678_s26 + $0xe4] sm:$0xf0] }
  0x4d   : > { %1746 = vmatpush.bf16.msrb.mxu2 %v1624_v57  ;;  %1715 = vmatpush.bf16.msrb.mxu0 %v2913_v5  ;;  %v2628_v57 = vld [vmem:[%s3678_s26 + $0x148] sm:$0xf]  ;;  %v3041_v63 = vor.u32 %v3521_v55, %v3038_v56  ;;  %v3449_v1 = vld [vmem:[%s3678_s26 + $0x244] sm:$0xf]  ;;  %v2565_v34 = vor.u32 %v3406_v27, %v2564_v26  ;;  %v3490_v26 = vld [vmem:[%s3678_s26 + $0x38c] sm:$0xf] }
  0x4e   : > { %v2750_v5 = vld [vmem:[%s3678_s26 + $0x260] sm:$0xf0]  ;;  %v2629_v6 = vor.u32 %v3422_v58, %v2628_v57  ;;  %v2820_v32 = vld [vmem:[%s3678_s26 + $0x2c8] sm:$0xf]  ;;  %v2918_v27 = vld [vmem:[%s3678_s26 + $0x3a8] sm:$0xf0] }
  0x4f   : > { %1729 = vmatpush.bf16.msrb.mxu1 %v3169_v8  ;;  %1706 = vmatpush.bf16.msrb.mxu3 %v2497_v28  ;;  %v3513_v7 = vld [vmem:[%s3678_s26 + $0x444] sm:$0xf]  ;;  %v2753_v14 = vor.u32 %v3449_v1, %v2750_v5  ;;  %v2853_v28 = vor.u32 %v3478_v16, %v2852_v15  ;;  %v3470_v33 = vld [vmem:[%s3678_s26 + $0x2e4] sm:$0xf0]  ;;  %v3562_v15 = vld [vmem:[%s3678_s26 + $0x5cc] sm:$0xf] }
  0x50   : > { %v3006_v8 = vld [vmem:[%s3678_s26 + $0x460] sm:$0xf0]  ;;  %v3172_v37 = vld [vmem:[%s3678_s26 + $0x588] sm:$0xf]  ;;  %v2821_v42 = vor.u32 %v3470_v33, %v2820_v32 }
  0x51   : > { %1747 = vmatpush.bf16.msrb.mxu2 %v3297_v9  ;;  %1716 = vmatpush.bf16.msrb.mxu0 %v2881_v17  ;;  %v2596_v9 = vld [vmem:[%s3678_s26 + $0x108] sm:$0xf]  ;;  %v3009_v17 = vor.u32 %v3513_v7, %v3006_v8  ;;  %v3441_v18 = vld [vmem:[%s3678_s26 + $0x204] sm:$0xf]  ;;  %v3434_v7 = vld [vmem:[%s3678_s26 + $0x1cc] sm:$0xf] }
  0x52   : > { %v2718_v19 = vld [vmem:[%s3678_s26 + $0x220] sm:$0xf0]  ;;  %v3558_v38 = vld [vmem:[%s3678_s26 + $0x5a4] sm:$0xf0] }
  0x53   : > { %1730 = vmatpush.bf16.msrb.mxu1 %v3137_v20  ;;  %1707 = vmatpush.bf16.msrb.mxu3 %v2465_v43  ;;  %v3505_v20 = vld [vmem:[%s3678_s26 + $0x404] sm:$0xf]  ;;  %v2721_v29 = vor.u32 %v3441_v18, %v2718_v19  ;;  %v3398_v39 = vld [vmem:[%s3678_s26 + $0xa4] sm:$0xf0]  ;;  %v3173_v43 = vor.u32 %v3558_v38, %v3172_v37  ;;  %v3206_v18 = vld [vmem:[%s3678_s26 + $0x5e8] sm:$0xf0] }
  0x54   : > { %v2974_v22 = vld [vmem:[%s3678_s26 + $0x420] sm:$0xf0]  ;;  %v3590_v41 = vld [vmem:[%s3678_s26 + $0x6a4] sm:$0xf0]  ;;  %v2630_v37 = vld [vmem:[%s3678_s26 + $0x168] sm:$0xf0] }
  0x55   : > { %1748 = vmatpush.bf16.msrb.mxu2 %v3265_v21  ;;  %1717 = vmatpush.bf16.msrb.mxu0 %v2849_v31  ;;  %v2597_v21 = vor.u32 %v3414_v10, %v2596_v9  ;;  %v2977_v30 = vor.u32 %v3505_v20, %v2974_v22  ;;  %v3205_v31 = vor.u32 %v3566_v24, %v3204_v23  ;;  %v2788_v44 = vld [vmem:[%s3678_s26 + $0x288] sm:$0xf]  ;;  %v2694_v9 = vld [vmem:[%s3678_s26 + $0x1e8] sm:$0xf0] }
  0x56   : > { %1708 = vmatmul.bf16.vlgmr.msrb.gmra.mxu3 %v3784_v62  ;;  %v3462_v45 = vld [vmem:[%s3678_s26 + $0x2a4] sm:$0xf0]  ;;  %v3498_v10 = vld [vmem:[%s3678_s26 + $0x3cc] sm:$0xf] }
  0x57   : > { %1731 = vmatpush.bf16.msrb.mxu1 %v3105_v35  ;;  %1770 = vmatpush.bf16.msra.mxu3 %v2949_v46  ;;  %v1627_v35 = vand.u32 %v3333_v25, %v3680_v2  ;;  %v2500_v48 = vld [vmem:[%s3678_s26 + $0x48] sm:$0xf]  ;;  %v2789_v55 = vor.u32 %v3462_v45, %v2788_v44  ;;  %v2953_v22 = vor.u32 %v3498_v10, %v2950_v11  ;;  %v3426_v23 = vld [vmem:[%s3678_s26 + $0x18c] sm:$0xf] }
  0x58   : > { %v3550_v51 = vld [vmem:[%s3678_s26 + $0x564] sm:$0xf0]  ;;  %v2662_v25 = vld [vmem:[%s3678_s26 + $0x1a8] sm:$0xf0] }
  0x59   : > { %1749 = vmatpush.bf16.msrb.mxu2 %v3233_v36  ;;  %1718 = vmatpush.bf16.msrb.mxu0 %v2817_v47  ;;  %v2532_v36 = vld [vmem:[%s3678_s26 + $0x88] sm:$0xf]  ;;  %v3482_v38 = vld [vmem:[%s3678_s26 + $0x34c] sm:$0xf] }
  0x5a   : > { %v2533_v46 = vor.u32 %v3398_v39, %v2532_v36  ;;  %v3390_v52 = vld [vmem:[%s3678_s26 + $0x64] sm:$0xf0]  ;;  %v3418_v36 = vld [vmem:[%s3678_s26 + $0x14c] sm:$0xf] }
  0x5b   : > { %1732 = vmatpush.bf16.msrb.mxu1 %v3073_v50  ;;  %1771 = vmatpush.bf16.msra.mxu3 %v2917_v59  ;;  %v3140_v50 = vld [vmem:[%s3678_s26 + $0x548] sm:$0xf]  ;;  %v2886_v39 = vld [vmem:[%s3678_s26 + $0x368] sm:$0xf0] }
  0x5c   : > { %3355 = vmatmul.msk.bf16.vlgmr.msrb.gmra.mxu2 %vm1612_vm2, %v3763_v49  ;;  %v3268_v53 = vld [vmem:[%s3678_s26 + $0x648] sm:$0xf]  ;;  %v3141_v56 = vor.u32 %v3550_v51, %v3140_v50  ;;  %v3594_v50 = vld [vmem:[%s3678_s26 + $0x6cc] sm:$0xf] }
  0x5d   : > { %1756 = vmatpush.bf16.msra.mxu2 %v2693_v40  ;;  %1719 = vmatpush.bf16.msrb.mxu0 %v2785_v60  ;;  %v3300_v40 = vld [vmem:[%s3678_s26 + $0x688] sm:$0xf]  ;;  %v2501_v60 = vor.u32 %v3390_v52, %v2500_v48  ;;  %v3410_v48 = vld [vmem:[%s3678_s26 + $0x10c] sm:$0xf] }
  0x5e   : > { %v3301_v47 = vor.u32 %v3590_v41, %v3300_v40  ;;  %v2756_v57 = vld [vmem:[%s3678_s26 + $0x248] sm:$0xf]  ;;  %v3334_v51 = vld [vmem:[%s3678_s26 + $0x6e8] sm:$0x10] }
  0x5f   : > { %1733 = vmatpush.bf16.msrb.mxu1 %v3041_v63  ;;  %1772 = vmatpush.bf16.msra.mxu3 %v2885_v13  ;;  %v3454_v58 = vld [vmem:[%s3678_s26 + $0x264] sm:$0xf0]  ;;  %v2598_v52 = vld [vmem:[%s3678_s26 + $0x128] sm:$0xf0] }
  0x60   : > { %v2468_v59 = vld [vmem:[%s3678_s26 + $0x8] sm:$0xf]  ;;  %v2757_v8 = vor.u32 %v3454_v58, %v2756_v57  ;;  %v3538_v57 = vld [vmem:[%s3678_s26 + $0x50c] sm:$0xf] }
  0x61   : > { %1757 = vmatpush.bf16.msra.mxu2 %v2661_v54  ;;  %1720 = vmatpush.bf16.msrb.mxu0 %v2753_v14  ;;  %v3582_v54 = vld [vmem:[%s3678_s26 + $0x664] sm:$0xf0]  ;;  %v3110_v58 = vld [vmem:[%s3678_s26 + $0x528] sm:$0xf0] }
  0x62   : > { %v3269_v61 = vor.u32 %v3582_v54, %v3268_v53  ;;  %v3382_v63 = vld [vmem:[%s3678_s26 + $0x24] sm:$0xf0]  ;;  %v3474_v53 = vld [vmem:[%s3678_s26 + $0x30c] sm:$0xf] }
  0x63   : > { %1734 = vmatpush.bf16.msrb.mxu1 %v3009_v17  ;;  %1773 = vmatpush.bf16.msra.mxu3 %v2853_v28  ;;  %v3108_v0 = vld [vmem:[%s3678_s26 + $0x508] sm:$0xf]  ;;  %v2469_v16 = vor.u32 %v3382_v63, %v2468_v59  ;;  %v3209_v28 = vor.u32 %v3562_v15, %v3206_v18  ;;  %v2854_v54 = vld [vmem:[%s3678_s26 + $0x328] sm:$0xf0]  ;;  %v2601_v63 = vor.u32 %v3410_v48, %v2598_v52  ;;  %v3439_v48 = vld [vmem:[%s3678_s26 + $0x1ec] sm:$0xf0] }
  0x64   : > { %v3542_v1 = vld [vmem:[%s3678_s26 + $0x524] sm:$0xf0]  ;;  %v3530_v11 = vld [vmem:[%s3678_s26 + $0x4cc] sm:$0xf]  ;;  %v3503_v52 = vld [vmem:[%s3678_s26 + $0x3ec] sm:$0xf0] }
  0x65   : > { %1758 = vmatpush.bf16.msra.mxu2 %v2629_v6  ;;  %1721 = vmatpush.bf16.msrb.mxu0 %v2721_v29  ;;  %v3236_v5 = vld [vmem:[%s3678_s26 + $0x608] sm:$0xf]  ;;  %v3109_v12 = vor.u32 %v3542_v1, %v3108_v0  ;;  %v2857_v0 = vor.u32 %v3474_v53, %v2854_v54  ;;  %v3402_v1 = vld [vmem:[%s3678_s26 + $0xcc] sm:$0xf]  ;;  %v3212_v53 = vld [vmem:[%s3678_s26 + $0x5d0] sm:$0xf] }
  0x66   : > { %v3574_v6 = vld [vmem:[%s3678_s26 + $0x624] sm:$0xf0]  ;;  %v3394_v15 = vld [vmem:[%s3678_s26 + $0x8c] sm:$0xf] }
  0x67   : > { %1735 = vmatpush.bf16.msrb.mxu1 %v2977_v30  ;;  %1774 = vmatpush.bf16.msra.mxu3 %v2821_v42  ;;  %v2724_v13 = vld [vmem:[%s3678_s26 + $0x208] sm:$0xf]  ;;  %v3237_v17 = vor.u32 %v3574_v6, %v3236_v5  ;;  %v3554_v30 = vld [vmem:[%s3678_s26 + $0x58c] sm:$0xf] }
  0x68   : > { %1722 = vmatmul.bf16.vlgmr.msrb.gmra.mxu0 %v3794_v4  ;;  %v3446_v14 = vld [vmem:[%s3678_s26 + $0x224] sm:$0xf0]  ;;  %v3546_v42 = vld [vmem:[%s3678_s26 + $0x54c] sm:$0xf] }
  0x69   : > { %1759 = vmatpush.bf16.msra.mxu2 %v2597_v21  ;;  %1784 = vmatpush.bf16.msra.mxu0 %v3205_v31  ;;  %v3076_v19 = vld [vmem:[%s3678_s26 + $0x4c8] sm:$0xf]  ;;  %v2697_v21 = vor.u32 %v3434_v7, %v2694_v9  ;;  %v2725_v24 = vor.u32 %v3446_v14, %v2724_v13  ;;  %v3174_v31 = vld [vmem:[%s3678_s26 + $0x5a8] sm:$0xf0] }
  0x6a   : > { %1736 = vmatmul.bf16.vlgmr.msrb.gmra.mxu1 %v3792_v3  ;;  %v3534_v20 = vld [vmem:[%s3678_s26 + $0x4e4] sm:$0xf0]  ;;  %v3177_v40 = vor.u32 %v3554_v30, %v3174_v31  ;;  %v2566_v5 = vld [vmem:[%s3678_s26 + $0xe8] sm:$0xf0] }
  0x6b   : > { %1802 = vmatpush.bf16.msra.mxu1 %v1627_v35  ;;  %1775 = vmatpush.bf16.msra.mxu3 %v2789_v55  ;;  %v3077_v29 = vor.u32 %v3534_v20, %v3076_v19  ;;  %v3044_v32 = vld [vmem:[%s3678_s26 + $0x488] sm:$0xf]  ;;  %v2921_v35 = vor.u32 %v3490_v26, %v2918_v27  ;;  %v3466_v6 = vld [vmem:[%s3678_s26 + $0x2cc] sm:$0xf]  ;;  %v2569_v13 = vor.u32 %v3402_v1, %v2566_v5  ;;  %v2668_v5 = vld [vmem:[%s3678_s26 + $0x190] sm:$0xf] }
  0x6c   : > { %v3526_v33 = vld [vmem:[%s3678_s26 + $0x4a4] sm:$0xf0]  ;;  %v2822_v7 = vld [vmem:[%s3678_s26 + $0x2e8] sm:$0xf0] }
  0x6d   : > { %1760 = vmatpush.bf16.msra.mxu2 %v2565_v34  ;;  %1785 = vmatpush.bf16.msra.mxu0 %v3173_v43  ;;  %v2665_v34 = vor.u32 %v3426_v23, %v2662_v25  ;;  %v3045_v41 = vor.u32 %v3526_v33, %v3044_v32  ;;  %v3142_v43 = vld [vmem:[%s3678_s26 + $0x568] sm:$0xf0]  ;;  %v3012_v44 = vld [vmem:[%s3678_s26 + $0x448] sm:$0xf]  ;;  %v2825_v14 = vor.u32 %v3466_v6, %v2822_v7  ;;  %v3431_v6 = vld [vmem:[%s3678_s26 + $0x1ac] sm:$0xf0] }
  0x6e   : > { %v3518_v45 = vld [vmem:[%s3678_s26 + $0x464] sm:$0xf0]  ;;  %v3145_v55 = vor.u32 %v3546_v42, %v3142_v43  ;;  %v2534_v18 = vld [vmem:[%s3678_s26 + $0xa8] sm:$0xf0]  ;;  %v2924_v7 = vld [vmem:[%s3678_s26 + $0x390] sm:$0xf] }
  0x6f   : > { %1803 = vmatpush.bf16.msra.mxu1 %v3301_v47  ;;  %1776 = vmatpush.bf16.msra.mxu3 %v2757_v8  ;;  %v2889_v47 = vor.u32 %v3482_v38, %v2886_v39  ;;  %v2980_v59 = vld [vmem:[%s3678_s26 + $0x408] sm:$0xf]  ;;  %v3113_v8 = vor.u32 %v3538_v57, %v3110_v58  ;;  %v3458_v19 = vld [vmem:[%s3678_s26 + $0x28c] sm:$0xf]  ;;  %v2537_v25 = vor.u32 %v3394_v15, %v2534_v18  ;;  %v3423_v18 = vld [vmem:[%s3678_s26 + $0x16c] sm:$0xf0] }
  0x70   : > { %v2790_v20 = vld [vmem:[%s3678_s26 + $0x2a8] sm:$0xf0] }
  0x71   : > { %1761 = vmatpush.bf16.msra.mxu2 %v2533_v46  ;;  %1786 = vmatpush.bf16.msra.mxu0 %v3141_v56  ;;  %v2633_v46 = vor.u32 %v3418_v36, %v2630_v37  ;;  %v3013_v56 = vor.u32 %v3518_v45, %v3012_v44  ;;  %v3522_v23 = vld [vmem:[%s3678_s26 + $0x48c] sm:$0xf]  ;;  %v2793_v26 = vor.u32 %v3458_v19, %v2790_v20  ;;  %v3340_v44 = vld [vmem:[%s3678_s26 + $0x6d0] sm:$0xf] }
  0x72   : > { %v3386_v27 = vld [vmem:[%s3678_s26 + $0x4c] sm:$0xf]  ;;  %v3599_v45 = vld [vmem:[%s3678_s26 + $0x6ec] sm:$0x10] }
  0x73   : > { %1804 = vmatpush.bf16.msra.mxu1 %v3269_v61  ;;  %1777 = vmatpush.bf16.msra.mxu3 %v2725_v24  ;;  %v3337_v61 = vor.u32 %v3594_v50, %v3334_v51  ;;  %v3046_v24 = vld [vmem:[%s3678_s26 + $0x4a8] sm:$0xf0]  ;;  %v2956_v51 = vld [vmem:[%s3678_s26 + $0x3d0] sm:$0xf]  ;;  %v3341_v58 = vor.u32 %v3599_v45, %v3340_v44 }
  0x74   : > { %v2502_v30 = vld [vmem:[%s3678_s26 + $0x68] sm:$0xf0]  ;;  %v3049_v33 = vor.u32 %v3522_v23, %v3046_v24  ;;  %v2892_v19 = vld [vmem:[%s3678_s26 + $0x350] sm:$0xf] }
  0x75   : > { %1762 = vmatpush.bf16.msra.mxu2 %v2501_v60  ;;  %1787 = vmatpush.bf16.msra.mxu0 %v3109_v12  ;;  %v3510_v60 = vld [vmem:[%s3678_s26 + $0x424] sm:$0xf0]  ;;  %v1630_v10 = vand.u32 %v3337_v61, %v3680_v2  ;;  %v3078_v12 = vld [vmem:[%s3678_s26 + $0x4e8] sm:$0xf0]  ;;  %v3551_v23 = vld [vmem:[%s3678_s26 + $0x56c] sm:$0xf0] }
  0x76   : > { %1778 = vmatmul.bf16.vlgmr.msra.gmra.mxu3 %v3794_v4  ;;  %v2981_v9 = vor.u32 %v3510_v60, %v2980_v59  ;;  %v3450_v31 = vld [vmem:[%s3678_s26 + $0x24c] sm:$0xf]  ;;  %v3276_v24 = vld [vmem:[%s3678_s26 + $0x650] sm:$0xf] }
  0x77   : > { %1805 = vmatpush.bf16.msra.mxu1 %v3237_v17  ;;  %1840 = vmatpush.bf16.msrb.mxu3 %v3209_v28  ;;  %v3302_v17 = vld [vmem:[%s3678_s26 + $0x6a8] sm:$0xf0]  ;;  %v3407_v44 = vld [vmem:[%s3678_s26 + $0xec] sm:$0xf0] }
  0x78   : > { %v3578_v28 = vld [vmem:[%s3678_s26 + $0x64c] sm:$0xf]  ;;  %v2828_v45 = vld [vmem:[%s3678_s26 + $0x2d0] sm:$0xf] }
  0x79   : > { %1763 = vmatpush.bf16.msra.mxu2 %v2469_v16  ;;  %1788 = vmatpush.bf16.msra.mxu0 %v3077_v29  ;;  %v3586_v16 = vld [vmem:[%s3678_s26 + $0x68c] sm:$0xf] }
  0x7a   : > { %3356 = vmatmul.msk.bf16.vlgmr.msra.gmra.mxu1 %vm1612_vm2, %v3763_v49  ;;  %v3270_v29 = vld [vmem:[%s3678_s26 + $0x668] sm:$0xf0] }
  0x7b   : > { %1812 = vmatpush.bf16.msrb.mxu1 %v2697_v21  ;;  %1841 = vmatpush.bf16.msrb.mxu3 %v3177_v40  ;;  %v3081_v21 = vor.u32 %v3530_v11, %v3078_v12  ;;  %v2758_v32 = vld [vmem:[%s3678_s26 + $0x268] sm:$0xf0]  ;;  %v3273_v36 = vor.u32 %v3578_v28, %v3270_v29  ;;  %v3559_v11 = vld [vmem:[%s3678_s26 + $0x5ac] sm:$0xf0] }
  0x7c   : > { %1764 = vmatmul.bf16.vlgmr.msra.gmra.mxu2 %v3784_v62  ;;  %v3378_v37 = vld [vmem:[%s3678_s26 + $0xc] sm:$0xf]  ;;  %v2761_v42 = vor.u32 %v3450_v31, %v2758_v32  ;;  %v3308_v12 = vld [vmem:[%s3678_s26 + $0x690] sm:$0xf] }
  0x7d   : > { %1826 = vmatpush.bf16.msrb.mxu2 %v2953_v22  ;;  %1789 = vmatpush.bf16.msra.mxu0 %v3045_v41  ;;  %v3305_v22 = vor.u32 %v3586_v16, %v3302_v17  ;;  %v2470_v38 = vld [vmem:[%s3678_s26 + $0x28] sm:$0xf0]  ;;  %v2505_v41 = vor.u32 %v3386_v27, %v2502_v30  ;;  %v2636_v17 = vld [vmem:[%s3678_s26 + $0x150] sm:$0xf] }
  0x7e   : > { %v3442_v39 = vld [vmem:[%s3678_s26 + $0x20c] sm:$0xf]  ;;  %v2473_v59 = vor.u32 %v3378_v37, %v2470_v38  ;;  %v2604_v29 = vld [vmem:[%s3678_s26 + $0x110] sm:$0xf] }
  0x7f   : > { %1813 = vmatpush.bf16.msrb.mxu1 %v2665_v34  ;;  %1842 = vmatpush.bf16.msrb.mxu3 %v3145_v55  ;;  %v3514_v34 = vld [vmem:[%s3678_s26 + $0x44c] sm:$0xf]  ;;  %v3567_v55 = vld [vmem:[%s3678_s26 + $0x5ec] sm:$0xf0] }
  0x80   : > { %v3570_v40 = vld [vmem:[%s3678_s26 + $0x60c] sm:$0xf]  ;;  %v3415_v30 = vld [vmem:[%s3678_s26 + $0x12c] sm:$0xf0] }
  0x81   : > { %1827 = vmatpush.bf16.msrb.mxu2 %v2921_v35  ;;  %1790 = vmatpush.bf16.msra.mxu0 %v3013_v56  ;;  %v3014_v35 = vld [vmem:[%s3678_s26 + $0x468] sm:$0xf0]  ;;  %v2860_v31 = vld [vmem:[%s3678_s26 + $0x310] sm:$0xf]  ;;  %v2605_v38 = vor.u32 %v3415_v30, %v2604_v29  ;;  %v3499_v29 = vld [vmem:[%s3678_s26 + $0x3d4] sm:$0xf] }
  0x82   : > { %v3238_v43 = vld [vmem:[%s3678_s26 + $0x628] sm:$0xf0]  ;;  %v3017_v50 = vor.u32 %v3514_v34, %v3014_v35  ;;  %v3116_v34 = vld [vmem:[%s3678_s26 + $0x510] sm:$0xf] }
  0x83   : > { %1814 = vmatpush.bf16.msrb.mxu1 %v2633_v46  ;;  %1843 = vmatpush.bf16.msrb.mxu3 %v3113_v8  ;;  %v2726_v46 = vld [vmem:[%s3678_s26 + $0x228] sm:$0xf0]  ;;  %v3241_v54 = vor.u32 %v3570_v40, %v3238_v43  ;;  %v1633_v8 = vand.u32 %v3341_v58, %v3680_v2  ;;  %v3543_v35 = vld [vmem:[%s3678_s26 + $0x52c] sm:$0xf0]  ;;  %v2702_v40 = vld [vmem:[%s3678_s26 + $0x1f0] sm:$0xf0] }
  0x84   : > { %v3506_v56 = vld [vmem:[%s3678_s26 + $0x40c] sm:$0xf]  ;;  %v2729_v60 = vor.u32 %v3442_v39, %v2726_v46  ;;  %v3575_v37 = vld [vmem:[%s3678_s26 + $0x62c] sm:$0xf0]  ;;  %v3435_v39 = vld [vmem:[%s3678_s26 + $0x1d4] sm:$0xf] }
  0x85   : > { %1828 = vmatpush.bf16.msrb.mxu2 %v2889_v47  ;;  %1791 = vmatpush.bf16.msra.mxu0 %v2981_v9  ;;  %v2700_v47 = vld [vmem:[%s3678_s26 + $0x1d0] sm:$0xf]  ;;  %v2982_v57 = vld [vmem:[%s3678_s26 + $0x428] sm:$0xf0] }
  0x86   : > { %v2701_v61 = vor.u32 %v3439_v48, %v2700_v47  ;;  %v2985_v1 = vor.u32 %v3506_v56, %v2982_v57  ;;  %v3495_v9 = vld [vmem:[%s3678_s26 + $0x3ac] sm:$0xf0] }
  0x87   : > { %1815 = vmatpush.bf16.msrb.mxu1 %v2601_v63  ;;  %1844 = vmatpush.bf16.msrb.mxu3 %v3081_v21  ;;  %v2957_v63 = vor.u32 %v3503_v52, %v2956_v51  ;;  %v2925_v15 = vor.u32 %v3495_v9, %v2924_v7  ;;  %v3487_v21 = vld [vmem:[%s3678_s26 + $0x36c] sm:$0xf0]  ;;  %v2705_v51 = vor.u32 %v3435_v39, %v2702_v40 }
  0x88   : > { %1792 = vmatmul.bf16.vlgmr.msra.gmra.mxu0 %v3792_v3  ;;  %v2893_v27 = vor.u32 %v3487_v21, %v2892_v19  ;;  %v2572_v43 = vld [vmem:[%s3678_s26 + $0xd0] sm:$0xf]  ;;  %v3342_v21 = vld [vmem:[%s3678_s26 + $0x6f0] sm:$0x10] }
  0x89   : > { %1829 = vmatpush.bf16.msrb.mxu2 %v2857_v0  ;;  %1858 = vmatpush.bf16.msrb.mxu0 %v1630_v10  ;;  %v3213_v0 = vor.u32 %v3567_v55, %v3212_v53  ;;  %v3180_v10 = vld [vmem:[%s3678_s26 + $0x590] sm:$0xf]  ;;  %v2573_v52 = vor.u32 %v3407_v44, %v2572_v43  ;;  %v3427_v53 = vld [vmem:[%s3678_s26 + $0x194] sm:$0xf] }
  0x8a   : > { %v3181_v16 = vor.u32 %v3559_v11, %v3180_v10  ;;  %v3471_v47 = vld [vmem:[%s3678_s26 + $0x2ec] sm:$0xf0]  ;;  %v2926_v43 = vld [vmem:[%s3678_s26 + $0x3b0] sm:$0xf0] }
  0x8b   : > { %1816 = vmatpush.bf16.msrb.mxu1 %v2569_v13  ;;  %1845 = vmatpush.bf16.msrb.mxu3 %v3049_v33  ;;  %v3591_v13 = vld [vmem:[%s3678_s26 + $0x6ac] sm:$0xf0]  ;;  %v2829_v55 = vor.u32 %v3471_v47, %v2828_v45  ;;  %v3182_v47 = vld [vmem:[%s3678_s26 + $0x5b0] sm:$0xf0] }
  0x8c   : > { %v3309_v20 = vor.u32 %v3591_v13, %v3308_v12  ;;  %v3479_v33 = vld [vmem:[%s3678_s26 + $0x32c] sm:$0xf0] }
  0x8d   : > { %1830 = vmatpush.bf16.msrb.mxu2 %v2825_v14  ;;  %1859 = vmatpush.bf16.msrb.mxu0 %v3305_v22  ;;  %v2669_v14 = vor.u32 %v3431_v6, %v2668_v5  ;;  %v3148_v22 = vld [vmem:[%s3678_s26 + $0x550] sm:$0xf]  ;;  %v3419_v5 = vld [vmem:[%s3678_s26 + $0x154] sm:$0xf] }
  0x8e   : > { %v3149_v28 = vor.u32 %v3551_v23, %v3148_v22  ;;  %v3084_v48 = vld [vmem:[%s3678_s26 + $0x4d0] sm:$0xf]  ;;  %v2638_v6 = vld [vmem:[%s3678_s26 + $0x170] sm:$0xf0] }
  0x8f   : > { %1817 = vmatpush.bf16.msrb.mxu1 %v2537_v25  ;;  %1846 = vmatpush.bf16.msrb.mxu3 %v3017_v50  ;;  %v3583_v25 = vld [vmem:[%s3678_s26 + $0x66c] sm:$0xf0] }
  0x90   : > { %v3277_v32 = vor.u32 %v3583_v25, %v3276_v24  ;;  %v3535_v50 = vld [vmem:[%s3678_s26 + $0x4ec] sm:$0xf0] }
  0x91   : > { %1831 = vmatpush.bf16.msrb.mxu2 %v2793_v26  ;;  %1860 = vmatpush.bf16.msrb.mxu0 %v3273_v36  ;;  %v2637_v26 = vor.u32 %v3423_v18, %v2636_v17  ;;  %v3244_v36 = vld [vmem:[%s3678_s26 + $0x610] sm:$0xf]  ;;  %v3085_v56 = vor.u32 %v3535_v50, %v3084_v48  ;;  %v2606_v17 = vld [vmem:[%s3678_s26 + $0x130] sm:$0xf0] }
  0x92   : > { %v3245_v46 = vor.u32 %v3575_v37, %v3244_v36  ;;  %v2540_v57 = vld [vmem:[%s3678_s26 + $0x90] sm:$0xf]  ;;  %v3403_v36 = vld [vmem:[%s3678_s26 + $0xd4] sm:$0xf] }
  0x93   : > { %1818 = vmatpush.bf16.msrb.mxu1 %v2505_v41  ;;  %1847 = vmatpush.bf16.msrb.mxu3 %v2985_v1  ;;  %v2861_v41 = vor.u32 %v3479_v33, %v2860_v31  ;;  %v3399_v58 = vld [vmem:[%s3678_s26 + $0xac] sm:$0xf0]  ;;  %v2958_v31 = vld [vmem:[%s3678_s26 + $0x3f0] sm:$0xf0] }
  0x94   : > { %v2541_v1 = vor.u32 %v3399_v58, %v2540_v57  ;;  %v2508_v9 = vld [vmem:[%s3678_s26 + $0x50] sm:$0xf]  ;;  %v3214_v33 = vld [vmem:[%s3678_s26 + $0x5f0] sm:$0xf0]  ;;  %v2961_v40 = vor.u32 %v3499_v29, %v2958_v31  ;;  %v2676_v31 = vld [vmem:[%s3678_s26 + $0x198] sm:$0xf] }
  0x95   : > { %1832 = vmatpush.bf16.msrb.mxu2 %v2761_v42  ;;  %1861 = vmatpush.bf16.msrb.mxu0 %v3241_v54  ;;  %v3117_v42 = vor.u32 %v3543_v35, %v3116_v34  ;;  %v2670_v54 = vld [vmem:[%s3678_s26 + $0x1b0] sm:$0xf0]  ;;  %v3391_v10 = vld [vmem:[%s3678_s26 + $0x6c] sm:$0xf0] }
  0x96   : > { %1848 = vmatmul.bf16.vlgmr.msrb.gmra.mxu3 %v3792_v3  ;;  %v2764_v11 = vld [vmem:[%s3678_s26 + $0x250] sm:$0xf]  ;;  %v2509_v18 = vor.u32 %v3391_v10, %v2508_v9  ;;  %v2574_v37 = vld [vmem:[%s3678_s26 + $0xf0] sm:$0xf0] }
  0x97   : > { %1819 = vmatpush.bf16.msrb.mxu1 %v2473_v59  ;;  %1914 = vmatpush.bf16.msra.mxu3 %v1633_v8  ;;  %v2796_v59 = vld [vmem:[%s3678_s26 + $0x290] sm:$0xf]  ;;  %v2577_v45 = vor.u32 %v3403_v36, %v2574_v37  ;;  %v3587_v48 = vld [vmem:[%s3678_s26 + $0x694] sm:$0xf] }
  0x98   : > { %3357 = vmatmul.msk.bf16.vlgmr.msrb.gmra.mxu0 %vm1612_vm2, %v3763_v49  ;;  %v3455_v12 = vld [vmem:[%s3678_s26 + $0x26c] sm:$0xf0]  ;;  %v3310_v50 = vld [vmem:[%s3678_s26 + $0x6b0] sm:$0xf0] }
  0x99   : > { %1833 = vmatpush.bf16.msrb.mxu2 %v2729_v60  ;;  %1868 = vmatpush.bf16.msra.mxu0 %v2701_v61  ;;  %v3463_v60 = vld [vmem:[%s3678_s26 + $0x2ac] sm:$0xf0]  ;;  %v2765_v22 = vor.u32 %v3455_v12, %v2764_v11  ;;  %v3313_v57 = vor.u32 %v3587_v48, %v3310_v50  ;;  %v3539_v9 = vld [vmem:[%s3678_s26 + $0x514] sm:$0xf] }
  0x9a   : > { %1820 = vmatmul.bf16.vlgmr.msrb.gmra.mxu1 %v3784_v62  ;;  %v3052_v61 = vld [vmem:[%s3678_s26 + $0x490] sm:$0xf]  ;;  %v2797_v7 = vor.u32 %v3463_v60, %v2796_v59  ;;  %v3547_v59 = vld [vmem:[%s3678_s26 + $0x554] sm:$0xf] }
  0x9b   : > { %1882 = vmatpush.bf16.msra.mxu1 %v2957_v63  ;;  %1915 = vmatpush.bf16.msra.mxu3 %v3309_v20  ;;  %v3527_v63 = vld [vmem:[%s3678_s26 + $0x4ac] sm:$0xf0]  ;;  %v3595_v20 = vld [vmem:[%s3678_s26 + $0x6d4] sm:$0xf] }
  0x9c   : > { %1834 = vmatmul.bf16.vlgmr.msrb.gmra.mxu2 %v3794_v4  ;;  %v3053_v8 = vor.u32 %v3527_v63, %v3052_v61  ;;  %v3020_v13 = vld [vmem:[%s3678_s26 + $0x450] sm:$0xf]  ;;  %v3345_v34 = vor.u32 %v3595_v20, %v3342_v21  ;;  %v3150_v60 = vld [vmem:[%s3678_s26 + $0x570] sm:$0xf0]  ;;  %v3504_v20 = vld [vmem:[%s3678_s26 + $0x3f4] sm:$0xf0] }
  0x9d   : > { %1896 = vmatpush.bf16.msra.mxu2 %v3213_v0  ;;  %1869 = vmatpush.bf16.msra.mxu0 %v2669_v14  ;;  %v2673_v0 = vor.u32 %v3427_v53, %v2670_v54  ;;  %v3519_v14 = vld [vmem:[%s3678_s26 + $0x46c] sm:$0xf0]  ;;  %v3579_v61 = vld [vmem:[%s3678_s26 + $0x654] sm:$0xf] }
  0x9e   : > { %v2476_v19 = vld [vmem:[%s3678_s26 + $0x10] sm:$0xf]  ;;  %v3021_v23 = vor.u32 %v3519_v14, %v3020_v13  ;;  %v1636_v44 = vand.u32 %v3345_v34, %v3680_v2  ;;  %v3278_v63 = vld [vmem:[%s3678_s26 + $0x670] sm:$0xf0]  ;;  %v3496_v34 = vld [vmem:[%s3678_s26 + $0x3b4] sm:$0xf0] }
  0x9f   : > { %1883 = vmatpush.bf16.msra.mxu1 %v2925_v15  ;;  %1916 = vmatpush.bf16.msra.mxu3 %v3277_v32  ;;  %v2641_v15 = vor.u32 %v3419_v5, %v2638_v6  ;;  %v3383_v24 = vld [vmem:[%s3678_s26 + $0x2c] sm:$0xf0]  ;;  %v3563_v32 = vld [vmem:[%s3678_s26 + $0x5d4] sm:$0xf]  ;;  %v3153_v6 = vor.u32 %v3547_v59, %v3150_v60  ;;  %v3281_v10 = vor.u32 %v3579_v61, %v3278_v63  ;;  %v3416_v59 = vld [vmem:[%s3678_s26 + $0x134] sm:$0xf0] }
  0xa0   : > { %v2732_v25 = vld [vmem:[%s3678_s26 + $0x210] sm:$0xf]  ;;  %v2477_v35 = vor.u32 %v3383_v24, %v2476_v19  ;;  %v3118_v12 = vld [vmem:[%s3678_s26 + $0x530] sm:$0xf0]  ;;  %v2964_v19 = vld [vmem:[%s3678_s26 + $0x3d8] sm:$0xf] }
  0xa1   : > { %1897 = vmatpush.bf16.msra.mxu2 %v3181_v16  ;;  %1870 = vmatpush.bf16.msra.mxu0 %v2637_v26  ;;  %v3411_v16 = vld [vmem:[%s3678_s26 + $0x114] sm:$0xf]  ;;  %v3447_v26 = vld [vmem:[%s3678_s26 + $0x22c] sm:$0xf0]  ;;  %v2868_v60 = vld [vmem:[%s3678_s26 + $0x318] sm:$0xf] }
  0xa2   : > { %v2609_v30 = vor.u32 %v3411_v16, %v2606_v17  ;;  %v3571_v13 = vld [vmem:[%s3678_s26 + $0x614] sm:$0xf]  ;;  %v3480_v61 = vld [vmem:[%s3678_s26 + $0x334] sm:$0xf0] }
  0xa3   : > { %1884 = vmatpush.bf16.msra.mxu1 %v2893_v27  ;;  %1917 = vmatpush.bf16.msra.mxu3 %v3245_v46  ;;  %v2988_v27 = vld [vmem:[%s3678_s26 + $0x410] sm:$0xf]  ;;  %v3555_v46 = vld [vmem:[%s3678_s26 + $0x594] sm:$0xf] }
  0xa4   : > { %v3185_v54 = vor.u32 %v3555_v46, %v3182_v47  ;;  %v3246_v14 = vld [vmem:[%s3678_s26 + $0x630] sm:$0xf0]  ;;  %v3488_v46 = vld [vmem:[%s3678_s26 + $0x374] sm:$0xf0] }
  0xa5   : > { %1898 = vmatpush.bf16.msra.mxu2 %v3149_v28  ;;  %1871 = vmatpush.bf16.msra.mxu0 %v2605_v38  ;;  %v3511_v28 = vld [vmem:[%s3678_s26 + $0x42c] sm:$0xf0]  ;;  %v2733_v38 = vor.u32 %v3447_v26, %v2732_v25  ;;  %v3379_v16 = vld [vmem:[%s3678_s26 + $0x14] sm:$0xf]  ;;  %v3249_v24 = vor.u32 %v3571_v13, %v3246_v14  ;;  %v3568_v13 = vld [vmem:[%s3678_s26 + $0x5f4] sm:$0xf0] }
  0xa6   : > { %3358 = vmatmul.msk.bf16.vlgmr.msra.gmra.mxu3 %vm1612_vm2, %v3763_v49  ;;  %v2989_v39 = vor.u32 %v3511_v28, %v2988_v27  ;;  %v2478_v17 = vld [vmem:[%s3678_s26 + $0x30] sm:$0xf0]  ;;  %v3408_v14 = vld [vmem:[%s3678_s26 + $0xf4] sm:$0xf0] }
  0xa7   : > { %1885 = vmatpush.bf16.msra.mxu1 %v2861_v41  ;;  %1924 = vmatpush.bf16.msrb.mxu3 %v2705_v51  ;;  %v3217_v41 = vor.u32 %v3563_v32, %v3214_v33  ;;  %v3395_v51 = vld [vmem:[%s3678_s26 + $0x94] sm:$0xf]  ;;  %v2481_v25 = vor.u32 %v3379_v16, %v2478_v17  ;;  %v3432_v32 = vld [vmem:[%s3678_s26 + $0x1b4] sm:$0xf0] }
  0xa8   : > { %v2830_v26 = vld [vmem:[%s3678_s26 + $0x2f0] sm:$0xf0]  ;;  %v2932_v33 = vld [vmem:[%s3678_s26 + $0x398] sm:$0xf] }
  0xa9   : > { %1899 = vmatpush.bf16.msra.mxu2 %v3117_v42  ;;  %1872 = vmatpush.bf16.msra.mxu0 %v2573_v52  ;;  %v3491_v42 = vld [vmem:[%s3678_s26 + $0x394] sm:$0xf]  ;;  %v3472_v16 = vld [vmem:[%s3678_s26 + $0x2f4] sm:$0xf0] }
  0xaa   : > { %v2542_v52 = vld [vmem:[%s3678_s26 + $0xb0] sm:$0xf0]  ;;  %v2929_v53 = vor.u32 %v3491_v42, %v2926_v43  ;;  %v2933_v42 = vor.u32 %v3496_v34, %v2932_v33  ;;  %v2644_v43 = vld [vmem:[%s3678_s26 + $0x158] sm:$0xf] }
  0xab   : > { %1886 = vmatpush.bf16.msra.mxu1 %v2829_v55  ;;  %1925 = vmatpush.bf16.msrb.mxu3 %v2673_v0  ;;  %v3483_v55 = vld [vmem:[%s3678_s26 + $0x354] sm:$0xf]  ;;  %v2545_v58 = vor.u32 %v3395_v51, %v2542_v52  ;;  %v3464_v33 = vld [vmem:[%s3678_s26 + $0x2b4] sm:$0xf0] }
  0xac   : > { %v3387_v0 = vld [vmem:[%s3678_s26 + $0x54] sm:$0xf] }
  0xad   : > { %1900 = vmatpush.bf16.msra.mxu2 %v3085_v56  ;;  %1873 = vmatpush.bf16.msra.mxu0 %v2541_v1  ;;  %v2894_v56 = vld [vmem:[%s3678_s26 + $0x370] sm:$0xf0] }
  0xae   : > { %v2510_v1 = vld [vmem:[%s3678_s26 + $0x70] sm:$0xf0]  ;;  %v2897_v5 = vor.u32 %v3483_v55, %v2894_v56  ;;  %v2612_v56 = vld [vmem:[%s3678_s26 + $0x118] sm:$0xf] }
  0xaf   : > { %1887 = vmatpush.bf16.msra.mxu1 %v2797_v7  ;;  %1926 = vmatpush.bf16.msrb.mxu3 %v2641_v15  ;;  %v3475_v7 = vld [vmem:[%s3678_s26 + $0x314] sm:$0xf]  ;;  %v2513_v11 = vor.u32 %v3387_v0, %v2510_v1  ;;  %v2708_v15 = vld [vmem:[%s3678_s26 + $0x1d8] sm:$0xf] }
  0xb0   : > { %v3531_v27 = vld [vmem:[%s3678_s26 + $0x4d4] sm:$0xf] }
  0xb1   : > { %1901 = vmatpush.bf16.msra.mxu2 %v3053_v8  ;;  %1874 = vmatpush.bf16.msra.mxu0 %v2509_v18  ;;  %v2862_v8 = vld [vmem:[%s3678_s26 + $0x330] sm:$0xf0]  ;;  %v3440_v18 = vld [vmem:[%s3678_s26 + $0x1f4] sm:$0xf0] }
  0xb2   : > { %v2865_v21 = vor.u32 %v3475_v7, %v2862_v8  ;;  %v3086_v28 = vld [vmem:[%s3678_s26 + $0x4f0] sm:$0xf0]  ;;  %v2709_v29 = vor.u32 %v3440_v18, %v2708_v15  ;;  %v2836_v15 = vld [vmem:[%s3678_s26 + $0x2d8] sm:$0xf] }
  0xb3   : > { %1888 = vmatpush.bf16.msra.mxu1 %v2765_v22  ;;  %1927 = vmatpush.bf16.msrb.mxu3 %v2609_v30  ;;  %v3121_v22 = vor.u32 %v3539_v9, %v3118_v12  ;;  %v2965_v30 = vor.u32 %v3504_v20, %v2964_v19  ;;  %v3089_v36 = vor.u32 %v3531_v27, %v3086_v28  ;;  %v3459_v37 = vld [vmem:[%s3678_s26 + $0x294] sm:$0xf]  ;;  %v3220_v12 = vld [vmem:[%s3678_s26 + $0x5d8] sm:$0xf] }
  0xb4   : > { %v3451_v50 = vld [vmem:[%s3678_s26 + $0x254] sm:$0xf]  ;;  %v2613_v9 = vor.u32 %v3416_v59, %v2612_v56  ;;  %v3221_v19 = vor.u32 %v3568_v13, %v3220_v12  ;;  %v3560_v27 = vld [vmem:[%s3678_s26 + $0x5b4] sm:$0xf0]  ;;  %v3564_v12 = vld [vmem:[%s3678_s26 + $0x5dc] sm:$0xf] }
  0xb5   : > { %1902 = vmatpush.bf16.msra.mxu2 %v3021_v23  ;;  %1875 = vmatpush.bf16.msra.mxu0 %v2477_v35  ;;  %v3467_v23 = vld [vmem:[%s3678_s26 + $0x2d4] sm:$0xf]  ;;  %v3316_v28 = vld [vmem:[%s3678_s26 + $0x698] sm:$0xf]  ;;  %v3222_v13 = vld [vmem:[%s3678_s26 + $0x5f8] sm:$0xf0] }
  0xb6   : > { %v2833_v35 = vor.u32 %v3467_v23, %v2830_v26  ;;  %v2766_v51 = vld [vmem:[%s3678_s26 + $0x270] sm:$0xf0]  ;;  %v2837_v26 = vor.u32 %v3472_v16, %v2836_v15  ;;  %v3544_v59 = vld [vmem:[%s3678_s26 + $0x534] sm:$0xf0] }
  0xb7   : > { %1889 = vmatpush.bf16.msra.mxu1 %v2733_v38  ;;  %1928 = vmatpush.bf16.msrb.mxu3 %v2577_v45  ;;  %v2798_v38 = vld [vmem:[%s3678_s26 + $0x2b0] sm:$0xf0]  ;;  %v2900_v45 = vld [vmem:[%s3678_s26 + $0x358] sm:$0xf]  ;;  %v2769_v63 = vor.u32 %v3451_v50, %v2766_v51 }
  0xb8   : > { %1876 = vmatmul.bf16.vlgmr.msra.gmra.mxu0 %v3784_v62  ;;  %v2801_v47 = vor.u32 %v3459_v37, %v2798_v38  ;;  %v3515_v52 = vld [vmem:[%s3678_s26 + $0x454] sm:$0xf]  ;;  %v2901_v55 = vor.u32 %v3488_v46, %v2900_v45  ;;  %v3156_v37 = vld [vmem:[%s3678_s26 + $0x558] sm:$0xf] }
  0xb9   : > { %1903 = vmatpush.bf16.msra.mxu2 %v2989_v39  ;;  %1938 = vmatpush.bf16.msrb.mxu0 %v2961_v40  ;;  %v3523_v39 = vld [vmem:[%s3678_s26 + $0x494] sm:$0xf]  ;;  %v2772_v45 = vld [vmem:[%s3678_s26 + $0x258] sm:$0xf] }
  0xba   : > { %1890 = vmatmul.bf16.vlgmr.msra.gmra.mxu1 %v3794_v4  ;;  %v3054_v40 = vld [vmem:[%s3678_s26 + $0x4b0] sm:$0xf0]  ;;  %v3456_v46 = vld [vmem:[%s3678_s26 + $0x274] sm:$0xf0] }
  0xbb   : > { %1952 = vmatpush.bf16.msrb.mxu1 %v3217_v41  ;;  %1929 = vmatpush.bf16.msrb.mxu3 %v2545_v58  ;;  %v2677_v41 = vor.u32 %v3432_v32, %v2676_v31  ;;  %v3057_v48 = vor.u32 %v3523_v39, %v3054_v40  ;;  %v3600_v58 = vld [vmem:[%s3678_s26 + $0x6f4] sm:$0x10]  ;;  %v3443_v1 = vld [vmem:[%s3678_s26 + $0x214] sm:$0xf] }
  0xbc   : > { %1904 = vmatmul.bf16.vlgmr.msra.gmra.mxu2 %v3792_v3  ;;  %v2990_v7 = vld [vmem:[%s3678_s26 + $0x430] sm:$0xf0]  ;;  %v3400_v31 = vld [vmem:[%s3678_s26 + $0xb4] sm:$0xf0] }
  0xbd   : > { %1970 = vmatpush.bf16.msrb.mxu2 %v1636_v44  ;;  %1939 = vmatpush.bf16.msrb.mxu0 %v2929_v53  ;;  %v3424_v44 = vld [vmem:[%s3678_s26 + $0x174] sm:$0xf0]  ;;  %v3022_v53 = vld [vmem:[%s3678_s26 + $0x470] sm:$0xf0] }
  0xbe   : > { %v3025_v0 = vor.u32 %v3515_v52, %v3022_v53  ;;  %v2804_v32 = vld [vmem:[%s3678_s26 + $0x298] sm:$0xf] }
  0xbf   : > { %1953 = vmatpush.bf16.msrb.mxu1 %v3185_v54  ;;  %1930 = vmatpush.bf16.msrb.mxu3 %v2513_v11  ;;  %v2645_v54 = vor.u32 %v3424_v44, %v2644_v43  ;;  %v2580_v11 = vld [vmem:[%s3678_s26 + $0xd8] sm:$0xf]  ;;  %v2805_v39 = vor.u32 %v3464_v33, %v2804_v32  ;;  %v1695_v43 = vpop.f32.mrf.mxu3 }
  0xc0   : > { %v3552_v40 = vld [vmem:[%s3678_s26 + $0x574] sm:$0xf0] }
  0xc1   : > { %1971 = vmatpush.bf16.msrb.mxu2 %v3313_v57  ;;  %1940 = vmatpush.bf16.msrb.mxu0 %v2897_v5  ;;  %v3348_v57 = vld [vmem:[%s3678_s26 + $0x6d8] sm:$0xf]  ;;  %v2734_v5 = vld [vmem:[%s3678_s26 + $0x230] sm:$0xf0]  ;;  %v3157_v50 = vor.u32 %v3552_v40, %v3156_v37  ;;  %v2646_v37 = vld [vmem:[%s3678_s26 + $0x178] sm:$0xf0] }
  0xc2   : > { %v3349_v8 = vor.u32 %v3600_v58, %v3348_v57  ;;  %v2737_v17 = vor.u32 %v3443_v1, %v2734_v5  ;;  %v3392_v44 = vld [vmem:[%s3678_s26 + $0x74] sm:$0xf0]  ;;  %v2773_v58 = vor.u32 %v3456_v46, %v2772_v45  ;;  %v3436_v1 = vld [vmem:[%s3678_s26 + $0x1dc] sm:$0xf] }
  0xc3   : > { %1954 = vmatpush.bf16.msrb.mxu1 %v3153_v6  ;;  %1931 = vmatpush.bf16.msrb.mxu3 %v2481_v25  ;;  %v3507_v6 = vld [vmem:[%s3678_s26 + $0x414] sm:$0xf]  ;;  %v2581_v25 = vor.u32 %v3408_v14, %v2580_v11  ;;  %v2484_v52 = vld [vmem:[%s3678_s26 + $0x18] sm:$0xf]  ;;  %v2710_v5 = vld [vmem:[%s3678_s26 + $0x1f8] sm:$0xf0] }
  0xc4   : > { %v2993_v18 = vor.u32 %v3507_v6, %v2990_v7  ;;  %v1639_v20 = vand.u32 %v3349_v8, %v3680_v2  ;;  %v3384_v53 = vld [vmem:[%s3678_s26 + $0x34] sm:$0xf0]  ;;  %v3500_v6 = vld [vmem:[%s3678_s26 + $0x3dc] sm:$0xf]  ;;  %v2713_v15 = vor.u32 %v3436_v1, %v2710_v5 }
  0xc5   : > { %1972 = vmatpush.bf16.msrb.mxu2 %v3281_v10  ;;  %1941 = vmatpush.bf16.msrb.mxu0 %v2865_v21  ;;  %v2869_v10 = vor.u32 %v3480_v61, %v2868_v60  ;;  %v2548_v21 = vld [vmem:[%s3678_s26 + $0x98] sm:$0xf]  ;;  %v2966_v7 = vld [vmem:[%s3678_s26 + $0x3f8] sm:$0xf0]  ;;  %v2485_v14 = vor.u32 %v3384_v53, %v2484_v52 }
  0xc6   : > { %1932 = vmatmul.bf16.vlgmr.msrb.gmra.mxu3 %v3784_v62  ;;  %v2549_v38 = vor.u32 %v3400_v31, %v2548_v21  ;;  %v3252_v60 = vld [vmem:[%s3678_s26 + $0x618] sm:$0xf]  ;;  %v2678_v21 = vld [vmem:[%s3678_s26 + $0x1b8] sm:$0xf0] }
  0xc7   : > { %1955 = vmatpush.bf16.msrb.mxu1 %v3121_v22  ;;  %1994 = vmatpush.bf16.msra.mxu3 %v2965_v30  ;;  %v3188_v22 = vld [vmem:[%s3678_s26 + $0x598] sm:$0xf]  ;;  %v1653_v23 = vpop.f32.mrf.mxu0  ;;  %v2902_v40 = vld [vmem:[%s3678_s26 + $0x378] sm:$0xf0] }
  0xc8   : > { %v3189_v34 = vor.u32 %v3560_v27, %v3188_v22  ;;  %v3576_v61 = vld [vmem:[%s3678_s26 + $0x634] sm:$0xf0]  ;;  %v3350_v52 = vld [vmem:[%s3678_s26 + $0x6f8] sm:$0x10] }
  0xc9   : > { %1973 = vmatpush.bf16.msrb.mxu2 %v3249_v24  ;;  %1942 = vmatpush.bf16.msrb.mxu0 %v2833_v35  ;;  %v1667_v24 = vpop.f32.mrf.mxu1  ;;  %v2740_v8 = vld [vmem:[%s3678_s26 + $0x218] sm:$0xf]  ;;  %v3253_v11 = vor.u32 %v3576_v61, %v3252_v60 }
  0xca   : > { %v1668_v30 = vadd.f32 %v1667_v24, %v1653_v23  ;;  %v3092_v16 = vld [vmem:[%s3678_s26 + $0x4d8] sm:$0xf]  ;;  %v3225_v23 = vor.u32 %v3564_v12, %v3222_v13  ;;  %v1697_v24 = vpop.f32.mrf.mxu3  ;;  %v3532_v12 = vld [vmem:[%s3678_s26 + $0x4dc] sm:$0xf] }
  0xcb   : > { %1956 = vmatpush.bf16.msrb.mxu1 %v3089_v36  ;;  %1995 = vmatpush.bf16.msra.mxu3 %v2933_v42  ;;  %v2516_v36 = vld [vmem:[%s3678_s26 + $0x58] sm:$0xf]  ;;  %v3094_v13 = vld [vmem:[%s3678_s26 + $0x4f8] sm:$0xf0] }
  0xcc   : > { %3359 = vmatmul.msk.bf16.vlgmr.msrb.gmra.mxu2 %vm1612_vm2, %v3763_v49  ;;  %v3584_v42 = vld [vmem:[%s3678_s26 + $0x674] sm:$0xf0]  ;;  %v2517_v57 = vor.u32 %v3392_v44, %v2516_v36  ;;  %v3420_v36 = vld [vmem:[%s3678_s26 + $0x15c] sm:$0xf] }
  0xcd   : > { %1980 = vmatpush.bf16.msra.mxu2 %v2709_v29  ;;  %1943 = vmatpush.bf16.msrb.mxu0 %v2801_v47  ;;  %v3592_v29 = vld [vmem:[%s3678_s26 + $0x6b4] sm:$0xf0]  ;;  %v2649_v44 = vor.u32 %v3420_v36, %v2646_v37  ;;  %v2518_v36 = vld [vmem:[%s3678_s26 + $0x78] sm:$0xf0] }
  0xce   : > { %v3317_v35 = vor.u32 %v3592_v29, %v3316_v28  ;;  %v3556_v29 = vld [vmem:[%s3678_s26 + $0x59c] sm:$0xf]  ;;  %v3060_v32 = vld [vmem:[%s3678_s26 + $0x498] sm:$0xf] }
  0xcf   : > { %1957 = vmatpush.bf16.msrb.mxu1 %v3057_v48  ;;  %1996 = vmatpush.bf16.msra.mxu3 %v2901_v55  ;;  %v1681_v47 = vpop.f32.mrf.mxu2  ;;  %v1655_v55 = vpop.f32.mrf.mxu0  ;;  %v3528_v33 = vld [vmem:[%s3678_s26 + $0x4b4] sm:$0xf0]  ;;  %v3580_v37 = vld [vmem:[%s3678_s26 + $0x65c] sm:$0xf] }
  0xd0   : > { %v1682_v48 = vadd.f32 %v1681_v47, %v1668_v30  ;;  %v3190_v30 = vld [vmem:[%s3678_s26 + $0x5b8] sm:$0xf0]  ;;  %v3028_v45 = vld [vmem:[%s3678_s26 + $0x458] sm:$0xf] }
  0xd1   : > { %1981 = vmatpush.bf16.msra.mxu2 %v2677_v41  ;;  %1944 = vmatpush.bf16.msrb.mxu0 %v2769_v63  ;;  %v3284_v41 = vld [vmem:[%s3678_s26 + $0x658] sm:$0xf]  ;;  %v1669_v56 = vpop.f32.mrf.mxu1  ;;  %v3412_v47 = vld [vmem:[%s3678_s26 + $0x11c] sm:$0xf] }
  0xd2   : > { %v3285_v51 = vor.u32 %v3584_v42, %v3284_v41  ;;  %v1670_v63 = vadd.f32 %v1669_v56, %v1655_v55  ;;  %v3061_v41 = vor.u32 %v3528_v33, %v3060_v32  ;;  %v3548_v42 = vld [vmem:[%s3678_s26 + $0x55c] sm:$0xf]  ;;  %v3520_v46 = vld [vmem:[%s3678_s26 + $0x474] sm:$0xf0] }
  0xd3   : > { %1958 = vmatpush.bf16.msrb.mxu1 %v3025_v0  ;;  %1997 = vmatpush.bf16.msra.mxu3 %v2869_v10  ;;  %v4133_v0 = vadd.f32 %v1695_v43, %v1682_v48  ;;  %v3158_v43 = vld [vmem:[%s3678_s26 + $0x578] sm:$0xf0]  ;;  %v3029_v56 = vor.u32 %v3520_v46, %v3028_v45  ;;  %v2996_v61 = vld [vmem:[%s3678_s26 + $0x418] sm:$0xf] }
  0xd4   : > { %v3161_v53 = vor.u32 %v3548_v42, %v3158_v43  ;;  %v2870_v55 = vld [vmem:[%s3678_s26 + $0x338] sm:$0xf0] }
  0xd5   : > { %1982 = vmatpush.bf16.msra.mxu2 %v2645_v54  ;;  %1945 = vmatpush.bf16.msrb.mxu0 %v2737_v17  ;;  %v3124_v54 = vld [vmem:[%s3678_s26 + $0x518] sm:$0xf]  ;;  %v3388_v32 = vld [vmem:[%s3678_s26 + $0x5c] sm:$0xf] }
  0xd6   : > { %v3125_v10 = vor.u32 %v3544_v59, %v3124_v54  ;;  %v3536_v17 = vld [vmem:[%s3678_s26 + $0x4f4] sm:$0xf0]  ;;  %v3476_v54 = vld [vmem:[%s3678_s26 + $0x31c] sm:$0xf]  ;;  %v2521_v46 = vor.u32 %v3388_v32, %v2518_v36 }
  0xd7   : > { %1959 = vmatpush.bf16.msrb.mxu1 %v2993_v18  ;;  %1998 = vmatpush.bf16.msra.mxu3 %v2837_v26  ;;  %v2969_v18 = vor.u32 %v3500_v6, %v2966_v7  ;;  %v1683_v22 = vpop.f32.mrf.mxu2  ;;  %v2934_v26 = vld [vmem:[%s3678_s26 + $0x3b8] sm:$0xf0]  ;;  %v3093_v28 = vor.u32 %v3536_v17, %v3092_v16  ;;  %v2873_v5 = vor.u32 %v3476_v54, %v2870_v55 }
  0xd8   : > { %1946 = vmatmul.bf16.vlgmr.msrb.gmra.mxu0 %v3794_v4  ;;  %v1684_v27 = vadd.f32 %v1683_v22, %v1670_v63  ;;  %v3512_v63 = vld [vmem:[%s3678_s26 + $0x434] sm:$0xf0]  ;;  %v3404_v6 = vld [vmem:[%s3678_s26 + $0xdc] sm:$0xf] }
  0xd9   : > { %1983 = vmatpush.bf16.msra.mxu2 %v2613_v9  ;;  %2008 = vmatpush.bf16.msra.mxu0 %v3221_v19  ;;  %v3448_v9 = vld [vmem:[%s3678_s26 + $0x234] sm:$0xf0]  ;;  %v1709_v60 = vpop.f32.mrf.mxu3  ;;  %v2582_v7 = vld [vmem:[%s3678_s26 + $0xf8] sm:$0xf0] }
  0xda   : > { %1960 = vmatmul.bf16.vlgmr.msrb.gmra.mxu1 %v3792_v3  ;;  %v2741_v19 = vor.u32 %v3448_v9, %v2740_v8  ;;  %v3468_v9 = vld [vmem:[%s3678_s26 + $0x2dc] sm:$0xf] }
  0xdb   : > { %2026 = vmatpush.bf16.msra.mxu1 %v1639_v20  ;;  %1999 = vmatpush.bf16.msra.mxu3 %v2805_v39  ;;  %v3428_v20 = vld [vmem:[%s3678_s26 + $0x19c] sm:$0xf] }
  0xdc   : > { %v2681_v31 = vor.u32 %v3428_v20, %v2678_v21  ;;  %v3484_v39 = vld [vmem:[%s3678_s26 + $0x35c] sm:$0xf] }
  0xdd   : > { %1984 = vmatpush.bf16.msra.mxu2 %v2581_v25  ;;  %2009 = vmatpush.bf16.msra.mxu0 %v3189_v34  ;;  %v3492_v25 = vld [vmem:[%s3678_s26 + $0x39c] sm:$0xf]  ;;  %v4153_v34 = vadd.f32 %v1697_v24, %v1684_v27  ;;  %v2905_v48 = vor.u32 %v3484_v39, %v2902_v40 }
  0xde   : > { %v2550_v22 = vld [vmem:[%s3678_s26 + $0xb8] sm:$0xf0] }
  0xdf   : > { %2027 = vmatpush.bf16.msra.mxu1 %v3317_v35  ;;  %2000 = vmatpush.bf16.msra.mxu3 %v2773_v58  ;;  %v2937_v35 = vor.u32 %v3492_v25, %v2934_v26  ;;  %v3126_v58 = vld [vmem:[%s3678_s26 + $0x538] sm:$0xf0]  ;;  %v1751_v16 = vpop.f32.mrf.mxu2  ;;  %v3097_v25 = vor.u32 %v3532_v12, %v3094_v13 }
  0xe0   : > { %v3318_v24 = vld [vmem:[%s3678_s26 + $0x6b8] sm:$0xf0] }
  0xe1   : > { %1985 = vmatpush.bf16.msra.mxu2 %v2549_v38  ;;  %2010 = vmatpush.bf16.msra.mxu0 %v3157_v50  ;;  %v3193_v38 = vor.u32 %v3556_v29, %v3190_v30  ;;  %v2614_v50 = vld [vmem:[%s3678_s26 + $0x138] sm:$0xf0]  ;;  %v1711_v39 = vpop.f32.mrf.mxu3 }
  0xe2   : > { %v2617_v59 = vor.u32 %v3412_v47, %v2614_v50  ;;  %v3460_v26 = vld [vmem:[%s3678_s26 + $0x29c] sm:$0xf] }
  0xe3   : > { %2028 = vmatpush.bf16.msra.mxu1 %v3285_v51  ;;  %2001 = vmatpush.bf16.msra.mxu3 %v2741_v19  ;;  %v3596_v51 = vld [vmem:[%s3678_s26 + $0x6dc] sm:$0xf] }
  0xe4   : > { %v3353_v1 = vor.u32 %v3596_v51, %v3350_v52  ;;  %v2806_v27 = vld [vmem:[%s3678_s26 + $0x2b8] sm:$0xf0] }
  0xe5   : > { %1986 = vmatpush.bf16.msra.mxu2 %v2517_v57  ;;  %2011 = vmatpush.bf16.msra.mxu0 %v3125_v10  ;;  %v3540_v57 = vld [vmem:[%s3678_s26 + $0x51c] sm:$0xf] }
  0xe6   : > { %2002 = vmatmul.bf16.vlgmr.msra.gmra.mxu3 %v3794_v4  ;;  %v3129_v8 = vor.u32 %v3540_v57, %v3126_v58  ;;  %v2838_v10 = vld [vmem:[%s3678_s26 + $0x2f8] sm:$0xf0]  ;;  %v1642_v17 = vand.u32 %v3353_v1, %v3680_v2 }
  0xe7   : > { %2029 = vmatpush.bf16.msra.mxu1 %v3253_v11  ;;  %2064 = vmatpush.bf16.msrb.mxu3 %v3225_v23  ;;  %v2997_v11 = vor.u32 %v3512_v63, %v2996_v61  ;;  %v1737_v20 = vpop.f32.mrf.mxu1  ;;  %v2841_v21 = vor.u32 %v3468_v9, %v2838_v10  ;;  %v3588_v23 = vld [vmem:[%s3678_s26 + $0x69c] sm:$0xf] }
  0xe8   : > { %v3524_v2 = vld [vmem:[%s3678_s26 + $0x49c] sm:$0xf] }
  0xe9   : > { %1987 = vmatpush.bf16.msra.mxu2 %v2485_v14  ;;  %2012 = vmatpush.bf16.msra.mxu0 %v3093_v28  ;;  %v1723_v14 = vpop.f32.mrf.mxu0  ;;  %v3062_v29 = vld [vmem:[%s3678_s26 + $0x4b8] sm:$0xf0] }
  0xea   : > { %3360 = vmatmul.msk.bf16.vlgmr.msra.gmra.mxu1 %vm1612_vm2, %v3763_v49  ;;  %v1724_v19 = vadd.f32 %v1723_v14, %v1709_v60  ;;  %v3065_v40 = vor.u32 %v3524_v2, %v3062_v29  ;;  %v2774_v42 = vld [vmem:[%s3678_s26 + $0x278] sm:$0xf0] }
  0xeb   : > { %2036 = vmatpush.bf16.msrb.mxu1 %v2713_v15  ;;  %2065 = vmatpush.bf16.msrb.mxu3 %v3193_v38  ;;  %v2585_v15 = vor.u32 %v3404_v6, %v2582_v7  ;;  %v3286_v38 = vld [vmem:[%s3678_s26 + $0x678] sm:$0xf0] }
  0xec   : > { %1988 = vmatmul.bf16.vlgmr.msra.gmra.mxu2 %v3784_v62  ;;  %v1738_v28 = vadd.f32 %v1737_v20, %v1724_v19  ;;  %v3516_v43 = vld [vmem:[%s3678_s26 + $0x45c] sm:$0xf]  ;;  %v3289_v47 = vor.u32 %v3580_v37, %v3286_v38 }
  0xed   : > { %2050 = vmatpush.bf16.msrb.mxu2 %v2969_v18  ;;  %2013 = vmatpush.bf16.msra.mxu0 %v3061_v41  ;;  %v3396_v18 = vld [vmem:[%s3678_s26 + $0x9c] sm:$0xf] }
  0xee   : > { %v2553_v30 = vor.u32 %v3396_v18, %v2550_v22  ;;  %v4193_v33 = vadd.f32 %v1751_v16, %v1738_v28  ;;  %v3452_v41 = vld [vmem:[%s3678_s26 + $0x25c] sm:$0xf] }
  0xef   : > { %2037 = vmatpush.bf16.msrb.mxu1 %v2681_v31  ;;  %2066 = vmatpush.bf16.msrb.mxu3 %v3161_v53  ;;  %v3321_v31 = vor.u32 %v3588_v23, %v3318_v24  ;;  %v1739_v51 = vpop.f32.mrf.mxu1  ;;  %v2777_v52 = vor.u32 %v3452_v41, %v2774_v42  ;;  %v2486_v53 = vld [vmem:[%s3678_s26 + $0x38] sm:$0xf0] }
  0xf0   : > { %v3572_v54 = vld [vmem:[%s3678_s26 + $0x61c] sm:$0xf] }
  0xf1   : > { %2051 = vmatpush.bf16.msrb.mxu2 %v2937_v35  ;;  %2014 = vmatpush.bf16.msra.mxu0 %v3029_v56  ;;  %v2809_v35 = vor.u32 %v3460_v26, %v2806_v27  ;;  %v1725_v45 = vpop.f32.mrf.mxu0  ;;  %v3254_v55 = vld [vmem:[%s3678_s26 + $0x638] sm:$0xf0]  ;;  %v1753_v56 = vpop.f32.mrf.mxu2 }
  0xf2   : > { %v1726_v50 = vadd.f32 %v1725_v45, %v1711_v39  ;;  %v3444_v58 = vld [vmem:[%s3678_s26 + $0x21c] sm:$0xf] }
  0xf3   : > { %2038 = vmatpush.bf16.msrb.mxu1 %v2649_v44  ;;  %2067 = vmatpush.bf16.msrb.mxu3 %v3129_v8  ;;  %v3030_v44 = vld [vmem:[%s3678_s26 + $0x478] sm:$0xf0] }
  0xf4   : > { %v3033_v57 = vor.u32 %v3516_v43, %v3030_v44  ;;  %v1740_v60 = vadd.f32 %v1739_v51, %v1726_v50  ;;  %v3508_v61 = vld [vmem:[%s3678_s26 + $0x41c] sm:$0xf] }
  0xf5   : > { %2052 = vmatpush.bf16.msrb.mxu2 %v2905_v48  ;;  %2015 = vmatpush.bf16.msra.mxu0 %v2997_v11  ;;  %v3380_v48 = vld [vmem:[%s3678_s26 + $0x1c] sm:$0xf] }
  0xf6   : > { %v2998_v63 = vld [vmem:[%s3678_s26 + $0x438] sm:$0xf0]  ;;  %v2489_v1 = vor.u32 %v3380_v48, %v2486_v53  ;;  %v4211_v6 = vadd.f32 %v1753_v56, %v1740_v60 }
  0xf7   : > { %2039 = vmatpush.bf16.msrb.mxu1 %v2617_v59  ;;  %2068 = vmatpush.bf16.msrb.mxu3 %v3097_v25  ;;  %v2742_v59 = vld [vmem:[%s3678_s26 + $0x238] sm:$0xf0]  ;;  %v3001_v8 = vor.u32 %v3508_v61, %v2998_v63  ;;  %v1807_v12 = vpop.f32.mrf.mxu1 }
  0xf8   : > { %2016 = vmatmul.bf16.vlgmr.msra.gmra.mxu0 %v3792_v3  ;;  %v2745_v7 = vor.u32 %v3444_v58, %v2742_v59  ;;  %v2119_v63 = vmul.f32 %v4211_v6, %v4211_v6 }
  0xf9   : > { %2053 = vmatpush.bf16.msrb.mxu2 %v2873_v5  ;;  %2082 = vmatpush.bf16.msrb.mxu0 %v1642_v17  ;;  %v3257_v5 = vor.u32 %v3572_v54, %v3254_v55  ;;  %v1779_v10 = vpop.f32.mrf.mxu3 }
  0xfb   : > { %2040 = vmatpush.bf16.msrb.mxu1 %v2585_v15  ;;  %2069 = vmatpush.bf16.msrb.mxu3 %v3065_v40 }
  0xfd   : > { %2054 = vmatpush.bf16.msrb.mxu2 %v2841_v21  ;;  %2083 = vmatpush.bf16.msrb.mxu0 %v3321_v31 }
  0xff   : > { %2041 = vmatpush.bf16.msrb.mxu1 %v2553_v30  ;;  %2070 = vmatpush.bf16.msrb.mxu3 %v3033_v57  ;;  %v1765_v9 = vpop.f32.mrf.mxu2 }
 0x100   : > { %v1780_v11 = vadd.f32 %v1779_v10, %v1765_v9  ;;  %v2118_v10 = vmul.f32 %v4153_v34, %v4153_v34 }
 0x101   : > { %2055 = vmatpush.bf16.msrb.mxu2 %v2809_v35  ;;  %2084 = vmatpush.bf16.msrb.mxu0 %v3289_v47  ;;  %v1781_v16 = vpop.f32.mrf.mxu3 }
 0x103   : > { %2042 = vmatpush.bf16.msrb.mxu1 %v2521_v46  ;;  %2071 = vmatpush.bf16.msrb.mxu3 %v3001_v8 }
 0x105   : > { %2056 = vmatpush.bf16.msrb.mxu2 %v2777_v52  ;;  %2085 = vmatpush.bf16.msrb.mxu0 %v3257_v5  ;;  %v1793_v13 = vpop.f32.mrf.mxu0 }
 0x106   : > { %2072 = vmatmul.bf16.vlgmr.msrb.gmra.mxu3 %v3792_v3  ;;  %v1794_v15 = vadd.f32 %v1793_v13, %v1780_v11 }
 0x107   : > { %2043 = vmatpush.bf16.msrb.mxu1 %v2489_v1  ;;  %v1767_v14 = vpop.f32.mrf.mxu2 }
 0x108   : > { %3361 = vmatmul.msk.bf16.vlgmr.msrb.gmra.mxu0 %vm1612_vm2, %v3763_v49  ;;  %v4218_v17 = vadd.f32 %v1807_v12, %v1794_v15  ;;  %v1782_v18 = vadd.f32 %v1781_v16, %v1767_v14  ;;  %v2101_v15 = vadd.f32 %v4211_v6, %v4153_v34 }
 0x109   : > { %2057 = vmatpush.bf16.msrb.mxu2 %v2745_v7 }
 0x10a   : > { %2044 = vmatmul.bf16.vlgmr.msrb.gmra.mxu1 %v3784_v62  ;;  %v1809_v62 = vpop.f32.mrf.mxu1 }
 0x10c   : > { %2058 = vmatmul.bf16.vlgmr.msrb.gmra.mxu2 %v3794_v4 }
 0x10d   : > { %v1795_v19 = vpop.f32.mrf.mxu0 }
 0x10e   : > { %v1796_v20 = vadd.f32 %v1795_v19, %v1782_v18  ;;  %v2135_v18 = vadd.f32 %v2119_v63, %v2118_v10 }
 0x110   : > { %v4220_v4 = vadd.f32 %v1809_v62, %v1796_v20 }
 0x112   : > { %v2120_v11 = vmul.f32 %v4220_v4, %v4220_v4  ;;  %v2102_v20 = vadd.f32 %v2101_v15, %v4220_v4 }
 0x115   : > { %v1863_v49 = vpop.f32.mrf.mxu0 }
 0x117   : > { %v1821_v3 = vpop.f32.mrf.mxu1 }
 0x119   : > { %v1849_v23 = vpop.f32.mrf.mxu3 }
 0x11d   : > { %v1865_v28 = vpop.f32.mrf.mxu0 }
 0x11f   : > { %v1835_v21 = vpop.f32.mrf.mxu2  ;;  %v1823_v26 = vpop.f32.mrf.mxu1 }
 0x120   : > { %v1836_v22 = vadd.f32 %v1835_v21, %v1821_v3  ;;  %v2136_v21 = vadd.f32 %v2135_v18, %v2120_v11 }
 0x121   : > { %v1851_v2 = vpop.f32.mrf.mxu3 }
 0x122   : > { %v1850_v24 = vadd.f32 %v1849_v23, %v1836_v22 }
 0x124   : > { %v4222_v25 = vadd.f32 %v1863_v49, %v1850_v24 }
 0x127   : > { %v1837_v27 = vpop.f32.mrf.mxu2 }
 0x128   : > { %v1838_v53 = vadd.f32 %v1837_v27, %v1823_v26  ;;  %v2110_v27 = vmul.f32 %v4133_v0, %v4133_v0 }
 0x129   : > { %v4224_v32 = vpop.f32.mrf.mxu3 }
 0x12a   : > { %v1852_v58 = vadd.f32 %v1851_v2, %v1838_v53 }
 0x12c   : > { %v4232_v1 = vadd.f32 %v1865_v28, %v1852_v58  ;;  %v2111_v28 = vmul.f32 %v4193_v33, %v4193_v33 }
 0x12e   : > { %v2121_v19 = vmul.f32 %v4232_v1, %v4232_v1  ;;  %v2103_v49 = vadd.f32 %v2102_v20, %v4232_v1 }
 0x130   : > { %v2137_v2 = vadd.f32 %v2136_v21, %v2121_v19 }
 0x131   : > { %v1921_v38 = vpop.f32.mrf.mxu3 }
 0x135   : > { %v1877_v30 = vpop.f32.mrf.mxu0 }
 0x137   : > { %v1891_v29 = vpop.f32.mrf.mxu1 }
 0x138   : > { %v1892_v12 = vadd.f32 %v1891_v29, %v1877_v30 }
 0x13d   : > { %v1879_v36 = vpop.f32.mrf.mxu0 }
 0x13f   : > { %v1905_v31 = vpop.f32.mrf.mxu2  ;;  %v1893_v35 = vpop.f32.mrf.mxu1 }
 0x140   : > { %v1894_v57 = vadd.f32 %v1893_v35, %v1879_v36  ;;  %v1906_v22 = vadd.f32 %v1905_v31, %v1892_v12 }
 0x147   : > { %v1907_v37 = vpop.f32.mrf.mxu2 }
 0x148   : > { %v1908_v60 = vadd.f32 %v1907_v37, %v1894_v57 }
 0x149   : > { %v1933_v42 = vpop.f32.mrf.mxu3 }
 0x14a   : > { %v4238_v13 = vadd.f32 %v1921_v38, %v1908_v60 }
 0x14c   : > { %v2122_v23 = vmul.f32 %v4238_v13, %v4238_v13  ;;  %v2104_v31 = vadd.f32 %v2103_v49, %v4238_v13  ;;  %v2144_v49 = vld [vmem:[%s4376_s4] sm:$0xff] }
 0x14f   : > { %v4226_v41 = vpop.f32.mrf.mxu2 }
 0x151   : > { %v1935_v46 = vpop.f32.mrf.mxu3 }
 0x155   : > { %v1947_v40 = vpop.f32.mrf.mxu0 }
 0x156   : > { %v1948_v62 = vadd.f32 %v1947_v40, %v1933_v42  ;;  %v2092_v42 = vadd.f32 %v4193_v33, %v4133_v0 }
 0x157   : > { %v1961_v39 = vpop.f32.mrf.mxu1  ;;  %v1977_v45 = vpop.f32.mrf.mxu2 }
 0x158   : > { %v1962_v29 = vadd.f32 %v1961_v39, %v1948_v62  ;;  %v2138_v39 = vadd.f32 %v2137_v2, %v2122_v23  ;;  %v2093_v53 = vadd.f32 %v2092_v42, %v4218_v17 }
 0x15a   : > { %v2094_v60 = vadd.f32 %v2093_v53, %v4222_v25 }
 0x15d   : > { %v1949_v44 = vpop.f32.mrf.mxu0 }
 0x15e   : > { %v1950_v59 = vadd.f32 %v1949_v44, %v1935_v46  ;;  %v4264_v44 = vadd.f32 %v4224_v32, %v1906_v22 }
 0x15f   : > { %v1963_v43 = vpop.f32.mrf.mxu1 }
 0x160   : > { %v1964_v7 = vadd.f32 %v1963_v43, %v1950_v59  ;;  %v2112_v43 = vmul.f32 %v4218_v17, %v4218_v17 }
 0x162   : > { %v4245_v3 = vadd.f32 %v1977_v45, %v1964_v7 }
 0x164   : > { %v2123_v36 = vmul.f32 %v4245_v3, %v4245_v3 }
 0x166   : > { %v2139_v58 = vadd.f32 %v2138_v39, %v2123_v36 }
 0x167   : > { %v4228_v47 = vpop.f32.mrf.mxu1 }
 0x169   : > { %v2003_v51 = vpop.f32.mrf.mxu3 }
 0x16f   : > { %v1989_v48 = vpop.f32.mrf.mxu2  ;;  %v2033_v52 = vpop.f32.mrf.mxu1 }
 0x170   : > { %v2004_v24 = vadd.f32 %v2003_v51, %v1989_v48  ;;  %v2105_v48 = vadd.f32 %v2104_v31, %v4245_v3 }
 0x171   : > { %v2005_v56 = vpop.f32.mrf.mxu3 }
 0x175   : > { %v2017_v50 = vpop.f32.mrf.mxu0 }
 0x176   : > { %v2018_v45 = vadd.f32 %v2017_v50, %v2004_v24 }
 0x177   : > { %v1991_v54 = vpop.f32.mrf.mxu2 }
 0x178   : > { %v2006_v8 = vadd.f32 %v2005_v56, %v1991_v54  ;;  %v2113_v54 = vmul.f32 %v4222_v25, %v4222_v25  ;;  %v4282_v63 = vadd.f32 %v4228_v47, %v2018_v45 }
 0x17d   : > { %v2019_v55 = vpop.f32.mrf.mxu0 }
 0x17e   : > { %v2020_v16 = vadd.f32 %v2019_v55, %v2006_v8  ;;  %v4273_v55 = vadd.f32 %v4226_v41, %v1962_v29 }
 0x180   : > { %v4250_v26 = vadd.f32 %v2033_v52, %v2020_v16  ;;  %v2126_v52 = vadd.f32 %v2111_v28, %v2110_v27  ;;  %v2115_v10 = vmul.f32 %v4273_v55, %v4273_v55  ;;  %v2116_v16 = vmul.f32 %v4282_v63, %v4282_v63  ;;  %v2145_v28 = vld [vmem:[%s4376_s4 + $0x8] sm:$0xff] }
 0x182   : > { %v2124_v51 = vmul.f32 %v4250_v26, %v4250_v26  ;;  %v2106_v50 = vadd.f32 %v2105_v48, %v4250_v26  ;;  %v2127_v59 = vadd.f32 %v2126_v52, %v2112_v43  ;;  %v2231_v48 = vld [vmem:[%s4377_s5] sm:$0xff] }
 0x184   : > { %v2140_v7 = vadd.f32 %v2139_v58, %v2124_v51  ;;  %v2128_v8 = vadd.f32 %v2127_v59, %v2113_v54 }
 0x185   : > { %v2087_v14 = vpop.f32.mrf.mxu0 }
 0x187   : > { %v2045_v61 = vpop.f32.mrf.mxu1 }
 0x189   : > { %v2073_v9 = vpop.f32.mrf.mxu3 }
 0x18d   : > { %v2089_v56 = vpop.f32.mrf.mxu0 }
 0x18f   : > { %v2059_v5 = vpop.f32.mrf.mxu2  ;;  %v2047_v30 = vpop.f32.mrf.mxu1 }
 0x190   : > { %v2060_v37 = vadd.f32 %v2059_v5, %v2045_v61  ;;  %v2114_v61 = vmul.f32 %v4264_v44, %v4264_v44 }
 0x191   : > { %v2075_v40 = vpop.f32.mrf.mxu3 }
 0x192   : > { %v2074_v32 = vadd.f32 %v2073_v9, %v2060_v37  ;;  %v2095_v9 = vadd.f32 %v2094_v60, %v4264_v44  ;;  %v2129_v15 = vadd.f32 %v2128_v8, %v2114_v61 }
 0x194   : > { %v4290_v11 = vadd.f32 %v2087_v14, %v2074_v32  ;;  %v2096_v47 = vadd.f32 %v2095_v9, %v4273_v55  ;;  %v2130_v62 = vadd.f32 %v2129_v15, %v2115_v10  ;;  %v2285_v15 = vld [vmem:[%s4374_s2] sm:$0xff] }
 0x196   : > { %v2097_v18 = vadd.f32 %v2096_v47, %v4282_v63  ;;  %v2117_v19 = vmul.f32 %v4290_v11, %v4290_v11  ;;  %v2131_v21 = vadd.f32 %v2130_v62, %v2116_v16 }
 0x197   : > { %v2061_v35 = vpop.f32.mrf.mxu2 }
 0x198   : > { %v2062_v38 = vadd.f32 %v2061_v35, %v2047_v30  ;;  %v2098_v20 = vadd.f32 %v2097_v18, %v4290_v11  ;;  %v2132_v14 = vadd.f32 %v2131_v21, %v2117_v19  ;;  %v2289_v19 = vld [vmem:[%s4375_s3] sm:$0xff]  ;;  %v2286_v21 = vld [vmem:[%s4374_s2 + $0x8] sm:$0xff] }
 0x19a   : > { %v2076_v46 = vadd.f32 %v2075_v40, %v2062_v38 }
 0x19c   : > { %v4275_v57 = vadd.f32 %v2089_v56, %v2076_v46  ;;  %v2232_v56 = vld [vmem:[%s4377_s5 + $0x8] sm:$0xff] }
 0x19e   : > { %v2107_v5 = vadd.f32 %v2106_v50, %v4275_v57  ;;  %v2125_v41 = vmul.f32 %v4275_v57, %v4275_v57 }
 0x1a0   : > { %2108 = vadd.xlane.f32.xlu0 %v2107_v5  ;;  %v2141_v12 = vadd.f32 %v2140_v7, %v2125_v41 }
 0x1a2   : > { %2142 = vadd.xlane.f32.xlu1 %v2141_v12  ;;  %v3628_v12 = vmov 0  }
 0x1a3   : > { %3612 = vset.pattern.permute.xlu2 %v3628_v12  ;;  %3613 = vset.pattern.permute.xlu0 %v3628_v12 }
 0x1a4   : > { %3614 = vset.pattern.permute.xlu1 %v3628_v12 }
 0x1a8   : > { %2099 = vadd.xlane.f32.xlu0 %v2098_v20 }
 0x1aa   : > { %2133 = vadd.xlane.f32.xlu1 %v2132_v14 }
 0x213   : > { %v2109_v22 = vpop.xlane.xlu0 %2108 }
 0x214   : > { %2167 = vmatpush.msra.mxu0 %v2109_v22 }
 0x215   : > { %v2143_v23 = vpop.xlane.xlu1 %2142 }
 0x216   : > { %2192 = vmatpush.msra.mxu1 %v2143_v23 }
 0x21b   : > { %v2100_v24 = vpop.xlane.xlu0 %2099 }
 0x21c   : > { %2168 = vmatpush.msra.mxu0 %v2100_v24 }
 0x21d   : > { %v2134_v27 = vpop.xlane.xlu1 %2133  ;;  %3362 = vmatmul.msk.f32.vlgmr.msra.gmra.mxu0 %vm2146_vm3, %v2144_v49 }
 0x21e   : > { %2193 = vmatpush.msra.mxu1 %v2134_v27 }
 0x21f   : > { %3364 = vmatmul.msk.f32.vlgmr.msra.gmra.mxu1 %vm2146_vm3, %v2144_v49  ;;  %v2290_v49 = vld [vmem:[%s4375_s3 + $0x8] sm:$0xff] }
 0x225   : > { %3363 = vmatmul.msk.f32.gmra.mxu0 %vm2146_vm3, %v2145_v28 }
 0x227   : > { %3365 = vmatmul.msk.f32.gmra.mxu1 %vm2146_vm3, %v2145_v28 }
 0x29a   : > { %v2170_v2 = vpop.f32.mrf.mxu0 }
 0x29b   : > { %v2176_v29 = vmul.f32 0.0009765625, %v2170_v2 }
 0x29c   : > { %v2195_v30 = vpop.f32.mrf.mxu1 }
 0x29d   : > { %v2203_v35 = vmul.f32 %v2176_v29, %v2176_v29  ;;  %v2201_v31 = vmul.f32 0.0009765625, %v2195_v30 }
 0x29f   : > { %v2205_v36 = vsub.f32 %v2201_v31, %v2203_v35 }
 0x2a1   : > { %v2207_v37 = vmax.f32 %v2205_v36, 0.0 }
 0x2a2   : > { %v2173_v38 = vpop.f32.mrf.mxu0 }
 0x2a3   : > { %v2209_v40 = vadd.f32 1e-05, %v2207_v37  ;;  %v2177_v42 = vmul.f32 0.0009765625, %v2173_v38 }
 0x2a4   : > { %v2198_v43 = vpop.f32.mrf.mxu1 }
 0x2a5   : > { %3615 = vrsqrt.f32 %v2209_v40  ;;  %v2204_v39 = vmul.f32 %v2177_v42, %v2177_v42  ;;  %v2202_v45 = vmul.f32 0.0009765625, %v2198_v43  ;;  %2253 = vmatpush.msra.mxu2 %v2177_v42  ;;  %vm2217_vm8 = vweird.f32 %v2209_v40 }
 0x2a7   : > { %v2206_v46 = vsub.f32 %v2202_v45, %v2204_v39  ;;  %2254 = vmatpush.msra.mxu2 %v2176_v29 }
 0x2a8   : > { %3366 = vmatmul.msk.f32.vlgmr.msra.gmra.mxu2 %vm2146_vm3, %v2231_v48 }
 0x2a9   : > { %v2208_v51 = vmax.f32 %v2206_v46, 0.0 }
 0x2ab   : > { %v3616_v52 = vpop.eup %3615  ;;  %v2210_v53 = vadd.f32 1e-05, %v2208_v51 }
 0x2ac   : > { %v2212_v54 = vmul.f32 %v3616_v52, %v2209_v40  ;;  %vm2218_vm6 = vweird.f32 %v3616_v52 }
 0x2ad   : > { %3617 = vrsqrt.f32 %v2210_v53  ;;  %vm2227_vm5 = vweird.f32 %v2210_v53  ;;  %vm2219_vm9 = vmor %vm2217_vm8, %vm2218_vm6 }
 0x2ae   : > { %v2213_v32 = vmul.f32 %v3616_v52, %v2212_v54 }
 0x2b0   : > { %3367 = vmatmul.msk.f32.gmra.mxu2 %vm2146_vm3, %v2232_v56  ;;  %v2214_v59 = vmul.f32 0.5, %v2213_v32 }
 0x2b2   : > { %v2215_v5 = vsub.f32 1.5, %v2214_v59 }
 0x2b3   : > { %v3618_v50 = vpop.eup %3617 }
 0x2b4   : > { %v2222_v58 = vmul.f32 %v3618_v50, %v2210_v53  ;;  %vm2228_vm4 = vweird.f32 %v3618_v50  ;;  %v2216_v8 = vmul.f32 %v3616_v52, %v2215_v5 }
 0x2b5   : > { %vm2229_vm7 = vmor %vm2227_vm5, %vm2228_vm4 }
 0x2b6   : > { %v2223_v60 = vmul.f32 %v3618_v50, %v2222_v58  ;;  %v2220_v10 = vsel %vm2219_vm9, %v3616_v52, %v2216_v8 }
 0x2b8   : > { %v2224_v61 = vmul.f32 0.5, %v2223_v60 }
 0x2ba   : > { %v2225_v41 = vsub.f32 1.5, %v2224_v61 }
 0x2bc   : > { %v2226_v7 = vmul.f32 %v3618_v50, %v2225_v41 }
 0x2be   : > { %v2230_v9 = vsel %vm2229_vm7, %v3618_v50, %v2226_v7 }
 0x2bf   : > { %2276 = vmatpush.msra.mxu3 %v2230_v9 }
 0x2c1   : > { %2277 = vmatpush.msra.mxu3 %v2220_v10 }
 0x2c2   : > { %3368 = vmatmul.msk.f32.vlgmr.msra.gmra.mxu3 %vm2146_vm3, %v2231_v48 }
 0x2ca   : > { %3369 = vmatmul.msk.f32.gmra.mxu3 %vm2146_vm3, %v2232_v56 }
 0x32b   : > { %v2256_v47 = vpop.f32.mrf.mxu2 }
 0x333   : > { %v2259_v22 = vpop.f32.mrf.mxu2 }
 0x345   : > { %v2279_v16 = vpop.f32.mrf.mxu3 }
 0x346   : > { %v2287_v18 = vmul.f32 %v2285_v15, %v2279_v16 }
 0x348   : > { %v2291_v62 = vmul.f32 %v2287_v18, %v2256_v47  ;;  %2297 = vperm.xlu2 %3612, %v2287_v18  }
 0x34a   : > { %v2293_v20 = vsub.f32 %v2289_v19, %v2291_v62 }
 0x34c   : > { %2323 = vperm.xlu0 %3613, %v2293_v20  }
 0x34d   : > { %v2282_v14 = vpop.f32.mrf.mxu3 }
 0x34e   : > { %v2288_v23 = vmul.f32 %v2286_v21, %v2282_v14 }
 0x350   : > { %v2292_v24 = vmul.f32 %v2288_v23, %v2259_v22  ;;  %2302 = vperm.xlu2 %3612, %v2288_v23  }
 0x352   : > { %v2294_v27 = vsub.f32 %v2290_v49, %v2292_v24 }
 0x354   : > { %2328 = vperm.xlu1 %3614, %v2294_v27  }
 0x3a2   : > { %v2298_v28 = vpop.permute.xlu2 %2297 }
 0x3a3   : > { %v2305_v2 = vmul.f32 %v2298_v28, %v4133_v0  ;;  %v2306_v29 = vmul.f32 %v2298_v28, %v4193_v33  ;;  %v2307_v30 = vmul.f32 %v2298_v28, %v4218_v17  ;;  %v2308_v35 = vmul.f32 %v2298_v28, %v4222_v25 }
 0x3a4   : > { %v2309_v31 = vmul.f32 %v2298_v28, %v4264_v44  ;;  %v2310_v36 = vmul.f32 %v2298_v28, %v4273_v55  ;;  %v2311_v37 = vmul.f32 %v2298_v28, %v4282_v63  ;;  %v2312_v0 = vmul.f32 %v2298_v28, %v4290_v11 }
 0x3aa   : > { %v2303_v25 = vpop.permute.xlu2 %2302 }
 0x3ab   : > { %v2313_v52 = vmul.f32 %v2303_v25, %v4153_v34  ;;  %v2314_v11 = vmul.f32 %v2303_v25, %v4211_v6  ;;  %v2315_v54 = vmul.f32 %v2303_v25, %v4220_v4  ;;  %v2316_v56 = vmul.f32 %v2303_v25, %v4232_v1 }
 0x3ac   : > { %v2317_v50 = vmul.f32 %v2303_v25, %v4238_v13  ;;  %v2318_v58 = vmul.f32 %v2303_v25, %v4245_v3  ;;  %v2319_v59 = vmul.f32 %v2303_v25, %v4250_v26  ;;  %v2320_v1 = vmul.f32 %v2303_v25, %v4275_v57 }
 0x3be   : > { %v2324_v38 = vpop.permute.xlu0 %2323 }
 0x3bf   : > { %v2331_v40 = vadd.f32 %v2324_v38, %v2305_v2  ;;  %v2332_v42 = vadd.f32 %v2324_v38, %v2306_v29  ;;  %v2333_v43 = vadd.f32 %v2324_v38, %v2307_v30  ;;  %v2334_v39 = vadd.f32 %v2324_v38, %v2308_v35 }
 0x3c0   : > { %v2335_v33 = vadd.f32 %v2324_v38, %v2309_v31  ;;  %v2336_v17 = vadd.f32 %v2324_v38, %v2310_v36  ;;  %v2337_v44 = vadd.f32 %v2324_v38, %v2311_v37  ;;  %v2338_v46 = vadd.f32 %v2324_v38, %v2312_v0 }
 0x3c1   : > { %v2347_v55 = vmax.f32 %v2331_v40, 0.0  ;;  %v2348_v63 = vmax.f32 %v2332_v42, 0.0  ;;  %v2349_v45 = vmax.f32 %v2333_v43, 0.0  ;;  %v2350_v48 = vmax.f32 %v2334_v39, 0.0 }
 0x3c2   : > { %v2351_v51 = vmax.f32 %v2335_v33, 0.0  ;;  %v2352_v53 = vmax.f32 %v2336_v17, 0.0  ;;  %v2353_v32 = vmax.f32 %v2337_v44, 0.0  ;;  %v2354_v60 = vmax.f32 %v2338_v46, 0.0 }
 0x3c3   : > { %2363 = vst [vmem:[%s4342_s15] sm:$0xff] %v2347_v55 }
 0x3c4   : > { %2364 = vst [vmem:[%s4342_s15 + $0x8] sm:$0xff] %v2348_v63 }
 0x3c5   : > { %2365 = vst [vmem:[%s4342_s15 + $0x10] sm:$0xff] %v2349_v45 }
 0x3c6   : > { %2366 = vst [vmem:[%s4342_s15 + $0x18] sm:$0xff] %v2350_v48  ;;  %v2329_v34 = vpop.permute.xlu1 %2328 }
 0x3c7   : > { %2367 = vst [vmem:[%s4342_s15 + $0x20] sm:$0xff] %v2351_v51  ;;  %v2339_v6 = vadd.f32 %v2329_v34, %v2313_v52  ;;  %v2340_v61 = vadd.f32 %v2329_v34, %v2314_v11  ;;  %v2341_v4 = vadd.f32 %v2329_v34, %v2315_v54  ;;  %v2342_v5 = vadd.f32 %v2329_v34, %v2316_v56 }
 0x3c8   : > { %2368 = vst [vmem:[%s4342_s15 + $0x28] sm:$0xff] %v2352_v53  ;;  %v2343_v13 = vadd.f32 %v2329_v34, %v2317_v50  ;;  %v2344_v41 = vadd.f32 %v2329_v34, %v2318_v58  ;;  %v2345_v3 = vadd.f32 %v2329_v34, %v2319_v59  ;;  %v2346_v9 = vadd.f32 %v2329_v34, %v2320_v1 }
 0x3c9   : > { %2369 = vst [vmem:[%s4342_s15 + $0x30] sm:$0xff] %v2353_v32  ;;  %v2355_v26 = vmax.f32 %v2339_v6, 0.0  ;;  %v2356_v7 = vmax.f32 %v2340_v61, 0.0  ;;  %v2357_v8 = vmax.f32 %v2341_v4, 0.0  ;;  %v2358_v10 = vmax.f32 %v2342_v5, 0.0 }
 0x3ca   : > { %2370 = vst [vmem:[%s4342_s15 + $0x38] sm:$0xff] %v2354_v60  ;;  %v2359_v12 = vmax.f32 %v2343_v13, 0.0  ;;  %v2360_v57 = vmax.f32 %v2344_v41, 0.0  ;;  %v2361_v15 = vmax.f32 %v2345_v3, 0.0  ;;  %v2362_v47 = vmax.f32 %v2346_v9, 0.0 }
 0x3cb   : > { %2371 = vst [vmem:[%s4342_s15 + $0x40] sm:$0xff] %v2355_v26 }
 0x3cc   : > { %2372 = vst [vmem:[%s4342_s15 + $0x48] sm:$0xff] %v2356_v7 }
 0x3cd   : > { %2373 = vst [vmem:[%s4342_s15 + $0x50] sm:$0xff] %v2357_v8 }
 0x3ce   : > { %2374 = vst [vmem:[%s4342_s15 + $0x58] sm:$0xff] %v2358_v10 }
 0x3cf   : > { %2375 = vst [vmem:[%s4342_s15 + $0x60] sm:$0xff] %v2359_v12 }
 0x3d0   : > { %2376 = vst [vmem:[%s4342_s15 + $0x68] sm:$0xff] %v2360_v57 }
 0x3d1   : > { %2377 = vst [vmem:[%s4342_s15 + $0x70] sm:$0xff] %v2361_v15 }
 0x3d2   : > { %2378 = vst [vmem:[%s4342_s15 + $0x78] sm:$0xff] %v2362_v47 }
 0x3d3 PF: > { %s16_s21 = sadd.s32 1, %s3625_s21  }
 0x3d4   : > { %p13_p4 = scmp.ge.s32.totalorder %s16_s21, 4  }
 0x3d6   :  { %15 = sbr.rel (!%p13_p4) target bundleno = 1 (0x1), region = 74 }

// kernel: _lambda_.11
= control target key start
LH: loop header
LB: loop body
LE: loop exit
PB: predicated region body
PF: predicated region fallthrough
CT: control target
= control target key end

     0   :  { %s3554_s21 = smov 0   ;;  %s4236_s0 = inlined_call_operand.vmem [shape: bf16[2,432,1024], index: 0, kind: input, shape index: {}]   ;;  %s4237_s1 = inlined_call_operand.vmem [shape: bf16[16,432], index: 1, kind: input, shape index: {}]   ;;  %s4238_s2 = inlined_call_operand.vmem [shape: f32[16,1], index: 2, kind: input, shape index: {}]   ;;  %s4239_s3 = inlined_call_operand.vmem [shape: f32[16,1], index: 3, kind: input, shape index: {}]   ;;  %s4240_s4 = inlined_call_operand.vmem [shape: f32[16,16], index: 4, kind: input, shape index: {}]   ;;  %s4241_s5 = inlined_call_operand.vmem [shape: f32[16,16], index: 5, kind: input, shape index: {}]   ;;  %s4242_s6 = inlined_call_operand.vmem [shape: f32[2,16,1024], index: 6, kind: output, shape index: {}]  }
   0x1 LB: > { %s2366_s22 = sadd.s32 4294967295, %s3516_s21   ;;  %p2370_p0 = scmp.ge.s32.totalorder %s3516_s21, 1  ;;  %s3516_s21 = sphi %s3554_s21, %s16_s21  }
   0x2   : > { %p212_p1 = scmp.lt.s32.totalorder %s3516_s21, 3 }
   0x4   : > { %p213_p2 = pnand %p2370_p0, %p212_p1 }
   0x5   : > { %p242_p3 = scmp.lt.s32.totalorder (!%p213_p2), %s2366_s22, 1 }
   0x6   : > { %216 = sbr.rel (%p213_p2) target bundleno = 971 (0x3cb), region = 44 }
   0xb   : > { %s4244_s22 = smov (!%p242_p3, %s2366_s22), 1  ;;  %vm1572_vm0 = vcmask 392192   ;;  %vm2078_vm1 = vcmask 130048  }
   0xc   : > { %s3493_s23 = smul.u32 1728, %s4244_s22  ;;  %s3272_s13 = sshll.u32 %s4244_s22, 7 }
   0xd   : > { %s4206_s15 = scalar_lea.vmem %s4242_s6, %s3272_s13 }
   0xe   : > { %s3568_s26 = scalar_lea.vmem %s4236_s0, %s3493_s23 }
   0xf   : > { %v2616_v0 = vld [vmem:[%s3568_s26 + $0x1c0] sm:$0xf]  ;;  %v3333_v35 = vld [vmem:[%s3568_s26 + $0x1c4] sm:$0xf] }
  0x10   : > { %v3337_v1 = vld [vmem:[%s3568_s26 + $0x1dc] sm:$0xf0]  ;;  %v2618_v36 = vld [vmem:[%s3568_s26 + $0x1e0] sm:$0xf0] }
  0x11   : > { %v3128_v2 = vld [vmem:[%s3568_s26 + $0x5c0] sm:$0xf]  ;;  %v2617_v3 = vor.u32 %v3337_v1, %v2616_v0  ;;  %v2621_v39 = vor.u32 %v3333_v35, %v2618_v36  ;;  %v3325_v45 = vld [vmem:[%s3568_s26 + $0x184] sm:$0xf] }
  0x12   : > { %v3465_v4 = vld [vmem:[%s3568_s26 + $0x5dc] sm:$0xf0]  ;;  %v2586_v47 = vld [vmem:[%s3568_s26 + $0x1a0] sm:$0xf0] }
  0x13   : > { %v3224_v5 = vld [vmem:[%s3568_s26 + $0x680] sm:$0xf]  ;;  %v3129_v7 = vor.u32 %v3465_v4, %v3128_v2  ;;  %1576 = vmatpush.bf16.msra.mxu0 %v2617_v3  ;;  %v2589_v52 = vor.u32 %v3325_v45, %v2586_v47  ;;  %v3317_v57 = vld [vmem:[%s3568_s26 + $0x144] sm:$0xf]  ;;  %v3275_v47 = vld [vmem:[%s4237_s1 + $0xc] sm:$0xf0] }
  0x14   : > { %v3489_v6 = vld [vmem:[%s3568_s26 + $0x69c] sm:$0xf0]  ;;  %v2554_v58 = vld [vmem:[%s3568_s26 + $0x160] sm:$0xf0] }
  0x15   : > { %v3225_v8 = vor.u32 %v3489_v6, %v3224_v5  ;;  %v2872_v9 = vld [vmem:[%s3568_s26 + $0x3c0] sm:$0xf]  ;;  %1604 = vmatpush.bf16.msra.mxu2 %v3129_v7  ;;  %v2557_v0 = vor.u32 %v3317_v57, %v2554_v58  ;;  %v3309_v5 = vld [vmem:[%s3568_s26 + $0x104] sm:$0xf] }
  0x16   : > { %v3401_v10 = vld [vmem:[%s3568_s26 + $0x3dc] sm:$0xf0]  ;;  %v2522_v6 = vld [vmem:[%s3568_s26 + $0x120] sm:$0xf0] }
  0x17   : > { %v2584_v11 = vld [vmem:[%s3568_s26 + $0x180] sm:$0xf]  ;;  %v2873_v12 = vor.u32 %v3401_v10, %v2872_v9  ;;  %1623 = vmatpush.bf16.msra.mxu3 %v3225_v8  ;;  %v2874_v35 = vld [vmem:[%s3568_s26 + $0x3e0] sm:$0xf0] }
  0x18   : > { %v3329_v13 = vld [vmem:[%s3568_s26 + $0x19c] sm:$0xf0]  ;;  %v3485_v36 = vld [vmem:[%s3568_s26 + $0x684] sm:$0xf] }
  0x19   : > { %v3096_v14 = vld [vmem:[%s3568_s26 + $0x580] sm:$0xf]  ;;  %v2585_v16 = vor.u32 %v3329_v13, %v2584_v11  ;;  %1590 = vmatpush.bf16.msra.mxu1 %v2873_v12  ;;  %v3389_v45 = vld [vmem:[%s3568_s26 + $0x384] sm:$0xf] }
  0x1a   : > { %v3457_v15 = vld [vmem:[%s3568_s26 + $0x59c] sm:$0xf0]  ;;  %v3477_v57 = vld [vmem:[%s3568_s26 + $0x644] sm:$0xf] }
  0x1b   : > { %v3097_v17 = vor.u32 %v3457_v15, %v3096_v14  ;;  %v3192_v18 = vld [vmem:[%s3568_s26 + $0x640] sm:$0xf]  ;;  %1577 = vmatpush.bf16.msra.mxu0 %v2585_v16  ;;  %v2525_v14 = vor.u32 %v3309_v5, %v2522_v6 }
  0x1c   : > { %v3481_v19 = vld [vmem:[%s3568_s26 + $0x65c] sm:$0xf0] }
  0x1d   : > { %v2840_v20 = vld [vmem:[%s3568_s26 + $0x380] sm:$0xf]  ;;  %v3193_v21 = vor.u32 %v3481_v19, %v3192_v18  ;;  %1605 = vmatpush.bf16.msra.mxu2 %v3097_v17  ;;  %v3301_v17 = vld [vmem:[%s3568_s26 + $0xc4] sm:$0xf] }
  0x1e   : > { %v3393_v22 = vld [vmem:[%s3568_s26 + $0x39c] sm:$0xf0]  ;;  %v2490_v18 = vld [vmem:[%s3568_s26 + $0xe0] sm:$0xf0] }
  0x1f   : > { %v2552_v23 = vld [vmem:[%s3568_s26 + $0x140] sm:$0xf]  ;;  %v2841_v25 = vor.u32 %v3393_v22, %v2840_v20  ;;  %1624 = vmatpush.bf16.msra.mxu3 %v3193_v21 }
  0x20   : > { %v3321_v24 = vld [vmem:[%s3568_s26 + $0x15c] sm:$0xf0] }
  0x21   : > { %v3064_v26 = vld [vmem:[%s3568_s26 + $0x540] sm:$0xf]  ;;  %v2553_v29 = vor.u32 %v3321_v24, %v2552_v23  ;;  %1591 = vmatpush.bf16.msra.mxu1 %v2841_v25  ;;  %v3274_v24 = vld [vmem:[%s4237_s1 + $0xc] sm:$0xf]  ;;  %v2386_v25 = vld [vmem:[%s4237_s1 + $0x18] sm:$0xf0] }
  0x22   : > { %v3449_v27 = vld [vmem:[%s3568_s26 + $0x55c] sm:$0xf0] }
  0x23   : > { %v3160_v28 = vld [vmem:[%s3568_s26 + $0x600] sm:$0xf]  ;;  %v3065_v33 = vor.u32 %v3449_v27, %v3064_v26  ;;  %1578 = vmatpush.bf16.msra.mxu0 %v2553_v29  ;;  %v3293_v29 = vld [vmem:[%s3568_s26 + $0x84] sm:$0xf] }
  0x24   : > { %v3473_v30 = vld [vmem:[%s3568_s26 + $0x61c] sm:$0xf0] }
  0x25   : > { %v2808_v31 = vld [vmem:[%s3568_s26 + $0x340] sm:$0xf]  ;;  %v3161_v34 = vor.u32 %v3473_v30, %v3160_v28  ;;  %1606 = vmatpush.bf16.msra.mxu2 %v3065_v33  ;;  %v3641_v30 = vor.u32 %v3274_v24, %v2386_v25  ;;  %v2458_v33 = vld [vmem:[%s3568_s26 + $0xa0] sm:$0xf0] }
  0x26   : > { %v3385_v32 = vld [vmem:[%s3568_s26 + $0x35c] sm:$0xf0]  ;;  %v3437_v24 = vld [vmem:[%s3568_s26 + $0x504] sm:$0xf] }
  0x27   : > { %v2520_v37 = vld [vmem:[%s3568_s26 + $0x100] sm:$0xf]  ;;  %v2809_v38 = vor.u32 %v3385_v32, %v2808_v31  ;;  %1625 = vmatpush.bf16.msra.mxu3 %v3161_v34  ;;  %v2493_v32 = vor.u32 %v3301_v17, %v2490_v18  ;;  %v3397_v34 = vld [vmem:[%s3568_s26 + $0x3c4] sm:$0xf] }
  0x28   : > { %v3313_v40 = vld [vmem:[%s3568_s26 + $0x11c] sm:$0xf0]  ;;  %v3373_v18 = vld [vmem:[%s3568_s26 + $0x304] sm:$0xf] }
  0x29   : > { %v3032_v41 = vld [vmem:[%s3568_s26 + $0x500] sm:$0xf]  ;;  %v2521_v46 = vor.u32 %v3313_v40, %v2520_v37  ;;  %1592 = vmatpush.bf16.msra.mxu1 %v2809_v38  ;;  %v3226_v37 = vld [vmem:[%s3568_s26 + $0x6a0] sm:$0xf0] }
  0x2a   : > { %v3441_v42 = vld [vmem:[%s3568_s26 + $0x51c] sm:$0xf0]  ;;  %3254 = vmatmul.msk.bf16.vlgmr.msra.gmra.mxu3 %vm1572_vm0, %v3641_v30  ;;  %v3461_v38 = vld [vmem:[%s3568_s26 + $0x5c4] sm:$0xf] }
  0x2b   : > { %v2776_v43 = vld [vmem:[%s3568_s26 + $0x300] sm:$0xf]  ;;  %v3033_v48 = vor.u32 %v3441_v42, %v3032_v41  ;;  %1632 = vmatpush.bf16.msrb.mxu3 %v2621_v39  ;;  %1579 = vmatpush.bf16.msra.mxu0 %v2521_v46  ;;  %v3130_v40 = vld [vmem:[%s3568_s26 + $0x5e0] sm:$0xf0]  ;;  %v2384_v41 = vld [vmem:[%s4237_s1 + $0x8] sm:$0xf] }
  0x2c   : > { %v3377_v44 = vld [vmem:[%s3568_s26 + $0x31c] sm:$0xf0]  ;;  %v3276_v42 = vld [vmem:[%s4237_s1 + $0x14] sm:$0xf0]  ;;  %v3034_v25 = vld [vmem:[%s3568_s26 + $0x520] sm:$0xf0] }
  0x2d   : > { %v2488_v49 = vld [vmem:[%s3568_s26 + $0xc0] sm:$0xf]  ;;  %v2777_v51 = vor.u32 %v3377_v44, %v2776_v43  ;;  %1607 = vmatpush.bf16.msra.mxu2 %v3033_v48  ;;  %v2877_v44 = vor.u32 %v3397_v34, %v2874_v35  ;;  %v3675_v58 = vor.u32 %v3276_v42, %v2384_v41  ;;  %v3037_v34 = vor.u32 %v3437_v24, %v3034_v25  ;;  %v3322_v41 = vld [vmem:[%s3568_s26 + $0x164] sm:$0xf0] }
  0x2e   : > { %v3305_v50 = vld [vmem:[%s3568_s26 + $0xdc] sm:$0xf0]  ;;  %v2816_v42 = vld [vmem:[%s3568_s26 + $0x348] sm:$0xf] }
  0x2f   : > { %v3000_v53 = vld [vmem:[%s3568_s26 + $0x4c0] sm:$0xf]  ;;  %v2489_v59 = vor.u32 %v3305_v50, %v2488_v49  ;;  %1593 = vmatpush.bf16.msra.mxu1 %v2777_v51  ;;  %1633 = vmatpush.bf16.msrb.mxu3 %v2589_v52  ;;  %v2461_v49 = vor.u32 %v3293_v29, %v2458_v33  ;;  %v2842_v50 = vld [vmem:[%s3568_s26 + $0x3a0] sm:$0xf0]  ;;  %v2378_v52 = vld [vmem:[%s4237_s1 + $0x10] sm:$0xf0] }
  0x30   : > { %v3433_v54 = vld [vmem:[%s3568_s26 + $0x4dc] sm:$0xf0]  ;;  %v3273_v51 = vld [vmem:[%s4237_s1 + $0x4] sm:$0xf]  ;;  %v2848_v29 = vld [vmem:[%s3568_s26 + $0x388] sm:$0xf] }
  0x31   : > { %v2744_v55 = vld [vmem:[%s3568_s26 + $0x2c0] sm:$0xf]  ;;  %v3001_v60 = vor.u32 %v3433_v54, %v3000_v53  ;;  %1580 = vmatpush.bf16.msra.mxu0 %v2489_v59  ;;  %v3229_v53 = vor.u32 %v3485_v36, %v3226_v37  ;;  %v3133_v54 = vor.u32 %v3461_v38, %v3130_v40  ;;  %v3194_v59 = vld [vmem:[%s3568_s26 + $0x660] sm:$0xf0]  ;;  %v3104_v25 = vld [vmem:[%s3568_s26 + $0x588] sm:$0xf] }
  0x32   : > { %v3369_v56 = vld [vmem:[%s3568_s26 + $0x2dc] sm:$0xf0]  ;;  %v3197_v5 = vor.u32 %v3477_v57, %v3194_v59  ;;  %v2746_v33 = vld [vmem:[%s3568_s26 + $0x2e0] sm:$0xf0] }
  0x33   : > { %v2456_v61 = vld [vmem:[%s3568_s26 + $0x80] sm:$0xf]  ;;  %v2745_v63 = vor.u32 %v3369_v56, %v2744_v55  ;;  %1608 = vmatpush.bf16.msra.mxu2 %v3001_v60  ;;  %1634 = vmatpush.bf16.msrb.mxu3 %v2557_v0  ;;  %v3285_v55 = vld [vmem:[%s3568_s26 + $0x44] sm:$0xf]  ;;  %v3682_v0 = vor.u32 %v3273_v51, %v2378_v52  ;;  %v2528_v51 = vld [vmem:[%s3568_s26 + $0x108] sm:$0xf] }
  0x34   : > { %v3297_v62 = vld [vmem:[%s3568_s26 + $0x9c] sm:$0xf0]  ;;  %v2426_v56 = vld [vmem:[%s3568_s26 + $0x60] sm:$0xf0] }
  0x35   : > { %v2968_v1 = vld [vmem:[%s3568_s26 + $0x480] sm:$0xf]  ;;  %v2457_v7 = vor.u32 %v3297_v62, %v2456_v61  ;;  %1594 = vmatpush.bf16.msra.mxu1 %v2745_v63  ;;  %v3453_v60 = vld [vmem:[%s3568_s26 + $0x584] sm:$0xf]  ;;  %v2845_v63 = vor.u32 %v3389_v45, %v2842_v50 }
  0x36   : > { %v3425_v2 = vld [vmem:[%s3568_s26 + $0x49c] sm:$0xf0]  ;;  %v3098_v61 = vld [vmem:[%s3568_s26 + $0x5a0] sm:$0xf0] }
  0x37   : > { %v2712_v3 = vld [vmem:[%s3568_s26 + $0x280] sm:$0xf]  ;;  %v2969_v9 = vor.u32 %v3425_v2, %v2968_v1  ;;  %1581 = vmatpush.bf16.msra.mxu0 %v2457_v7  ;;  %1635 = vmatpush.bf16.msrb.mxu3 %v2525_v14  ;;  %v2429_v1 = vor.u32 %v3285_v55, %v2426_v56  ;;  %v3277_v2 = vld [vmem:[%s3568_s26 + $0x4] sm:$0xf]  ;;  %v3101_v6 = vor.u32 %v3453_v60, %v3098_v61  ;;  %v3338_v14 = vld [vmem:[%s3568_s26 + $0x1e4] sm:$0xf0] }
  0x38   : > { %v3361_v4 = vld [vmem:[%s3568_s26 + $0x29c] sm:$0xf0]  ;;  %v2394_v7 = vld [vmem:[%s3568_s26 + $0x20] sm:$0xf0]  ;;  %v3378_v55 = vld [vmem:[%s3568_s26 + $0x324] sm:$0xf0] }
  0x39   : > { %v2424_v8 = vld [vmem:[%s3568_s26 + $0x40] sm:$0xf]  ;;  %v2713_v13 = vor.u32 %v3361_v4, %v2712_v3  ;;  %1609 = vmatpush.bf16.msra.mxu2 %v2969_v9  ;;  %v3381_v3 = vld [vmem:[%s3568_s26 + $0x344] sm:$0xf]  ;;  %v2397_v17 = vor.u32 %v3277_v2, %v2394_v7  ;;  %v2496_v2 = vld [vmem:[%s3568_s26 + $0xc8] sm:$0xf] }
  0x3a   : > { %v3289_v10 = vld [vmem:[%s3568_s26 + $0x5c] sm:$0xf0]  ;;  %v2810_v4 = vld [vmem:[%s3568_s26 + $0x360] sm:$0xf0] }
  0x3b   : > { %v2936_v11 = vld [vmem:[%s3568_s26 + $0x440] sm:$0xf]  ;;  %v2425_v21 = vor.u32 %v3289_v10, %v2424_v8  ;;  %1595 = vmatpush.bf16.msra.mxu1 %v2713_v13  ;;  %1636 = vmatpush.bf16.msrb.mxu3 %v2493_v32  ;;  %v3469_v8 = vld [vmem:[%s3568_s26 + $0x604] sm:$0xf]  ;;  %v2813_v13 = vor.u32 %v3381_v3, %v2810_v4  ;;  %v3306_v4 = vld [vmem:[%s3568_s26 + $0xe4] sm:$0xf0] }
  0x3c   : > { %v3417_v12 = vld [vmem:[%s3568_s26 + $0x45c] sm:$0xf0]  ;;  %v3162_v9 = vld [vmem:[%s3568_s26 + $0x620] sm:$0xf0] }
  0x3d   : > { %v2680_v15 = vld [vmem:[%s3568_s26 + $0x240] sm:$0xf]  ;;  %v2937_v26 = vor.u32 %v3417_v12, %v2936_v11  ;;  %1582 = vmatpush.bf16.msra.mxu0 %v2425_v21  ;;  %v3445_v10 = vld [vmem:[%s3568_s26 + $0x544] sm:$0xf]  ;;  %v2624_v12 = vld [vmem:[%s3568_s26 + $0x1c8] sm:$0xf] }
  0x3e   : > { %v3353_v16 = vld [vmem:[%s3568_s26 + $0x25c] sm:$0xf0]  ;;  %v3066_v11 = vld [vmem:[%s3568_s26 + $0x560] sm:$0xf0] }
  0x3f   : > { %v2392_v19 = vld [vmem:[%s3568_s26] sm:$0xf]  ;;  %v2681_v31 = vor.u32 %v3353_v16, %v2680_v15  ;;  %1610 = vmatpush.bf16.msra.mxu2 %v2937_v26  ;;  %1637 = vmatpush.bf16.msrb.mxu3 %v2461_v49  ;;  %v2880_v15 = vld [vmem:[%s3568_s26 + $0x3c8] sm:$0xf]  ;;  %v3069_v21 = vor.u32 %v3445_v10, %v3066_v11  ;;  %v3365_v32 = vld [vmem:[%s3568_s26 + $0x2c4] sm:$0xf] }
  0x40   : > { %v3281_v20 = vld [vmem:[%s3568_s26 + $0x1c] sm:$0xf0]  ;;  %v3402_v16 = vld [vmem:[%s3568_s26 + $0x3e4] sm:$0xf0]  ;;  %v3429_v37 = vld [vmem:[%s3568_s26 + $0x4c4] sm:$0xf]  ;;  %v2749_v40 = vor.u32 %v3365_v32, %v2746_v33 }
  0x41   : > { %v2904_v22 = vld [vmem:[%s3568_s26 + $0x400] sm:$0xf]  ;;  %v2393_v39 = vor.u32 %v3281_v20, %v2392_v19  ;;  %1596 = vmatpush.bf16.msra.mxu1 %v2681_v31  ;;  %v2778_v19 = vld [vmem:[%s3568_s26 + $0x320] sm:$0xf0]  ;;  %v3165_v20 = vor.u32 %v3469_v8, %v3162_v9  ;;  %v2592_v26 = vld [vmem:[%s3568_s26 + $0x188] sm:$0xf] }
  0x42   : > { %v3409_v23 = vld [vmem:[%s3568_s26 + $0x41c] sm:$0xf0]  ;;  %v3394_v31 = vld [vmem:[%s3568_s26 + $0x3a4] sm:$0xf0]  ;;  %v3002_v38 = vld [vmem:[%s3568_s26 + $0x4e0] sm:$0xf0] }
  0x43   : > { %v2648_v27 = vld [vmem:[%s3568_s26 + $0x200] sm:$0xf]  ;;  %v2905_v43 = vor.u32 %v3409_v23, %v2904_v22  ;;  %1583 = vmatpush.bf16.msra.mxu0 %v2393_v39  ;;  %1638 = vmatpush.bf16.msrb.mxu3 %v2429_v1  ;;  %v2625_v22 = vor.u32 %v3338_v14, %v2624_v12  ;;  %v2881_v23 = vor.u32 %v3402_v16, %v2880_v15  ;;  %v2560_v39 = vld [vmem:[%s3568_s26 + $0x148] sm:$0xf]  ;;  %v2714_v45 = vld [vmem:[%s3568_s26 + $0x2a0] sm:$0xf0] }
  0x44   : > { %v3345_v28 = vld [vmem:[%s3568_s26 + $0x21c] sm:$0xf0]  ;;  %v2849_v36 = vor.u32 %v3394_v31, %v2848_v29  ;;  %v3421_v49 = vld [vmem:[%s3568_s26 + $0x484] sm:$0xf]  ;;  %v3136_v10 = vld [vmem:[%s3568_s26 + $0x5c8] sm:$0xf]  ;;  %v2497_v12 = vor.u32 %v3306_v4, %v2496_v2 }
  0x45   : > { %v2376_v46 = vld [vmem:[%s4237_s1] sm:$0xf]  ;;  %v2649_v48 = vor.u32 %v3345_v28, %v2648_v27  ;;  %1611 = vmatpush.bf16.msra.mxu2 %v2905_v43  ;;  %v2781_v27 = vor.u32 %v3373_v18, %v2778_v19  ;;  %v3330_v28 = vld [vmem:[%s3568_s26 + $0x1a4] sm:$0xf0]  ;;  %v2970_v50 = vld [vmem:[%s3568_s26 + $0x4a0] sm:$0xf0] }
  0x46   : > { %v3680_v62 = vor.u32 %v3275_v47, %v2376_v46  ;;  %v2593_v35 = vor.u32 %v3330_v28, %v2592_v26  ;;  %v3386_v43 = vld [vmem:[%s3568_s26 + $0x364] sm:$0xf0]  ;;  %v3005_v46 = vor.u32 %v3429_v37, %v3002_v38  ;;  %v2561_v47 = vor.u32 %v3322_v41, %v2560_v39  ;;  %v3349_v56 = vld [vmem:[%s3568_s26 + $0x244] sm:$0xf]  ;;  %v2594_v4 = vld [vmem:[%s3568_s26 + $0x1a8] sm:$0xf0] }
  0x47   : > { %1646 = vmatpush.bf16.msrb.mxu0 %v2877_v44  ;;  %1597 = vmatpush.bf16.msra.mxu1 %v2649_v48  ;;  %v3357_v44 = vld [vmem:[%s3568_s26 + $0x284] sm:$0xf]  ;;  %v2817_v48 = vor.u32 %v3386_v43, %v2816_v42  ;;  %v2973_v59 = vor.u32 %v3421_v49, %v2970_v50  ;;  %v3466_v11 = vld [vmem:[%s3568_s26 + $0x5e4] sm:$0xf0]  ;;  %v3334_v50 = vld [vmem:[%s3568_s26 + $0x1cc] sm:$0xf] }
  0x48   : > { %1612 = vmatmul.bf16.vlgmr.msra.gmra.mxu2 %v3675_v58  ;;  %1584 = vmatmul.bf16.vlgmr.msra.gmra.mxu0 %v3680_v62  ;;  %v2717_v52 = vor.u32 %v3357_v44, %v2714_v45  ;;  %v2682_v57 = vld [vmem:[%s3568_s26 + $0x260] sm:$0xf0]  ;;  %v2464_v16 = vld [vmem:[%s3568_s26 + $0x88] sm:$0xf] }
  0x49   : > { %1679 = vmatpush.bf16.msrb.mxu2 %v3229_v53  ;;  %1639 = vmatpush.bf16.msrb.mxu3 %v2397_v17  ;;  %v3314_v53 = vld [vmem:[%s3568_s26 + $0x124] sm:$0xf0]  ;;  %v2938_v1 = vld [vmem:[%s3568_s26 + $0x460] sm:$0xf0]  ;;  %v2685_v3 = vor.u32 %v3349_v56, %v2682_v57 }
  0x4a   : > { %1598 = vmatmul.bf16.vlgmr.msra.gmra.mxu1 %v3682_v0  ;;  %v2529_v60 = vor.u32 %v3314_v53, %v2528_v51  ;;  %v3341_v7 = vld [vmem:[%s3568_s26 + $0x204] sm:$0xf]  ;;  %v3298_v18 = vld [vmem:[%s3568_s26 + $0xa4] sm:$0xf0]  ;;  %v2626_v51 = vld [vmem:[%s3568_s26 + $0x1e8] sm:$0xf0] }
  0x4b   : > { %1660 = vmatpush.bf16.msrb.mxu1 %v3133_v54  ;;  %1647 = vmatpush.bf16.msrb.mxu0 %v2845_v63  ;;  %v2784_v54 = vld [vmem:[%s3568_s26 + $0x308] sm:$0xf]  ;;  %v3413_v63 = vld [vmem:[%s3568_s26 + $0x444] sm:$0xf]  ;;  %v3138_v53 = vld [vmem:[%s3568_s26 + $0x5e8] sm:$0xf0] }
  0x4c   : > { %1640 = vmatmul.bf16.vlgmr.msrb.gmra.mxu3 %v3680_v62  ;;  %v2785_v61 = vor.u32 %v3378_v55, %v2784_v54  ;;  %v2650_v8 = vld [vmem:[%s3568_s26 + $0x220] sm:$0xf0]  ;;  %v2941_v9 = vor.u32 %v3413_v63, %v2938_v1  ;;  %v2720_v19 = vld [vmem:[%s3568_s26 + $0x288] sm:$0xf]  ;;  %v3398_v54 = vld [vmem:[%s3568_s26 + $0x3cc] sm:$0xf]  ;;  %v2629_v63 = vor.u32 %v3334_v50, %v2626_v51 }
  0x4d   : > { %1680 = vmatpush.bf16.msrb.mxu2 %v3197_v5  ;;  %1688 = vmatpush.bf16.msra.mxu3 %v2625_v22  ;;  %v2752_v5 = vld [vmem:[%s3568_s26 + $0x2c8] sm:$0xf]  ;;  %v3405_v14 = vld [vmem:[%s3568_s26 + $0x404] sm:$0xf]  ;;  %v2653_v17 = vor.u32 %v3341_v7, %v2650_v8  ;;  %v2882_v55 = vld [vmem:[%s3568_s26 + $0x3e8] sm:$0xf0] }
  0x4e   : > { %v2906_v15 = vld [vmem:[%s3568_s26 + $0x420] sm:$0xf0]  ;;  %v3232_v22 = vld [vmem:[%s3568_s26 + $0x688] sm:$0xf]  ;;  %v2885_v2 = vor.u32 %v3398_v54, %v2882_v55  ;;  %v3106_v7 = vld [vmem:[%s3568_s26 + $0x5a8] sm:$0xf0] }
  0x4f   : > { %1661 = vmatpush.bf16.msrb.mxu1 %v3101_v6  ;;  %1648 = vmatpush.bf16.msrb.mxu0 %v2813_v13  ;;  %v3370_v6 = vld [vmem:[%s3568_s26 + $0x2e4] sm:$0xf0]  ;;  %v2909_v24 = vor.u32 %v3405_v14, %v2906_v15  ;;  %v3390_v8 = vld [vmem:[%s3568_s26 + $0x38c] sm:$0xf] }
  0x50   : > { %v2753_v13 = vor.u32 %v3370_v6, %v2752_v5  ;;  %v3458_v26 = vld [vmem:[%s3568_s26 + $0x5a4] sm:$0xf0]  ;;  %v3454_v5 = vld [vmem:[%s3568_s26 + $0x58c] sm:$0xf] }
  0x51   : > { %1681 = vmatpush.bf16.msrb.mxu2 %v3165_v20  ;;  %1689 = vmatpush.bf16.msra.mxu3 %v2593_v35  ;;  %v3362_v20 = vld [vmem:[%s3568_s26 + $0x2a4] sm:$0xf0]  ;;  %v3105_v35 = vor.u32 %v3458_v26, %v3104_v25  ;;  %v3318_v15 = vld [vmem:[%s3568_s26 + $0x14c] sm:$0xf] }
  0x52   : > { %v2721_v28 = vor.u32 %v3362_v20, %v2720_v19  ;;  %v2432_v29 = vld [vmem:[%s3568_s26 + $0x48] sm:$0xf]  ;;  %v3074_v19 = vld [vmem:[%s3568_s26 + $0x568] sm:$0xf0] }
  0x53   : > { %1662 = vmatpush.bf16.msrb.mxu1 %v3069_v21  ;;  %1649 = vmatpush.bf16.msrb.mxu0 %v2781_v27  ;;  %v3137_v21 = vor.u32 %v3466_v11, %v3136_v10  ;;  %v2465_v27 = vor.u32 %v3298_v18, %v2464_v16  ;;  %v3290_v32 = vld [vmem:[%s3568_s26 + $0x64] sm:$0xf0]  ;;  %v2562_v16 = vld [vmem:[%s3568_s26 + $0x168] sm:$0xf0] }
  0x54   : > { %v2688_v33 = vld [vmem:[%s3568_s26 + $0x248] sm:$0xf]  ;;  %v3382_v20 = vld [vmem:[%s3568_s26 + $0x34c] sm:$0xf] }
  0x55   : > { %1702 = vmatpush.bf16.msra.mxu2 %v2881_v23  ;;  %1690 = vmatpush.bf16.msra.mxu3 %v2561_v47  ;;  %v3490_v23 = vld [vmem:[%s3568_s26 + $0x6a4] sm:$0xf0]  ;;  %v3486_v50 = vld [vmem:[%s3568_s26 + $0x68c] sm:$0xf] }
  0x56   : > { %v3233_v31 = vor.u32 %v3490_v23, %v3232_v22  ;;  %v3482_v37 = vld [vmem:[%s3568_s26 + $0x664] sm:$0xf0]  ;;  %v3234_v51 = vld [vmem:[%s3568_s26 + $0x6a8] sm:$0xf0] }
  0x57   : > { %1663 = vmatpush.bf16.msrb.mxu1 %v3037_v34  ;;  %1650 = vmatpush.bf16.msrb.mxu0 %v2749_v40  ;;  %v3354_v34 = vld [vmem:[%s3568_s26 + $0x264] sm:$0xf0]  ;;  %v2433_v40 = vor.u32 %v3290_v32, %v2432_v29  ;;  %v3438_v29 = vld [vmem:[%s3568_s26 + $0x50c] sm:$0xf] }
  0x58   : > { %3255 = vmatmul.msk.bf16.vlgmr.msrb.gmra.mxu2 %vm1572_vm0, %v3641_v30  ;;  %v3072_v38 = vld [vmem:[%s3568_s26 + $0x548] sm:$0xf]  ;;  %v2689_v41 = vor.u32 %v3354_v34, %v2688_v33  ;;  %v3042_v32 = vld [vmem:[%s3568_s26 + $0x528] sm:$0xf0] }
  0x59   : > { %1703 = vmatpush.bf16.msra.mxu2 %v2849_v36  ;;  %1691 = vmatpush.bf16.msra.mxu3 %v2529_v60  ;;  %v3200_v36 = vld [vmem:[%s3568_s26 + $0x648] sm:$0xf]  ;;  %v3374_v33 = vld [vmem:[%s3568_s26 + $0x30c] sm:$0xf] }
  0x5a   : > { %v3450_v39 = vld [vmem:[%s3568_s26 + $0x564] sm:$0xf0]  ;;  %v3201_v45 = vor.u32 %v3482_v37, %v3200_v36  ;;  %v2786_v34 = vld [vmem:[%s3568_s26 + $0x328] sm:$0xf0] }
  0x5b   : > { %1664 = vmatpush.bf16.msrb.mxu1 %v3005_v46  ;;  %1651 = vmatpush.bf16.msrb.mxu0 %v2717_v52  ;;  %v2400_v42 = vld [vmem:[%s3568_s26 + $0x8] sm:$0xf]  ;;  %v3073_v49 = vor.u32 %v3450_v39, %v3072_v38  ;;  %v3462_v52 = vld [vmem:[%s3568_s26 + $0x5cc] sm:$0xf]  ;;  %v3045_v38 = vor.u32 %v3438_v29, %v3042_v32  ;;  %v2789_v39 = vor.u32 %v3374_v33, %v2786_v34  ;;  %v3240_v29 = vld [vmem:[%s3568_s26 + $0x690] sm:$0xf] }
  0x5c   : > { %v3282_v43 = vld [vmem:[%s3568_s26 + $0x24] sm:$0xf0]  ;;  %v3141_v1 = vor.u32 %v3462_v52, %v3138_v53  ;;  %v3294_v54 = vld [vmem:[%s3568_s26 + $0x8c] sm:$0xf]  ;;  %v3144_v34 = vld [vmem:[%s3568_s26 + $0x5d0] sm:$0xf] }
  0x5d   : > { %1704 = vmatpush.bf16.msra.mxu2 %v2817_v48  ;;  %1692 = vmatpush.bf16.msra.mxu3 %v2497_v12  ;;  %v2656_v44 = vld [vmem:[%s3568_s26 + $0x208] sm:$0xf]  ;;  %v2401_v56 = vor.u32 %v3282_v43, %v2400_v42  ;;  %v3430_v42 = vld [vmem:[%s3568_s26 + $0x4cc] sm:$0xf] }
  0x5e   : > { %v3346_v46 = vld [vmem:[%s3568_s26 + $0x224] sm:$0xf0]  ;;  %v2466_v55 = vld [vmem:[%s3568_s26 + $0xa8] sm:$0xf0] }
  0x5f   : > { %1665 = vmatpush.bf16.msrb.mxu1 %v2973_v59  ;;  %1652 = vmatpush.bf16.msrb.mxu0 %v2685_v3  ;;  %v3168_v47 = vld [vmem:[%s3568_s26 + $0x608] sm:$0xf]  ;;  %v2657_v57 = vor.u32 %v3346_v46, %v2656_v44  ;;  %v3326_v3 = vld [vmem:[%s3568_s26 + $0x18c] sm:$0xf] }
  0x60   : > { %v3474_v48 = vld [vmem:[%s3568_s26 + $0x624] sm:$0xf0]  ;;  %v2597_v12 = vor.u32 %v3326_v3, %v2594_v4  ;;  %v3010_v44 = vld [vmem:[%s3568_s26 + $0x4e8] sm:$0xf0] }
  0x61   : > { %1705 = vmatpush.bf16.msra.mxu2 %v2785_v61  ;;  %1693 = vmatpush.bf16.msra.mxu3 %v2465_v27  ;;  %v3040_v59 = vld [vmem:[%s3568_s26 + $0x508] sm:$0xf]  ;;  %v3169_v61 = vor.u32 %v3474_v48, %v3168_v47  ;;  %v3310_v27 = vld [vmem:[%s3568_s26 + $0x10c] sm:$0xf]  ;;  %v3013_v52 = vor.u32 %v3430_v42, %v3010_v44  ;;  %v2600_v42 = vld [vmem:[%s3568_s26 + $0x190] sm:$0xf] }
  0x62   : > { %v3442_v60 = vld [vmem:[%s3568_s26 + $0x524] sm:$0xf0]  ;;  %v2754_v46 = vld [vmem:[%s3568_s26 + $0x2e8] sm:$0xf0]  ;;  %v3331_v44 = vld [vmem:[%s3568_s26 + $0x1ac] sm:$0xf0] }
  0x63   : > { %1666 = vmatpush.bf16.msrb.mxu1 %v2941_v9  ;;  %1653 = vmatpush.bf16.msrb.mxu0 %v2653_v17  ;;  %v3041_v6 = vor.u32 %v3442_v60, %v3040_v59  ;;  %v2850_v9 = vld [vmem:[%s3568_s26 + $0x3a8] sm:$0xf0]  ;;  %v3008_v10 = vld [vmem:[%s3568_s26 + $0x4c8] sm:$0xf] }
  0x64   : > { %v3434_v11 = vld [vmem:[%s3568_s26 + $0x4e4] sm:$0xf0]  ;;  %v2853_v14 = vor.u32 %v3390_v8, %v2850_v9  ;;  %v3446_v17 = vld [vmem:[%s3568_s26 + $0x54c] sm:$0xf] }
  0x65   : > { %1706 = vmatpush.bf16.msra.mxu2 %v2753_v13  ;;  %1694 = vmatpush.bf16.msra.mxu3 %v2433_v40  ;;  %v3109_v13 = vor.u32 %v3454_v5, %v3106_v7  ;;  %v3009_v18 = vor.u32 %v3434_v11, %v3008_v10  ;;  %v2976_v22 = vld [vmem:[%s3568_s26 + $0x488] sm:$0xf]  ;;  %v3077_v25 = vor.u32 %v3446_v17, %v3074_v19  ;;  %v3302_v40 = vld [vmem:[%s3568_s26 + $0xcc] sm:$0xf] }
  0x66   : > { %1654 = vmatmul.bf16.vlgmr.msrb.gmra.mxu0 %v3682_v0  ;;  %v3426_v23 = vld [vmem:[%s3568_s26 + $0x4a4] sm:$0xf0]  ;;  %v2978_v59 = vld [vmem:[%s3568_s26 + $0x4a8] sm:$0xf0] }
  0x67   : > { %1716 = vmatpush.bf16.msra.mxu0 %v3137_v21  ;;  %1667 = vmatpush.bf16.msrb.mxu1 %v2909_v24  ;;  %v2818_v21 = vld [vmem:[%s3568_s26 + $0x368] sm:$0xf0]  ;;  %v2565_v24 = vor.u32 %v3318_v15, %v2562_v16  ;;  %v3418_v36 = vld [vmem:[%s3568_s26 + $0x464] sm:$0xf0] }
  0x68   : > { %v2821_v26 = vor.u32 %v3382_v20, %v2818_v21  ;;  %v2912_v47 = vld [vmem:[%s3568_s26 + $0x408] sm:$0xf]  ;;  %v3358_v60 = vld [vmem:[%s3568_s26 + $0x28c] sm:$0xf] }
  0x69   : > { %1707 = vmatpush.bf16.msra.mxu2 %v2721_v28  ;;  %1695 = vmatpush.bf16.msra.mxu3 %v2401_v56  ;;  %v2530_v28 = vld [vmem:[%s3568_s26 + $0x128] sm:$0xf0]  ;;  %v3410_v48 = vld [vmem:[%s3568_s26 + $0x424] sm:$0xf0] }
  0x6a   : > { %1668 = vmatmul.bf16.vlgmr.msrb.gmra.mxu1 %v3675_v58  ;;  %v2533_v37 = vor.u32 %v3310_v27, %v2530_v28  ;;  %v3422_v56 = vld [vmem:[%s3568_s26 + $0x48c] sm:$0xf]  ;;  %v3339_v28 = vld [vmem:[%s3568_s26 + $0x1ec] sm:$0xf0] }
  0x6b   : > { %1735 = vmatpush.bf16.msra.mxu1 %v3233_v31  ;;  %1717 = vmatpush.bf16.msra.mxu0 %v3105_v35  ;;  %v2977_v31 = vor.u32 %v3426_v23, %v2976_v22  ;;  %v2944_v35 = vld [vmem:[%s3568_s26 + $0x448] sm:$0xf]  ;;  %v3202_v3 = vld [vmem:[%s3568_s26 + $0x668] sm:$0xf0]  ;;  %v2981_v4 = vor.u32 %v3422_v56, %v2978_v59  ;;  %v2888_v22 = vld [vmem:[%s3568_s26 + $0x3d0] sm:$0xf] }
  0x6c   : > { %1696 = vmatmul.bf16.vlgmr.msra.gmra.mxu3 %v3680_v62  ;;  %v2945_v43 = vor.u32 %v3418_v36, %v2944_v35  ;;  %v2434_v7 = vld [vmem:[%s3568_s26 + $0x68] sm:$0xf0]  ;;  %v3403_v23 = vld [vmem:[%s3568_s26 + $0x3ec] sm:$0xf0] }
  0x6d   : > { %1708 = vmatpush.bf16.msra.mxu2 %v2689_v41  ;;  %1744 = vmatpush.bf16.msrb.mxu3 %v2629_v63  ;;  %v2498_v41 = vld [vmem:[%s3568_s26 + $0xe8] sm:$0xf0]  ;;  %v3237_v63 = vor.u32 %v3486_v50, %v3234_v51  ;;  %v2889_v33 = vor.u32 %v3403_v23, %v2888_v22  ;;  %v3467_v35 = vld [vmem:[%s3568_s26 + $0x5ec] sm:$0xf0] }
  0x6e   : > { %v3414_v8 = vld [vmem:[%s3568_s26 + $0x44c] sm:$0xf]  ;;  %v2824_v50 = vld [vmem:[%s3568_s26 + $0x350] sm:$0xf] }
  0x6f   : > { %1736 = vmatpush.bf16.msra.mxu1 %v3201_v45  ;;  %1718 = vmatpush.bf16.msra.mxu0 %v3073_v49  ;;  %v3366_v45 = vld [vmem:[%s3568_s26 + $0x2cc] sm:$0xf]  ;;  %v2501_v49 = vor.u32 %v3302_v40, %v2498_v41  ;;  %v3387_v51 = vld [vmem:[%s3568_s26 + $0x36c] sm:$0xf0] }
  0x70   : > { %v2757_v53 = vor.u32 %v3366_v45, %v2754_v46  ;;  %v2946_v9 = vld [vmem:[%s3568_s26 + $0x468] sm:$0xf0]  ;;  %v3208_v45 = vld [vmem:[%s3568_s26 + $0x650] sm:$0xf] }
  0x71   : > { %1709 = vmatpush.bf16.msra.mxu2 %v2657_v57  ;;  %1745 = vmatpush.bf16.msrb.mxu3 %v2597_v12  ;;  %v2913_v57 = vor.u32 %v3410_v48, %v2912_v47  ;;  %v3350_v10 = vld [vmem:[%s3568_s26 + $0x24c] sm:$0xf]  ;;  %v2949_v19 = vor.u32 %v3414_v8, %v2946_v9  ;;  %v3483_v46 = vld [vmem:[%s3568_s26 + $0x66c] sm:$0xf0] }
  0x72   : > { %v2690_v11 = vld [vmem:[%s3568_s26 + $0x268] sm:$0xf0]  ;;  %v3112_v48 = vld [vmem:[%s3568_s26 + $0x590] sm:$0xf] }
  0x73   : > { %1737 = vmatpush.bf16.msra.mxu1 %v3169_v61  ;;  %1719 = vmatpush.bf16.msra.mxu0 %v3041_v6  ;;  %v2722_v61 = vld [vmem:[%s3568_s26 + $0x2a8] sm:$0xf0]  ;;  %v2693_v20 = vor.u32 %v3350_v10, %v2690_v11  ;;  %v3475_v59 = vld [vmem:[%s3568_s26 + $0x62c] sm:$0xf0] }
  0x74   : > { %1710 = vmatmul.bf16.vlgmr.msra.gmra.mxu2 %v3682_v0  ;;  %v2725_v5 = vor.u32 %v3358_v60, %v2722_v61  ;;  %v3286_v6 = vld [vmem:[%s3568_s26 + $0x4c] sm:$0xf]  ;;  %v3080_v60 = vld [vmem:[%s3568_s26 + $0x550] sm:$0xf]  ;;  %v2825_v61 = vor.u32 %v3387_v51, %v2824_v50  ;;  %v3303_v50 = vld [vmem:[%s3568_s26 + $0xd4] sm:$0xf] }
  0x75   : > { %1772 = vmatpush.bf16.msrb.mxu2 %v3141_v1  ;;  %1746 = vmatpush.bf16.msrb.mxu3 %v2565_v24  ;;  %v2469_v1 = vor.u32 %v3294_v54, %v2466_v55  ;;  %v2437_v15 = vor.u32 %v3286_v6, %v2434_v7  ;;  %v3406_v16 = vld [vmem:[%s3568_s26 + $0x40c] sm:$0xf]  ;;  %v2568_v54 = vld [vmem:[%s3568_s26 + $0x150] sm:$0xf]  ;;  %v2506_v51 = vld [vmem:[%s3568_s26 + $0xf0] sm:$0xf0] }
  0x76   : > { %v3470_v17 = vld [vmem:[%s3568_s26 + $0x60c] sm:$0xf]  ;;  %v3323_v55 = vld [vmem:[%s3568_s26 + $0x16c] sm:$0xf0] }
  0x77   : > { %1758 = vmatpush.bf16.msrb.mxu1 %v2885_v2  ;;  %1720 = vmatpush.bf16.msra.mxu0 %v3009_v18  ;;  %v3478_v2 = vld [vmem:[%s3568_s26 + $0x64c] sm:$0xf]  ;;  %v3379_v6 = vld [vmem:[%s3568_s26 + $0x32c] sm:$0xf0] }
  0x78   : > { %v3205_v12 = vor.u32 %v3478_v2, %v3202_v3  ;;  %v3170_v18 = vld [vmem:[%s3568_s26 + $0x628] sm:$0xf0]  ;;  %v2634_v2 = vld [vmem:[%s3568_s26 + $0x1f0] sm:$0xf0]  ;;  %v2569_v3 = vor.u32 %v3323_v55, %v2568_v54  ;;  %v2536_v9 = vld [vmem:[%s3568_s26 + $0x110] sm:$0xf] }
  0x79   : > { %1773 = vmatpush.bf16.msrb.mxu2 %v3109_v13  ;;  %1747 = vmatpush.bf16.msrb.mxu3 %v2533_v37  ;;  %v3278_v13 = vld [vmem:[%s3568_s26 + $0xc] sm:$0xf]  ;;  %v3173_v27 = vor.u32 %v3470_v17, %v3170_v18  ;;  %v3315_v10 = vld [vmem:[%s3568_s26 + $0x12c] sm:$0xf0] }
  0x7a   : > { %3256 = vmatmul.msk.bf16.vlgmr.msra.gmra.mxu1 %vm1572_vm0, %v3641_v30  ;;  %v2914_v21 = vld [vmem:[%s3568_s26 + $0x428] sm:$0xf0]  ;;  %v3048_v11 = vld [vmem:[%s3568_s26 + $0x510] sm:$0xf] }
  0x7b   : > { %1759 = vmatpush.bf16.msrb.mxu1 %v2853_v14  ;;  %1721 = vmatpush.bf16.msra.mxu0 %v2977_v31  ;;  %v2402_v14 = vld [vmem:[%s3568_s26 + $0x28] sm:$0xf0]  ;;  %v3491_v31 = vld [vmem:[%s3568_s26 + $0x6ac] sm:$0xf0]  ;;  %v2917_v36 = vor.u32 %v3406_v16, %v2914_v21  ;;  %v2537_v16 = vor.u32 %v3315_v10, %v2536_v9  ;;  %v3242_v9 = vld [vmem:[%s3568_s26 + $0x6b0] sm:$0xf0] }
  0x7c   : > { %v3342_v24 = vld [vmem:[%s3568_s26 + $0x20c] sm:$0xf]  ;;  %v2405_v32 = vor.u32 %v3278_v13, %v2402_v14  ;;  %v3241_v41 = vor.u32 %v3491_v31, %v3240_v29  ;;  %v3327_v13 = vld [vmem:[%s3568_s26 + $0x194] sm:$0xf]  ;;  %v2760_v17 = vld [vmem:[%s3568_s26 + $0x2d0] sm:$0xf] }
  0x7d   : > { %1774 = vmatpush.bf16.msrb.mxu2 %v3077_v25  ;;  %1748 = vmatpush.bf16.msrb.mxu3 %v2501_v49  ;;  %v2658_v25 = vld [vmem:[%s3568_s26 + $0x228] sm:$0xf0]  ;;  %v3459_v49 = vld [vmem:[%s3568_s26 + $0x5ac] sm:$0xf0]  ;;  %v2602_v14 = vld [vmem:[%s3568_s26 + $0x1b0] sm:$0xf0] }
  0x7e   : > { %v2661_v37 = vor.u32 %v3342_v24, %v2658_v25  ;;  %v3113_v56 = vor.u32 %v3459_v49, %v3112_v48  ;;  %v3371_v18 = vld [vmem:[%s3568_s26 + $0x2ec] sm:$0xf0]  ;;  %v3319_v25 = vld [vmem:[%s3568_s26 + $0x154] sm:$0xf] }
  0x7f   : > { %1760 = vmatpush.bf16.msrb.mxu1 %v2821_v26  ;;  %1722 = vmatpush.bf16.msra.mxu0 %v2945_v43  ;;  %v2632_v26 = vld [vmem:[%s3568_s26 + $0x1d0] sm:$0xf]  ;;  %v3145_v43 = vor.u32 %v3467_v35, %v3144_v34 }
  0x80   : > { %v2633_v40 = vor.u32 %v3339_v28, %v2632_v26  ;;  %v2504_v21 = vld [vmem:[%s3568_s26 + $0xd0] sm:$0xf]  ;;  %v2570_v26 = vld [vmem:[%s3568_s26 + $0x170] sm:$0xf0] }
  0x81   : > { %1775 = vmatpush.bf16.msrb.mxu2 %v3045_v38  ;;  %1749 = vmatpush.bf16.msrb.mxu3 %v2469_v1  ;;  %v2856_v38 = vld [vmem:[%s3568_s26 + $0x390] sm:$0xf]  ;;  %v3335_v1 = vld [vmem:[%s3568_s26 + $0x1d4] sm:$0xf] }
  0x82   : > { %v2637_v8 = vor.u32 %v3335_v1, %v2634_v2  ;;  %v3307_v22 = vld [vmem:[%s3568_s26 + $0xec] sm:$0xf0]  ;;  %v3463_v1 = vld [vmem:[%s3568_s26 + $0x5d4] sm:$0xf] }
  0x83   : > { %1761 = vmatpush.bf16.msrb.mxu1 %v2789_v39  ;;  %1723 = vmatpush.bf16.msra.mxu0 %v2913_v57  ;;  %v3395_v39 = vld [vmem:[%s3568_s26 + $0x3ac] sm:$0xf0]  ;;  %v2505_v28 = vor.u32 %v3307_v22, %v2504_v21  ;;  %v3146_v2 = vld [vmem:[%s3568_s26 + $0x5f0] sm:$0xf0] }
  0x84   : > { %v2857_v47 = vor.u32 %v3395_v39, %v2856_v38  ;;  %v3176_v57 = vld [vmem:[%s3568_s26 + $0x610] sm:$0xf]  ;;  %v3311_v38 = vld [vmem:[%s3568_s26 + $0x114] sm:$0xf] }
  0x85   : > { %1776 = vmatpush.bf16.msrb.mxu2 %v3013_v52  ;;  %1750 = vmatpush.bf16.msrb.mxu3 %v2437_v15  ;;  %v2601_v52 = vor.u32 %v3331_v44, %v2600_v42  ;;  %v3016_v23 = vld [vmem:[%s3568_s26 + $0x4d0] sm:$0xf]  ;;  %v2538_v39 = vld [vmem:[%s3568_s26 + $0x130] sm:$0xf0] }
  0x86   : > { %1724 = vmatmul.bf16.vlgmr.msra.gmra.mxu0 %v3675_v58  ;;  %v3435_v24 = vld [vmem:[%s3568_s26 + $0x4ec] sm:$0xf0]  ;;  %v2858_v21 = vld [vmem:[%s3568_s26 + $0x3b0] sm:$0xf0] }
  0x87   : > { %1762 = vmatpush.bf16.msrb.mxu1 %v2757_v53  ;;  %1791 = vmatpush.bf16.msrb.mxu0 %v3237_v63  ;;  %v3209_v53 = vor.u32 %v3483_v46, %v3208_v45  ;;  %v3451_v63 = vld [vmem:[%s3568_s26 + $0x56c] sm:$0xf0]  ;;  %v2541_v45 = vor.u32 %v3311_v38, %v2538_v39  ;;  %v3479_v22 = vld [vmem:[%s3568_s26 + $0x654] sm:$0xf]  ;;  %v3404_v39 = vld [vmem:[%s3568_s26 + $0x3f4] sm:$0xf0] }
  0x88   : > { %v3081_v7 = vor.u32 %v3451_v63, %v3080_v60  ;;  %v2728_v29 = vld [vmem:[%s3568_s26 + $0x290] sm:$0xf] }
  0x89   : > { %1777 = vmatpush.bf16.msrb.mxu2 %v2981_v4  ;;  %1751 = vmatpush.bf16.msrb.mxu3 %v2405_v32  ;;  %v3177_v4 = vor.u32 %v3475_v59, %v3176_v57  ;;  %v3363_v31 = vld [vmem:[%s3568_s26 + $0x2ac] sm:$0xf0]  ;;  %v3017_v32 = vor.u32 %v3435_v24, %v3016_v23  ;;  %v3210_v23 = vld [vmem:[%s3568_s26 + $0x670] sm:$0xf0] }
  0x8a   : > { %v2472_v34 = vld [vmem:[%s3568_s26 + $0x90] sm:$0xf] }
  0x8b   : > { %1763 = vmatpush.bf16.msrb.mxu1 %v2725_v5  ;;  %1792 = vmatpush.bf16.msrb.mxu0 %v3205_v12  ;;  %v2792_v5 = vld [vmem:[%s3568_s26 + $0x310] sm:$0xf] }
  0x8c   : > { %1752 = vmatmul.bf16.vlgmr.msrb.gmra.mxu3 %v3680_v62  ;;  %v3443_v12 = vld [vmem:[%s3568_s26 + $0x52c] sm:$0xf0]  ;;  %v2793_v15 = vor.u32 %v3379_v6, %v2792_v5  ;;  %v3399_v5 = vld [vmem:[%s3568_s26 + $0x3d4] sm:$0xf] }
  0x8d   : > { %1778 = vmatpush.bf16.msrb.mxu2 %v2949_v19  ;;  %1800 = vmatpush.bf16.msra.mxu3 %v2633_v40  ;;  %v3049_v19 = vor.u32 %v3443_v12, %v3048_v11  ;;  %v3299_v35 = vld [vmem:[%s3568_s26 + $0xac] sm:$0xf0]  ;;  %v2729_v40 = vor.u32 %v3363_v31, %v2728_v29  ;;  %v3149_v11 = vor.u32 %v3463_v1, %v3146_v2  ;;  %v2762_v1 = vld [vmem:[%s3568_s26 + $0x2f0] sm:$0xf0]  ;;  %v2832_v2 = vld [vmem:[%s3568_s26 + $0x358] sm:$0xf] }
  0x8e   : > { %v2696_v42 = vld [vmem:[%s3568_s26 + $0x250] sm:$0xf]  ;;  %v3213_v31 = vor.u32 %v3479_v22, %v3210_v23 }
  0x8f   : > { %1764 = vmatpush.bf16.msrb.mxu1 %v2693_v20  ;;  %1793 = vmatpush.bf16.msrb.mxu0 %v3173_v27  ;;  %v2605_v20 = vor.u32 %v3327_v13, %v2602_v14  ;;  %v2761_v27 = vor.u32 %v3371_v18, %v2760_v17  ;;  %v2440_v46 = vld [vmem:[%s3568_s26 + $0x50] sm:$0xf]  ;;  %v3455_v14 = vld [vmem:[%s3568_s26 + $0x594] sm:$0xf] }
  0x90   : > { %v2952_v48 = vld [vmem:[%s3568_s26 + $0x450] sm:$0xf]  ;;  %v3287_v18 = vld [vmem:[%s3568_s26 + $0x54] sm:$0xf] }
  0x91   : > { %1779 = vmatpush.bf16.msrb.mxu2 %v2917_v36  ;;  %1801 = vmatpush.bf16.msra.mxu3 %v2601_v52  ;;  %v2984_v36 = vld [vmem:[%s3568_s26 + $0x490] sm:$0xf] }
  0x92   : > { %v3419_v49 = vld [vmem:[%s3568_s26 + $0x46c] sm:$0xf0] }
  0x93   : > { %1814 = vmatpush.bf16.msra.mxu0 %v2889_v33  ;;  %1765 = vmatpush.bf16.msrb.mxu1 %v2661_v37  ;;  %v2573_v33 = vor.u32 %v3319_v25, %v2570_v26  ;;  %v3427_v37 = vld [vmem:[%s3568_s26 + $0x4ac] sm:$0xf0]  ;;  %v2953_v60 = vor.u32 %v3419_v49, %v2952_v48  ;;  %v3279_v26 = vld [vmem:[%s3568_s26 + $0x14] sm:$0xf] }
  0x94   : > { %1780 = vmatmul.bf16.vlgmr.msrb.gmra.mxu2 %v3675_v58  ;;  %v2985_v44 = vor.u32 %v3427_v37, %v2984_v36  ;;  %v3283_v54 = vld [vmem:[%s3568_s26 + $0x2c] sm:$0xf0]  ;;  %v3178_v36 = vld [vmem:[%s3568_s26 + $0x630] sm:$0xf0]  ;;  %v2896_v37 = vld [vmem:[%s3568_s26 + $0x3d8] sm:$0xf] }
  0x95   : > { %1847 = vmatpush.bf16.msra.mxu2 %v3241_v41  ;;  %1802 = vmatpush.bf16.msra.mxu3 %v2569_v3  ;;  %v2473_v41 = vor.u32 %v3299_v35, %v2472_v34  ;;  %v3347_v57 = vld [vmem:[%s3568_s26 + $0x22c] sm:$0xf0]  ;;  %v3295_v3 = vld [vmem:[%s3568_s26 + $0x94] sm:$0xf] }
  0x96   : > { %1766 = vmatmul.bf16.vlgmr.msrb.gmra.mxu1 %v3682_v0  ;;  %3257 = vmatmul.msk.bf16.vlgmr.msrb.gmra.mxu0 %vm1572_vm0, %v3641_v30  ;;  %v2920_v59 = vld [vmem:[%s3568_s26 + $0x410] sm:$0xf]  ;;  %v2826_v34 = vld [vmem:[%s3568_s26 + $0x370] sm:$0xf0] }
  0x97   : > { %1828 = vmatpush.bf16.msra.mxu1 %v3145_v43  ;;  %1815 = vmatpush.bf16.msra.mxu0 %v2857_v47  ;;  %v3355_v43 = vld [vmem:[%s3568_s26 + $0x26c] sm:$0xf0]  ;;  %v3471_v35 = vld [vmem:[%s3568_s26 + $0x614] sm:$0xf] }
  0x98   : > { %v3291_v47 = vld [vmem:[%s3568_s26 + $0x6c] sm:$0xf0]  ;;  %v2697_v52 = vor.u32 %v3355_v43, %v2696_v42  ;;  %v3439_v43 = vld [vmem:[%s3568_s26 + $0x514] sm:$0xf] }
  0x99   : > { %1848 = vmatpush.bf16.msra.mxu2 %v3209_v53  ;;  %1803 = vmatpush.bf16.msra.mxu3 %v2537_v16  ;;  %v2408_v53 = vld [vmem:[%s3568_s26 + $0x10] sm:$0xf]  ;;  %v2441_v55 = vor.u32 %v3291_v47, %v2440_v46  ;;  %v3181_v46 = vor.u32 %v3471_v35, %v3178_v36  ;;  %v2897_v47 = vor.u32 %v3404_v39, %v2896_v37  ;;  %v3375_v49 = vld [vmem:[%s3568_s26 + $0x314] sm:$0xf]  ;;  %v3248_v35 = vld [vmem:[%s3568_s26 + $0x698] sm:$0xf] }
  0x9a   : > { %v3411_v63 = vld [vmem:[%s3568_s26 + $0x42c] sm:$0xf0]  ;;  %v2409_v10 = vor.u32 %v3283_v54, %v2408_v53  ;;  %v3396_v53 = vld [vmem:[%s3568_s26 + $0x3b4] sm:$0xf0]  ;;  %v3343_v39 = vld [vmem:[%s3568_s26 + $0x214] sm:$0xf] }
  0x9b   : > { %1829 = vmatpush.bf16.msra.mxu1 %v3113_v56  ;;  %1816 = vmatpush.bf16.msra.mxu0 %v2825_v61  ;;  %v2664_v56 = vld [vmem:[%s3568_s26 + $0x210] sm:$0xf]  ;;  %v2509_v61 = vor.u32 %v3303_v50, %v2506_v51  ;;  %v2921_v12 = vor.u32 %v3411_v63, %v2920_v59  ;;  %v2794_v50 = vld [vmem:[%s3568_s26 + $0x330] sm:$0xf0]  ;;  %v2864_v51 = vld [vmem:[%s3568_s26 + $0x398] sm:$0xf] }
  0x9c   : > { %v2665_v6 = vor.u32 %v3347_v57, %v2664_v56  ;;  %v2608_v54 = vld [vmem:[%s3568_s26 + $0x198] sm:$0xf]  ;;  %v3431_v56 = vld [vmem:[%s3568_s26 + $0x4d4] sm:$0xf]  ;;  %v2797_v59 = vor.u32 %v3375_v49, %v2794_v50 }
  0x9d   : > { %1849 = vmatpush.bf16.msra.mxu2 %v3177_v4  ;;  %1804 = vmatpush.bf16.msra.mxu3 %v2505_v28  ;;  %v2474_v4 = vld [vmem:[%s3568_s26 + $0xb0] sm:$0xf0]  ;;  %v3492_v36 = vld [vmem:[%s3568_s26 + $0x6b4] sm:$0xf0] }
  0x9e   : > { %v2477_v13 = vor.u32 %v3295_v3, %v2474_v4  ;;  %v3082_v28 = vld [vmem:[%s3568_s26 + $0x570] sm:$0xf0]  ;;  %v3388_v4 = vld [vmem:[%s3568_s26 + $0x374] sm:$0xf0] }
  0x9f   : > { %1830 = vmatpush.bf16.msra.mxu1 %v3081_v7  ;;  %1817 = vmatpush.bf16.msra.mxu0 %v2793_v15  ;;  %v2890_v7 = vld [vmem:[%s3568_s26 + $0x3f0] sm:$0xf0]  ;;  %v3216_v50 = vld [vmem:[%s3568_s26 + $0x658] sm:$0xf] }
  0xa0   : > { %v3114_v15 = vld [vmem:[%s3568_s26 + $0x5b0] sm:$0xf0]  ;;  %v2893_v16 = vor.u32 %v3399_v5, %v2890_v7  ;;  %v2576_v5 = vld [vmem:[%s3568_s26 + $0x158] sm:$0xf] }
  0xa1   : > { %1856 = vmatpush.bf16.msrb.mxu2 %v2637_v8  ;;  %1805 = vmatpush.bf16.msra.mxu3 %v2473_v41  ;;  %v3487_v8 = vld [vmem:[%s3568_s26 + $0x694] sm:$0xf]  ;;  %v3117_v24 = vor.u32 %v3455_v14, %v3114_v15  ;;  %v3340_v41 = vld [vmem:[%s3568_s26 + $0x1f4] sm:$0xf0] }
  0xa2   : > { %v3245_v17 = vor.u32 %v3487_v8, %v3242_v9  ;;  %v3018_v57 = vld [vmem:[%s3568_s26 + $0x4f0] sm:$0xf0]  ;;  %v2800_v14 = vld [vmem:[%s3568_s26 + $0x318] sm:$0xf] }
  0xa3   : > { %1831 = vmatpush.bf16.msra.mxu1 %v3049_v19  ;;  %1818 = vmatpush.bf16.msra.mxu0 %v2761_v27  ;;  %v2442_v19 = vld [vmem:[%s3568_s26 + $0x70] sm:$0xf0]  ;;  %v3021_v3 = vor.u32 %v3431_v56, %v3018_v57  ;;  %v3356_v56 = vld [vmem:[%s3568_s26 + $0x274] sm:$0xf0] }
  0xa4   : > { %3258 = vmatmul.msk.bf16.vlgmr.msra.gmra.mxu2 %vm1572_vm0, %v3641_v30  ;;  %v2445_v25 = vor.u32 %v3287_v18, %v2442_v19  ;;  %v3447_v27 = vld [vmem:[%s3568_s26 + $0x554] sm:$0xf]  ;;  %v3316_v18 = vld [vmem:[%s3568_s26 + $0x134] sm:$0xf0] }
  0xa5   : > { %1857 = vmatpush.bf16.msrb.mxu2 %v2605_v20  ;;  %1806 = vmatpush.bf16.msra.mxu3 %v2441_v55  ;;  %v3391_v20 = vld [vmem:[%s3568_s26 + $0x394] sm:$0xf]  ;;  %v3085_v38 = vor.u32 %v3447_v27, %v3082_v28  ;;  %v3332_v55 = vld [vmem:[%s3568_s26 + $0x1b4] sm:$0xf0] }
  0xa6   : > { %v2861_v29 = vor.u32 %v3391_v20, %v2858_v21  ;;  %v3367_v63 = vld [vmem:[%s3568_s26 + $0x2d4] sm:$0xf]  ;;  %v3372_v28 = vld [vmem:[%s3568_s26 + $0x2f4] sm:$0xf0] }
  0xa7   : > { %1832 = vmatpush.bf16.msra.mxu1 %v3017_v32  ;;  %1819 = vmatpush.bf16.msra.mxu0 %v2729_v40  ;;  %v2410_v32 = vld [vmem:[%s3568_s26 + $0x30] sm:$0xf0]  ;;  %v2640_v40 = vld [vmem:[%s3568_s26 + $0x1d8] sm:$0xf]  ;;  %v2765_v9 = vor.u32 %v3367_v63, %v2762_v1 }
  0xa8   : > { %v2413_v42 = vor.u32 %v3279_v26, %v2410_v32  ;;  %v2641_v48 = vor.u32 %v3340_v41, %v2640_v40  ;;  %v3423_v7 = vld [vmem:[%s3568_s26 + $0x494] sm:$0xf]  ;;  %v2768_v26 = vld [vmem:[%s3568_s26 + $0x2d8] sm:$0xf] }
  0xa9   : > { %1858 = vmatpush.bf16.msrb.mxu2 %v2573_v33  ;;  %1807 = vmatpush.bf16.msra.mxu3 %v2409_v10  ;;  %v3383_v33 = vld [vmem:[%s3568_s26 + $0x354] sm:$0xf]  ;;  %v2833_v10 = vor.u32 %v3388_v4, %v2832_v2  ;;  %v2769_v37 = vor.u32 %v3372_v28, %v2768_v26  ;;  %v2736_v41 = vld [vmem:[%s3568_s26 + $0x298] sm:$0xf]  ;;  %v2610_v26 = vld [vmem:[%s3568_s26 + $0x1b8] sm:$0xf0] }
  0xaa   : > { %v2986_v8 = vld [vmem:[%s3568_s26 + $0x4b0] sm:$0xf0]  ;;  %v3120_v57 = vld [vmem:[%s3568_s26 + $0x598] sm:$0xf] }
  0xab   : > { %1833 = vmatpush.bf16.msra.mxu1 %v2985_v44  ;;  %1820 = vmatpush.bf16.msra.mxu0 %v2697_v52  ;;  %v3050_v44 = vld [vmem:[%s3568_s26 + $0x530] sm:$0xf0]  ;;  %v2989_v15 = vor.u32 %v3423_v7, %v2986_v8  ;;  %v2672_v2 = vld [vmem:[%s3568_s26 + $0x218] sm:$0xf] }
  0xac   : > { %1808 = vmatmul.bf16.vlgmr.msra.gmra.mxu3 %v3680_v62  ;;  %v3053_v52 = vor.u32 %v3439_v43, %v3050_v44  ;;  %v3415_v19 = vld [vmem:[%s3568_s26 + $0x454] sm:$0xf]  ;;  %v3364_v43 = vld [vmem:[%s3568_s26 + $0x2b4] sm:$0xf0] }
  0xad   : > { %1859 = vmatpush.bf16.msrb.mxu2 %v2541_v45  ;;  %1870 = vmatpush.bf16.msrb.mxu3 %v2893_v16  ;;  %v2829_v45 = vor.u32 %v3383_v33, %v2826_v34  ;;  %v3380_v16 = vld [vmem:[%s3568_s26 + $0x334] sm:$0xf0]  ;;  %v2954_v20 = vld [vmem:[%s3568_s26 + $0x470] sm:$0xf0] }
  0xae   : > { %v2801_v22 = vor.u32 %v3380_v16, %v2800_v14  ;;  %v2957_v27 = vor.u32 %v3415_v19, %v2954_v20  ;;  %v3407_v32 = vld [vmem:[%s3568_s26 + $0x414] sm:$0xf]  ;;  %v3152_v44 = vld [vmem:[%s3568_s26 + $0x5d8] sm:$0xf]  ;;  %v3154_v19 = vld [vmem:[%s3568_s26 + $0x5f8] sm:$0xf0] }
  0xaf   : > { %1834 = vmatpush.bf16.msra.mxu1 %v2953_v60  ;;  %1821 = vmatpush.bf16.msra.mxu0 %v2665_v6  ;;  %v2865_v60 = vor.u32 %v3396_v53, %v2864_v51  ;;  %v3324_v6 = vld [vmem:[%s3568_s26 + $0x174] sm:$0xf0]  ;;  %v2922_v33 = vld [vmem:[%s3568_s26 + $0x430] sm:$0xf0] }
  0xb0   : > { %v2666_v40 = vld [vmem:[%s3568_s26 + $0x230] sm:$0xf0]  ;;  %v3484_v51 = vld [vmem:[%s3568_s26 + $0x674] sm:$0xf0] }
  0xb1   : > { %1860 = vmatpush.bf16.msrb.mxu2 %v2509_v61  ;;  %1871 = vmatpush.bf16.msrb.mxu3 %v2861_v29  ;;  %v2609_v61 = vor.u32 %v3332_v55, %v2608_v54  ;;  %v2512_v29 = vld [vmem:[%s3568_s26 + $0xd8] sm:$0xf]  ;;  %v2669_v49 = vor.u32 %v3343_v39, %v2666_v40  ;;  %v3217_v63 = vor.u32 %v3484_v51, %v3216_v50  ;;  %v3392_v40 = vld [vmem:[%s3568_s26 + $0x39c] sm:$0xf] }
  0xb2   : > { %1822 = vmatmul.bf16.vlgmr.msra.gmra.mxu0 %v3682_v0  ;;  %v2704_v54 = vld [vmem:[%s3568_s26 + $0x258] sm:$0xf] }
  0xb3   : > { %1884 = vmatpush.bf16.msrb.mxu0 %v3149_v11  ;;  %1835 = vmatpush.bf16.msra.mxu1 %v2921_v12  ;;  %v2577_v11 = vor.u32 %v3324_v6, %v2576_v5  ;;  %v3359_v12 = vld [vmem:[%s3568_s26 + $0x294] sm:$0xf]  ;;  %v3476_v4 = vld [vmem:[%s3568_s26 + $0x634] sm:$0xf0]  ;;  %v2705_v5 = vor.u32 %v3356_v56, %v2704_v54  ;;  %v2834_v56 = vld [vmem:[%s3568_s26 + $0x378] sm:$0xf0] }
  0xb4   : > { %v3348_v8 = vld [vmem:[%s3568_s26 + $0x234] sm:$0xf0] }
  0xb5   : > { %1861 = vmatpush.bf16.msrb.mxu2 %v2477_v13  ;;  %1872 = vmatpush.bf16.msrb.mxu3 %v2829_v45  ;;  %v2730_v13 = vld [vmem:[%s3568_s26 + $0x2b0] sm:$0xf0]  ;;  %v3468_v45 = vld [vmem:[%s3568_s26 + $0x5f4] sm:$0xf0] }
  0xb6   : > { %1836 = vmatmul.bf16.vlgmr.msra.gmra.mxu1 %v3675_v58  ;;  %v2733_v21 = vor.u32 %v3359_v12, %v2730_v13  ;;  %v3153_v53 = vor.u32 %v3468_v45, %v3152_v44  ;;  %v3088_v13 = vld [vmem:[%s3568_s26 + $0x558] sm:$0xf]  ;;  %v3320_v45 = vld [vmem:[%s3568_s26 + $0x15c] sm:$0xf] }
  0xb7   : > { %1903 = vmatpush.bf16.msrb.mxu1 %v3245_v17  ;;  %1885 = vmatpush.bf16.msrb.mxu0 %v3117_v24  ;;  %v2544_v17 = vld [vmem:[%s3568_s26 + $0x118] sm:$0xf]  ;;  %v3351_v24 = vld [vmem:[%s3568_s26 + $0x254] sm:$0xf] }
  0xb8   : > { %v2545_v23 = vor.u32 %v3316_v18, %v2544_v17  ;;  %v3452_v14 = vld [vmem:[%s3568_s26 + $0x574] sm:$0xf0]  ;;  %v3464_v18 = vld [vmem:[%s3568_s26 + $0x5dc] sm:$0xf] }
  0xb9   : > { %1862 = vmatpush.bf16.msrb.mxu2 %v2445_v25  ;;  %1873 = vmatpush.bf16.msrb.mxu3 %v2797_v59  ;;  %v2698_v25 = vld [vmem:[%s3568_s26 + $0x270] sm:$0xf0]  ;;  %v3460_v59 = vld [vmem:[%s3568_s26 + $0x5b4] sm:$0xf0] }
  0xba   : > { %v2701_v34 = vor.u32 %v3351_v24, %v2698_v25  ;;  %v3121_v6 = vor.u32 %v3460_v59, %v3120_v57  ;;  %v3284_v16 = vld [vmem:[%s3568_s26 + $0x34] sm:$0xf0]  ;;  %v3089_v24 = vor.u32 %v3452_v14, %v3088_v13  ;;  %v3328_v25 = vld [vmem:[%s3568_s26 + $0x19c] sm:$0xf] }
  0xbb   : > { %1904 = vmatpush.bf16.msrb.mxu1 %v3213_v31  ;;  %1886 = vmatpush.bf16.msrb.mxu0 %v3085_v38  ;;  %v3308_v31 = vld [vmem:[%s3568_s26 + $0xf4] sm:$0xf0]  ;;  %v2613_v39 = vor.u32 %v3328_v25, %v2610_v26  ;;  %v3312_v59 = vld [vmem:[%s3568_s26 + $0x11c] sm:$0xf] }
  0xbc   : > { %v2513_v38 = vor.u32 %v3308_v31, %v2512_v29  ;;  %v3157_v31 = vor.u32 %v3464_v18, %v3154_v19  ;;  %v3436_v50 = vld [vmem:[%s3568_s26 + $0x4f4] sm:$0xf0]  ;;  %v3304_v13 = vld [vmem:[%s3568_s26 + $0xdc] sm:$0xf] }
  0xbd   : > { %1863 = vmatpush.bf16.msrb.mxu2 %v2413_v42  ;;  %1874 = vmatpush.bf16.msrb.mxu3 %v2765_v9  ;;  %v2925_v42 = vor.u32 %v3407_v32, %v2922_v33  ;;  %v3336_v9 = vld [vmem:[%s3568_s26 + $0x1dc] sm:$0xf]  ;;  %v3056_v32 = vld [vmem:[%s3568_s26 + $0x518] sm:$0xf] }
  0xbe   : > { %v3444_v33 = vld [vmem:[%s3568_s26 + $0x534] sm:$0xf0]  ;;  %v2514_v14 = vld [vmem:[%s3568_s26 + $0xf8] sm:$0xf0] }
  0xbf   : > { %1905 = vmatpush.bf16.msrb.mxu1 %v3181_v46  ;;  %1887 = vmatpush.bf16.msrb.mxu0 %v3053_v52  ;;  %v2480_v46 = vld [vmem:[%s3568_s26 + $0x98] sm:$0xf]  ;;  %v2737_v52 = vor.u32 %v3364_v43, %v2736_v41  ;;  %v2866_v41 = vld [vmem:[%s3568_s26 + $0x3b8] sm:$0xf0]  ;;  %v3057_v43 = vor.u32 %v3444_v33, %v3056_v32 }
  0xc0   : > { %1864 = vmatmul.bf16.vlgmr.msrb.gmra.mxu2 %v3680_v62  ;;  %v2869_v51 = vor.u32 %v3392_v40, %v2866_v41  ;;  %v3432_v19 = vld [vmem:[%s3568_s26 + $0x4dc] sm:$0xf] }
  0xc1   : > { %1926 = vmatpush.bf16.msra.mxu2 %v2897_v47  ;;  %1875 = vmatpush.bf16.msrb.mxu3 %v2733_v21  ;;  %v3300_v47 = vld [vmem:[%s3568_s26 + $0xb4] sm:$0xf0]  ;;  %v3400_v21 = vld [vmem:[%s3568_s26 + $0x3dc] sm:$0xf] }
  0xc2   : > { %v2481_v55 = vor.u32 %v3300_v47, %v2480_v46  ;;  %v2578_v46 = vld [vmem:[%s3568_s26 + $0x178] sm:$0xf0] }
  0xc3   : > { %1912 = vmatpush.bf16.msra.mxu1 %v2641_v48  ;;  %1888 = vmatpush.bf16.msrb.mxu0 %v3021_v3  ;;  %v3249_v48 = vor.u32 %v3492_v36, %v3248_v35  ;;  %v3184_v3 = vld [vmem:[%s3568_s26 + $0x618] sm:$0xf]  ;;  %v3456_v36 = vld [vmem:[%s3568_s26 + $0x59c] sm:$0xf]  ;;  %v2581_v54 = vor.u32 %v3320_v45, %v2578_v46 }
  0xc4   : > { %v3185_v17 = vor.u32 %v3476_v4, %v3184_v3  ;;  %v3296_v25 = vld [vmem:[%s3568_s26 + $0x9c] sm:$0xf] }
  0xc5   : > { %1927 = vmatpush.bf16.msra.mxu2 %v2865_v60  ;;  %1876 = vmatpush.bf16.msrb.mxu3 %v2701_v34  ;;  %v2448_v60 = vld [vmem:[%s3568_s26 + $0x58] sm:$0xf]  ;;  %v1585_v1 = vpop.f32.mrf.mxu0  ;;  %v2482_v26 = vld [vmem:[%s3568_s26 + $0xb8] sm:$0xf0] }
  0xc6   : > { %3259 = vmatmul.msk.bf16.vlgmr.msrb.gmra.mxu1 %vm1572_vm0, %v3641_v30  ;;  %v2994_v33 = vld [vmem:[%s3568_s26 + $0x4b8] sm:$0xf0] }
  0xc7   : > { %1913 = vmatpush.bf16.msra.mxu1 %v2609_v61  ;;  %1889 = vmatpush.bf16.msrb.mxu0 %v2989_v15  ;;  %v3292_v61 = vld [vmem:[%s3568_s26 + $0x74] sm:$0xf0]  ;;  %v1599_v7 = vpop.f32.mrf.mxu1  ;;  %v3288_v41 = vld [vmem:[%s3568_s26 + $0x5c] sm:$0xf] }
  0xc8   : > { %v1600_v12 = vadd.f32 %v1599_v7, %v1585_v1  ;;  %v2416_v15 = vld [vmem:[%s3568_s26 + $0x18] sm:$0xf]  ;;  %v3416_v45 = vld [vmem:[%s3568_s26 + $0x45c] sm:$0xf] }
  0xc9   : > { %1928 = vmatpush.bf16.msra.mxu2 %v2833_v10  ;;  %1877 = vmatpush.bf16.msrb.mxu3 %v2669_v49  ;;  %v2642_v10 = vld [vmem:[%s3568_s26 + $0x1f8] sm:$0xf0]  ;;  %v2417_v29 = vor.u32 %v3284_v16, %v2416_v15  ;;  %v3024_v49 = vld [vmem:[%s3568_s26 + $0x4d8] sm:$0xf] }
  0xca   : > { %v2645_v20 = vor.u32 %v3336_v9, %v2642_v10  ;;  %v3025_v57 = vor.u32 %v3436_v50, %v3024_v49  ;;  %v2992_v1 = vld [vmem:[%s3568_s26 + $0x498] sm:$0xf]  ;;  %v3376_v9 = vld [vmem:[%s3568_s26 + $0x31c] sm:$0xf] }
  0xcb   : > { %1914 = vmatpush.bf16.msra.mxu1 %v2577_v11  ;;  %1890 = vmatpush.bf16.msrb.mxu0 %v2957_v27  ;;  %v2449_v11 = vor.u32 %v3292_v61, %v2448_v60  ;;  %v1627_v27 = vpop.f32.mrf.mxu3  ;;  %v1613_v28 = vpop.f32.mrf.mxu2  ;;  %v2546_v60 = vld [vmem:[%s3568_s26 + $0x138] sm:$0xf0]  ;;  %v2960_v16 = vld [vmem:[%s3568_s26 + $0x458] sm:$0xf] }
  0xcc   : > { %1878 = vmatmul.bf16.vlgmr.msrb.gmra.mxu3 %v3682_v0  ;;  %v1614_v34 = vadd.f32 %v1613_v28, %v1600_v12  ;;  %v2802_v10 = vld [vmem:[%s3568_s26 + $0x338] sm:$0xf0]  ;;  %v2928_v28 = vld [vmem:[%s3568_s26 + $0x418] sm:$0xf] }
  0xcd   : > { %1929 = vmatpush.bf16.msra.mxu2 %v2801_v22  ;;  %1940 = vmatpush.bf16.msra.mxu3 %v3153_v53  ;;  %v2898_v22 = vld [vmem:[%s3568_s26 + $0x3f8] sm:$0xf0]  ;;  %v2805_v18 = vor.u32 %v3376_v9, %v2802_v10 }
  0xce   : > { %v2901_v35 = vor.u32 %v3400_v21, %v2898_v22  ;;  %v3090_v53 = vld [vmem:[%s3568_s26 + $0x578] sm:$0xf0]  ;;  %v2517_v21 = vor.u32 %v3304_v13, %v2514_v14 }
  0xcf   : > { %1915 = vmatpush.bf16.msra.mxu1 %v2545_v23  ;;  %1891 = vmatpush.bf16.msrb.mxu0 %v2925_v42  ;;  %v2673_v23 = vor.u32 %v3348_v8, %v2672_v2  ;;  %v4014_v42 = vadd.f32 %v1627_v27, %v1614_v34  ;;  %v1601_v44 = vpop.f32.mrf.mxu1  ;;  %v3428_v2 = vld [vmem:[%s3568_s26 + $0x4b4] sm:$0xf0]  ;;  %v2549_v8 = vor.u32 %v3312_v59, %v2546_v60  ;;  %v3368_v22 = vld [vmem:[%s3568_s26 + $0x2dc] sm:$0xf] }
  0xd0   : > { %v2993_v12 = vor.u32 %v3428_v2, %v2992_v1  ;;  %v3488_v34 = vld [vmem:[%s3568_s26 + $0x69c] sm:$0xf] }
  0xd1   : > { %1930 = vmatpush.bf16.msra.mxu2 %v2769_v37  ;;  %1941 = vmatpush.bf16.msra.mxu3 %v3121_v6  ;;  %v3122_v37 = vld [vmem:[%s3568_s26 + $0x5b8] sm:$0xf0] }
  0xd2   : > { %1892 = vmatmul.bf16.vlgmr.msrb.gmra.mxu0 %v3675_v58  ;;  %v3125_v47 = vor.u32 %v3456_v36, %v3122_v37  ;;  %v3058_v6 = vld [vmem:[%s3568_s26 + $0x538] sm:$0xf0]  ;;  %v2485_v36 = vor.u32 %v3296_v25, %v2482_v26 }
  0xd3   : > { %1916 = vmatpush.bf16.msra.mxu1 %v2513_v38  ;;  %1959 = vmatpush.bf16.msra.mxu0 %v3249_v48  ;;  %v1587_v38 = vpop.f32.mrf.mxu0  ;;  %v1615_v61 = vpop.f32.mrf.mxu2  ;;  %v3360_v37 = vld [vmem:[%s3568_s26 + $0x29c] sm:$0xf] }
  0xd4   : > { %v1602_v48 = vadd.f32 %v1601_v44, %v1587_v38  ;;  %v1629_v7 = vpop.f32.mrf.mxu3  ;;  %v2738_v38 = vld [vmem:[%s3568_s26 + $0x2b8] sm:$0xf0] }
  0xd5   : > { %1931 = vmatpush.bf16.msra.mxu2 %v2737_v52  ;;  %1942 = vmatpush.bf16.msra.mxu3 %v3089_v24  ;;  %v3448_v52 = vld [vmem:[%s3568_s26 + $0x55c] sm:$0xf] }
  0xd6   : > { %v1616_v3 = vadd.f32 %v1615_v61, %v1602_v48  ;;  %v2962_v48 = vld [vmem:[%s3568_s26 + $0x478] sm:$0xf0] }
  0xd7   : > { %1917 = vmatpush.bf16.msra.mxu1 %v2481_v55  ;;  %1960 = vmatpush.bf16.msra.mxu0 %v3217_v63  ;;  %v3384_v55 = vld [vmem:[%s3568_s26 + $0x35c] sm:$0xf]  ;;  %v3093_v63 = vor.u32 %v3448_v52, %v3090_v53  ;;  %v2965_v61 = vor.u32 %v3416_v45, %v2962_v48 }
  0xd8   : > { %v2837_v4 = vor.u32 %v3384_v55, %v2834_v56  ;;  %v3480_v49 = vld [vmem:[%s3568_s26 + $0x65c] sm:$0xf] }
  0xd9   : > { %1932 = vmatpush.bf16.msra.mxu2 %v2705_v5  ;;  %1943 = vmatpush.bf16.msra.mxu3 %v3057_v43  ;;  %v3440_v5 = vld [vmem:[%s3568_s26 + $0x51c] sm:$0xf] }
  0xda   : > { %v3061_v15 = vor.u32 %v3440_v5, %v3058_v6  ;;  %v2450_v43 = vld [vmem:[%s3568_s26 + $0x78] sm:$0xf0] }
  0xdb   : > { %1918 = vmatpush.bf16.msra.mxu1 %v2449_v11  ;;  %1961 = vmatpush.bf16.msra.mxu0 %v3185_v17  ;;  %v4034_v11 = vadd.f32 %v1629_v7, %v1616_v3  ;;  %v3420_v17 = vld [vmem:[%s3568_s26 + $0x474] sm:$0xf0]  ;;  %v3218_v50 = vld [vmem:[%s3568_s26 + $0x678] sm:$0xf0] }
  0xdc   : > { %v2961_v24 = vor.u32 %v3420_v17, %v2960_v16  ;;  %v1641_v40 = vpop.f32.mrf.mxu3  ;;  %v3352_v52 = vld [vmem:[%s3568_s26 + $0x25c] sm:$0xf]  ;;  %v3221_v1 = vor.u32 %v3480_v49, %v3218_v50 }
  0xdd   : > { %1933 = vmatpush.bf16.msra.mxu2 %v2673_v23  ;;  %1944 = vmatpush.bf16.msra.mxu3 %v3025_v57  ;;  %v2770_v23 = vld [vmem:[%s3568_s26 + $0x2f8] sm:$0xf0] }
  0xde   : > { %v2773_v32 = vor.u32 %v3368_v22, %v2770_v23  ;;  %v2706_v53 = vld [vmem:[%s3568_s26 + $0x278] sm:$0xf0] }
  0xdf   : > { %1968 = vmatpush.bf16.msrb.mxu0 %v2645_v20  ;;  %1919 = vmatpush.bf16.msra.mxu1 %v2417_v29  ;;  %v3026_v20 = vld [vmem:[%s3568_s26 + $0x4f8] sm:$0xf0]  ;;  %v3412_v29 = vld [vmem:[%s3568_s26 + $0x434] sm:$0xf0]  ;;  %v2709_v2 = vor.u32 %v3352_v52, %v2706_v53 }
  0xe0   : > { %1934 = vmatmul.bf16.vlgmr.msra.gmra.mxu2 %v3682_v0  ;;  %v3029_v27 = vor.u32 %v3432_v19, %v3026_v20  ;;  %v3280_v56 = vld [vmem:[%s3568_s26 + $0x1c] sm:$0xf] }
  0xe1   : > { %1996 = vmatpush.bf16.msrb.mxu2 %v3157_v31  ;;  %1945 = vmatpush.bf16.msra.mxu3 %v2993_v12  ;;  %v3424_v31 = vld [vmem:[%s3568_s26 + $0x49c] sm:$0xf] }
  0xe2   : > { %1920 = vmatmul.bf16.vlgmr.msra.gmra.mxu1 %v3680_v62  ;;  %3260 = vmatmul.msk.bf16.vlgmr.msra.gmra.mxu0 %vm1572_vm0, %v3641_v30  ;;  %v2997_v44 = vor.u32 %v3424_v31, %v2994_v33  ;;  %v2418_v57 = vld [vmem:[%s3568_s26 + $0x38] sm:$0xf0] }
  0xe3   : > { %1982 = vmatpush.bf16.msrb.mxu1 %v2901_v35  ;;  %1969 = vmatpush.bf16.msrb.mxu0 %v2613_v39  ;;  %v3250_v35 = vld [vmem:[%s3568_s26 + $0x6b8] sm:$0xf0]  ;;  %v2929_v39 = vor.u32 %v3412_v29, %v2928_v28  ;;  %v1655_v55 = vpop.f32.mrf.mxu0  ;;  %v2421_v7 = vor.u32 %v3280_v56, %v2418_v57 }
  0xe4   : > { %v3253_v46 = vor.u32 %v3488_v34, %v3250_v35  ;;  %v1656_v59 = vadd.f32 %v1655_v55, %v1641_v40  ;;  %v2930_v3 = vld [vmem:[%s3568_s26 + $0x438] sm:$0xf0] }
  0xe5   : > { %1997 = vmatpush.bf16.msrb.mxu2 %v3125_v47  ;;  %1946 = vmatpush.bf16.msra.mxu3 %v2961_v24  ;;  %v2741_v47 = vor.u32 %v3360_v37, %v2738_v38  ;;  %v3186_v5 = vld [vmem:[%s3568_s26 + $0x638] sm:$0xf0] }
  0xe6   : > { %v2674_v9 = vld [vmem:[%s3568_s26 + $0x238] sm:$0xf0] }
  0xe7   : > { %1983 = vmatpush.bf16.msrb.mxu1 %v2869_v51  ;;  %1970 = vmatpush.bf16.msrb.mxu0 %v2581_v54  ;;  %v2453_v51 = vor.u32 %v3288_v41, %v2450_v43  ;;  %v1683_v54 = vpop.f32.mrf.mxu2  ;;  %v1669_v60 = vpop.f32.mrf.mxu1 }
  0xe8   : > { %v1670_v6 = vadd.f32 %v1669_v60, %v1656_v59 }
  0xe9   : > { %1998 = vmatpush.bf16.msrb.mxu2 %v3093_v63  ;;  %1947 = vmatpush.bf16.msra.mxu3 %v2929_v39  ;;  %v3408_v63 = vld [vmem:[%s3568_s26 + $0x41c] sm:$0xf] }
  0xea   : > { %v4073_v10 = vadd.f32 %v1683_v54, %v1670_v6  ;;  %v2933_v12 = vor.u32 %v3408_v63, %v2930_v3 }
  0xeb   : > { %1984 = vmatpush.bf16.msrb.mxu1 %v2837_v4  ;;  %1971 = vmatpush.bf16.msrb.mxu0 %v2549_v8  ;;  %v3472_v4 = vld [vmem:[%s3568_s26 + $0x61c] sm:$0xf]  ;;  %v1657_v16 = vpop.f32.mrf.mxu0 }
  0xec   : > { %1948 = vmatmul.bf16.vlgmr.msra.gmra.mxu3 %v3675_v58  ;;  %v3344_v8 = vld [vmem:[%s3568_s26 + $0x21c] sm:$0xf]  ;;  %v3189_v13 = vor.u32 %v3472_v4, %v3186_v5 }
  0xed   : > { %1999 = vmatpush.bf16.msrb.mxu2 %v3061_v15  ;;  %2015 = vmatpush.bf16.msrb.mxu3 %v3253_v46  ;;  %v2677_v14 = vor.u32 %v3344_v8, %v2674_v9  ;;  %v1643_v15 = vpop.f32.mrf.mxu3 }
  0xee   : > { %v1658_v17 = vadd.f32 %v1657_v16, %v1643_v15 }
  0xef   : > { %1985 = vmatpush.bf16.msrb.mxu1 %v2805_v18  ;;  %1972 = vmatpush.bf16.msrb.mxu0 %v2517_v21  ;;  %v1671_v18 = vpop.f32.mrf.mxu1  ;;  %v1685_v19 = vpop.f32.mrf.mxu2 }
  0xf0   : > { %v1672_v20 = vadd.f32 %v1671_v18, %v1658_v17 }
  0xf1   : > { %2000 = vmatpush.bf16.msrb.mxu2 %v3029_v27  ;;  %2016 = vmatpush.bf16.msrb.mxu3 %v3221_v1 }
  0xf2   : > { %v4078_v21 = vadd.f32 %v1685_v19, %v1672_v20  ;;  %v2050_v20 = vmul.f32 %v4034_v11, %v4034_v11 }
  0xf3   : > { %1986 = vmatpush.bf16.msrb.mxu1 %v2773_v32  ;;  %1973 = vmatpush.bf16.msrb.mxu0 %v2485_v36 }
  0xf4   : > { %v2051_v18 = vmul.f32 %v4078_v21, %v4078_v21 }
  0xf5   : > { %2001 = vmatpush.bf16.msrb.mxu2 %v2997_v44  ;;  %2017 = vmatpush.bf16.msrb.mxu3 %v3189_v13  ;;  %v1697_v22 = vpop.f32.mrf.mxu3 }
  0xf7   : > { %1987 = vmatpush.bf16.msrb.mxu1 %v2741_v47  ;;  %1974 = vmatpush.bf16.msrb.mxu0 %v2453_v51  ;;  %v1711_v23 = vpop.f32.mrf.mxu2  ;;  %v1739_v25 = vpop.f32.mrf.mxu1 }
  0xf8   : > { %v1712_v24 = vadd.f32 %v1711_v23, %v1697_v22 }
  0xf9   : > { %2002 = vmatpush.bf16.msrb.mxu2 %v2965_v61 }
  0xfb   : > { %1988 = vmatpush.bf16.msrb.mxu1 %v2709_v2  ;;  %1975 = vmatpush.bf16.msrb.mxu0 %v2421_v7 }
  0xfc   : > { %3261 = vmatmul.msk.bf16.vlgmr.msrb.gmra.mxu3 %vm1572_vm0, %v3641_v30 }
  0xfd   : > { %2003 = vmatpush.bf16.msrb.mxu2 %v2933_v12  ;;  %v1699_v26 = vpop.f32.mrf.mxu3 }
  0xfe   : > { %1976 = vmatmul.bf16.vlgmr.msrb.gmra.mxu0 %v3680_v62 }
  0xff   : > { %1989 = vmatpush.bf16.msrb.mxu1 %v2677_v14  ;;  %v1713_v27 = vpop.f32.mrf.mxu2  ;;  %v1741_v32 = vpop.f32.mrf.mxu1 }
 0x100   : > { %2004 = vmatmul.bf16.vlgmr.msrb.gmra.mxu2 %v3675_v58  ;;  %v1714_v28 = vadd.f32 %v1713_v27, %v1699_v26 }
 0x102   : > { %1990 = vmatmul.bf16.vlgmr.msrb.gmra.mxu1 %v3682_v0 }
 0x103   : > { %v1725_v29 = vpop.f32.mrf.mxu0 }
 0x104   : > { %v1726_v31 = vadd.f32 %v1725_v29, %v1712_v24  ;;  %v2033_v24 = vadd.f32 %v4078_v21, %v4034_v11  ;;  %v2067_v29 = vadd.f32 %v2051_v18, %v2050_v20 }
 0x106   : > { %v4082_v62 = vadd.f32 %v1739_v25, %v1726_v31 }
 0x10b   : > { %v1727_v58 = vpop.f32.mrf.mxu0 }
 0x10c   : > { %v1728_v33 = vadd.f32 %v1727_v58, %v1714_v28 }
 0x10e   : > { %v4084_v0 = vadd.f32 %v1741_v32, %v1728_v33 }
 0x10f   : > { %v1753_v35 = vpop.f32.mrf.mxu3 }
 0x110   : > { %v2052_v25 = vmul.f32 %v4084_v0, %v4084_v0  ;;  %v2034_v31 = vadd.f32 %v2033_v24, %v4084_v0 }
 0x113   : > { %v1767_v34 = vpop.f32.mrf.mxu1  ;;  %v1795_v39 = vpop.f32.mrf.mxu0 }
 0x114   : > { %v1768_v36 = vadd.f32 %v1767_v34, %v1753_v35 }
 0x117   : > { %v1781_v37 = vpop.f32.mrf.mxu2  ;;  %v1755_v47 = vpop.f32.mrf.mxu3 }
 0x118   : > { %v1782_v38 = vadd.f32 %v1781_v37, %v1768_v36  ;;  %v2068_v36 = vadd.f32 %v2067_v29, %v2052_v25 }
 0x11a   : > { %v4086_v30 = vadd.f32 %v1795_v39, %v1782_v38 }
 0x11b   : > { %v1797_v40 = vpop.f32.mrf.mxu0  ;;  %v1769_v41 = vpop.f32.mrf.mxu1 }
 0x11c   : > { %v1770_v7 = vadd.f32 %v1769_v41, %v1755_v47  ;;  %v2042_v41 = vmul.f32 %v4014_v42, %v4014_v42 }
 0x11f   : > { %v1783_v43 = vpop.f32.mrf.mxu2 }
 0x120   : > { %v1784_v12 = vadd.f32 %v1783_v43, %v1770_v7 }
 0x122   : > { %v4096_v19 = vadd.f32 %v1797_v40, %v1784_v12 }
 0x124   : > { %v2053_v32 = vmul.f32 %v4096_v19, %v4096_v19  ;;  %v2035_v35 = vadd.f32 %v2034_v31, %v4096_v19 }
 0x126   : > { %v2069_v47 = vadd.f32 %v2068_v36, %v2053_v32 }
 0x127   : > { %v4088_v46 = vpop.f32.mrf.mxu2 }
 0x12f   : > { %v1823_v44 = vpop.f32.mrf.mxu0  ;;  %v1809_v50 = vpop.f32.mrf.mxu3 }
 0x130   : > { %v1853_v51 = vpop.f32.mrf.mxu2  ;;  %v1824_v26 = vadd.f32 %v1823_v44, %v1809_v50  ;;  %v2043_v44 = vmul.f32 %v4073_v10, %v4073_v10 }
 0x133   : > { %v1837_v45 = vpop.f32.mrf.mxu1 }
 0x134   : > { %v1838_v37 = vadd.f32 %v1837_v45, %v1824_v26 }
 0x137   : > { %v1825_v48 = vpop.f32.mrf.mxu0  ;;  %v1811_v55 = vpop.f32.mrf.mxu3 }
 0x138   : > { %v1826_v8 = vadd.f32 %v1825_v48, %v1811_v55 }
 0x13b   : > { %v1839_v49 = vpop.f32.mrf.mxu1 }
 0x13c   : > { %v1840_v16 = vadd.f32 %v1839_v49, %v1826_v8 }
 0x13e   : > { %v4104_v27 = vadd.f32 %v1853_v51, %v1840_v16 }
 0x140   : > { %v2054_v38 = vmul.f32 %v4104_v27, %v4104_v27  ;;  %v2036_v48 = vadd.f32 %v2035_v35, %v4104_v27 }
 0x143   : > { %v4090_v53 = vpop.f32.mrf.mxu1  ;;  %v1865_v54 = vpop.f32.mrf.mxu2 }
 0x14b   : > { %v1909_v57 = vpop.f32.mrf.mxu1  ;;  %v1867_v60 = vpop.f32.mrf.mxu2 }
 0x14f   : > { %v1893_v52 = vpop.f32.mrf.mxu0  ;;  %v1879_v59 = vpop.f32.mrf.mxu3 }
 0x150   : > { %v1880_v58 = vadd.f32 %v1879_v59, %v1865_v54  ;;  %v4128_v59 = vadd.f32 %v4088_v46, %v1838_v37 }
 0x152   : > { %v1894_v49 = vadd.f32 %v1893_v52, %v1880_v58 }
 0x154   : > { %v4137_v7 = vadd.f32 %v4090_v53, %v1894_v49 }
 0x157   : > { %v1895_v56 = vpop.f32.mrf.mxu0  ;;  %v1881_v1 = vpop.f32.mrf.mxu3 }
 0x158   : > { %v1882_v15 = vadd.f32 %v1881_v1, %v1867_v60  ;;  %v2070_v60 = vadd.f32 %v2069_v47, %v2054_v38  ;;  %v2076_v38 = vld [vmem:[%s4240_s4] sm:$0xff] }
 0x15a   : > { %v1896_v22 = vadd.f32 %v1895_v56, %v1882_v15  ;;  %v2024_v56 = vadd.f32 %v4073_v10, %v4014_v42  ;;  %v2046_v15 = vmul.f32 %v4128_v59, %v4128_v59 }
 0x15c   : > { %v4109_v34 = vadd.f32 %v1909_v57, %v1896_v22  ;;  %v2044_v57 = vmul.f32 %v4082_v62, %v4082_v62 }
 0x15e   : > { %v2055_v45 = vmul.f32 %v4109_v34, %v4109_v34  ;;  %v2037_v52 = vadd.f32 %v2036_v48, %v4109_v34 }
 0x15f   : > { %v4092_v61 = vpop.f32.mrf.mxu0  ;;  %v1921_v63 = vpop.f32.mrf.mxu1 }
 0x160   : > { %v2071_v12 = vadd.f32 %v2070_v60, %v2055_v45 }
 0x163   : > { %v1935_v2 = vpop.f32.mrf.mxu2 }
 0x164   : > { %v1936_v51 = vadd.f32 %v1935_v2, %v1921_v63  ;;  %v2058_v63 = vadd.f32 %v2043_v44, %v2042_v41  ;;  %v2025_v2 = vadd.f32 %v2024_v56, %v4082_v62  ;;  %v2077_v41 = vld [vmem:[%s4240_s4 + $0x8] sm:$0xff] }
 0x167   : > { %v1965_v3 = vpop.f32.mrf.mxu0  ;;  %v1923_v4 = vpop.f32.mrf.mxu1 }
 0x16b   : > { %v1937_v6 = vpop.f32.mrf.mxu2 }
 0x16c   : > { %v1938_v23 = vadd.f32 %v1937_v6, %v1923_v4  ;;  %v2045_v6 = vmul.f32 %v4086_v30, %v4086_v30 }
 0x16f   : > { %v1949_v5 = vpop.f32.mrf.mxu3 }
 0x170   : > { %v1950_v1 = vadd.f32 %v1949_v5, %v1936_v51 }
 0x172   : > { %v4146_v16 = vadd.f32 %v4092_v61, %v1950_v1 }
 0x177   : > { %v1951_v14 = vpop.f32.mrf.mxu3 }
 0x178   : > { %v1952_v28 = vadd.f32 %v1951_v14, %v1938_v23  ;;  %v2059_v14 = vadd.f32 %v2058_v63, %v2044_v57  ;;  %v2047_v23 = vmul.f32 %v4137_v7, %v4137_v7 }
 0x17a   : > { %v4116_v43 = vadd.f32 %v1965_v3, %v1952_v28  ;;  %v2060_v20 = vadd.f32 %v2059_v14, %v2045_v6  ;;  %v2048_v28 = vmul.f32 %v4146_v16, %v4146_v16 }
 0x17b   : > { %v1977_v9 = vpop.f32.mrf.mxu0 }
 0x17c   : > { %v2056_v4 = vmul.f32 %v4116_v43, %v4116_v43  ;;  %v2038_v5 = vadd.f32 %v2037_v52, %v4116_v43  ;;  %v2061_v26 = vadd.f32 %v2060_v20, %v2046_v15  ;;  %v2163_v52 = vld [vmem:[%s4241_s5] sm:$0xff] }
 0x17e   : > { %v2062_v32 = vadd.f32 %v2061_v26, %v2047_v23  ;;  %v2217_v26 = vld [vmem:[%s4238_s2] sm:$0xff] }
 0x17f   : > { %v1991_v13 = vpop.f32.mrf.mxu1  ;;  %v2019_v33 = vpop.f32.mrf.mxu3 }
 0x180   : > { %v1992_v54 = vadd.f32 %v1991_v13, %v1977_v9  ;;  %v2026_v13 = vadd.f32 %v2025_v2, %v4086_v30  ;;  %v2063_v35 = vadd.f32 %v2062_v32, %v2048_v28 }
 0x182   : > { %v2027_v22 = vadd.f32 %v2026_v13, %v4128_v59 }
 0x183   : > { %v2005_v17 = vpop.f32.mrf.mxu2  ;;  %v1979_v39 = vpop.f32.mrf.mxu0 }
 0x184   : > { %v2006_v46 = vadd.f32 %v2005_v17, %v1992_v54  ;;  %v2072_v17 = vadd.f32 %v2071_v12, %v2056_v4  ;;  %v2028_v61 = vadd.f32 %v2027_v22, %v4137_v7 }
 0x186   : > { %v4154_v24 = vadd.f32 %v2019_v33, %v2006_v46  ;;  %v2029_v29 = vadd.f32 %v2028_v61, %v4146_v16 }
 0x187   : > { %v1993_v40 = vpop.f32.mrf.mxu1  ;;  %v2021_v8 = vpop.f32.mrf.mxu3 }
 0x188   : > { %v1994_v55 = vadd.f32 %v1993_v40, %v1979_v39  ;;  %v2049_v31 = vmul.f32 %v4154_v24, %v4154_v24  ;;  %v2030_v58 = vadd.f32 %v2029_v29, %v4154_v24 }
 0x18a   : > { %v2064_v33 = vadd.f32 %v2063_v35, %v2049_v31  ;;  %v2221_v31 = vld [vmem:[%s4239_s3] sm:$0xff]  ;;  %v2218_v35 = vld [vmem:[%s4238_s2 + $0x8] sm:$0xff] }
 0x18b   : > { %v2007_v50 = vpop.f32.mrf.mxu2 }
 0x18c   : > { %v2008_v3 = vadd.f32 %v2007_v50, %v1994_v55 }
 0x18e   : > { %v4139_v9 = vadd.f32 %v2021_v8, %v2008_v3  ;;  %v2164_v8 = vld [vmem:[%s4241_s5 + $0x8] sm:$0xff] }
 0x190   : > { %v2039_v18 = vadd.f32 %v2038_v5, %v4139_v9  ;;  %v2057_v53 = vmul.f32 %v4139_v9, %v4139_v9 }
 0x192   : > { %2040 = vadd.xlane.f32.xlu0 %v2039_v18  ;;  %v2073_v25 = vadd.f32 %v2072_v17, %v2057_v53 }
 0x194   : > { %2074 = vadd.xlane.f32.xlu1 %v2073_v25  ;;  %v3518_v25 = vmov 0  }
 0x195   : > { %3503 = vset.pattern.permute.xlu2 %v3518_v25  ;;  %3504 = vset.pattern.permute.xlu0 %v3518_v25 }
 0x196   : > { %3505 = vset.pattern.permute.xlu1 %v3518_v25 }
 0x19a   : > { %2031 = vadd.xlane.f32.xlu0 %v2030_v58 }
 0x19c   : > { %2065 = vadd.xlane.f32.xlu1 %v2064_v33 }
 0x205   : > { %v2041_v36 = vpop.xlane.xlu0 %2040 }
 0x206   : > { %2099 = vmatpush.msra.mxu3 %v2041_v36 }
 0x207   : > { %v2075_v37 = vpop.xlane.xlu1 %2074 }
 0x208   : > { %2124 = vmatpush.msra.mxu0 %v2075_v37 }
 0x20d   : > { %v2032_v39 = vpop.xlane.xlu0 %2031 }
 0x20e   : > { %2100 = vmatpush.msra.mxu3 %v2032_v39 }
 0x20f   : > { %v2066_v40 = vpop.xlane.xlu1 %2065  ;;  %3262 = vmatmul.msk.f32.vlgmr.msra.gmra.mxu3 %vm2078_vm1, %v2076_v38 }
 0x210   : > { %2125 = vmatpush.msra.mxu0 %v2066_v40 }
 0x211   : > { %3264 = vmatmul.msk.f32.vlgmr.msra.gmra.mxu0 %vm2078_vm1, %v2076_v38  ;;  %v2222_v38 = vld [vmem:[%s4239_s3 + $0x8] sm:$0xff] }
 0x217   : > { %3263 = vmatmul.msk.f32.gmra.mxu3 %vm2078_vm1, %v2077_v41 }
 0x219   : > { %3265 = vmatmul.msk.f32.gmra.mxu0 %vm2078_vm1, %v2077_v41 }
 0x28e   : > { %v2127_v44 = vpop.f32.mrf.mxu0 }
 0x28f   : > { %v2133_v49 = vmul.f32 0.0009765625, %v2127_v44 }
 0x292   : > { %v2102_v47 = vpop.f32.mrf.mxu3 }
 0x293   : > { %v2108_v48 = vmul.f32 0.0009765625, %v2102_v47 }
 0x295   : > { %v2135_v50 = vmul.f32 %v2108_v48, %v2108_v48 }
 0x296   : > { %v2130_v51 = vpop.f32.mrf.mxu0 }
 0x297   : > { %v2137_v45 = vsub.f32 %v2133_v49, %v2135_v50  ;;  %v2134_v60 = vmul.f32 0.0009765625, %v2130_v51 }
 0x299   : > { %v2139_v54 = vmax.f32 %v2137_v45, 0.0 }
 0x29a   : > { %v2105_v55 = vpop.f32.mrf.mxu3 }
 0x29b   : > { %v2141_v56 = vadd.f32 1e-05, %v2139_v54  ;;  %v2109_v57 = vmul.f32 0.0009765625, %v2105_v55 }
 0x29d   : > { %3506 = vrsqrt.f32 %v2141_v56  ;;  %v2136_v1 = vmul.f32 %v2109_v57, %v2109_v57  ;;  %2185 = vmatpush.msra.mxu1 %v2109_v57  ;;  %vm2149_vm6 = vweird.f32 %v2141_v56 }
 0x29f   : > { %v2138_v3 = vsub.f32 %v2134_v60, %v2136_v1  ;;  %2186 = vmatpush.msra.mxu1 %v2108_v48 }
 0x2a0   : > { %3266 = vmatmul.msk.f32.vlgmr.msra.gmra.mxu1 %vm2078_vm1, %v2163_v52 }
 0x2a1   : > { %v2140_v4 = vmax.f32 %v2138_v3, 0.0 }
 0x2a3   : > { %v3507_v63 = vpop.eup %3506  ;;  %v2142_v2 = vadd.f32 1e-05, %v2140_v4 }
 0x2a4   : > { %v2144_v6 = vmul.f32 %v3507_v63, %v2141_v56  ;;  %vm2150_vm4 = vweird.f32 %v3507_v63 }
 0x2a5   : > { %3508 = vrsqrt.f32 %v2142_v2  ;;  %vm2159_vm3 = vweird.f32 %v2142_v2  ;;  %vm2151_vm7 = vmor %vm2149_vm6, %vm2150_vm4 }
 0x2a6   : > { %v2145_v46 = vmul.f32 %v3507_v63, %v2144_v6 }
 0x2a8   : > { %3267 = vmatmul.msk.f32.gmra.mxu1 %vm2078_vm1, %v2164_v8  ;;  %v2146_v13 = vmul.f32 0.5, %v2145_v46 }
 0x2aa   : > { %v2147_v18 = vsub.f32 1.5, %v2146_v13 }
 0x2ab   : > { %v3509_v5 = vpop.eup %3508 }
 0x2ac   : > { %v2154_v12 = vmul.f32 %v3509_v5, %v2142_v2  ;;  %vm2160_vm2 = vweird.f32 %v3509_v5  ;;  %v2148_v20 = vmul.f32 %v3507_v63, %v2147_v18 }
 0x2ad   : > { %vm2161_vm5 = vmor %vm2159_vm3, %vm2160_vm2 }
 0x2ae   : > { %v2155_v14 = vmul.f32 %v3509_v5, %v2154_v12  ;;  %v2152_v23 = vsel %vm2151_vm7, %v3507_v63, %v2148_v20 }
 0x2b0   : > { %v2156_v15 = vmul.f32 0.5, %v2155_v14 }
 0x2b2   : > { %v2157_v53 = vsub.f32 1.5, %v2156_v15 }
 0x2b4   : > { %v2158_v17 = vmul.f32 %v3509_v5, %v2157_v53 }
 0x2b6   : > { %v2162_v22 = vsel %vm2161_vm5, %v3509_v5, %v2158_v17 }
 0x2b7   : > { %2208 = vmatpush.msra.mxu2 %v2162_v22 }
 0x2b9   : > { %2209 = vmatpush.msra.mxu2 %v2152_v23 }
 0x2ba   : > { %3268 = vmatmul.msk.f32.vlgmr.msra.gmra.mxu2 %vm2078_vm1, %v2163_v52 }
 0x2c2   : > { %3269 = vmatmul.msk.f32.gmra.mxu2 %vm2078_vm1, %v2164_v8 }
 0x31d   : > { %v2188_v61 = vpop.f32.mrf.mxu1 }
 0x325   : > { %v2191_v36 = vpop.f32.mrf.mxu1 }
 0x33d   : > { %v2211_v28 = vpop.f32.mrf.mxu2 }
 0x33e   : > { %v2219_v29 = vmul.f32 %v2217_v26, %v2211_v28 }
 0x340   : > { %v2223_v32 = vmul.f32 %v2219_v29, %v2188_v61  ;;  %2229 = vperm.xlu2 %3503, %v2219_v29  }
 0x342   : > { %v2225_v58 = vsub.f32 %v2221_v31, %v2223_v32 }
 0x344   : > { %2255 = vperm.xlu0 %3504, %v2225_v58  }
 0x345   : > { %v2214_v33 = vpop.f32.mrf.mxu2 }
 0x346   : > { %v2220_v37 = vmul.f32 %v2218_v35, %v2214_v33 }
 0x348   : > { %v2224_v39 = vmul.f32 %v2220_v37, %v2191_v36  ;;  %2234 = vperm.xlu2 %3503, %v2220_v37  }
 0x34a   : > { %v2226_v40 = vsub.f32 %v2222_v38, %v2224_v39 }
 0x34c   : > { %2260 = vperm.xlu1 %3505, %v2226_v40  }
 0x39a   : > { %v2230_v41 = vpop.permute.xlu2 %2229 }
 0x39b   : > { %v2237_v44 = vmul.f32 %v2230_v41, %v4014_v42  ;;  %v2238_v47 = vmul.f32 %v2230_v41, %v4073_v10  ;;  %v2239_v48 = vmul.f32 %v2230_v41, %v4082_v62  ;;  %v2240_v49 = vmul.f32 %v2230_v41, %v4086_v30 }
 0x39c   : > { %v2241_v50 = vmul.f32 %v2230_v41, %v4128_v59  ;;  %v2242_v45 = vmul.f32 %v2230_v41, %v4137_v7  ;;  %v2243_v51 = vmul.f32 %v2230_v41, %v4146_v16  ;;  %v2244_v42 = vmul.f32 %v2230_v41, %v4154_v24 }
 0x3a2   : > { %v2235_v30 = vpop.permute.xlu2 %2234 }
 0x3a3   : > { %v2245_v63 = vmul.f32 %v2235_v30, %v4034_v11  ;;  %v2246_v24 = vmul.f32 %v2235_v30, %v4078_v21  ;;  %v2247_v6 = vmul.f32 %v2235_v30, %v4084_v0  ;;  %v2248_v8 = vmul.f32 %v2235_v30, %v4096_v19 }
 0x3a4   : > { %v2249_v5 = vmul.f32 %v2235_v30, %v4104_v27  ;;  %v2250_v12 = vmul.f32 %v2235_v30, %v4109_v34  ;;  %v2251_v13 = vmul.f32 %v2235_v30, %v4116_v43  ;;  %v2252_v19 = vmul.f32 %v2235_v30, %v4139_v9 }
 0x3b6   : > { %v2256_v54 = vpop.permute.xlu0 %2255 }
 0x3b7   : > { %v2263_v55 = vadd.f32 %v2256_v54, %v2237_v44  ;;  %v2264_v56 = vadd.f32 %v2256_v54, %v2238_v47  ;;  %v2265_v57 = vadd.f32 %v2256_v54, %v2239_v48  ;;  %v2266_v60 = vadd.f32 %v2256_v54, %v2240_v49 }
 0x3b8   : > { %v2267_v10 = vadd.f32 %v2256_v54, %v2241_v50  ;;  %v2268_v62 = vadd.f32 %v2256_v54, %v2242_v45  ;;  %v2269_v59 = vadd.f32 %v2256_v54, %v2243_v51  ;;  %v2270_v3 = vadd.f32 %v2256_v54, %v2244_v42 }
 0x3b9   : > { %v2279_v7 = vmax.f32 %v2263_v55, 0.0  ;;  %v2280_v16 = vmax.f32 %v2264_v56, 0.0  ;;  %v2281_v1 = vmax.f32 %v2265_v57, 0.0  ;;  %v2282_v52 = vmax.f32 %v2266_v60, 0.0 }
 0x3ba   : > { %v2283_v4 = vmax.f32 %v2267_v10, 0.0  ;;  %v2284_v2 = vmax.f32 %v2268_v62, 0.0  ;;  %v2285_v46 = vmax.f32 %v2269_v59, 0.0  ;;  %v2286_v14 = vmax.f32 %v2270_v3, 0.0 }
 0x3bb   : > { %2295 = vst [vmem:[%s4206_s15] sm:$0xff] %v2279_v7 }
 0x3bc   : > { %2296 = vst [vmem:[%s4206_s15 + $0x8] sm:$0xff] %v2280_v16 }
 0x3bd   : > { %2297 = vst [vmem:[%s4206_s15 + $0x10] sm:$0xff] %v2281_v1 }
 0x3be   : > { %2298 = vst [vmem:[%s4206_s15 + $0x18] sm:$0xff] %v2282_v52  ;;  %v2261_v11 = vpop.permute.xlu1 %2260 }
 0x3bf   : > { %2299 = vst [vmem:[%s4206_s15 + $0x20] sm:$0xff] %v2283_v4  ;;  %v2271_v21 = vadd.f32 %v2261_v11, %v2245_v63  ;;  %v2272_v15 = vadd.f32 %v2261_v11, %v2246_v24  ;;  %v2273_v0 = vadd.f32 %v2261_v11, %v2247_v6  ;;  %v2274_v18 = vadd.f32 %v2261_v11, %v2248_v8 }
 0x3c0   : > { %2300 = vst [vmem:[%s4206_s15 + $0x28] sm:$0xff] %v2284_v2  ;;  %v2275_v27 = vadd.f32 %v2261_v11, %v2249_v5  ;;  %v2276_v53 = vadd.f32 %v2261_v11, %v2250_v12  ;;  %v2277_v34 = vadd.f32 %v2261_v11, %v2251_v13  ;;  %v2278_v22 = vadd.f32 %v2261_v11, %v2252_v19 }
 0x3c1   : > { %2301 = vst [vmem:[%s4206_s15 + $0x30] sm:$0xff] %v2285_v46  ;;  %v2287_v43 = vmax.f32 %v2271_v21, 0.0  ;;  %v2288_v17 = vmax.f32 %v2272_v15, 0.0  ;;  %v2289_v20 = vmax.f32 %v2273_v0, 0.0  ;;  %v2290_v23 = vmax.f32 %v2274_v18, 0.0 }
 0x3c2   : > { %2302 = vst [vmem:[%s4206_s15 + $0x38] sm:$0xff] %v2286_v14  ;;  %v2291_v25 = vmax.f32 %v2275_v27, 0.0  ;;  %v2292_v9 = vmax.f32 %v2276_v53, 0.0  ;;  %v2293_v26 = vmax.f32 %v2277_v34, 0.0  ;;  %v2294_v61 = vmax.f32 %v2278_v22, 0.0 }
 0x3c3   : > { %2303 = vst [vmem:[%s4206_s15 + $0x40] sm:$0xff] %v2287_v43 }
 0x3c4   : > { %2304 = vst [vmem:[%s4206_s15 + $0x48] sm:$0xff] %v2288_v17 }
 0x3c5   : > { %2305 = vst [vmem:[%s4206_s15 + $0x50] sm:$0xff] %v2289_v20 }
 0x3c6   : > { %2306 = vst [vmem:[%s4206_s15 + $0x58] sm:$0xff] %v2290_v23 }
 0x3c7   : > { %2307 = vst [vmem:[%s4206_s15 + $0x60] sm:$0xff] %v2291_v25 }
 0x3c8   : > { %2308 = vst [vmem:[%s4206_s15 + $0x68] sm:$0xff] %v2292_v9 }
 0x3c9   : > { %2309 = vst [vmem:[%s4206_s15 + $0x70] sm:$0xff] %v2293_v26 }
 0x3ca   : > { %2310 = vst [vmem:[%s4206_s15 + $0x78] sm:$0xff] %v2294_v61 }
 0x3cb PF: > { %s16_s21 = sadd.s32 1, %s3516_s21  }
 0x3cc   : > { %p13_p4 = scmp.ge.s32.totalorder %s16_s21, 4  }
 0x3ce   :  { %15 = sbr.rel (!%p13_p4) target bundleno = 1 (0x1), region = 74 }

// kernel: _lambda_.12
= control target key start
LH: loop header
LB: loop body
LE: loop exit
PB: predicated region body
PF: predicated region fallthrough
CT: control target
= control target key end

     0   :  { %s3653_s24 = smov 0   ;;  %s4360_s0 = inlined_call_operand.vmem [shape: bf16[2,432,1024], index: 0, kind: input, shape index: {}]   ;;  %s4361_s1 = inlined_call_operand.vmem [shape: bf16[16,432], index: 1, kind: input, shape index: {}]   ;;  %s4362_s2 = inlined_call_operand.vmem [shape: f32[16,1], index: 2, kind: input, shape index: {}]   ;;  %s4363_s3 = inlined_call_operand.vmem [shape: f32[16,1], index: 3, kind: input, shape index: {}]   ;;  %s4364_s4 = inlined_call_operand.vmem [shape: f32[16,16], index: 4, kind: input, shape index: {}]   ;;  %s4365_s5 = inlined_call_operand.vmem [shape: f32[16,16], index: 5, kind: input, shape index: {}]   ;;  %s4366_s6 = inlined_call_operand.vmem [shape: f32[2,16,1024], index: 6, kind: input, shape index: {}]   ;;  %s4367_s7 = inlined_call_operand.vmem [shape: f32[2,16,1024], index: 7, kind: output, shape index: {}]  }
   0x1 LB: > { %s2457_s25 = sadd.s32 4294967295, %s3610_s24   ;;  %p2461_p0 = scmp.ge.s32.totalorder %s3610_s24, 1  ;;  %s3610_s24 = sphi %s3653_s24, %s17_s24  }
   0x2   : > { %p247_p1 = scmp.lt.s32.totalorder %s3610_s24, 3 }
   0x4   : > { %p248_p2 = pnand %p2461_p0, %p247_p1 }
   0x5   : > { %p284_p3 = scmp.lt.s32.totalorder (!%p248_p2), %s2457_s25, 1 }
   0x6   : > { %251 = sbr.rel (%p248_p2) target bundleno = 973 (0x3cd), region = 48 }
   0xb   : > { %s4369_s25 = smov (!%p284_p3, %s2457_s25), 1  ;;  %vm1619_vm0 = vcmask 392192   ;;  %vm2125_vm1 = vcmask 130048  }
   0xc   : > { %s3587_s26 = smul.u32 1728, %s4369_s25  ;;  %s3365_s18 = sshll.u32 %s4369_s25, 7 }
   0xd   : > { %s4300_s21 = scalar_lea.vmem %s4366_s6, %s3365_s18 }
   0xe   : > { %s3667_s29 = scalar_lea.vmem %s4360_s0, %s3587_s26  ;;  %s4323_s26 = scalar_lea.vmem %s4367_s7, %s3365_s18 }
   0xf   : > { %v2709_v0 = vld [vmem:[%s3667_s29 + $0x1c0] sm:$0xf]  ;;  %v3427_v35 = vld [vmem:[%s3667_s29 + $0x1c4] sm:$0xf] }
  0x10   : > { %v3431_v1 = vld [vmem:[%s3667_s29 + $0x1dc] sm:$0xf0]  ;;  %v2711_v36 = vld [vmem:[%s3667_s29 + $0x1e0] sm:$0xf0] }
  0x11   : > { %v3221_v2 = vld [vmem:[%s3667_s29 + $0x5c0] sm:$0xf]  ;;  %v2710_v3 = vor.u32 %v3431_v1, %v2709_v0  ;;  %v2714_v39 = vor.u32 %v3427_v35, %v2711_v36  ;;  %v3419_v45 = vld [vmem:[%s3667_s29 + $0x184] sm:$0xf] }
  0x12   : > { %v3559_v4 = vld [vmem:[%s3667_s29 + $0x5dc] sm:$0xf0]  ;;  %v2679_v47 = vld [vmem:[%s3667_s29 + $0x1a0] sm:$0xf0] }
  0x13   : > { %v3317_v5 = vld [vmem:[%s3667_s29 + $0x680] sm:$0xf]  ;;  %v3222_v7 = vor.u32 %v3559_v4, %v3221_v2  ;;  %1623 = vmatpush.bf16.msra.mxu0 %v2710_v3  ;;  %v2682_v52 = vor.u32 %v3419_v45, %v2679_v47  ;;  %v3411_v57 = vld [vmem:[%s3667_s29 + $0x144] sm:$0xf]  ;;  %v3369_v47 = vld [vmem:[%s4361_s1 + $0xc] sm:$0xf0] }
  0x14   : > { %v3583_v6 = vld [vmem:[%s3667_s29 + $0x69c] sm:$0xf0]  ;;  %v2647_v58 = vld [vmem:[%s3667_s29 + $0x160] sm:$0xf0] }
  0x15   : > { %v3318_v8 = vor.u32 %v3583_v6, %v3317_v5  ;;  %v2965_v9 = vld [vmem:[%s3667_s29 + $0x3c0] sm:$0xf]  ;;  %1651 = vmatpush.bf16.msra.mxu2 %v3222_v7  ;;  %v2650_v0 = vor.u32 %v3411_v57, %v2647_v58  ;;  %v3403_v5 = vld [vmem:[%s3667_s29 + $0x104] sm:$0xf] }
  0x16   : > { %v3495_v10 = vld [vmem:[%s3667_s29 + $0x3dc] sm:$0xf0]  ;;  %v2615_v6 = vld [vmem:[%s3667_s29 + $0x120] sm:$0xf0] }
  0x17   : > { %v2677_v11 = vld [vmem:[%s3667_s29 + $0x180] sm:$0xf]  ;;  %v2966_v12 = vor.u32 %v3495_v10, %v2965_v9  ;;  %1670 = vmatpush.bf16.msra.mxu3 %v3318_v8  ;;  %v2967_v35 = vld [vmem:[%s3667_s29 + $0x3e0] sm:$0xf0] }
  0x18   : > { %v3423_v13 = vld [vmem:[%s3667_s29 + $0x19c] sm:$0xf0]  ;;  %v3579_v36 = vld [vmem:[%s3667_s29 + $0x684] sm:$0xf] }
  0x19   : > { %v3189_v14 = vld [vmem:[%s3667_s29 + $0x580] sm:$0xf]  ;;  %v2678_v16 = vor.u32 %v3423_v13, %v2677_v11  ;;  %1637 = vmatpush.bf16.msra.mxu1 %v2966_v12  ;;  %v3483_v45 = vld [vmem:[%s3667_s29 + $0x384] sm:$0xf] }
  0x1a   : > { %v3551_v15 = vld [vmem:[%s3667_s29 + $0x59c] sm:$0xf0]  ;;  %v3571_v57 = vld [vmem:[%s3667_s29 + $0x644] sm:$0xf] }
  0x1b   : > { %v3190_v17 = vor.u32 %v3551_v15, %v3189_v14  ;;  %v3285_v18 = vld [vmem:[%s3667_s29 + $0x640] sm:$0xf]  ;;  %1624 = vmatpush.bf16.msra.mxu0 %v2678_v16  ;;  %v2618_v14 = vor.u32 %v3403_v5, %v2615_v6 }
  0x1c   : > { %v3575_v19 = vld [vmem:[%s3667_s29 + $0x65c] sm:$0xf0] }
  0x1d   : > { %v2933_v20 = vld [vmem:[%s3667_s29 + $0x380] sm:$0xf]  ;;  %v3286_v21 = vor.u32 %v3575_v19, %v3285_v18  ;;  %1652 = vmatpush.bf16.msra.mxu2 %v3190_v17  ;;  %v3395_v17 = vld [vmem:[%s3667_s29 + $0xc4] sm:$0xf] }
  0x1e   : > { %v3487_v22 = vld [vmem:[%s3667_s29 + $0x39c] sm:$0xf0]  ;;  %v2583_v18 = vld [vmem:[%s3667_s29 + $0xe0] sm:$0xf0] }
  0x1f   : > { %v2645_v23 = vld [vmem:[%s3667_s29 + $0x140] sm:$0xf]  ;;  %v2934_v25 = vor.u32 %v3487_v22, %v2933_v20  ;;  %1671 = vmatpush.bf16.msra.mxu3 %v3286_v21 }
  0x20   : > { %v3415_v24 = vld [vmem:[%s3667_s29 + $0x15c] sm:$0xf0] }
  0x21   : > { %v3157_v26 = vld [vmem:[%s3667_s29 + $0x540] sm:$0xf]  ;;  %v2646_v29 = vor.u32 %v3415_v24, %v2645_v23  ;;  %1638 = vmatpush.bf16.msra.mxu1 %v2934_v25  ;;  %v3368_v24 = vld [vmem:[%s4361_s1 + $0xc] sm:$0xf]  ;;  %v2479_v25 = vld [vmem:[%s4361_s1 + $0x18] sm:$0xf0] }
  0x22   : > { %v3543_v27 = vld [vmem:[%s3667_s29 + $0x55c] sm:$0xf0] }
  0x23   : > { %v3253_v28 = vld [vmem:[%s3667_s29 + $0x600] sm:$0xf]  ;;  %v3158_v33 = vor.u32 %v3543_v27, %v3157_v26  ;;  %1625 = vmatpush.bf16.msra.mxu0 %v2646_v29  ;;  %v3387_v29 = vld [vmem:[%s3667_s29 + $0x84] sm:$0xf] }
  0x24   : > { %v3567_v30 = vld [vmem:[%s3667_s29 + $0x61c] sm:$0xf0] }
  0x25   : > { %v2901_v31 = vld [vmem:[%s3667_s29 + $0x340] sm:$0xf]  ;;  %v3254_v34 = vor.u32 %v3567_v30, %v3253_v28  ;;  %1653 = vmatpush.bf16.msra.mxu2 %v3158_v33  ;;  %v3740_v30 = vor.u32 %v3368_v24, %v2479_v25  ;;  %v2551_v33 = vld [vmem:[%s3667_s29 + $0xa0] sm:$0xf0] }
  0x26   : > { %v3479_v32 = vld [vmem:[%s3667_s29 + $0x35c] sm:$0xf0]  ;;  %v3531_v24 = vld [vmem:[%s3667_s29 + $0x504] sm:$0xf] }
  0x27   : > { %v2613_v37 = vld [vmem:[%s3667_s29 + $0x100] sm:$0xf]  ;;  %v2902_v38 = vor.u32 %v3479_v32, %v2901_v31  ;;  %1672 = vmatpush.bf16.msra.mxu3 %v3254_v34  ;;  %v2586_v32 = vor.u32 %v3395_v17, %v2583_v18  ;;  %v3491_v34 = vld [vmem:[%s3667_s29 + $0x3c4] sm:$0xf] }
  0x28   : > { %v3407_v40 = vld [vmem:[%s3667_s29 + $0x11c] sm:$0xf0]  ;;  %v3467_v18 = vld [vmem:[%s3667_s29 + $0x304] sm:$0xf] }
  0x29   : > { %v3125_v41 = vld [vmem:[%s3667_s29 + $0x500] sm:$0xf]  ;;  %v2614_v46 = vor.u32 %v3407_v40, %v2613_v37  ;;  %1639 = vmatpush.bf16.msra.mxu1 %v2902_v38  ;;  %v3319_v37 = vld [vmem:[%s3667_s29 + $0x6a0] sm:$0xf0] }
  0x2a   : > { %v3535_v42 = vld [vmem:[%s3667_s29 + $0x51c] sm:$0xf0]  ;;  %3347 = vmatmul.msk.bf16.vlgmr.msra.gmra.mxu3 %vm1619_vm0, %v3740_v30  ;;  %v3555_v38 = vld [vmem:[%s3667_s29 + $0x5c4] sm:$0xf] }
  0x2b   : > { %v2869_v43 = vld [vmem:[%s3667_s29 + $0x300] sm:$0xf]  ;;  %v3126_v48 = vor.u32 %v3535_v42, %v3125_v41  ;;  %1679 = vmatpush.bf16.msrb.mxu3 %v2714_v39  ;;  %1626 = vmatpush.bf16.msra.mxu0 %v2614_v46  ;;  %v3223_v40 = vld [vmem:[%s3667_s29 + $0x5e0] sm:$0xf0]  ;;  %v2477_v41 = vld [vmem:[%s4361_s1 + $0x8] sm:$0xf] }
  0x2c   : > { %v3471_v44 = vld [vmem:[%s3667_s29 + $0x31c] sm:$0xf0]  ;;  %v3370_v42 = vld [vmem:[%s4361_s1 + $0x14] sm:$0xf0]  ;;  %v3127_v25 = vld [vmem:[%s3667_s29 + $0x520] sm:$0xf0] }
  0x2d   : > { %v2581_v49 = vld [vmem:[%s3667_s29 + $0xc0] sm:$0xf]  ;;  %v2870_v51 = vor.u32 %v3471_v44, %v2869_v43  ;;  %1654 = vmatpush.bf16.msra.mxu2 %v3126_v48  ;;  %v2970_v44 = vor.u32 %v3491_v34, %v2967_v35  ;;  %v3774_v58 = vor.u32 %v3370_v42, %v2477_v41  ;;  %v3130_v34 = vor.u32 %v3531_v24, %v3127_v25  ;;  %v3416_v41 = vld [vmem:[%s3667_s29 + $0x164] sm:$0xf0] }
  0x2e   : > { %v3399_v50 = vld [vmem:[%s3667_s29 + $0xdc] sm:$0xf0]  ;;  %v2909_v42 = vld [vmem:[%s3667_s29 + $0x348] sm:$0xf] }
  0x2f   : > { %v3093_v53 = vld [vmem:[%s3667_s29 + $0x4c0] sm:$0xf]  ;;  %v2582_v59 = vor.u32 %v3399_v50, %v2581_v49  ;;  %1640 = vmatpush.bf16.msra.mxu1 %v2870_v51  ;;  %1680 = vmatpush.bf16.msrb.mxu3 %v2682_v52  ;;  %v2554_v49 = vor.u32 %v3387_v29, %v2551_v33  ;;  %v2935_v50 = vld [vmem:[%s3667_s29 + $0x3a0] sm:$0xf0]  ;;  %v2471_v52 = vld [vmem:[%s4361_s1 + $0x10] sm:$0xf0] }
  0x30   : > { %v3527_v54 = vld [vmem:[%s3667_s29 + $0x4dc] sm:$0xf0]  ;;  %v3367_v51 = vld [vmem:[%s4361_s1 + $0x4] sm:$0xf]  ;;  %v2941_v29 = vld [vmem:[%s3667_s29 + $0x388] sm:$0xf] }
  0x31   : > { %v2837_v55 = vld [vmem:[%s3667_s29 + $0x2c0] sm:$0xf]  ;;  %v3094_v60 = vor.u32 %v3527_v54, %v3093_v53  ;;  %1627 = vmatpush.bf16.msra.mxu0 %v2582_v59  ;;  %v3322_v53 = vor.u32 %v3579_v36, %v3319_v37  ;;  %v3226_v54 = vor.u32 %v3555_v38, %v3223_v40  ;;  %v3287_v59 = vld [vmem:[%s3667_s29 + $0x660] sm:$0xf0]  ;;  %v3197_v25 = vld [vmem:[%s3667_s29 + $0x588] sm:$0xf] }
  0x32   : > { %v3463_v56 = vld [vmem:[%s3667_s29 + $0x2dc] sm:$0xf0]  ;;  %v3290_v5 = vor.u32 %v3571_v57, %v3287_v59  ;;  %v2839_v33 = vld [vmem:[%s3667_s29 + $0x2e0] sm:$0xf0] }
  0x33   : > { %v2549_v61 = vld [vmem:[%s3667_s29 + $0x80] sm:$0xf]  ;;  %v2838_v63 = vor.u32 %v3463_v56, %v2837_v55  ;;  %1655 = vmatpush.bf16.msra.mxu2 %v3094_v60  ;;  %1681 = vmatpush.bf16.msrb.mxu3 %v2650_v0  ;;  %v3379_v55 = vld [vmem:[%s3667_s29 + $0x44] sm:$0xf]  ;;  %v3781_v0 = vor.u32 %v3367_v51, %v2471_v52  ;;  %v2621_v51 = vld [vmem:[%s3667_s29 + $0x108] sm:$0xf] }
  0x34   : > { %v3391_v62 = vld [vmem:[%s3667_s29 + $0x9c] sm:$0xf0]  ;;  %v2519_v56 = vld [vmem:[%s3667_s29 + $0x60] sm:$0xf0] }
  0x35   : > { %v3061_v1 = vld [vmem:[%s3667_s29 + $0x480] sm:$0xf]  ;;  %v2550_v7 = vor.u32 %v3391_v62, %v2549_v61  ;;  %1641 = vmatpush.bf16.msra.mxu1 %v2838_v63  ;;  %v3547_v60 = vld [vmem:[%s3667_s29 + $0x584] sm:$0xf]  ;;  %v2938_v63 = vor.u32 %v3483_v45, %v2935_v50 }
  0x36   : > { %v3519_v2 = vld [vmem:[%s3667_s29 + $0x49c] sm:$0xf0]  ;;  %v3191_v61 = vld [vmem:[%s3667_s29 + $0x5a0] sm:$0xf0] }
  0x37   : > { %v2805_v3 = vld [vmem:[%s3667_s29 + $0x280] sm:$0xf]  ;;  %v3062_v9 = vor.u32 %v3519_v2, %v3061_v1  ;;  %1628 = vmatpush.bf16.msra.mxu0 %v2550_v7  ;;  %1682 = vmatpush.bf16.msrb.mxu3 %v2618_v14  ;;  %v2522_v1 = vor.u32 %v3379_v55, %v2519_v56  ;;  %v3371_v2 = vld [vmem:[%s3667_s29 + $0x4] sm:$0xf]  ;;  %v3194_v6 = vor.u32 %v3547_v60, %v3191_v61  ;;  %v3432_v14 = vld [vmem:[%s3667_s29 + $0x1e4] sm:$0xf0] }
  0x38   : > { %v3455_v4 = vld [vmem:[%s3667_s29 + $0x29c] sm:$0xf0]  ;;  %v2487_v7 = vld [vmem:[%s3667_s29 + $0x20] sm:$0xf0]  ;;  %v3472_v55 = vld [vmem:[%s3667_s29 + $0x324] sm:$0xf0] }
  0x39   : > { %v2517_v8 = vld [vmem:[%s3667_s29 + $0x40] sm:$0xf]  ;;  %v2806_v13 = vor.u32 %v3455_v4, %v2805_v3  ;;  %1656 = vmatpush.bf16.msra.mxu2 %v3062_v9  ;;  %v3475_v3 = vld [vmem:[%s3667_s29 + $0x344] sm:$0xf]  ;;  %v2490_v17 = vor.u32 %v3371_v2, %v2487_v7  ;;  %v2589_v2 = vld [vmem:[%s3667_s29 + $0xc8] sm:$0xf] }
  0x3a   : > { %v3383_v10 = vld [vmem:[%s3667_s29 + $0x5c] sm:$0xf0]  ;;  %v2903_v4 = vld [vmem:[%s3667_s29 + $0x360] sm:$0xf0] }
  0x3b   : > { %v3029_v11 = vld [vmem:[%s3667_s29 + $0x440] sm:$0xf]  ;;  %v2518_v21 = vor.u32 %v3383_v10, %v2517_v8  ;;  %1642 = vmatpush.bf16.msra.mxu1 %v2806_v13  ;;  %1683 = vmatpush.bf16.msrb.mxu3 %v2586_v32  ;;  %v3563_v8 = vld [vmem:[%s3667_s29 + $0x604] sm:$0xf]  ;;  %v2906_v13 = vor.u32 %v3475_v3, %v2903_v4  ;;  %v3400_v4 = vld [vmem:[%s3667_s29 + $0xe4] sm:$0xf0] }
  0x3c   : > { %v3511_v12 = vld [vmem:[%s3667_s29 + $0x45c] sm:$0xf0]  ;;  %v3255_v9 = vld [vmem:[%s3667_s29 + $0x620] sm:$0xf0] }
  0x3d   : > { %v2773_v15 = vld [vmem:[%s3667_s29 + $0x240] sm:$0xf]  ;;  %v3030_v26 = vor.u32 %v3511_v12, %v3029_v11  ;;  %1629 = vmatpush.bf16.msra.mxu0 %v2518_v21  ;;  %v3539_v10 = vld [vmem:[%s3667_s29 + $0x544] sm:$0xf]  ;;  %v2717_v12 = vld [vmem:[%s3667_s29 + $0x1c8] sm:$0xf] }
  0x3e   : > { %v3447_v16 = vld [vmem:[%s3667_s29 + $0x25c] sm:$0xf0]  ;;  %v3159_v11 = vld [vmem:[%s3667_s29 + $0x560] sm:$0xf0] }
  0x3f   : > { %v2485_v19 = vld [vmem:[%s3667_s29] sm:$0xf]  ;;  %v2774_v31 = vor.u32 %v3447_v16, %v2773_v15  ;;  %1657 = vmatpush.bf16.msra.mxu2 %v3030_v26  ;;  %1684 = vmatpush.bf16.msrb.mxu3 %v2554_v49  ;;  %v2973_v15 = vld [vmem:[%s3667_s29 + $0x3c8] sm:$0xf]  ;;  %v3162_v21 = vor.u32 %v3539_v10, %v3159_v11  ;;  %v3459_v32 = vld [vmem:[%s3667_s29 + $0x2c4] sm:$0xf] }
  0x40   : > { %v3375_v20 = vld [vmem:[%s3667_s29 + $0x1c] sm:$0xf0]  ;;  %v3496_v16 = vld [vmem:[%s3667_s29 + $0x3e4] sm:$0xf0]  ;;  %v3523_v37 = vld [vmem:[%s3667_s29 + $0x4c4] sm:$0xf]  ;;  %v2842_v40 = vor.u32 %v3459_v32, %v2839_v33 }
  0x41   : > { %v2997_v22 = vld [vmem:[%s3667_s29 + $0x400] sm:$0xf]  ;;  %v2486_v39 = vor.u32 %v3375_v20, %v2485_v19  ;;  %1643 = vmatpush.bf16.msra.mxu1 %v2774_v31  ;;  %v2871_v19 = vld [vmem:[%s3667_s29 + $0x320] sm:$0xf0]  ;;  %v3258_v20 = vor.u32 %v3563_v8, %v3255_v9  ;;  %v2685_v26 = vld [vmem:[%s3667_s29 + $0x188] sm:$0xf] }
  0x42   : > { %v3503_v23 = vld [vmem:[%s3667_s29 + $0x41c] sm:$0xf0]  ;;  %v3488_v31 = vld [vmem:[%s3667_s29 + $0x3a4] sm:$0xf0]  ;;  %v3095_v38 = vld [vmem:[%s3667_s29 + $0x4e0] sm:$0xf0] }
  0x43   : > { %v2741_v27 = vld [vmem:[%s3667_s29 + $0x200] sm:$0xf]  ;;  %v2998_v43 = vor.u32 %v3503_v23, %v2997_v22  ;;  %1630 = vmatpush.bf16.msra.mxu0 %v2486_v39  ;;  %1685 = vmatpush.bf16.msrb.mxu3 %v2522_v1  ;;  %v2718_v22 = vor.u32 %v3432_v14, %v2717_v12  ;;  %v2974_v23 = vor.u32 %v3496_v16, %v2973_v15  ;;  %v2653_v39 = vld [vmem:[%s3667_s29 + $0x148] sm:$0xf]  ;;  %v2807_v45 = vld [vmem:[%s3667_s29 + $0x2a0] sm:$0xf0] }
  0x44   : > { %v3439_v28 = vld [vmem:[%s3667_s29 + $0x21c] sm:$0xf0]  ;;  %v2942_v36 = vor.u32 %v3488_v31, %v2941_v29  ;;  %v3515_v49 = vld [vmem:[%s3667_s29 + $0x484] sm:$0xf]  ;;  %v3229_v10 = vld [vmem:[%s3667_s29 + $0x5c8] sm:$0xf]  ;;  %v2590_v12 = vor.u32 %v3400_v4, %v2589_v2 }
  0x45   : > { %v2469_v46 = vld [vmem:[%s4361_s1] sm:$0xf]  ;;  %v2742_v48 = vor.u32 %v3439_v28, %v2741_v27  ;;  %1658 = vmatpush.bf16.msra.mxu2 %v2998_v43  ;;  %v2874_v27 = vor.u32 %v3467_v18, %v2871_v19  ;;  %v3424_v28 = vld [vmem:[%s3667_s29 + $0x1a4] sm:$0xf0]  ;;  %v3063_v50 = vld [vmem:[%s3667_s29 + $0x4a0] sm:$0xf0] }
  0x46   : > { %v3779_v62 = vor.u32 %v3369_v47, %v2469_v46  ;;  %v2686_v35 = vor.u32 %v3424_v28, %v2685_v26  ;;  %v3480_v43 = vld [vmem:[%s3667_s29 + $0x364] sm:$0xf0]  ;;  %v3098_v46 = vor.u32 %v3523_v37, %v3095_v38  ;;  %v2654_v47 = vor.u32 %v3416_v41, %v2653_v39  ;;  %v3443_v56 = vld [vmem:[%s3667_s29 + $0x244] sm:$0xf]  ;;  %v2687_v4 = vld [vmem:[%s3667_s29 + $0x1a8] sm:$0xf0] }
  0x47   : > { %1693 = vmatpush.bf16.msrb.mxu0 %v2970_v44  ;;  %1644 = vmatpush.bf16.msra.mxu1 %v2742_v48  ;;  %v3451_v44 = vld [vmem:[%s3667_s29 + $0x284] sm:$0xf]  ;;  %v2910_v48 = vor.u32 %v3480_v43, %v2909_v42  ;;  %v3066_v59 = vor.u32 %v3515_v49, %v3063_v50  ;;  %v3560_v11 = vld [vmem:[%s3667_s29 + $0x5e4] sm:$0xf0]  ;;  %v3428_v50 = vld [vmem:[%s3667_s29 + $0x1cc] sm:$0xf] }
  0x48   : > { %1659 = vmatmul.bf16.vlgmr.msra.gmra.mxu2 %v3774_v58  ;;  %1631 = vmatmul.bf16.vlgmr.msra.gmra.mxu0 %v3779_v62  ;;  %v2810_v52 = vor.u32 %v3451_v44, %v2807_v45  ;;  %v2775_v57 = vld [vmem:[%s3667_s29 + $0x260] sm:$0xf0]  ;;  %v2557_v16 = vld [vmem:[%s3667_s29 + $0x88] sm:$0xf] }
  0x49   : > { %1726 = vmatpush.bf16.msrb.mxu2 %v3322_v53  ;;  %1686 = vmatpush.bf16.msrb.mxu3 %v2490_v17  ;;  %v3408_v53 = vld [vmem:[%s3667_s29 + $0x124] sm:$0xf0]  ;;  %v3031_v1 = vld [vmem:[%s3667_s29 + $0x460] sm:$0xf0]  ;;  %v2778_v3 = vor.u32 %v3443_v56, %v2775_v57 }
  0x4a   : > { %1645 = vmatmul.bf16.vlgmr.msra.gmra.mxu1 %v3781_v0  ;;  %v2622_v60 = vor.u32 %v3408_v53, %v2621_v51  ;;  %v3435_v7 = vld [vmem:[%s3667_s29 + $0x204] sm:$0xf]  ;;  %v3392_v18 = vld [vmem:[%s3667_s29 + $0xa4] sm:$0xf0]  ;;  %v2719_v51 = vld [vmem:[%s3667_s29 + $0x1e8] sm:$0xf0] }
  0x4b   : > { %1707 = vmatpush.bf16.msrb.mxu1 %v3226_v54  ;;  %1694 = vmatpush.bf16.msrb.mxu0 %v2938_v63  ;;  %v2877_v54 = vld [vmem:[%s3667_s29 + $0x308] sm:$0xf]  ;;  %v3507_v63 = vld [vmem:[%s3667_s29 + $0x444] sm:$0xf]  ;;  %v3231_v53 = vld [vmem:[%s3667_s29 + $0x5e8] sm:$0xf0] }
  0x4c   : > { %1687 = vmatmul.bf16.vlgmr.msrb.gmra.mxu3 %v3779_v62  ;;  %v2878_v61 = vor.u32 %v3472_v55, %v2877_v54  ;;  %v2743_v8 = vld [vmem:[%s3667_s29 + $0x220] sm:$0xf0]  ;;  %v3034_v9 = vor.u32 %v3507_v63, %v3031_v1  ;;  %v2813_v19 = vld [vmem:[%s3667_s29 + $0x288] sm:$0xf]  ;;  %v3492_v54 = vld [vmem:[%s3667_s29 + $0x3cc] sm:$0xf]  ;;  %v2722_v63 = vor.u32 %v3428_v50, %v2719_v51 }
  0x4d   : > { %1727 = vmatpush.bf16.msrb.mxu2 %v3290_v5  ;;  %1735 = vmatpush.bf16.msra.mxu3 %v2718_v22  ;;  %v2845_v5 = vld [vmem:[%s3667_s29 + $0x2c8] sm:$0xf]  ;;  %v3499_v14 = vld [vmem:[%s3667_s29 + $0x404] sm:$0xf]  ;;  %v2746_v17 = vor.u32 %v3435_v7, %v2743_v8  ;;  %v2975_v55 = vld [vmem:[%s3667_s29 + $0x3e8] sm:$0xf0] }
  0x4e   : > { %v2999_v15 = vld [vmem:[%s3667_s29 + $0x420] sm:$0xf0]  ;;  %v3325_v22 = vld [vmem:[%s3667_s29 + $0x688] sm:$0xf]  ;;  %v2978_v2 = vor.u32 %v3492_v54, %v2975_v55  ;;  %v3199_v7 = vld [vmem:[%s3667_s29 + $0x5a8] sm:$0xf0] }
  0x4f   : > { %1708 = vmatpush.bf16.msrb.mxu1 %v3194_v6  ;;  %1695 = vmatpush.bf16.msrb.mxu0 %v2906_v13  ;;  %v3464_v6 = vld [vmem:[%s3667_s29 + $0x2e4] sm:$0xf0]  ;;  %v3002_v24 = vor.u32 %v3499_v14, %v2999_v15  ;;  %v3484_v8 = vld [vmem:[%s3667_s29 + $0x38c] sm:$0xf] }
  0x50   : > { %v2846_v13 = vor.u32 %v3464_v6, %v2845_v5  ;;  %v3552_v26 = vld [vmem:[%s3667_s29 + $0x5a4] sm:$0xf0]  ;;  %v3548_v5 = vld [vmem:[%s3667_s29 + $0x58c] sm:$0xf] }
  0x51   : > { %1728 = vmatpush.bf16.msrb.mxu2 %v3258_v20  ;;  %1736 = vmatpush.bf16.msra.mxu3 %v2686_v35  ;;  %v3456_v20 = vld [vmem:[%s3667_s29 + $0x2a4] sm:$0xf0]  ;;  %v3198_v35 = vor.u32 %v3552_v26, %v3197_v25  ;;  %v3412_v15 = vld [vmem:[%s3667_s29 + $0x14c] sm:$0xf] }
  0x52   : > { %v2814_v28 = vor.u32 %v3456_v20, %v2813_v19  ;;  %v2525_v29 = vld [vmem:[%s3667_s29 + $0x48] sm:$0xf]  ;;  %v3167_v19 = vld [vmem:[%s3667_s29 + $0x568] sm:$0xf0] }
  0x53   : > { %1709 = vmatpush.bf16.msrb.mxu1 %v3162_v21  ;;  %1696 = vmatpush.bf16.msrb.mxu0 %v2874_v27  ;;  %v3230_v21 = vor.u32 %v3560_v11, %v3229_v10  ;;  %v2558_v27 = vor.u32 %v3392_v18, %v2557_v16  ;;  %v3384_v32 = vld [vmem:[%s3667_s29 + $0x64] sm:$0xf0]  ;;  %v2655_v16 = vld [vmem:[%s3667_s29 + $0x168] sm:$0xf0] }
  0x54   : > { %v2781_v33 = vld [vmem:[%s3667_s29 + $0x248] sm:$0xf]  ;;  %v3476_v20 = vld [vmem:[%s3667_s29 + $0x34c] sm:$0xf] }
  0x55   : > { %1749 = vmatpush.bf16.msra.mxu2 %v2974_v23  ;;  %1737 = vmatpush.bf16.msra.mxu3 %v2654_v47  ;;  %v3584_v23 = vld [vmem:[%s3667_s29 + $0x6a4] sm:$0xf0]  ;;  %v3580_v50 = vld [vmem:[%s3667_s29 + $0x68c] sm:$0xf] }
  0x56   : > { %v3326_v31 = vor.u32 %v3584_v23, %v3325_v22  ;;  %v3576_v37 = vld [vmem:[%s3667_s29 + $0x664] sm:$0xf0]  ;;  %v3327_v51 = vld [vmem:[%s3667_s29 + $0x6a8] sm:$0xf0] }
  0x57   : > { %1710 = vmatpush.bf16.msrb.mxu1 %v3130_v34  ;;  %1697 = vmatpush.bf16.msrb.mxu0 %v2842_v40  ;;  %v3448_v34 = vld [vmem:[%s3667_s29 + $0x264] sm:$0xf0]  ;;  %v2526_v40 = vor.u32 %v3384_v32, %v2525_v29  ;;  %v3532_v29 = vld [vmem:[%s3667_s29 + $0x50c] sm:$0xf] }
  0x58   : > { %3348 = vmatmul.msk.bf16.vlgmr.msrb.gmra.mxu2 %vm1619_vm0, %v3740_v30  ;;  %v3165_v38 = vld [vmem:[%s3667_s29 + $0x548] sm:$0xf]  ;;  %v2782_v41 = vor.u32 %v3448_v34, %v2781_v33  ;;  %v3135_v32 = vld [vmem:[%s3667_s29 + $0x528] sm:$0xf0] }
  0x59   : > { %1750 = vmatpush.bf16.msra.mxu2 %v2942_v36  ;;  %1738 = vmatpush.bf16.msra.mxu3 %v2622_v60  ;;  %v3293_v36 = vld [vmem:[%s3667_s29 + $0x648] sm:$0xf]  ;;  %v3468_v33 = vld [vmem:[%s3667_s29 + $0x30c] sm:$0xf] }
  0x5a   : > { %v3544_v39 = vld [vmem:[%s3667_s29 + $0x564] sm:$0xf0]  ;;  %v3294_v45 = vor.u32 %v3576_v37, %v3293_v36  ;;  %v2879_v34 = vld [vmem:[%s3667_s29 + $0x328] sm:$0xf0] }
  0x5b   : > { %1711 = vmatpush.bf16.msrb.mxu1 %v3098_v46  ;;  %1698 = vmatpush.bf16.msrb.mxu0 %v2810_v52  ;;  %v2493_v42 = vld [vmem:[%s3667_s29 + $0x8] sm:$0xf]  ;;  %v3166_v49 = vor.u32 %v3544_v39, %v3165_v38  ;;  %v3556_v52 = vld [vmem:[%s3667_s29 + $0x5cc] sm:$0xf]  ;;  %v3138_v38 = vor.u32 %v3532_v29, %v3135_v32  ;;  %v2882_v39 = vor.u32 %v3468_v33, %v2879_v34  ;;  %v3333_v29 = vld [vmem:[%s3667_s29 + $0x690] sm:$0xf] }
  0x5c   : > { %v3376_v43 = vld [vmem:[%s3667_s29 + $0x24] sm:$0xf0]  ;;  %v3234_v1 = vor.u32 %v3556_v52, %v3231_v53  ;;  %v3388_v54 = vld [vmem:[%s3667_s29 + $0x8c] sm:$0xf]  ;;  %v3237_v34 = vld [vmem:[%s3667_s29 + $0x5d0] sm:$0xf] }
  0x5d   : > { %1751 = vmatpush.bf16.msra.mxu2 %v2910_v48  ;;  %1739 = vmatpush.bf16.msra.mxu3 %v2590_v12  ;;  %v2749_v44 = vld [vmem:[%s3667_s29 + $0x208] sm:$0xf]  ;;  %v2494_v56 = vor.u32 %v3376_v43, %v2493_v42  ;;  %v3524_v42 = vld [vmem:[%s3667_s29 + $0x4cc] sm:$0xf] }
  0x5e   : > { %v3440_v46 = vld [vmem:[%s3667_s29 + $0x224] sm:$0xf0]  ;;  %v2559_v55 = vld [vmem:[%s3667_s29 + $0xa8] sm:$0xf0] }
  0x5f   : > { %1712 = vmatpush.bf16.msrb.mxu1 %v3066_v59  ;;  %1699 = vmatpush.bf16.msrb.mxu0 %v2778_v3  ;;  %v3261_v47 = vld [vmem:[%s3667_s29 + $0x608] sm:$0xf]  ;;  %v2750_v57 = vor.u32 %v3440_v46, %v2749_v44  ;;  %v3420_v3 = vld [vmem:[%s3667_s29 + $0x18c] sm:$0xf] }
  0x60   : > { %v3568_v48 = vld [vmem:[%s3667_s29 + $0x624] sm:$0xf0]  ;;  %v2690_v12 = vor.u32 %v3420_v3, %v2687_v4  ;;  %v3103_v44 = vld [vmem:[%s3667_s29 + $0x4e8] sm:$0xf0] }
  0x61   : > { %1752 = vmatpush.bf16.msra.mxu2 %v2878_v61  ;;  %1740 = vmatpush.bf16.msra.mxu3 %v2558_v27  ;;  %v3133_v59 = vld [vmem:[%s3667_s29 + $0x508] sm:$0xf]  ;;  %v3262_v61 = vor.u32 %v3568_v48, %v3261_v47  ;;  %v3404_v27 = vld [vmem:[%s3667_s29 + $0x10c] sm:$0xf]  ;;  %v3106_v52 = vor.u32 %v3524_v42, %v3103_v44  ;;  %v2693_v42 = vld [vmem:[%s3667_s29 + $0x190] sm:$0xf] }
  0x62   : > { %v3536_v60 = vld [vmem:[%s3667_s29 + $0x524] sm:$0xf0]  ;;  %v2847_v46 = vld [vmem:[%s3667_s29 + $0x2e8] sm:$0xf0]  ;;  %v3425_v44 = vld [vmem:[%s3667_s29 + $0x1ac] sm:$0xf0] }
  0x63   : > { %1713 = vmatpush.bf16.msrb.mxu1 %v3034_v9  ;;  %1700 = vmatpush.bf16.msrb.mxu0 %v2746_v17  ;;  %v3134_v6 = vor.u32 %v3536_v60, %v3133_v59  ;;  %v2943_v9 = vld [vmem:[%s3667_s29 + $0x3a8] sm:$0xf0]  ;;  %v3101_v10 = vld [vmem:[%s3667_s29 + $0x4c8] sm:$0xf] }
  0x64   : > { %v3528_v11 = vld [vmem:[%s3667_s29 + $0x4e4] sm:$0xf0]  ;;  %v2946_v14 = vor.u32 %v3484_v8, %v2943_v9  ;;  %v3540_v17 = vld [vmem:[%s3667_s29 + $0x54c] sm:$0xf] }
  0x65   : > { %1753 = vmatpush.bf16.msra.mxu2 %v2846_v13  ;;  %1741 = vmatpush.bf16.msra.mxu3 %v2526_v40  ;;  %v3202_v13 = vor.u32 %v3548_v5, %v3199_v7  ;;  %v3102_v18 = vor.u32 %v3528_v11, %v3101_v10  ;;  %v3069_v22 = vld [vmem:[%s3667_s29 + $0x488] sm:$0xf]  ;;  %v3170_v25 = vor.u32 %v3540_v17, %v3167_v19  ;;  %v3396_v40 = vld [vmem:[%s3667_s29 + $0xcc] sm:$0xf] }
  0x66   : > { %1701 = vmatmul.bf16.vlgmr.msrb.gmra.mxu0 %v3781_v0  ;;  %v3520_v23 = vld [vmem:[%s3667_s29 + $0x4a4] sm:$0xf0]  ;;  %v3071_v59 = vld [vmem:[%s3667_s29 + $0x4a8] sm:$0xf0] }
  0x67   : > { %1763 = vmatpush.bf16.msra.mxu0 %v3230_v21  ;;  %1714 = vmatpush.bf16.msrb.mxu1 %v3002_v24  ;;  %v2911_v21 = vld [vmem:[%s3667_s29 + $0x368] sm:$0xf0]  ;;  %v2658_v24 = vor.u32 %v3412_v15, %v2655_v16  ;;  %v3512_v36 = vld [vmem:[%s3667_s29 + $0x464] sm:$0xf0] }
  0x68   : > { %v2914_v26 = vor.u32 %v3476_v20, %v2911_v21  ;;  %v3005_v47 = vld [vmem:[%s3667_s29 + $0x408] sm:$0xf]  ;;  %v3452_v60 = vld [vmem:[%s3667_s29 + $0x28c] sm:$0xf] }
  0x69   : > { %1754 = vmatpush.bf16.msra.mxu2 %v2814_v28  ;;  %1742 = vmatpush.bf16.msra.mxu3 %v2494_v56  ;;  %v2623_v28 = vld [vmem:[%s3667_s29 + $0x128] sm:$0xf0]  ;;  %v3504_v48 = vld [vmem:[%s3667_s29 + $0x424] sm:$0xf0] }
  0x6a   : > { %1715 = vmatmul.bf16.vlgmr.msrb.gmra.mxu1 %v3774_v58  ;;  %v2626_v37 = vor.u32 %v3404_v27, %v2623_v28  ;;  %v3516_v56 = vld [vmem:[%s3667_s29 + $0x48c] sm:$0xf]  ;;  %v3433_v28 = vld [vmem:[%s3667_s29 + $0x1ec] sm:$0xf0] }
  0x6b   : > { %1782 = vmatpush.bf16.msra.mxu1 %v3326_v31  ;;  %1764 = vmatpush.bf16.msra.mxu0 %v3198_v35  ;;  %v3070_v31 = vor.u32 %v3520_v23, %v3069_v22  ;;  %v3037_v35 = vld [vmem:[%s3667_s29 + $0x448] sm:$0xf]  ;;  %v3295_v3 = vld [vmem:[%s3667_s29 + $0x668] sm:$0xf0]  ;;  %v3074_v4 = vor.u32 %v3516_v56, %v3071_v59  ;;  %v2981_v22 = vld [vmem:[%s3667_s29 + $0x3d0] sm:$0xf] }
  0x6c   : > { %1743 = vmatmul.bf16.vlgmr.msra.gmra.mxu3 %v3779_v62  ;;  %v3038_v43 = vor.u32 %v3512_v36, %v3037_v35  ;;  %v2527_v7 = vld [vmem:[%s3667_s29 + $0x68] sm:$0xf0]  ;;  %v3497_v23 = vld [vmem:[%s3667_s29 + $0x3ec] sm:$0xf0] }
  0x6d   : > { %1755 = vmatpush.bf16.msra.mxu2 %v2782_v41  ;;  %1791 = vmatpush.bf16.msrb.mxu3 %v2722_v63  ;;  %v2591_v41 = vld [vmem:[%s3667_s29 + $0xe8] sm:$0xf0]  ;;  %v3330_v63 = vor.u32 %v3580_v50, %v3327_v51  ;;  %v2982_v33 = vor.u32 %v3497_v23, %v2981_v22  ;;  %v3561_v35 = vld [vmem:[%s3667_s29 + $0x5ec] sm:$0xf0] }
  0x6e   : > { %v3508_v8 = vld [vmem:[%s3667_s29 + $0x44c] sm:$0xf]  ;;  %v2917_v50 = vld [vmem:[%s3667_s29 + $0x350] sm:$0xf] }
  0x6f   : > { %1783 = vmatpush.bf16.msra.mxu1 %v3294_v45  ;;  %1765 = vmatpush.bf16.msra.mxu0 %v3166_v49  ;;  %v3460_v45 = vld [vmem:[%s3667_s29 + $0x2cc] sm:$0xf]  ;;  %v2594_v49 = vor.u32 %v3396_v40, %v2591_v41  ;;  %v3481_v51 = vld [vmem:[%s3667_s29 + $0x36c] sm:$0xf0] }
  0x70   : > { %v2850_v53 = vor.u32 %v3460_v45, %v2847_v46  ;;  %v3039_v9 = vld [vmem:[%s3667_s29 + $0x468] sm:$0xf0]  ;;  %v3301_v45 = vld [vmem:[%s3667_s29 + $0x650] sm:$0xf] }
  0x71   : > { %1756 = vmatpush.bf16.msra.mxu2 %v2750_v57  ;;  %1792 = vmatpush.bf16.msrb.mxu3 %v2690_v12  ;;  %v3006_v57 = vor.u32 %v3504_v48, %v3005_v47  ;;  %v3444_v10 = vld [vmem:[%s3667_s29 + $0x24c] sm:$0xf]  ;;  %v3042_v19 = vor.u32 %v3508_v8, %v3039_v9  ;;  %v3577_v46 = vld [vmem:[%s3667_s29 + $0x66c] sm:$0xf0] }
  0x72   : > { %v2783_v11 = vld [vmem:[%s3667_s29 + $0x268] sm:$0xf0]  ;;  %v3205_v48 = vld [vmem:[%s3667_s29 + $0x590] sm:$0xf] }
  0x73   : > { %1784 = vmatpush.bf16.msra.mxu1 %v3262_v61  ;;  %1766 = vmatpush.bf16.msra.mxu0 %v3134_v6  ;;  %v2815_v61 = vld [vmem:[%s3667_s29 + $0x2a8] sm:$0xf0]  ;;  %v2786_v20 = vor.u32 %v3444_v10, %v2783_v11  ;;  %v3569_v59 = vld [vmem:[%s3667_s29 + $0x62c] sm:$0xf0] }
  0x74   : > { %1757 = vmatmul.bf16.vlgmr.msra.gmra.mxu2 %v3781_v0  ;;  %v2818_v5 = vor.u32 %v3452_v60, %v2815_v61  ;;  %v3380_v6 = vld [vmem:[%s3667_s29 + $0x4c] sm:$0xf]  ;;  %v3173_v60 = vld [vmem:[%s3667_s29 + $0x550] sm:$0xf]  ;;  %v2918_v61 = vor.u32 %v3481_v51, %v2917_v50  ;;  %v3397_v50 = vld [vmem:[%s3667_s29 + $0xd4] sm:$0xf] }
  0x75   : > { %1819 = vmatpush.bf16.msrb.mxu2 %v3234_v1  ;;  %1793 = vmatpush.bf16.msrb.mxu3 %v2658_v24  ;;  %v2562_v1 = vor.u32 %v3388_v54, %v2559_v55  ;;  %v2530_v15 = vor.u32 %v3380_v6, %v2527_v7  ;;  %v3500_v16 = vld [vmem:[%s3667_s29 + $0x40c] sm:$0xf]  ;;  %v2661_v54 = vld [vmem:[%s3667_s29 + $0x150] sm:$0xf]  ;;  %v2599_v51 = vld [vmem:[%s3667_s29 + $0xf0] sm:$0xf0] }
  0x76   : > { %v3564_v17 = vld [vmem:[%s3667_s29 + $0x60c] sm:$0xf]  ;;  %v3417_v55 = vld [vmem:[%s3667_s29 + $0x16c] sm:$0xf0] }
  0x77   : > { %1805 = vmatpush.bf16.msrb.mxu1 %v2978_v2  ;;  %1767 = vmatpush.bf16.msra.mxu0 %v3102_v18  ;;  %v3572_v2 = vld [vmem:[%s3667_s29 + $0x64c] sm:$0xf]  ;;  %v3473_v6 = vld [vmem:[%s3667_s29 + $0x32c] sm:$0xf0] }
  0x78   : > { %v3298_v12 = vor.u32 %v3572_v2, %v3295_v3  ;;  %v3263_v18 = vld [vmem:[%s3667_s29 + $0x628] sm:$0xf0]  ;;  %v2727_v2 = vld [vmem:[%s3667_s29 + $0x1f0] sm:$0xf0]  ;;  %v2662_v3 = vor.u32 %v3417_v55, %v2661_v54  ;;  %v2629_v9 = vld [vmem:[%s3667_s29 + $0x110] sm:$0xf] }
  0x79   : > { %1820 = vmatpush.bf16.msrb.mxu2 %v3202_v13  ;;  %1794 = vmatpush.bf16.msrb.mxu3 %v2626_v37  ;;  %v3372_v13 = vld [vmem:[%s3667_s29 + $0xc] sm:$0xf]  ;;  %v3266_v27 = vor.u32 %v3564_v17, %v3263_v18  ;;  %v3409_v10 = vld [vmem:[%s3667_s29 + $0x12c] sm:$0xf0] }
  0x7a   : > { %3349 = vmatmul.msk.bf16.vlgmr.msra.gmra.mxu1 %vm1619_vm0, %v3740_v30  ;;  %v3007_v21 = vld [vmem:[%s3667_s29 + $0x428] sm:$0xf0]  ;;  %v3141_v11 = vld [vmem:[%s3667_s29 + $0x510] sm:$0xf] }
  0x7b   : > { %1806 = vmatpush.bf16.msrb.mxu1 %v2946_v14  ;;  %1768 = vmatpush.bf16.msra.mxu0 %v3070_v31  ;;  %v2495_v14 = vld [vmem:[%s3667_s29 + $0x28] sm:$0xf0]  ;;  %v3585_v31 = vld [vmem:[%s3667_s29 + $0x6ac] sm:$0xf0]  ;;  %v3010_v36 = vor.u32 %v3500_v16, %v3007_v21  ;;  %v2630_v16 = vor.u32 %v3409_v10, %v2629_v9  ;;  %v3335_v9 = vld [vmem:[%s3667_s29 + $0x6b0] sm:$0xf0] }
  0x7c   : > { %v3436_v24 = vld [vmem:[%s3667_s29 + $0x20c] sm:$0xf]  ;;  %v2498_v32 = vor.u32 %v3372_v13, %v2495_v14  ;;  %v3334_v41 = vor.u32 %v3585_v31, %v3333_v29  ;;  %v3421_v13 = vld [vmem:[%s3667_s29 + $0x194] sm:$0xf]  ;;  %v2853_v17 = vld [vmem:[%s3667_s29 + $0x2d0] sm:$0xf] }
  0x7d   : > { %1821 = vmatpush.bf16.msrb.mxu2 %v3170_v25  ;;  %1795 = vmatpush.bf16.msrb.mxu3 %v2594_v49  ;;  %v2751_v25 = vld [vmem:[%s3667_s29 + $0x228] sm:$0xf0]  ;;  %v3553_v49 = vld [vmem:[%s3667_s29 + $0x5ac] sm:$0xf0]  ;;  %v2695_v14 = vld [vmem:[%s3667_s29 + $0x1b0] sm:$0xf0] }
  0x7e   : > { %v2754_v37 = vor.u32 %v3436_v24, %v2751_v25  ;;  %v3206_v56 = vor.u32 %v3553_v49, %v3205_v48  ;;  %v3465_v18 = vld [vmem:[%s3667_s29 + $0x2ec] sm:$0xf0]  ;;  %v3413_v25 = vld [vmem:[%s3667_s29 + $0x154] sm:$0xf] }
  0x7f   : > { %1807 = vmatpush.bf16.msrb.mxu1 %v2914_v26  ;;  %1769 = vmatpush.bf16.msra.mxu0 %v3038_v43  ;;  %v2725_v26 = vld [vmem:[%s3667_s29 + $0x1d0] sm:$0xf]  ;;  %v3238_v43 = vor.u32 %v3561_v35, %v3237_v34 }
  0x80   : > { %v2726_v40 = vor.u32 %v3433_v28, %v2725_v26  ;;  %v2597_v21 = vld [vmem:[%s3667_s29 + $0xd0] sm:$0xf]  ;;  %v2663_v26 = vld [vmem:[%s3667_s29 + $0x170] sm:$0xf0] }
  0x81   : > { %1822 = vmatpush.bf16.msrb.mxu2 %v3138_v38  ;;  %1796 = vmatpush.bf16.msrb.mxu3 %v2562_v1  ;;  %v2949_v38 = vld [vmem:[%s3667_s29 + $0x390] sm:$0xf]  ;;  %v3429_v1 = vld [vmem:[%s3667_s29 + $0x1d4] sm:$0xf] }
  0x82   : > { %v2730_v8 = vor.u32 %v3429_v1, %v2727_v2  ;;  %v3401_v22 = vld [vmem:[%s3667_s29 + $0xec] sm:$0xf0]  ;;  %v3557_v1 = vld [vmem:[%s3667_s29 + $0x5d4] sm:$0xf] }
  0x83   : > { %1808 = vmatpush.bf16.msrb.mxu1 %v2882_v39  ;;  %1770 = vmatpush.bf16.msra.mxu0 %v3006_v57  ;;  %v3489_v39 = vld [vmem:[%s3667_s29 + $0x3ac] sm:$0xf0]  ;;  %v2598_v28 = vor.u32 %v3401_v22, %v2597_v21  ;;  %v3239_v2 = vld [vmem:[%s3667_s29 + $0x5f0] sm:$0xf0] }
  0x84   : > { %v2950_v47 = vor.u32 %v3489_v39, %v2949_v38  ;;  %v3269_v57 = vld [vmem:[%s3667_s29 + $0x610] sm:$0xf]  ;;  %v3405_v38 = vld [vmem:[%s3667_s29 + $0x114] sm:$0xf] }
  0x85   : > { %1823 = vmatpush.bf16.msrb.mxu2 %v3106_v52  ;;  %1797 = vmatpush.bf16.msrb.mxu3 %v2530_v15  ;;  %v2694_v52 = vor.u32 %v3425_v44, %v2693_v42  ;;  %v3109_v23 = vld [vmem:[%s3667_s29 + $0x4d0] sm:$0xf]  ;;  %v2631_v39 = vld [vmem:[%s3667_s29 + $0x130] sm:$0xf0] }
  0x86   : > { %1771 = vmatmul.bf16.vlgmr.msra.gmra.mxu0 %v3774_v58  ;;  %v3529_v24 = vld [vmem:[%s3667_s29 + $0x4ec] sm:$0xf0]  ;;  %v2951_v21 = vld [vmem:[%s3667_s29 + $0x3b0] sm:$0xf0] }
  0x87   : > { %1809 = vmatpush.bf16.msrb.mxu1 %v2850_v53  ;;  %1838 = vmatpush.bf16.msrb.mxu0 %v3330_v63  ;;  %v3302_v53 = vor.u32 %v3577_v46, %v3301_v45  ;;  %v3545_v63 = vld [vmem:[%s3667_s29 + $0x56c] sm:$0xf0]  ;;  %v2634_v45 = vor.u32 %v3405_v38, %v2631_v39  ;;  %v3573_v22 = vld [vmem:[%s3667_s29 + $0x654] sm:$0xf]  ;;  %v3498_v39 = vld [vmem:[%s3667_s29 + $0x3f4] sm:$0xf0] }
  0x88   : > { %v3174_v7 = vor.u32 %v3545_v63, %v3173_v60  ;;  %v2821_v29 = vld [vmem:[%s3667_s29 + $0x290] sm:$0xf] }
  0x89   : > { %1824 = vmatpush.bf16.msrb.mxu2 %v3074_v4  ;;  %1798 = vmatpush.bf16.msrb.mxu3 %v2498_v32  ;;  %v3270_v4 = vor.u32 %v3569_v59, %v3269_v57  ;;  %v3457_v31 = vld [vmem:[%s3667_s29 + $0x2ac] sm:$0xf0]  ;;  %v3110_v32 = vor.u32 %v3529_v24, %v3109_v23  ;;  %v3303_v23 = vld [vmem:[%s3667_s29 + $0x670] sm:$0xf0] }
  0x8a   : > { %v2565_v34 = vld [vmem:[%s3667_s29 + $0x90] sm:$0xf] }
  0x8b   : > { %1810 = vmatpush.bf16.msrb.mxu1 %v2818_v5  ;;  %1839 = vmatpush.bf16.msrb.mxu0 %v3298_v12  ;;  %v2885_v5 = vld [vmem:[%s3667_s29 + $0x310] sm:$0xf] }
  0x8c   : > { %1799 = vmatmul.bf16.vlgmr.msrb.gmra.mxu3 %v3779_v62  ;;  %v3537_v12 = vld [vmem:[%s3667_s29 + $0x52c] sm:$0xf0]  ;;  %v2886_v15 = vor.u32 %v3473_v6, %v2885_v5  ;;  %v3493_v5 = vld [vmem:[%s3667_s29 + $0x3d4] sm:$0xf] }
  0x8d   : > { %1825 = vmatpush.bf16.msrb.mxu2 %v3042_v19  ;;  %1847 = vmatpush.bf16.msra.mxu3 %v2726_v40  ;;  %v3142_v19 = vor.u32 %v3537_v12, %v3141_v11  ;;  %v3393_v35 = vld [vmem:[%s3667_s29 + $0xac] sm:$0xf0]  ;;  %v2822_v40 = vor.u32 %v3457_v31, %v2821_v29  ;;  %v3242_v11 = vor.u32 %v3557_v1, %v3239_v2  ;;  %v2855_v1 = vld [vmem:[%s3667_s29 + $0x2f0] sm:$0xf0]  ;;  %v2925_v2 = vld [vmem:[%s3667_s29 + $0x358] sm:$0xf] }
  0x8e   : > { %v2789_v42 = vld [vmem:[%s3667_s29 + $0x250] sm:$0xf]  ;;  %v3306_v31 = vor.u32 %v3573_v22, %v3303_v23 }
  0x8f   : > { %1811 = vmatpush.bf16.msrb.mxu1 %v2786_v20  ;;  %1840 = vmatpush.bf16.msrb.mxu0 %v3266_v27  ;;  %v2698_v20 = vor.u32 %v3421_v13, %v2695_v14  ;;  %v2854_v27 = vor.u32 %v3465_v18, %v2853_v17  ;;  %v2533_v46 = vld [vmem:[%s3667_s29 + $0x50] sm:$0xf]  ;;  %v3549_v14 = vld [vmem:[%s3667_s29 + $0x594] sm:$0xf] }
  0x90   : > { %v3045_v48 = vld [vmem:[%s3667_s29 + $0x450] sm:$0xf]  ;;  %v3381_v18 = vld [vmem:[%s3667_s29 + $0x54] sm:$0xf] }
  0x91   : > { %1826 = vmatpush.bf16.msrb.mxu2 %v3010_v36  ;;  %1848 = vmatpush.bf16.msra.mxu3 %v2694_v52  ;;  %v3077_v36 = vld [vmem:[%s3667_s29 + $0x490] sm:$0xf] }
  0x92   : > { %v3513_v49 = vld [vmem:[%s3667_s29 + $0x46c] sm:$0xf0] }
  0x93   : > { %1861 = vmatpush.bf16.msra.mxu0 %v2982_v33  ;;  %1812 = vmatpush.bf16.msrb.mxu1 %v2754_v37  ;;  %v2666_v33 = vor.u32 %v3413_v25, %v2663_v26  ;;  %v3521_v37 = vld [vmem:[%s3667_s29 + $0x4ac] sm:$0xf0]  ;;  %v3046_v60 = vor.u32 %v3513_v49, %v3045_v48  ;;  %v3373_v26 = vld [vmem:[%s3667_s29 + $0x14] sm:$0xf] }
  0x94   : > { %1827 = vmatmul.bf16.vlgmr.msrb.gmra.mxu2 %v3774_v58  ;;  %v3078_v44 = vor.u32 %v3521_v37, %v3077_v36  ;;  %v3377_v54 = vld [vmem:[%s3667_s29 + $0x2c] sm:$0xf0]  ;;  %v3271_v36 = vld [vmem:[%s3667_s29 + $0x630] sm:$0xf0]  ;;  %v2989_v37 = vld [vmem:[%s3667_s29 + $0x3d8] sm:$0xf] }
  0x95   : > { %1894 = vmatpush.bf16.msra.mxu2 %v3334_v41  ;;  %1849 = vmatpush.bf16.msra.mxu3 %v2662_v3  ;;  %v2566_v41 = vor.u32 %v3393_v35, %v2565_v34  ;;  %v3441_v57 = vld [vmem:[%s3667_s29 + $0x22c] sm:$0xf0]  ;;  %v3389_v3 = vld [vmem:[%s3667_s29 + $0x94] sm:$0xf] }
  0x96   : > { %1813 = vmatmul.bf16.vlgmr.msrb.gmra.mxu1 %v3781_v0  ;;  %3350 = vmatmul.msk.bf16.vlgmr.msrb.gmra.mxu0 %vm1619_vm0, %v3740_v30  ;;  %v3013_v59 = vld [vmem:[%s3667_s29 + $0x410] sm:$0xf]  ;;  %v2919_v34 = vld [vmem:[%s3667_s29 + $0x370] sm:$0xf0] }
  0x97   : > { %1875 = vmatpush.bf16.msra.mxu1 %v3238_v43  ;;  %1862 = vmatpush.bf16.msra.mxu0 %v2950_v47  ;;  %v3449_v43 = vld [vmem:[%s3667_s29 + $0x26c] sm:$0xf0]  ;;  %v3565_v35 = vld [vmem:[%s3667_s29 + $0x614] sm:$0xf] }
  0x98   : > { %v3385_v47 = vld [vmem:[%s3667_s29 + $0x6c] sm:$0xf0]  ;;  %v2790_v52 = vor.u32 %v3449_v43, %v2789_v42  ;;  %v3533_v43 = vld [vmem:[%s3667_s29 + $0x514] sm:$0xf] }
  0x99   : > { %1895 = vmatpush.bf16.msra.mxu2 %v3302_v53  ;;  %1850 = vmatpush.bf16.msra.mxu3 %v2630_v16  ;;  %v2501_v53 = vld [vmem:[%s3667_s29 + $0x10] sm:$0xf]  ;;  %v2534_v55 = vor.u32 %v3385_v47, %v2533_v46  ;;  %v3274_v46 = vor.u32 %v3565_v35, %v3271_v36  ;;  %v2990_v47 = vor.u32 %v3498_v39, %v2989_v37  ;;  %v3469_v49 = vld [vmem:[%s3667_s29 + $0x314] sm:$0xf]  ;;  %v3341_v35 = vld [vmem:[%s3667_s29 + $0x698] sm:$0xf] }
  0x9a   : > { %v3505_v63 = vld [vmem:[%s3667_s29 + $0x42c] sm:$0xf0]  ;;  %v2502_v10 = vor.u32 %v3377_v54, %v2501_v53  ;;  %v3490_v53 = vld [vmem:[%s3667_s29 + $0x3b4] sm:$0xf0]  ;;  %v3437_v39 = vld [vmem:[%s3667_s29 + $0x214] sm:$0xf] }
  0x9b   : > { %1876 = vmatpush.bf16.msra.mxu1 %v3206_v56  ;;  %1863 = vmatpush.bf16.msra.mxu0 %v2918_v61  ;;  %v2757_v56 = vld [vmem:[%s3667_s29 + $0x210] sm:$0xf]  ;;  %v2602_v61 = vor.u32 %v3397_v50, %v2599_v51  ;;  %v3014_v12 = vor.u32 %v3505_v63, %v3013_v59  ;;  %v2887_v50 = vld [vmem:[%s3667_s29 + $0x330] sm:$0xf0]  ;;  %v2957_v51 = vld [vmem:[%s3667_s29 + $0x398] sm:$0xf] }
  0x9c   : > { %v2758_v6 = vor.u32 %v3441_v57, %v2757_v56  ;;  %v2701_v54 = vld [vmem:[%s3667_s29 + $0x198] sm:$0xf]  ;;  %v3525_v56 = vld [vmem:[%s3667_s29 + $0x4d4] sm:$0xf]  ;;  %v2890_v59 = vor.u32 %v3469_v49, %v2887_v50 }
  0x9d   : > { %1896 = vmatpush.bf16.msra.mxu2 %v3270_v4  ;;  %1851 = vmatpush.bf16.msra.mxu3 %v2598_v28  ;;  %v2567_v4 = vld [vmem:[%s3667_s29 + $0xb0] sm:$0xf0]  ;;  %v3586_v36 = vld [vmem:[%s3667_s29 + $0x6b4] sm:$0xf0] }
  0x9e   : > { %v2570_v13 = vor.u32 %v3389_v3, %v2567_v4  ;;  %v3175_v28 = vld [vmem:[%s3667_s29 + $0x570] sm:$0xf0]  ;;  %v3482_v4 = vld [vmem:[%s3667_s29 + $0x374] sm:$0xf0] }
  0x9f   : > { %1877 = vmatpush.bf16.msra.mxu1 %v3174_v7  ;;  %1864 = vmatpush.bf16.msra.mxu0 %v2886_v15  ;;  %v2983_v7 = vld [vmem:[%s3667_s29 + $0x3f0] sm:$0xf0]  ;;  %v3309_v50 = vld [vmem:[%s3667_s29 + $0x658] sm:$0xf] }
  0xa0   : > { %v3207_v15 = vld [vmem:[%s3667_s29 + $0x5b0] sm:$0xf0]  ;;  %v2986_v16 = vor.u32 %v3493_v5, %v2983_v7  ;;  %v2669_v5 = vld [vmem:[%s3667_s29 + $0x158] sm:$0xf] }
  0xa1   : > { %1903 = vmatpush.bf16.msrb.mxu2 %v2730_v8  ;;  %1852 = vmatpush.bf16.msra.mxu3 %v2566_v41  ;;  %v3581_v8 = vld [vmem:[%s3667_s29 + $0x694] sm:$0xf]  ;;  %v3210_v24 = vor.u32 %v3549_v14, %v3207_v15  ;;  %v3434_v41 = vld [vmem:[%s3667_s29 + $0x1f4] sm:$0xf0] }
  0xa2   : > { %v3338_v17 = vor.u32 %v3581_v8, %v3335_v9  ;;  %v3111_v57 = vld [vmem:[%s3667_s29 + $0x4f0] sm:$0xf0]  ;;  %v2893_v14 = vld [vmem:[%s3667_s29 + $0x318] sm:$0xf] }
  0xa3   : > { %1878 = vmatpush.bf16.msra.mxu1 %v3142_v19  ;;  %1865 = vmatpush.bf16.msra.mxu0 %v2854_v27  ;;  %v2535_v19 = vld [vmem:[%s3667_s29 + $0x70] sm:$0xf0]  ;;  %v3114_v3 = vor.u32 %v3525_v56, %v3111_v57  ;;  %v3450_v56 = vld [vmem:[%s3667_s29 + $0x274] sm:$0xf0] }
  0xa4   : > { %3351 = vmatmul.msk.bf16.vlgmr.msra.gmra.mxu2 %vm1619_vm0, %v3740_v30  ;;  %v2538_v25 = vor.u32 %v3381_v18, %v2535_v19  ;;  %v3541_v27 = vld [vmem:[%s3667_s29 + $0x554] sm:$0xf]  ;;  %v3410_v18 = vld [vmem:[%s3667_s29 + $0x134] sm:$0xf0] }
  0xa5   : > { %1904 = vmatpush.bf16.msrb.mxu2 %v2698_v20  ;;  %1853 = vmatpush.bf16.msra.mxu3 %v2534_v55  ;;  %v3485_v20 = vld [vmem:[%s3667_s29 + $0x394] sm:$0xf]  ;;  %v3178_v38 = vor.u32 %v3541_v27, %v3175_v28  ;;  %v3426_v55 = vld [vmem:[%s3667_s29 + $0x1b4] sm:$0xf0] }
  0xa6   : > { %v2954_v29 = vor.u32 %v3485_v20, %v2951_v21  ;;  %v3461_v63 = vld [vmem:[%s3667_s29 + $0x2d4] sm:$0xf]  ;;  %v3466_v28 = vld [vmem:[%s3667_s29 + $0x2f4] sm:$0xf0] }
  0xa7   : > { %1879 = vmatpush.bf16.msra.mxu1 %v3110_v32  ;;  %1866 = vmatpush.bf16.msra.mxu0 %v2822_v40  ;;  %v2503_v32 = vld [vmem:[%s3667_s29 + $0x30] sm:$0xf0]  ;;  %v2733_v40 = vld [vmem:[%s3667_s29 + $0x1d8] sm:$0xf]  ;;  %v2858_v9 = vor.u32 %v3461_v63, %v2855_v1 }
  0xa8   : > { %v2506_v42 = vor.u32 %v3373_v26, %v2503_v32  ;;  %v2734_v48 = vor.u32 %v3434_v41, %v2733_v40  ;;  %v3517_v7 = vld [vmem:[%s3667_s29 + $0x494] sm:$0xf]  ;;  %v2861_v26 = vld [vmem:[%s3667_s29 + $0x2d8] sm:$0xf] }
  0xa9   : > { %1905 = vmatpush.bf16.msrb.mxu2 %v2666_v33  ;;  %1854 = vmatpush.bf16.msra.mxu3 %v2502_v10  ;;  %v3477_v33 = vld [vmem:[%s3667_s29 + $0x354] sm:$0xf]  ;;  %v2926_v10 = vor.u32 %v3482_v4, %v2925_v2  ;;  %v2862_v37 = vor.u32 %v3466_v28, %v2861_v26  ;;  %v2829_v41 = vld [vmem:[%s3667_s29 + $0x298] sm:$0xf]  ;;  %v2703_v26 = vld [vmem:[%s3667_s29 + $0x1b8] sm:$0xf0] }
  0xaa   : > { %v3079_v8 = vld [vmem:[%s3667_s29 + $0x4b0] sm:$0xf0]  ;;  %v3213_v57 = vld [vmem:[%s3667_s29 + $0x598] sm:$0xf] }
  0xab   : > { %1880 = vmatpush.bf16.msra.mxu1 %v3078_v44  ;;  %1867 = vmatpush.bf16.msra.mxu0 %v2790_v52  ;;  %v3143_v44 = vld [vmem:[%s3667_s29 + $0x530] sm:$0xf0]  ;;  %v3082_v15 = vor.u32 %v3517_v7, %v3079_v8  ;;  %v2765_v2 = vld [vmem:[%s3667_s29 + $0x218] sm:$0xf] }
  0xac   : > { %1855 = vmatmul.bf16.vlgmr.msra.gmra.mxu3 %v3779_v62  ;;  %v3146_v52 = vor.u32 %v3533_v43, %v3143_v44  ;;  %v3509_v19 = vld [vmem:[%s3667_s29 + $0x454] sm:$0xf]  ;;  %v3458_v43 = vld [vmem:[%s3667_s29 + $0x2b4] sm:$0xf0] }
  0xad   : > { %1906 = vmatpush.bf16.msrb.mxu2 %v2634_v45  ;;  %1917 = vmatpush.bf16.msrb.mxu3 %v2986_v16  ;;  %v2922_v45 = vor.u32 %v3477_v33, %v2919_v34  ;;  %v3474_v16 = vld [vmem:[%s3667_s29 + $0x334] sm:$0xf0]  ;;  %v3047_v20 = vld [vmem:[%s3667_s29 + $0x470] sm:$0xf0] }
  0xae   : > { %v2894_v22 = vor.u32 %v3474_v16, %v2893_v14  ;;  %v3050_v27 = vor.u32 %v3509_v19, %v3047_v20  ;;  %v3501_v32 = vld [vmem:[%s3667_s29 + $0x414] sm:$0xf]  ;;  %v3245_v44 = vld [vmem:[%s3667_s29 + $0x5d8] sm:$0xf]  ;;  %v3247_v19 = vld [vmem:[%s3667_s29 + $0x5f8] sm:$0xf0] }
  0xaf   : > { %1881 = vmatpush.bf16.msra.mxu1 %v3046_v60  ;;  %1868 = vmatpush.bf16.msra.mxu0 %v2758_v6  ;;  %v2958_v60 = vor.u32 %v3490_v53, %v2957_v51  ;;  %v3418_v6 = vld [vmem:[%s3667_s29 + $0x174] sm:$0xf0]  ;;  %v3015_v33 = vld [vmem:[%s3667_s29 + $0x430] sm:$0xf0] }
  0xb0   : > { %v2759_v40 = vld [vmem:[%s3667_s29 + $0x230] sm:$0xf0]  ;;  %v3578_v51 = vld [vmem:[%s3667_s29 + $0x674] sm:$0xf0] }
  0xb1   : > { %1907 = vmatpush.bf16.msrb.mxu2 %v2602_v61  ;;  %1918 = vmatpush.bf16.msrb.mxu3 %v2954_v29  ;;  %v2702_v61 = vor.u32 %v3426_v55, %v2701_v54  ;;  %v2605_v29 = vld [vmem:[%s3667_s29 + $0xd8] sm:$0xf]  ;;  %v2762_v49 = vor.u32 %v3437_v39, %v2759_v40  ;;  %v3310_v63 = vor.u32 %v3578_v51, %v3309_v50  ;;  %v3486_v40 = vld [vmem:[%s3667_s29 + $0x39c] sm:$0xf] }
  0xb2   : > { %1869 = vmatmul.bf16.vlgmr.msra.gmra.mxu0 %v3781_v0  ;;  %v2797_v54 = vld [vmem:[%s3667_s29 + $0x258] sm:$0xf] }
  0xb3   : > { %1931 = vmatpush.bf16.msrb.mxu0 %v3242_v11  ;;  %1882 = vmatpush.bf16.msra.mxu1 %v3014_v12  ;;  %v2670_v11 = vor.u32 %v3418_v6, %v2669_v5  ;;  %v3453_v12 = vld [vmem:[%s3667_s29 + $0x294] sm:$0xf]  ;;  %v3570_v4 = vld [vmem:[%s3667_s29 + $0x634] sm:$0xf0]  ;;  %v2798_v5 = vor.u32 %v3450_v56, %v2797_v54  ;;  %v2927_v56 = vld [vmem:[%s3667_s29 + $0x378] sm:$0xf0] }
  0xb4   : > { %v3442_v8 = vld [vmem:[%s3667_s29 + $0x234] sm:$0xf0] }
  0xb5   : > { %1908 = vmatpush.bf16.msrb.mxu2 %v2570_v13  ;;  %1919 = vmatpush.bf16.msrb.mxu3 %v2922_v45  ;;  %v2823_v13 = vld [vmem:[%s3667_s29 + $0x2b0] sm:$0xf0]  ;;  %v3562_v45 = vld [vmem:[%s3667_s29 + $0x5f4] sm:$0xf0] }
  0xb6   : > { %1883 = vmatmul.bf16.vlgmr.msra.gmra.mxu1 %v3774_v58  ;;  %v2826_v21 = vor.u32 %v3453_v12, %v2823_v13  ;;  %v3246_v53 = vor.u32 %v3562_v45, %v3245_v44  ;;  %v3181_v13 = vld [vmem:[%s3667_s29 + $0x558] sm:$0xf]  ;;  %v3414_v45 = vld [vmem:[%s3667_s29 + $0x15c] sm:$0xf] }
  0xb7   : > { %1950 = vmatpush.bf16.msrb.mxu1 %v3338_v17  ;;  %1932 = vmatpush.bf16.msrb.mxu0 %v3210_v24  ;;  %v2637_v17 = vld [vmem:[%s3667_s29 + $0x118] sm:$0xf]  ;;  %v3445_v24 = vld [vmem:[%s3667_s29 + $0x254] sm:$0xf] }
  0xb8   : > { %v2638_v23 = vor.u32 %v3410_v18, %v2637_v17  ;;  %v3546_v14 = vld [vmem:[%s3667_s29 + $0x574] sm:$0xf0]  ;;  %v3558_v18 = vld [vmem:[%s3667_s29 + $0x5dc] sm:$0xf] }
  0xb9   : > { %1909 = vmatpush.bf16.msrb.mxu2 %v2538_v25  ;;  %1920 = vmatpush.bf16.msrb.mxu3 %v2890_v59  ;;  %v2791_v25 = vld [vmem:[%s3667_s29 + $0x270] sm:$0xf0]  ;;  %v3554_v59 = vld [vmem:[%s3667_s29 + $0x5b4] sm:$0xf0] }
  0xba   : > { %v2794_v34 = vor.u32 %v3445_v24, %v2791_v25  ;;  %v3214_v6 = vor.u32 %v3554_v59, %v3213_v57  ;;  %v3378_v16 = vld [vmem:[%s3667_s29 + $0x34] sm:$0xf0]  ;;  %v3182_v24 = vor.u32 %v3546_v14, %v3181_v13  ;;  %v3422_v25 = vld [vmem:[%s3667_s29 + $0x19c] sm:$0xf] }
  0xbb   : > { %1951 = vmatpush.bf16.msrb.mxu1 %v3306_v31  ;;  %1933 = vmatpush.bf16.msrb.mxu0 %v3178_v38  ;;  %v3402_v31 = vld [vmem:[%s3667_s29 + $0xf4] sm:$0xf0]  ;;  %v2706_v39 = vor.u32 %v3422_v25, %v2703_v26  ;;  %v3406_v59 = vld [vmem:[%s3667_s29 + $0x11c] sm:$0xf] }
  0xbc   : > { %v2606_v38 = vor.u32 %v3402_v31, %v2605_v29  ;;  %v3250_v31 = vor.u32 %v3558_v18, %v3247_v19  ;;  %v3530_v50 = vld [vmem:[%s3667_s29 + $0x4f4] sm:$0xf0]  ;;  %v3398_v13 = vld [vmem:[%s3667_s29 + $0xdc] sm:$0xf] }
  0xbd   : > { %1910 = vmatpush.bf16.msrb.mxu2 %v2506_v42  ;;  %1921 = vmatpush.bf16.msrb.mxu3 %v2858_v9  ;;  %v3018_v42 = vor.u32 %v3501_v32, %v3015_v33  ;;  %v3430_v9 = vld [vmem:[%s3667_s29 + $0x1dc] sm:$0xf]  ;;  %v3149_v32 = vld [vmem:[%s3667_s29 + $0x518] sm:$0xf] }
  0xbe   : > { %v3538_v33 = vld [vmem:[%s3667_s29 + $0x534] sm:$0xf0]  ;;  %v2607_v14 = vld [vmem:[%s3667_s29 + $0xf8] sm:$0xf0] }
  0xbf   : > { %1952 = vmatpush.bf16.msrb.mxu1 %v3274_v46  ;;  %1934 = vmatpush.bf16.msrb.mxu0 %v3146_v52  ;;  %v2573_v46 = vld [vmem:[%s3667_s29 + $0x98] sm:$0xf]  ;;  %v2830_v52 = vor.u32 %v3458_v43, %v2829_v41  ;;  %v2959_v41 = vld [vmem:[%s3667_s29 + $0x3b8] sm:$0xf0]  ;;  %v3150_v43 = vor.u32 %v3538_v33, %v3149_v32 }
  0xc0   : > { %1911 = vmatmul.bf16.vlgmr.msrb.gmra.mxu2 %v3779_v62  ;;  %v2962_v51 = vor.u32 %v3486_v40, %v2959_v41  ;;  %v3526_v19 = vld [vmem:[%s3667_s29 + $0x4dc] sm:$0xf] }
  0xc1   : > { %1973 = vmatpush.bf16.msra.mxu2 %v2990_v47  ;;  %1922 = vmatpush.bf16.msrb.mxu3 %v2826_v21  ;;  %v3394_v47 = vld [vmem:[%s3667_s29 + $0xb4] sm:$0xf0]  ;;  %v3494_v21 = vld [vmem:[%s3667_s29 + $0x3dc] sm:$0xf] }
  0xc2   : > { %v2574_v55 = vor.u32 %v3394_v47, %v2573_v46  ;;  %v2671_v46 = vld [vmem:[%s3667_s29 + $0x178] sm:$0xf0] }
  0xc3   : > { %1959 = vmatpush.bf16.msra.mxu1 %v2734_v48  ;;  %1935 = vmatpush.bf16.msrb.mxu0 %v3114_v3  ;;  %v3342_v48 = vor.u32 %v3586_v36, %v3341_v35  ;;  %v3277_v3 = vld [vmem:[%s3667_s29 + $0x618] sm:$0xf]  ;;  %v3550_v36 = vld [vmem:[%s3667_s29 + $0x59c] sm:$0xf]  ;;  %v2674_v54 = vor.u32 %v3414_v45, %v2671_v46 }
  0xc4   : > { %v3278_v17 = vor.u32 %v3570_v4, %v3277_v3  ;;  %v3390_v25 = vld [vmem:[%s3667_s29 + $0x9c] sm:$0xf] }
  0xc5   : > { %1974 = vmatpush.bf16.msra.mxu2 %v2958_v60  ;;  %1923 = vmatpush.bf16.msrb.mxu3 %v2794_v34  ;;  %v2541_v60 = vld [vmem:[%s3667_s29 + $0x58] sm:$0xf]  ;;  %v1632_v1 = vpop.f32.mrf.mxu0  ;;  %v2575_v26 = vld [vmem:[%s3667_s29 + $0xb8] sm:$0xf0] }
  0xc6   : > { %3352 = vmatmul.msk.bf16.vlgmr.msrb.gmra.mxu1 %vm1619_vm0, %v3740_v30  ;;  %v3087_v33 = vld [vmem:[%s3667_s29 + $0x4b8] sm:$0xf0] }
  0xc7   : > { %1960 = vmatpush.bf16.msra.mxu1 %v2702_v61  ;;  %1936 = vmatpush.bf16.msrb.mxu0 %v3082_v15  ;;  %v3386_v61 = vld [vmem:[%s3667_s29 + $0x74] sm:$0xf0]  ;;  %v1646_v7 = vpop.f32.mrf.mxu1  ;;  %v3382_v41 = vld [vmem:[%s3667_s29 + $0x5c] sm:$0xf] }
  0xc8   : > { %v1647_v12 = vadd.f32 %v1646_v7, %v1632_v1  ;;  %v2509_v15 = vld [vmem:[%s3667_s29 + $0x18] sm:$0xf]  ;;  %v3510_v45 = vld [vmem:[%s3667_s29 + $0x45c] sm:$0xf] }
  0xc9   : > { %1975 = vmatpush.bf16.msra.mxu2 %v2926_v10  ;;  %1924 = vmatpush.bf16.msrb.mxu3 %v2762_v49  ;;  %v2735_v10 = vld [vmem:[%s3667_s29 + $0x1f8] sm:$0xf0]  ;;  %v2510_v29 = vor.u32 %v3378_v16, %v2509_v15  ;;  %v3117_v49 = vld [vmem:[%s3667_s29 + $0x4d8] sm:$0xf] }
  0xca   : > { %v2738_v20 = vor.u32 %v3430_v9, %v2735_v10  ;;  %v3118_v57 = vor.u32 %v3530_v50, %v3117_v49  ;;  %v3085_v1 = vld [vmem:[%s3667_s29 + $0x498] sm:$0xf]  ;;  %v3470_v9 = vld [vmem:[%s3667_s29 + $0x31c] sm:$0xf] }
  0xcb   : > { %1961 = vmatpush.bf16.msra.mxu1 %v2670_v11  ;;  %1937 = vmatpush.bf16.msrb.mxu0 %v3050_v27  ;;  %v2542_v11 = vor.u32 %v3386_v61, %v2541_v60  ;;  %v1674_v27 = vpop.f32.mrf.mxu3  ;;  %v1660_v28 = vpop.f32.mrf.mxu2  ;;  %v2639_v60 = vld [vmem:[%s3667_s29 + $0x138] sm:$0xf0]  ;;  %v3053_v16 = vld [vmem:[%s3667_s29 + $0x458] sm:$0xf] }
  0xcc   : > { %1925 = vmatmul.bf16.vlgmr.msrb.gmra.mxu3 %v3781_v0  ;;  %v1661_v34 = vadd.f32 %v1660_v28, %v1647_v12  ;;  %v2895_v10 = vld [vmem:[%s3667_s29 + $0x338] sm:$0xf0]  ;;  %v3021_v28 = vld [vmem:[%s3667_s29 + $0x418] sm:$0xf] }
  0xcd   : > { %1976 = vmatpush.bf16.msra.mxu2 %v2894_v22  ;;  %1987 = vmatpush.bf16.msra.mxu3 %v3246_v53  ;;  %v2991_v22 = vld [vmem:[%s3667_s29 + $0x3f8] sm:$0xf0]  ;;  %v2898_v18 = vor.u32 %v3470_v9, %v2895_v10 }
  0xce   : > { %v2994_v35 = vor.u32 %v3494_v21, %v2991_v22  ;;  %v3183_v53 = vld [vmem:[%s3667_s29 + $0x578] sm:$0xf0]  ;;  %v2610_v21 = vor.u32 %v3398_v13, %v2607_v14 }
  0xcf   : > { %1962 = vmatpush.bf16.msra.mxu1 %v2638_v23  ;;  %1938 = vmatpush.bf16.msrb.mxu0 %v3018_v42  ;;  %v2766_v23 = vor.u32 %v3442_v8, %v2765_v2  ;;  %v4113_v42 = vadd.f32 %v1674_v27, %v1661_v34  ;;  %v1648_v44 = vpop.f32.mrf.mxu1  ;;  %v3522_v2 = vld [vmem:[%s3667_s29 + $0x4b4] sm:$0xf0]  ;;  %v2642_v8 = vor.u32 %v3406_v59, %v2639_v60  ;;  %v3462_v22 = vld [vmem:[%s3667_s29 + $0x2dc] sm:$0xf] }
  0xd0   : > { %v3086_v12 = vor.u32 %v3522_v2, %v3085_v1  ;;  %v3582_v34 = vld [vmem:[%s3667_s29 + $0x69c] sm:$0xf] }
  0xd1   : > { %1977 = vmatpush.bf16.msra.mxu2 %v2862_v37  ;;  %1988 = vmatpush.bf16.msra.mxu3 %v3214_v6  ;;  %v3215_v37 = vld [vmem:[%s3667_s29 + $0x5b8] sm:$0xf0] }
  0xd2   : > { %1939 = vmatmul.bf16.vlgmr.msrb.gmra.mxu0 %v3774_v58  ;;  %v3218_v47 = vor.u32 %v3550_v36, %v3215_v37  ;;  %v3151_v6 = vld [vmem:[%s3667_s29 + $0x538] sm:$0xf0]  ;;  %v2578_v36 = vor.u32 %v3390_v25, %v2575_v26 }
  0xd3   : > { %1963 = vmatpush.bf16.msra.mxu1 %v2606_v38  ;;  %2006 = vmatpush.bf16.msra.mxu0 %v3342_v48  ;;  %v1634_v38 = vpop.f32.mrf.mxu0  ;;  %v1662_v61 = vpop.f32.mrf.mxu2  ;;  %v3454_v37 = vld [vmem:[%s3667_s29 + $0x29c] sm:$0xf] }
  0xd4   : > { %v1649_v48 = vadd.f32 %v1648_v44, %v1634_v38  ;;  %v1676_v7 = vpop.f32.mrf.mxu3  ;;  %v2831_v38 = vld [vmem:[%s3667_s29 + $0x2b8] sm:$0xf0] }
  0xd5   : > { %1978 = vmatpush.bf16.msra.mxu2 %v2830_v52  ;;  %1989 = vmatpush.bf16.msra.mxu3 %v3182_v24  ;;  %v3542_v52 = vld [vmem:[%s3667_s29 + $0x55c] sm:$0xf] }
  0xd6   : > { %v1663_v3 = vadd.f32 %v1662_v61, %v1649_v48  ;;  %v3055_v48 = vld [vmem:[%s3667_s29 + $0x478] sm:$0xf0] }
  0xd7   : > { %1964 = vmatpush.bf16.msra.mxu1 %v2574_v55  ;;  %2007 = vmatpush.bf16.msra.mxu0 %v3310_v63  ;;  %v3478_v55 = vld [vmem:[%s3667_s29 + $0x35c] sm:$0xf]  ;;  %v3186_v63 = vor.u32 %v3542_v52, %v3183_v53  ;;  %v3058_v61 = vor.u32 %v3510_v45, %v3055_v48 }
  0xd8   : > { %v2930_v4 = vor.u32 %v3478_v55, %v2927_v56  ;;  %v3574_v49 = vld [vmem:[%s3667_s29 + $0x65c] sm:$0xf] }
  0xd9   : > { %1979 = vmatpush.bf16.msra.mxu2 %v2798_v5  ;;  %1990 = vmatpush.bf16.msra.mxu3 %v3150_v43  ;;  %v3534_v5 = vld [vmem:[%s3667_s29 + $0x51c] sm:$0xf] }
  0xda   : > { %v3154_v15 = vor.u32 %v3534_v5, %v3151_v6  ;;  %v2543_v43 = vld [vmem:[%s3667_s29 + $0x78] sm:$0xf0] }
  0xdb   : > { %1965 = vmatpush.bf16.msra.mxu1 %v2542_v11  ;;  %2008 = vmatpush.bf16.msra.mxu0 %v3278_v17  ;;  %v4133_v11 = vadd.f32 %v1676_v7, %v1663_v3  ;;  %v3514_v17 = vld [vmem:[%s3667_s29 + $0x474] sm:$0xf0]  ;;  %v3311_v50 = vld [vmem:[%s3667_s29 + $0x678] sm:$0xf0] }
  0xdc   : > { %v3054_v24 = vor.u32 %v3514_v17, %v3053_v16  ;;  %v1688_v40 = vpop.f32.mrf.mxu3  ;;  %v3446_v52 = vld [vmem:[%s3667_s29 + $0x25c] sm:$0xf]  ;;  %v3314_v1 = vor.u32 %v3574_v49, %v3311_v50 }
  0xdd   : > { %1980 = vmatpush.bf16.msra.mxu2 %v2766_v23  ;;  %1991 = vmatpush.bf16.msra.mxu3 %v3118_v57  ;;  %v2863_v23 = vld [vmem:[%s3667_s29 + $0x2f8] sm:$0xf0] }
  0xde   : > { %v2866_v32 = vor.u32 %v3462_v22, %v2863_v23  ;;  %v2799_v53 = vld [vmem:[%s3667_s29 + $0x278] sm:$0xf0] }
  0xdf   : > { %2015 = vmatpush.bf16.msrb.mxu0 %v2738_v20  ;;  %1966 = vmatpush.bf16.msra.mxu1 %v2510_v29  ;;  %v3119_v20 = vld [vmem:[%s3667_s29 + $0x4f8] sm:$0xf0]  ;;  %v3506_v29 = vld [vmem:[%s3667_s29 + $0x434] sm:$0xf0]  ;;  %v2802_v2 = vor.u32 %v3446_v52, %v2799_v53 }
  0xe0   : > { %1981 = vmatmul.bf16.vlgmr.msra.gmra.mxu2 %v3781_v0  ;;  %v3122_v27 = vor.u32 %v3526_v19, %v3119_v20  ;;  %v3374_v56 = vld [vmem:[%s3667_s29 + $0x1c] sm:$0xf] }
  0xe1   : > { %2043 = vmatpush.bf16.msrb.mxu2 %v3250_v31  ;;  %1992 = vmatpush.bf16.msra.mxu3 %v3086_v12  ;;  %v3518_v31 = vld [vmem:[%s3667_s29 + $0x49c] sm:$0xf] }
  0xe2   : > { %1967 = vmatmul.bf16.vlgmr.msra.gmra.mxu1 %v3779_v62  ;;  %3353 = vmatmul.msk.bf16.vlgmr.msra.gmra.mxu0 %vm1619_vm0, %v3740_v30  ;;  %v3090_v44 = vor.u32 %v3518_v31, %v3087_v33  ;;  %v2511_v57 = vld [vmem:[%s3667_s29 + $0x38] sm:$0xf0] }
  0xe3   : > { %2029 = vmatpush.bf16.msrb.mxu1 %v2994_v35  ;;  %2016 = vmatpush.bf16.msrb.mxu0 %v2706_v39  ;;  %v3343_v35 = vld [vmem:[%s3667_s29 + $0x6b8] sm:$0xf0]  ;;  %v3022_v39 = vor.u32 %v3506_v29, %v3021_v28  ;;  %v1702_v55 = vpop.f32.mrf.mxu0  ;;  %v2514_v7 = vor.u32 %v3374_v56, %v2511_v57 }
  0xe4   : > { %v3346_v46 = vor.u32 %v3582_v34, %v3343_v35  ;;  %v1703_v59 = vadd.f32 %v1702_v55, %v1688_v40  ;;  %v3023_v3 = vld [vmem:[%s3667_s29 + $0x438] sm:$0xf0] }
  0xe5   : > { %2044 = vmatpush.bf16.msrb.mxu2 %v3218_v47  ;;  %1993 = vmatpush.bf16.msra.mxu3 %v3054_v24  ;;  %v2834_v47 = vor.u32 %v3454_v37, %v2831_v38  ;;  %v3279_v5 = vld [vmem:[%s3667_s29 + $0x638] sm:$0xf0] }
  0xe6   : > { %v2767_v9 = vld [vmem:[%s3667_s29 + $0x238] sm:$0xf0] }
  0xe7   : > { %2030 = vmatpush.bf16.msrb.mxu1 %v2962_v51  ;;  %2017 = vmatpush.bf16.msrb.mxu0 %v2674_v54  ;;  %v2546_v51 = vor.u32 %v3382_v41, %v2543_v43  ;;  %v1730_v54 = vpop.f32.mrf.mxu2  ;;  %v1716_v60 = vpop.f32.mrf.mxu1 }
  0xe8   : > { %v1717_v6 = vadd.f32 %v1716_v60, %v1703_v59 }
  0xe9   : > { %2045 = vmatpush.bf16.msrb.mxu2 %v3186_v63  ;;  %1994 = vmatpush.bf16.msra.mxu3 %v3022_v39  ;;  %v3502_v63 = vld [vmem:[%s3667_s29 + $0x41c] sm:$0xf] }
  0xea   : > { %v4172_v10 = vadd.f32 %v1730_v54, %v1717_v6  ;;  %v3026_v12 = vor.u32 %v3502_v63, %v3023_v3 }
  0xeb   : > { %2031 = vmatpush.bf16.msrb.mxu1 %v2930_v4  ;;  %2018 = vmatpush.bf16.msrb.mxu0 %v2642_v8  ;;  %v3566_v4 = vld [vmem:[%s3667_s29 + $0x61c] sm:$0xf]  ;;  %v1704_v16 = vpop.f32.mrf.mxu0 }
  0xec   : > { %1995 = vmatmul.bf16.vlgmr.msra.gmra.mxu3 %v3774_v58  ;;  %v3438_v8 = vld [vmem:[%s3667_s29 + $0x21c] sm:$0xf]  ;;  %v3282_v13 = vor.u32 %v3566_v4, %v3279_v5 }
  0xed   : > { %2046 = vmatpush.bf16.msrb.mxu2 %v3154_v15  ;;  %2062 = vmatpush.bf16.msrb.mxu3 %v3346_v46  ;;  %v2770_v14 = vor.u32 %v3438_v8, %v2767_v9  ;;  %v1690_v15 = vpop.f32.mrf.mxu3 }
  0xee   : > { %v1705_v17 = vadd.f32 %v1704_v16, %v1690_v15 }
  0xef   : > { %2032 = vmatpush.bf16.msrb.mxu1 %v2898_v18  ;;  %2019 = vmatpush.bf16.msrb.mxu0 %v2610_v21  ;;  %v1718_v18 = vpop.f32.mrf.mxu1  ;;  %v1732_v19 = vpop.f32.mrf.mxu2 }
  0xf0   : > { %v1719_v20 = vadd.f32 %v1718_v18, %v1705_v17 }
  0xf1   : > { %2047 = vmatpush.bf16.msrb.mxu2 %v3122_v27  ;;  %2063 = vmatpush.bf16.msrb.mxu3 %v3314_v1 }
  0xf2   : > { %v4177_v21 = vadd.f32 %v1732_v19, %v1719_v20  ;;  %v2097_v20 = vmul.f32 %v4133_v11, %v4133_v11 }
  0xf3   : > { %2033 = vmatpush.bf16.msrb.mxu1 %v2866_v32  ;;  %2020 = vmatpush.bf16.msrb.mxu0 %v2578_v36 }
  0xf4   : > { %v2098_v18 = vmul.f32 %v4177_v21, %v4177_v21 }
  0xf5   : > { %2048 = vmatpush.bf16.msrb.mxu2 %v3090_v44  ;;  %2064 = vmatpush.bf16.msrb.mxu3 %v3282_v13  ;;  %v1744_v22 = vpop.f32.mrf.mxu3 }
  0xf7   : > { %2034 = vmatpush.bf16.msrb.mxu1 %v2834_v47  ;;  %2021 = vmatpush.bf16.msrb.mxu0 %v2546_v51  ;;  %v1758_v23 = vpop.f32.mrf.mxu2  ;;  %v1786_v25 = vpop.f32.mrf.mxu1 }
  0xf8   : > { %v1759_v24 = vadd.f32 %v1758_v23, %v1744_v22 }
  0xf9   : > { %2049 = vmatpush.bf16.msrb.mxu2 %v3058_v61 }
  0xfb   : > { %2035 = vmatpush.bf16.msrb.mxu1 %v2802_v2  ;;  %2022 = vmatpush.bf16.msrb.mxu0 %v2514_v7 }
  0xfc   : > { %3354 = vmatmul.msk.bf16.vlgmr.msrb.gmra.mxu3 %vm1619_vm0, %v3740_v30 }
  0xfd   : > { %2050 = vmatpush.bf16.msrb.mxu2 %v3026_v12  ;;  %v1746_v26 = vpop.f32.mrf.mxu3 }
  0xfe   : > { %2023 = vmatmul.bf16.vlgmr.msrb.gmra.mxu0 %v3779_v62 }
  0xff   : > { %2036 = vmatpush.bf16.msrb.mxu1 %v2770_v14  ;;  %v1760_v27 = vpop.f32.mrf.mxu2  ;;  %v1788_v32 = vpop.f32.mrf.mxu1 }
 0x100   : > { %2051 = vmatmul.bf16.vlgmr.msrb.gmra.mxu2 %v3774_v58  ;;  %v1761_v28 = vadd.f32 %v1760_v27, %v1746_v26 }
 0x102   : > { %2037 = vmatmul.bf16.vlgmr.msrb.gmra.mxu1 %v3781_v0 }
 0x103   : > { %v1772_v29 = vpop.f32.mrf.mxu0 }
 0x104   : > { %v1773_v31 = vadd.f32 %v1772_v29, %v1759_v24  ;;  %v2080_v24 = vadd.f32 %v4177_v21, %v4133_v11  ;;  %v2114_v29 = vadd.f32 %v2098_v18, %v2097_v20 }
 0x106   : > { %v4181_v62 = vadd.f32 %v1786_v25, %v1773_v31 }
 0x10b   : > { %v1774_v58 = vpop.f32.mrf.mxu0 }
 0x10c   : > { %v1775_v33 = vadd.f32 %v1774_v58, %v1761_v28 }
 0x10e   : > { %v4183_v0 = vadd.f32 %v1788_v32, %v1775_v33 }
 0x10f   : > { %v1800_v35 = vpop.f32.mrf.mxu3 }
 0x110   : > { %v2099_v25 = vmul.f32 %v4183_v0, %v4183_v0  ;;  %v2081_v31 = vadd.f32 %v2080_v24, %v4183_v0 }
 0x113   : > { %v1814_v34 = vpop.f32.mrf.mxu1  ;;  %v1842_v39 = vpop.f32.mrf.mxu0 }
 0x114   : > { %v1815_v36 = vadd.f32 %v1814_v34, %v1800_v35 }
 0x117   : > { %v1828_v37 = vpop.f32.mrf.mxu2  ;;  %v1802_v47 = vpop.f32.mrf.mxu3 }
 0x118   : > { %v1829_v38 = vadd.f32 %v1828_v37, %v1815_v36  ;;  %v2115_v36 = vadd.f32 %v2114_v29, %v2099_v25 }
 0x11a   : > { %v4185_v30 = vadd.f32 %v1842_v39, %v1829_v38 }
 0x11b   : > { %v1844_v40 = vpop.f32.mrf.mxu0  ;;  %v1816_v41 = vpop.f32.mrf.mxu1 }
 0x11c   : > { %v1817_v7 = vadd.f32 %v1816_v41, %v1802_v47  ;;  %v2089_v41 = vmul.f32 %v4113_v42, %v4113_v42 }
 0x11f   : > { %v1830_v43 = vpop.f32.mrf.mxu2 }
 0x120   : > { %v1831_v12 = vadd.f32 %v1830_v43, %v1817_v7 }
 0x122   : > { %v4195_v19 = vadd.f32 %v1844_v40, %v1831_v12 }
 0x124   : > { %v2100_v32 = vmul.f32 %v4195_v19, %v4195_v19  ;;  %v2082_v35 = vadd.f32 %v2081_v31, %v4195_v19 }
 0x126   : > { %v2116_v47 = vadd.f32 %v2115_v36, %v2100_v32 }
 0x127   : > { %v4187_v46 = vpop.f32.mrf.mxu2 }
 0x12f   : > { %v1870_v44 = vpop.f32.mrf.mxu0  ;;  %v1856_v50 = vpop.f32.mrf.mxu3 }
 0x130   : > { %v1900_v51 = vpop.f32.mrf.mxu2  ;;  %v1871_v26 = vadd.f32 %v1870_v44, %v1856_v50  ;;  %v2090_v44 = vmul.f32 %v4172_v10, %v4172_v10 }
 0x133   : > { %v1884_v45 = vpop.f32.mrf.mxu1 }
 0x134   : > { %v1885_v37 = vadd.f32 %v1884_v45, %v1871_v26 }
 0x137   : > { %v1872_v48 = vpop.f32.mrf.mxu0  ;;  %v1858_v55 = vpop.f32.mrf.mxu3 }
 0x138   : > { %v1873_v8 = vadd.f32 %v1872_v48, %v1858_v55 }
 0x13b   : > { %v1886_v49 = vpop.f32.mrf.mxu1 }
 0x13c   : > { %v1887_v16 = vadd.f32 %v1886_v49, %v1873_v8 }
 0x13e   : > { %v4203_v27 = vadd.f32 %v1900_v51, %v1887_v16 }
 0x140   : > { %v2101_v38 = vmul.f32 %v4203_v27, %v4203_v27  ;;  %v2083_v48 = vadd.f32 %v2082_v35, %v4203_v27 }
 0x143   : > { %v4189_v53 = vpop.f32.mrf.mxu1  ;;  %v1912_v54 = vpop.f32.mrf.mxu2 }
 0x14b   : > { %v1956_v57 = vpop.f32.mrf.mxu1  ;;  %v1914_v60 = vpop.f32.mrf.mxu2 }
 0x14f   : > { %v1940_v52 = vpop.f32.mrf.mxu0  ;;  %v1926_v59 = vpop.f32.mrf.mxu3 }
 0x150   : > { %v1927_v58 = vadd.f32 %v1926_v59, %v1912_v54  ;;  %v4227_v59 = vadd.f32 %v4187_v46, %v1885_v37 }
 0x152   : > { %v1941_v49 = vadd.f32 %v1940_v52, %v1927_v58 }
 0x154   : > { %v4236_v7 = vadd.f32 %v4189_v53, %v1941_v49 }
 0x157   : > { %v1942_v56 = vpop.f32.mrf.mxu0  ;;  %v1928_v1 = vpop.f32.mrf.mxu3 }
 0x158   : > { %v1929_v15 = vadd.f32 %v1928_v1, %v1914_v60  ;;  %v2117_v60 = vadd.f32 %v2116_v47, %v2101_v38  ;;  %v2123_v38 = vld [vmem:[%s4364_s4] sm:$0xff] }
 0x15a   : > { %v1943_v22 = vadd.f32 %v1942_v56, %v1929_v15  ;;  %v2071_v56 = vadd.f32 %v4172_v10, %v4113_v42  ;;  %v2093_v15 = vmul.f32 %v4227_v59, %v4227_v59 }
 0x15c   : > { %v4208_v34 = vadd.f32 %v1956_v57, %v1943_v22  ;;  %v2091_v57 = vmul.f32 %v4181_v62, %v4181_v62 }
 0x15e   : > { %v2102_v45 = vmul.f32 %v4208_v34, %v4208_v34  ;;  %v2084_v52 = vadd.f32 %v2083_v48, %v4208_v34 }
 0x15f   : > { %v4191_v61 = vpop.f32.mrf.mxu0  ;;  %v1968_v63 = vpop.f32.mrf.mxu1 }
 0x160   : > { %v2118_v12 = vadd.f32 %v2117_v60, %v2102_v45 }
 0x163   : > { %v1982_v2 = vpop.f32.mrf.mxu2 }
 0x164   : > { %v1983_v51 = vadd.f32 %v1982_v2, %v1968_v63  ;;  %v2105_v63 = vadd.f32 %v2090_v44, %v2089_v41  ;;  %v2072_v2 = vadd.f32 %v2071_v56, %v4181_v62  ;;  %v2124_v41 = vld [vmem:[%s4364_s4 + $0x8] sm:$0xff] }
 0x167   : > { %v2012_v3 = vpop.f32.mrf.mxu0  ;;  %v1970_v4 = vpop.f32.mrf.mxu1 }
 0x16b   : > { %v1984_v6 = vpop.f32.mrf.mxu2 }
 0x16c   : > { %v1985_v23 = vadd.f32 %v1984_v6, %v1970_v4  ;;  %v2092_v6 = vmul.f32 %v4185_v30, %v4185_v30 }
 0x16f   : > { %v1996_v5 = vpop.f32.mrf.mxu3 }
 0x170   : > { %v1997_v1 = vadd.f32 %v1996_v5, %v1983_v51 }
 0x172   : > { %v4245_v16 = vadd.f32 %v4191_v61, %v1997_v1 }
 0x177   : > { %v1998_v14 = vpop.f32.mrf.mxu3 }
 0x178   : > { %v1999_v28 = vadd.f32 %v1998_v14, %v1985_v23  ;;  %v2106_v14 = vadd.f32 %v2105_v63, %v2091_v57  ;;  %v2094_v23 = vmul.f32 %v4236_v7, %v4236_v7 }
 0x17a   : > { %v4215_v43 = vadd.f32 %v2012_v3, %v1999_v28  ;;  %v2107_v20 = vadd.f32 %v2106_v14, %v2092_v6  ;;  %v2095_v28 = vmul.f32 %v4245_v16, %v4245_v16 }
 0x17b   : > { %v2024_v9 = vpop.f32.mrf.mxu0 }
 0x17c   : > { %v2103_v4 = vmul.f32 %v4215_v43, %v4215_v43  ;;  %v2085_v5 = vadd.f32 %v2084_v52, %v4215_v43  ;;  %v2108_v26 = vadd.f32 %v2107_v20, %v2093_v15  ;;  %v2210_v52 = vld [vmem:[%s4365_s5] sm:$0xff] }
 0x17e   : > { %v2109_v32 = vadd.f32 %v2108_v26, %v2094_v23  ;;  %v2264_v26 = vld [vmem:[%s4362_s2] sm:$0xff] }
 0x17f   : > { %v2038_v13 = vpop.f32.mrf.mxu1  ;;  %v2066_v33 = vpop.f32.mrf.mxu3 }
 0x180   : > { %v2039_v54 = vadd.f32 %v2038_v13, %v2024_v9  ;;  %v2073_v13 = vadd.f32 %v2072_v2, %v4185_v30  ;;  %v2110_v35 = vadd.f32 %v2109_v32, %v2095_v28 }
 0x182   : > { %v2074_v22 = vadd.f32 %v2073_v13, %v4227_v59 }
 0x183   : > { %v2052_v17 = vpop.f32.mrf.mxu2  ;;  %v2026_v39 = vpop.f32.mrf.mxu0 }
 0x184   : > { %v2053_v46 = vadd.f32 %v2052_v17, %v2039_v54  ;;  %v2119_v17 = vadd.f32 %v2118_v12, %v2103_v4  ;;  %v2075_v61 = vadd.f32 %v2074_v22, %v4236_v7 }
 0x186   : > { %v4253_v24 = vadd.f32 %v2066_v33, %v2053_v46  ;;  %v2076_v29 = vadd.f32 %v2075_v61, %v4245_v16 }
 0x187   : > { %v2040_v40 = vpop.f32.mrf.mxu1  ;;  %v2068_v8 = vpop.f32.mrf.mxu3 }
 0x188   : > { %v2041_v55 = vadd.f32 %v2040_v40, %v2026_v39  ;;  %v2096_v31 = vmul.f32 %v4253_v24, %v4253_v24  ;;  %v2077_v58 = vadd.f32 %v2076_v29, %v4253_v24 }
 0x18a   : > { %v2111_v33 = vadd.f32 %v2110_v35, %v2096_v31  ;;  %v2268_v31 = vld [vmem:[%s4363_s3] sm:$0xff]  ;;  %v2265_v35 = vld [vmem:[%s4362_s2 + $0x8] sm:$0xff] }
 0x18b   : > { %v2054_v50 = vpop.f32.mrf.mxu2 }
 0x18c   : > { %v2055_v3 = vadd.f32 %v2054_v50, %v2041_v55 }
 0x18e   : > { %v4238_v9 = vadd.f32 %v2068_v8, %v2055_v3  ;;  %v2211_v8 = vld [vmem:[%s4365_s5 + $0x8] sm:$0xff] }
 0x190   : > { %v2086_v18 = vadd.f32 %v2085_v5, %v4238_v9  ;;  %v2104_v53 = vmul.f32 %v4238_v9, %v4238_v9 }
 0x192   : > { %2087 = vadd.xlane.f32.xlu0 %v2086_v18  ;;  %v2120_v25 = vadd.f32 %v2119_v17, %v2104_v53 }
 0x194   : > { %2121 = vadd.xlane.f32.xlu1 %v2120_v25  ;;  %v3612_v25 = vmov 0  }
 0x195   : > { %3597 = vset.pattern.permute.xlu2 %v3612_v25  ;;  %3598 = vset.pattern.permute.xlu0 %v3612_v25 }
 0x196   : > { %3599 = vset.pattern.permute.xlu1 %v3612_v25 }
 0x19a   : > { %2078 = vadd.xlane.f32.xlu0 %v2077_v58 }
 0x19c   : > { %2112 = vadd.xlane.f32.xlu1 %v2111_v33 }
 0x205   : > { %v2088_v36 = vpop.xlane.xlu0 %2087 }
 0x206   : > { %2146 = vmatpush.msra.mxu3 %v2088_v36 }
 0x207   : > { %v2122_v37 = vpop.xlane.xlu1 %2121 }
 0x208   : > { %2171 = vmatpush.msra.mxu0 %v2122_v37 }
 0x20d   : > { %v2079_v39 = vpop.xlane.xlu0 %2078 }
 0x20e   : > { %2147 = vmatpush.msra.mxu3 %v2079_v39 }
 0x20f   : > { %v2113_v40 = vpop.xlane.xlu1 %2112  ;;  %3355 = vmatmul.msk.f32.vlgmr.msra.gmra.mxu3 %vm2125_vm1, %v2123_v38 }
 0x210   : > { %2172 = vmatpush.msra.mxu0 %v2113_v40 }
 0x211   : > { %3357 = vmatmul.msk.f32.vlgmr.msra.gmra.mxu0 %vm2125_vm1, %v2123_v38  ;;  %v2269_v38 = vld [vmem:[%s4363_s3 + $0x8] sm:$0xff] }
 0x217   : > { %3356 = vmatmul.msk.f32.gmra.mxu3 %vm2125_vm1, %v2124_v41 }
 0x219   : > { %3358 = vmatmul.msk.f32.gmra.mxu0 %vm2125_vm1, %v2124_v41 }
 0x28e   : > { %v2174_v44 = vpop.f32.mrf.mxu0 }
 0x28f   : > { %v2180_v49 = vmul.f32 0.0009765625, %v2174_v44 }
 0x292   : > { %v2149_v47 = vpop.f32.mrf.mxu3 }
 0x293   : > { %v2155_v48 = vmul.f32 0.0009765625, %v2149_v47 }
 0x295   : > { %v2182_v50 = vmul.f32 %v2155_v48, %v2155_v48 }
 0x296   : > { %v2177_v51 = vpop.f32.mrf.mxu0 }
 0x297   : > { %v2184_v45 = vsub.f32 %v2180_v49, %v2182_v50  ;;  %v2181_v60 = vmul.f32 0.0009765625, %v2177_v51  ;;  %v2326_v50 = vld [vmem:[%s4300_s21] sm:$0xff] }
 0x299   : > { %v2186_v54 = vmax.f32 %v2184_v45, 0.0  ;;  %v2327_v45 = vld [vmem:[%s4300_s21 + $0x8] sm:$0xff] }
 0x29a   : > { %v2152_v55 = vpop.f32.mrf.mxu3 }
 0x29b   : > { %v2188_v56 = vadd.f32 1e-05, %v2186_v54  ;;  %v2156_v57 = vmul.f32 0.0009765625, %v2152_v55 }
 0x29d   : > { %3600 = vrsqrt.f32 %v2188_v56  ;;  %v2183_v1 = vmul.f32 %v2156_v57, %v2156_v57  ;;  %2232 = vmatpush.msra.mxu1 %v2156_v57  ;;  %vm2196_vm6 = vweird.f32 %v2188_v56  ;;  %v2328_v57 = vld [vmem:[%s4300_s21 + $0x10] sm:$0xff] }
 0x29f   : > { %v2185_v3 = vsub.f32 %v2181_v60, %v2183_v1  ;;  %2233 = vmatpush.msra.mxu1 %v2155_v48  ;;  %v2329_v60 = vld [vmem:[%s4300_s21 + $0x18] sm:$0xff] }
 0x2a0   : > { %3359 = vmatmul.msk.f32.vlgmr.msra.gmra.mxu1 %vm2125_vm1, %v2210_v52 }
 0x2a1   : > { %v2187_v4 = vmax.f32 %v2185_v3, 0.0  ;;  %v2331_v3 = vld [vmem:[%s4300_s21 + $0x28] sm:$0xff] }
 0x2a3   : > { %v3601_v63 = vpop.eup %3600  ;;  %v2189_v2 = vadd.f32 1e-05, %v2187_v4 }
 0x2a4   : > { %v2191_v6 = vmul.f32 %v3601_v63, %v2188_v56  ;;  %vm2197_vm4 = vweird.f32 %v3601_v63 }
 0x2a5   : > { %3602 = vrsqrt.f32 %v2189_v2  ;;  %vm2206_vm3 = vweird.f32 %v2189_v2  ;;  %vm2198_vm7 = vmor %vm2196_vm6, %vm2197_vm4 }
 0x2a6   : > { %v2192_v46 = vmul.f32 %v3601_v63, %v2191_v6 }
 0x2a8   : > { %3360 = vmatmul.msk.f32.gmra.mxu1 %vm2125_vm1, %v2211_v8  ;;  %v2193_v13 = vmul.f32 0.5, %v2192_v46 }
 0x2aa   : > { %v2194_v18 = vsub.f32 1.5, %v2193_v13 }
 0x2ab   : > { %v3603_v5 = vpop.eup %3602 }
 0x2ac   : > { %v2201_v12 = vmul.f32 %v3603_v5, %v2189_v2  ;;  %vm2207_vm2 = vweird.f32 %v3603_v5  ;;  %v2195_v20 = vmul.f32 %v3601_v63, %v2194_v18 }
 0x2ad   : > { %vm2208_vm5 = vmor %vm2206_vm3, %vm2207_vm2 }
 0x2ae   : > { %v2202_v14 = vmul.f32 %v3603_v5, %v2201_v12  ;;  %v2199_v23 = vsel %vm2198_vm7, %v3601_v63, %v2195_v20 }
 0x2b0   : > { %v2203_v15 = vmul.f32 0.5, %v2202_v14 }
 0x2b2   : > { %v2204_v53 = vsub.f32 1.5, %v2203_v15 }
 0x2b4   : > { %v2205_v17 = vmul.f32 %v3603_v5, %v2204_v53 }
 0x2b6   : > { %v2209_v22 = vsel %vm2208_vm5, %v3603_v5, %v2205_v17 }
 0x2b7   : > { %2255 = vmatpush.msra.mxu2 %v2209_v22 }
 0x2b9   : > { %2256 = vmatpush.msra.mxu2 %v2199_v23 }
 0x2ba   : > { %3361 = vmatmul.msk.f32.vlgmr.msra.gmra.mxu2 %vm2125_vm1, %v2210_v52 }
 0x2c2   : > { %3362 = vmatmul.msk.f32.gmra.mxu2 %vm2125_vm1, %v2211_v8 }
 0x31d   : > { %v2235_v61 = vpop.f32.mrf.mxu1 }
 0x325   : > { %v2238_v36 = vpop.f32.mrf.mxu1 }
 0x33d   : > { %v2258_v28 = vpop.f32.mrf.mxu2 }
 0x33e   : > { %v2266_v29 = vmul.f32 %v2264_v26, %v2258_v28 }
 0x340   : > { %v2270_v32 = vmul.f32 %v2266_v29, %v2235_v61  ;;  %2276 = vperm.xlu2 %3597, %v2266_v29  }
 0x342   : > { %v2272_v58 = vsub.f32 %v2268_v31, %v2270_v32  ;;  %v2334_v31 = vld [vmem:[%s4300_s21 + $0x40] sm:$0xff] }
 0x344   : > { %2302 = vperm.xlu0 %3598, %v2272_v58  }
 0x345   : > { %v2261_v33 = vpop.f32.mrf.mxu2 }
 0x346   : > { %v2267_v37 = vmul.f32 %v2265_v35, %v2261_v33  ;;  %v2336_v35 = vld [vmem:[%s4300_s21 + $0x50] sm:$0xff]  ;;  %v2338_v33 = vld [vmem:[%s4300_s21 + $0x60] sm:$0xff] }
 0x348   : > { %v2271_v39 = vmul.f32 %v2267_v37, %v2238_v36  ;;  %2281 = vperm.xlu2 %3597, %v2267_v37  }
 0x34a   : > { %v2273_v40 = vsub.f32 %v2269_v38, %v2271_v39 }
 0x34c   : > { %2307 = vperm.xlu1 %3599, %v2273_v40  }
 0x39a   : > { %v2277_v41 = vpop.permute.xlu2 %2276 }
 0x39b   : > { %v2284_v44 = vmul.f32 %v2277_v41, %v4113_v42  ;;  %v2285_v47 = vmul.f32 %v2277_v41, %v4172_v10  ;;  %v2286_v48 = vmul.f32 %v2277_v41, %v4181_v62  ;;  %v2287_v49 = vmul.f32 %v2277_v41, %v4185_v30  ;;  %v2330_v42 = vld [vmem:[%s4300_s21 + $0x20] sm:$0xff]  ;;  %v2332_v10 = vld [vmem:[%s4300_s21 + $0x30] sm:$0xff]  ;;  %v2333_v62 = vld [vmem:[%s4300_s21 + $0x38] sm:$0xff] }
 0x39c   : > { %v2288_v51 = vmul.f32 %v2277_v41, %v4227_v59  ;;  %v2289_v54 = vmul.f32 %v2277_v41, %v4236_v7  ;;  %v2290_v55 = vmul.f32 %v2277_v41, %v4245_v16  ;;  %v2291_v56 = vmul.f32 %v2277_v41, %v4253_v24 }
 0x3a2   : > { %v2282_v2 = vpop.permute.xlu2 %2281 }
 0x3a3   : > { %v2292_v18 = vmul.f32 %v2282_v2, %v4133_v11  ;;  %v2293_v22 = vmul.f32 %v2282_v2, %v4177_v21  ;;  %v2294_v23 = vmul.f32 %v2282_v2, %v4183_v0  ;;  %v2295_v25 = vmul.f32 %v2282_v2, %v4195_v19  ;;  %v2335_v21 = vld [vmem:[%s4300_s21 + $0x48] sm:$0xff] }
 0x3a4   : > { %v2296_v61 = vmul.f32 %v2282_v2, %v4203_v27  ;;  %v2297_v28 = vmul.f32 %v2282_v2, %v4208_v34  ;;  %v2298_v11 = vmul.f32 %v2282_v2, %v4215_v43  ;;  %v2299_v0 = vmul.f32 %v2282_v2, %v4238_v9  ;;  %v2337_v27 = vld [vmem:[%s4300_s21 + $0x58] sm:$0xff]  ;;  %v2339_v43 = vld [vmem:[%s4300_s21 + $0x68] sm:$0xff]  ;;  %v2340_v9 = vld [vmem:[%s4300_s21 + $0x70] sm:$0xff] }
 0x3b6   : > { %v2303_v1 = vpop.permute.xlu0 %2302 }
 0x3b7   : > { %v2310_v52 = vadd.f32 %v2303_v1, %v2284_v44  ;;  %v2311_v30 = vadd.f32 %v2303_v1, %v2285_v47  ;;  %v2312_v4 = vadd.f32 %v2303_v1, %v2286_v48  ;;  %v2313_v63 = vadd.f32 %v2303_v1, %v2287_v49  ;;  %v2341_v48 = vld [vmem:[%s4300_s21 + $0x78] sm:$0xff] }
 0x3b8   : > { %v2314_v59 = vadd.f32 %v2303_v1, %v2288_v51  ;;  %v2315_v6 = vadd.f32 %v2303_v1, %v2289_v54  ;;  %v2316_v7 = vadd.f32 %v2303_v1, %v2290_v55  ;;  %v2317_v8 = vadd.f32 %v2303_v1, %v2291_v56 }
 0x3b9   : > { %v2342_v16 = vadd.f32 %v2326_v50, %v2310_v52  ;;  %v2343_v46 = vadd.f32 %v2327_v45, %v2311_v30  ;;  %v2344_v24 = vadd.f32 %v2328_v57, %v2312_v4  ;;  %v2345_v5 = vadd.f32 %v2329_v60, %v2313_v63 }
 0x3ba   : > { %v2346_v12 = vadd.f32 %v2330_v42, %v2314_v59  ;;  %v2347_v13 = vadd.f32 %v2331_v3, %v2315_v6  ;;  %v2348_v14 = vadd.f32 %v2332_v10, %v2316_v7  ;;  %v2349_v15 = vadd.f32 %v2333_v62, %v2317_v8 }
 0x3bb   : > { %v2358_v53 = vmax.f32 %v2342_v16, 0.0  ;;  %v2359_v17 = vmax.f32 %v2343_v46, 0.0  ;;  %v2360_v20 = vmax.f32 %v2344_v24, 0.0  ;;  %v2361_v26 = vmax.f32 %v2345_v5, 0.0 }
 0x3bc   : > { %v2362_v29 = vmax.f32 %v2346_v12, 0.0  ;;  %v2363_v32 = vmax.f32 %v2347_v13, 0.0  ;;  %v2364_v19 = vmax.f32 %v2348_v14, 0.0  ;;  %v2365_v58 = vmax.f32 %v2349_v15, 0.0 }
 0x3bd   : > { %2374 = vst [vmem:[%s4323_s26] sm:$0xff] %v2358_v53 }
 0x3be   : > { %2375 = vst [vmem:[%s4323_s26 + $0x8] sm:$0xff] %v2359_v17  ;;  %v2308_v34 = vpop.permute.xlu1 %2307 }
 0x3bf   : > { %2376 = vst [vmem:[%s4323_s26 + $0x10] sm:$0xff] %v2360_v20  ;;  %v2318_v36 = vadd.f32 %v2308_v34, %v2292_v18  ;;  %v2319_v37 = vadd.f32 %v2308_v34, %v2293_v22  ;;  %v2320_v38 = vadd.f32 %v2308_v34, %v2294_v23  ;;  %v2321_v39 = vadd.f32 %v2308_v34, %v2295_v25 }
 0x3c0   : > { %2377 = vst [vmem:[%s4323_s26 + $0x18] sm:$0xff] %v2361_v26  ;;  %v2322_v40 = vadd.f32 %v2308_v34, %v2296_v61  ;;  %v2323_v41 = vadd.f32 %v2308_v34, %v2297_v28  ;;  %v2324_v44 = vadd.f32 %v2308_v34, %v2298_v11  ;;  %v2325_v47 = vadd.f32 %v2308_v34, %v2299_v0 }
 0x3c1   : > { %2378 = vst [vmem:[%s4323_s26 + $0x20] sm:$0xff] %v2362_v29  ;;  %v2350_v49 = vadd.f32 %v2334_v31, %v2318_v36  ;;  %v2351_v50 = vadd.f32 %v2335_v21, %v2319_v37  ;;  %v2352_v45 = vadd.f32 %v2336_v35, %v2320_v38  ;;  %v2353_v51 = vadd.f32 %v2337_v27, %v2321_v39 }
 0x3c2   : > { %2379 = vst [vmem:[%s4323_s26 + $0x28] sm:$0xff] %v2363_v32  ;;  %v2354_v54 = vadd.f32 %v2338_v33, %v2322_v40  ;;  %v2355_v55 = vadd.f32 %v2339_v43, %v2323_v41  ;;  %v2356_v56 = vadd.f32 %v2340_v9, %v2324_v44  ;;  %v2357_v1 = vadd.f32 %v2341_v48, %v2325_v47 }
 0x3c3   : > { %2380 = vst [vmem:[%s4323_s26 + $0x30] sm:$0xff] %v2364_v19  ;;  %v2366_v57 = vmax.f32 %v2350_v49, 0.0  ;;  %v2367_v60 = vmax.f32 %v2351_v50, 0.0  ;;  %v2368_v42 = vmax.f32 %v2352_v45, 0.0  ;;  %v2369_v3 = vmax.f32 %v2353_v51, 0.0 }
 0x3c4   : > { %2381 = vst [vmem:[%s4323_s26 + $0x38] sm:$0xff] %v2365_v58  ;;  %v2370_v10 = vmax.f32 %v2354_v54, 0.0  ;;  %v2371_v62 = vmax.f32 %v2355_v55, 0.0  ;;  %v2372_v52 = vmax.f32 %v2356_v56, 0.0  ;;  %v2373_v30 = vmax.f32 %v2357_v1, 0.0 }
 0x3c5   : > { %2382 = vst [vmem:[%s4323_s26 + $0x40] sm:$0xff] %v2366_v57 }
 0x3c6   : > { %2383 = vst [vmem:[%s4323_s26 + $0x48] sm:$0xff] %v2367_v60 }
 0x3c7   : > { %2384 = vst [vmem:[%s4323_s26 + $0x50] sm:$0xff] %v2368_v42 }
 0x3c8   : > { %2385 = vst [vmem:[%s4323_s26 + $0x58] sm:$0xff] %v2369_v3 }
 0x3c9   : > { %2386 = vst [vmem:[%s4323_s26 + $0x60] sm:$0xff] %v2370_v10 }
 0x3ca   : > { %2387 = vst [vmem:[%s4323_s26 + $0x68] sm:$0xff] %v2371_v62 }
 0x3cb   : > { %2388 = vst [vmem:[%s4323_s26 + $0x70] sm:$0xff] %v2372_v52 }
 0x3cc   : > { %2389 = vst [vmem:[%s4323_s26 + $0x78] sm:$0xff] %v2373_v30 }
 0x3cd PF: > { %s17_s24 = sadd.s32 1, %s3610_s24  }
 0x3ce   : > { %p14_p4 = scmp.ge.s32.totalorder %s17_s24, 4  }
 0x3d0   :  { %16 = sbr.rel (!%p14_p4) target bundleno = 1 (0x1), region = 81 }

// kernel: _lambda_.13
= control target key start
LH: loop header
LB: loop body
LE: loop exit
PB: predicated region body
PF: predicated region fallthrough
CT: control target
= control target key end

     0   :  { %s1182_s21 = smov 0   ;;  %s1360_s0 = inlined_call_operand.vmem [shape: bf16[2,432,128], index: 0, kind: input, shape index: {}]   ;;  %s1361_s1 = inlined_call_operand.vmem [shape: bf16[32,432], index: 1, kind: input, shape index: {}]   ;;  %s1362_s2 = inlined_call_operand.vmem [shape: f32[32,1], index: 2, kind: input, shape index: {}]   ;;  %s1363_s3 = inlined_call_operand.vmem [shape: f32[32,1], index: 3, kind: input, shape index: {}]   ;;  %s1364_s4 = inlined_call_operand.vmem [shape: f32[16,32], index: 4, kind: input, shape index: {}]   ;;  %s1365_s5 = inlined_call_operand.vmem [shape: f32[32,16], index: 5, kind: input, shape index: {}]   ;;  %s1366_s6 = inlined_call_operand.vmem [shape: f32[2,32,128], index: 6, kind: output, shape index: {}]  }
   0x1 LB: > { %s911_s22 = sadd.s32 4294967295, %s1144_s21   ;;  %p915_p0 = scmp.ge.s32.totalorder %s1144_s21, 1  ;;  %s1144_s21 = sphi %s1182_s21, %s16_s21  }
   0x2   : > { %p212_p1 = scmp.lt.s32.totalorder %s1144_s21, 3 }
   0x4   : > { %p213_p2 = pnand %p915_p0, %p212_p1 }
   0x5   : > { %p242_p3 = scmp.lt.s32.totalorder (!%p213_p2), %s911_s22, 1 }
   0x6   : > { %216 = sbr.rel (%p213_p2) target bundleno = 805 (0x325), region = 44 }
   0xb   : > { %s1368_s22 = smov (!%p242_p3, %s911_s22), 1  ;;  %v1077_v12 = vld [vmem:[%s1361_s1 + $0xc] sm:$0xf]  ;;  %v931_v13 = vld [vmem:[%s1361_s1 + $0x18] sm:$0xf0]  ;;  %vm515_vm0 = vcmask 392192  }
   0xc   : > { %s1121_s23 = smul.u32 216, %s1368_s22  ;;  %v934_v17 = vor.u32 %v1077_v12, %v931_v13  ;;  %v921_v26 = vld [vmem:[%s1361_s1] sm:$0xf]  ;;  %v1078_v27 = vld [vmem:[%s1361_s1 + $0xc] sm:$0xf0]  ;;  %vm620_vm1 = vcmask 261120  }
   0xd   : > { %v929_v29 = vld [vmem:[%s1361_s1 + $0x8] sm:$0xf]  ;;  %v1081_v30 = vld [vmem:[%s1361_s1 + $0x2c] sm:$0xf]  ;;  %v947_v31 = vld [vmem:[%s1361_s1 + $0x38] sm:$0xf0]  ;;  %v922_v39 = vor.u32 %v1078_v27, %v921_v26 }
   0xe   : > { %s1196_s26 = scalar_lea.vmem %s1360_s0, %s1121_s23  ;;  %v1079_v34 = vld [vmem:[%s1361_s1 + $0x14] sm:$0xf0]  ;;  %v950_v36 = vor.u32 %v1081_v30, %v947_v31  ;;  %v1080_v37 = vld [vmem:[%s1361_s1 + $0x24] sm:$0xf]  ;;  %v939_v38 = vld [vmem:[%s1361_s1 + $0x30] sm:$0xf0] }
   0xf   : > { %v1091_v0 = vld [vmem:[%s1196_s26 + $0x38] sm:$0xff]  ;;  %v1090_v2 = vld [vmem:[%s1196_s26 + $0x30] sm:$0xff]  ;;  %v1109_v7 = vld [vmem:[%s1196_s26 + $0xc8] sm:$0xff]  ;;  %v930_v40 = vor.u32 %v1079_v34, %v929_v29  ;;  %v942_v41 = vor.u32 %v1080_v37, %v939_v38  ;;  %vm709_vm2 = vcmask 130048   ;;  %s1075_s19 = sshll.u32 %s1368_s22, 5 }
  0x10   : > { %v1107_v1 = vld [vmem:[%s1196_s26 + $0xb8] sm:$0xff]  ;;  %522 = vmatpush.bf16.msra.mxu0 %v1091_v0  ;;  %v1106_v3 = vld [vmem:[%s1196_s26 + $0xb0] sm:$0xff]  ;;  %v1089_v8 = vld [vmem:[%s1196_s26 + $0x28] sm:$0xff]  ;;  %s251_s24 = scalar_lea.vmem %s1366_s6, %s1075_s19 }
  0x11   : > { %560 = vmatpush.bf16.msra.mxu2 %v1107_v1  ;;  %v1099_v4 = vld [vmem:[%s1196_s26 + $0x78] sm:$0xff]  ;;  %v1110_v5 = vld [vmem:[%s1196_s26 + $0xd0] sm:$0xff]  ;;  %v1105_v9 = vld [vmem:[%s1196_s26 + $0xa8] sm:$0xff] }
  0x12   : > { %1111 = vmatpush.bf16.msra.mxu1 %v1099_v4  ;;  %v1205_v6 = vld [vmem:[%s1196_s26 + $0x70] sm:$0xff]  ;;  %584 = vmatpush.bf16.msra.mxu3 %v1110_v5  ;;  %v1097_v10 = vld [vmem:[%s1196_s26 + $0x68] sm:$0xff]  ;;  %v1108_v11 = vld [vmem:[%s1196_s26 + $0xc0] sm:$0xff] }
  0x13   : > { %v1088_v14 = vld [vmem:[%s1196_s26 + $0x20] sm:$0xff]  ;;  %v1087_v18 = vld [vmem:[%s1196_s26 + $0x18] sm:$0xff]  ;;  %v1086_v21 = vld [vmem:[%s1196_s26 + $0x10] sm:$0xff] }
  0x14   : > { %523 = vmatpush.bf16.msra.mxu0 %v1090_v2  ;;  %v1104_v15 = vld [vmem:[%s1196_s26 + $0xa0] sm:$0xff]  ;;  %v1103_v19 = vld [vmem:[%s1196_s26 + $0x98] sm:$0xff]  ;;  %v1102_v22 = vld [vmem:[%s1196_s26 + $0x90] sm:$0xff] }
  0x15   : > { %561 = vmatpush.bf16.msra.mxu2 %v1106_v3  ;;  %v1096_v16 = vld [vmem:[%s1196_s26 + $0x60] sm:$0xff]  ;;  %v1095_v20 = vld [vmem:[%s1196_s26 + $0x58] sm:$0xff]  ;;  %v1094_v23 = vld [vmem:[%s1196_s26 + $0x50] sm:$0xff] }
  0x16   : > { %1112 = vmatpush.bf16.msra.mxu1 %v1205_v6  ;;  %585 = vmatpush.bf16.msra.mxu3 %v1109_v7  ;;  %v1085_v24 = vld [vmem:[%s1196_s26 + $0x8] sm:$0xff]  ;;  %v1084_v32 = vld [vmem:[%s1196_s26] sm:$0xff]  ;;  %v1082_v43 = vld [vmem:[%s1361_s1 + $0x2c] sm:$0xf0] }
  0x17   : > { %v1101_v25 = vld [vmem:[%s1196_s26 + $0x88] sm:$0xff]  ;;  %v1100_v33 = vld [vmem:[%s1196_s26 + $0x80] sm:$0xff]  ;;  %v1083_v45 = vld [vmem:[%s1361_s1 + $0x34] sm:$0xf0] }
  0x18   : > { %524 = vmatpush.bf16.msra.mxu0 %v1089_v8  ;;  %v1093_v28 = vld [vmem:[%s1196_s26 + $0x48] sm:$0xff]  ;;  %v1092_v35 = vld [vmem:[%s1196_s26 + $0x40] sm:$0xff]  ;;  %v923_v49 = vld [vmem:[%s1361_s1 + $0x10] sm:$0xf0] }
  0x19   : > { %562 = vmatpush.bf16.msra.mxu2 %v1105_v9  ;;  %v937_v42 = vld [vmem:[%s1361_s1 + $0x20] sm:$0xf]  ;;  %v945_v44 = vld [vmem:[%s1361_s1 + $0x28] sm:$0xf]  ;;  %v1076_v48 = vld [vmem:[%s1361_s1 + $0x4] sm:$0xf] }
  0x1a   : > { %1113 = vmatpush.bf16.msra.mxu1 %v1097_v10  ;;  %586 = vmatpush.bf16.msra.mxu3 %v1108_v11  ;;  %v938_v46 = vor.u32 %v1082_v43, %v937_v42  ;;  %v946_v47 = vor.u32 %v1083_v45, %v945_v44  ;;  %v926_v50 = vor.u32 %v1076_v48, %v923_v49  ;;  %v619_v27 = vld [vmem:[%s1364_s4 + $0x8] sm:$0xff] }
  0x1c   : > { %525 = vmatpush.bf16.msra.mxu0 %v1088_v14 }
  0x1d   : > { %563 = vmatpush.bf16.msra.mxu2 %v1104_v15  ;;  %1059 = vmatmul.msk.bf16.vlgmr.msra.gmra.mxu3 %vm515_vm0, %v934_v17 }
  0x1e   : > { %1114 = vmatpush.bf16.msra.mxu1 %v1096_v16 }
  0x20   : > { %526 = vmatpush.bf16.msra.mxu0 %v1087_v18 }
  0x21   : > { %564 = vmatpush.bf16.msra.mxu2 %v1103_v19 }
  0x22   : > { %1115 = vmatpush.bf16.msra.mxu1 %v1095_v20 }
  0x24   : > { %527 = vmatpush.bf16.msra.mxu0 %v1086_v21 }
  0x25   : > { %565 = vmatpush.bf16.msra.mxu2 %v1102_v22 }
  0x26   : > { %1116 = vmatpush.bf16.msra.mxu1 %v1094_v23 }
  0x28   : > { %528 = vmatpush.bf16.msra.mxu0 %v1085_v24 }
  0x29   : > { %566 = vmatpush.bf16.msra.mxu2 %v1101_v25 }
  0x2a   : > { %1117 = vmatpush.bf16.msra.mxu1 %v1093_v28 }
  0x2c   : > { %529 = vmatpush.bf16.msra.mxu0 %v1084_v32 }
  0x2d   : > { %567 = vmatpush.bf16.msra.mxu2 %v1100_v33  ;;  %1060 = vmatmul.msk.bf16.gmra.mxu3 %vm515_vm0, %v950_v36  ;;  %v705_v33 = vld [vmem:[%s1365_s5] sm:$0xff] }
  0x2e   : > { %1118 = vmatpush.bf16.msra.mxu1 %v1092_v35 }
  0x2f   : > { %530 = vmatmul.bf16.vlgmr.msra.gmra.mxu0 %v922_v39  ;;  %v706_v39 = vld [vmem:[%s1365_s5 + $0x8] sm:$0xff] }
  0x30   : > { %541 = vmatpush.bf16.msrb.mxu0 %v1099_v4  ;;  %568 = vmatmul.bf16.vlgmr.msra.gmra.mxu2 %v930_v40 }
  0x31   : > { %554 = vmatmul.bf16.vlgmr.msra.gmra.mxu1 %v942_v41 }
  0x34   : > { %542 = vmatpush.bf16.msrb.mxu0 %v1205_v6 }
  0x38   : > { %543 = vmatpush.bf16.msrb.mxu0 %v1097_v10 }
  0x3c   : > { %544 = vmatpush.bf16.msrb.mxu0 %v1096_v16 }
  0x3f   : > { %535 = vmatmul.bf16.gmra.mxu0 %v938_v46  ;;  %v707_v46 = vld [vmem:[%s1365_s5 + $0x10] sm:$0xff] }
  0x40   : > { %545 = vmatpush.bf16.msrb.mxu0 %v1095_v20  ;;  %573 = vmatmul.bf16.gmra.mxu2 %v946_v47 }
  0x44   : > { %546 = vmatpush.bf16.msrb.mxu0 %v1094_v23  ;;  %v618_v23 = vld [vmem:[%s1364_s4] sm:$0xff] }
  0x48   : > { %547 = vmatpush.bf16.msrb.mxu0 %v1093_v28 }
  0x4c   : > { %548 = vmatpush.bf16.msrb.mxu0 %v1092_v35 }
  0x4f   : > { %549 = vmatmul.bf16.vlgmr.msrb.gmra.mxu0 %v926_v50 }
  0xa0   : > { %v588_v52 = vpop.f32.mrf.mxu3 }
  0xa8   : > { %v590_v55 = vpop.f32.mrf.mxu3 }
  0xac   : > { %v531_v51 = vpop.f32.mrf.mxu0 }
  0xae   : > { %v555_v57 = vpop.f32.mrf.mxu1 }
  0xb0   : > { %v593_v59 = vpop.f32.mrf.mxu3 }
  0xb3   : > { %v569_v53 = vpop.f32.mrf.mxu2 }
  0xb4   : > { %v533_v54 = vpop.f32.mrf.mxu0 }
  0xb6   : > { %v557_v62 = vpop.f32.mrf.mxu1 }
  0xb8   : > { %v595_v0 = vpop.f32.mrf.mxu3 }
  0xbb   : > { %v571_v56 = vpop.f32.mrf.mxu2 }
  0xbc   : > { %v536_v58 = vpop.f32.mrf.mxu0 }
  0xbd   : > { %v556_v4 = vadd.f32 %v555_v57, %v536_v58 }
  0xc3   : > { %v574_v60 = vpop.f32.mrf.mxu2 }
  0xc4   : > { %v538_v61 = vpop.f32.mrf.mxu0  ;;  %v575_v6 = vadd.f32 %v574_v60, %v556_v4 }
  0xc5   : > { %v558_v63 = vadd.f32 %v557_v62, %v538_v61 }
  0xc6   : > { %v1284_v8 = vadd.f32 %v593_v59, %v575_v6  ;;  %v788_v6 = vld [vmem:[%s1363_s3] sm:$0xff] }
  0xc8   : > { %v608_v12 = vmul.f32 %v1284_v8, %v1284_v8 }
  0xcb   : > { %v576_v1 = vpop.f32.mrf.mxu2 }
  0xcc   : > { %v577_v2 = vadd.f32 %v576_v1, %v558_v63  ;;  %v550_v3 = vpop.f32.mrf.mxu0  ;;  %v1146_v63 = vmov 0  }
  0xcd   : > { %v551_v13 = vadd.f32 %v550_v3, %v531_v51  ;;  %v708_v51 = vld [vmem:[%s1365_s5 + $0x18] sm:$0xff]  ;;  %1131 = vset.pattern.permute.xlu2 %v1146_v63  ;;  %1132 = vset.pattern.permute.xlu0 %v1146_v63 }
  0xce   : > { %v1279_v5 = vadd.f32 %v595_v0, %v577_v2  ;;  %1133 = vset.pattern.permute.xlu1 %v1146_v63  ;;  %v780_v0 = vld [vmem:[%s1362_s2] sm:$0xff] }
  0xcf   : > { %v570_v15 = vadd.f32 %v569_v53, %v551_v13  ;;  %v789_v13 = vld [vmem:[%s1363_s3 + $0x8] sm:$0xff] }
  0xd0   : > { %604 = vadd.xlane.f32.xlu0 %v1279_v5  ;;  %v609_v7 = vmul.f32 %v1279_v5, %v1279_v5 }
  0xd1   : > { %v1294_v17 = vadd.f32 %v588_v52, %v570_v15 }
  0xd2   : > { %616 = vadd.xlane.f32.xlu2 %v609_v7  ;;  %v781_v7 = vld [vmem:[%s1362_s2 + $0x8] sm:$0xff] }
  0xd3   : > { %v606_v18 = vmul.f32 %v1294_v17, %v1294_v17 }
  0xd4   : > { %v552_v9 = vpop.f32.mrf.mxu0 }
  0xd5   : > { %v553_v10 = vadd.f32 %v552_v9, %v533_v54 }
  0xd7   : > { %v572_v11 = vadd.f32 %v571_v56, %v553_v10 }
  0xd8   : > { %602 = vadd.xlane.f32.xlu0 %v1284_v8 }
  0xd9   : > { %v1289_v14 = vadd.f32 %v590_v55, %v572_v11 }
  0xda   : > { %614 = vadd.xlane.f32.xlu2 %v608_v12 }
  0xdb   : > { %600 = vadd.xlane.f32.xlu1 %v1289_v14  ;;  %v607_v16 = vmul.f32 %v1289_v14, %v1289_v14 }
  0xe0   : > { %612 = vadd.xlane.f32.xlu0 %v607_v16 }
  0xe3   : > { %598 = vadd.xlane.f32.xlu1 %v1294_v17 }
  0xeb   : > { %610 = vadd.xlane.f32.xlu1 %v606_v18 }
 0x143   : > { %v605_v19 = vpop.xlane.xlu0 %604 }
 0x144   : > { %639 = vmatpush.msrb.mxu3 %v605_v19  ;;  %v782_v19 = vld [vmem:[%s1362_s2 + $0x10] sm:$0xff] }
 0x145   : > { %v617_v22 = vpop.xlane.xlu2 %616 }
 0x14b   : > { %v603_v20 = vpop.xlane.xlu0 %602 }
 0x14c   : > { %640 = vmatpush.msrb.mxu3 %v603_v20 }
 0x14d   : > { %v615_v25 = vpop.xlane.xlu2 %614 }
 0x14e   : > { %v601_v21 = vpop.xlane.xlu1 %600 }
 0x14f   : > { %641 = vmatpush.msrb.mxu3 %v601_v21  ;;  %v783_v21 = vld [vmem:[%s1362_s2 + $0x18] sm:$0xff] }
 0x153   : > { %v613_v26 = vpop.xlane.xlu0 %612 }
 0x156   : > { %v599_v24 = vpop.xlane.xlu1 %598 }
 0x157   : > { %642 = vmatpush.msrb.mxu3 %v599_v24 }
 0x158   : > { %1061 = vmatmul.msk.f32.vlgmr.msrb.gmra.mxu3 %vm620_vm1, %v618_v23 }
 0x159   : > { %664 = vmatpush.msra.mxu3 %v617_v22 }
 0x15b   : > { %665 = vmatpush.msra.mxu3 %v615_v25  ;;  %v791_v25 = vld [vmem:[%s1363_s3 + $0x18] sm:$0xff] }
 0x15d   : > { %666 = vmatpush.msra.mxu3 %v613_v26 }
 0x15e   : > { %v611_v28 = vpop.xlane.xlu1 %610 }
 0x15f   : > { %667 = vmatpush.msra.mxu3 %v611_v28 }
 0x160   : > { %1062 = vmatmul.msk.f32.gmra.mxu3 %vm620_vm1, %v619_v27 }
 0x168   : > { %1063 = vmatmul.msk.f32.vlgmr.msra.gmra.mxu3 %vm620_vm1, %v618_v23 }
 0x170   : > { %1064 = vmatmul.msk.f32.gmra.mxu3 %vm620_vm1, %v619_v27 }
 0x1db   : > { %v644_v29 = vpop.f32.mrf.mxu3 }
 0x1dc   : > { %v650_v32 = vmul.f32 0.00390625, %v644_v29 }
 0x1de   : > { %v677_v36 = vmul.f32 %v650_v32, %v650_v32 }
 0x1e3   : > { %v647_v30 = vpop.f32.mrf.mxu3 }
 0x1e4   : > { %v651_v31 = vmul.f32 0.00390625, %v647_v30  ;;  %v790_v30 = vld [vmem:[%s1363_s3 + $0x10] sm:$0xff] }
 0x1e6   : > { %736 = vmatpush.msrb.mxu2 %v651_v31  ;;  %1119 = vmatpush.msrb.mxu3 %v651_v31  ;;  %v678_v43 = vmul.f32 %v651_v31, %v651_v31 }
 0x1e8   : > { %737 = vmatpush.msrb.mxu2 %v650_v32  ;;  %1120 = vmatpush.msrb.mxu3 %v650_v32 }
 0x1e9   : > { %1065 = vmatmul.msk.f32.vlgmr.msrb.gmra.mxu2 %vm709_vm2, %v705_v33  ;;  %1068 = vmatmul.msk.f32.vlgmr.msrb.gmra.mxu3 %vm709_vm2, %v708_v51 }
 0x1eb   : > { %v669_v34 = vpop.f32.mrf.mxu3 }
 0x1ec   : > { %v675_v35 = vmul.f32 0.00390625, %v669_v34 }
 0x1ee   : > { %v679_v37 = vsub.f32 %v675_v35, %v677_v36 }
 0x1f0   : > { %v681_v38 = vmax.f32 %v679_v37, 0.0 }
 0x1f1   : > { %1066 = vmatmul.msk.f32.gmra.mxu2 %vm709_vm2, %v706_v39 }
 0x1f2   : > { %v683_v40 = vadd.f32 1e-05, %v681_v38 }
 0x1f3   : > { %v672_v41 = vpop.f32.mrf.mxu3 }
 0x1f4   : > { %1134 = vrsqrt.f32 %v683_v40  ;;  %v676_v42 = vmul.f32 0.00390625, %v672_v41  ;;  %vm691_vm7 = vweird.f32 %v683_v40 }
 0x1f6   : > { %v680_v44 = vsub.f32 %v676_v42, %v678_v43 }
 0x1f8   : > { %v682_v45 = vmax.f32 %v680_v44, 0.0 }
 0x1f9   : > { %1067 = vmatmul.msk.f32.gmra.mxu2 %vm709_vm2, %v707_v46 }
 0x1fa   : > { %v1135_v47 = vpop.eup %1134  ;;  %v684_v48 = vadd.f32 1e-05, %v682_v45 }
 0x1fb   : > { %v686_v49 = vmul.f32 %v1135_v47, %v683_v40  ;;  %vm692_vm5 = vweird.f32 %v1135_v47 }
 0x1fc   : > { %1136 = vrsqrt.f32 %v684_v48  ;;  %vm701_vm4 = vweird.f32 %v684_v48  ;;  %vm693_vm8 = vmor %vm691_vm7, %vm692_vm5 }
 0x1fd   : > { %v687_v50 = vmul.f32 %v1135_v47, %v686_v49 }
 0x1ff   : > { %v688_v54 = vmul.f32 0.5, %v687_v50 }
 0x201   : > { %v689_v57 = vsub.f32 1.5, %v688_v54 }
 0x202   : > { %v1137_v52 = vpop.eup %1136 }
 0x203   : > { %v696_v53 = vmul.f32 %v1137_v52, %v684_v48  ;;  %vm702_vm3 = vweird.f32 %v1137_v52  ;;  %v690_v60 = vmul.f32 %v1135_v47, %v689_v57 }
 0x204   : > { %vm703_vm6 = vmor %vm701_vm4, %vm702_vm3 }
 0x205   : > { %v697_v55 = vmul.f32 %v1137_v52, %v696_v53  ;;  %v694_v62 = vsel %vm693_vm8, %v1135_v47, %v690_v60 }
 0x207   : > { %v698_v56 = vmul.f32 0.5, %v697_v55 }
 0x209   : > { %v699_v58 = vsub.f32 1.5, %v698_v56 }
 0x20b   : > { %v700_v59 = vmul.f32 %v1137_v52, %v699_v58 }
 0x20d   : > { %v704_v61 = vsel %vm703_vm6, %v1137_v52, %v700_v59 }
 0x20e   : > { %765 = vmatpush.msrb.mxu1 %v704_v61 }
 0x210   : > { %766 = vmatpush.msrb.mxu1 %v694_v62 }
 0x211   : > { %1069 = vmatmul.msk.f32.vlgmr.msrb.gmra.mxu1 %vm709_vm2, %v705_v33 }
 0x219   : > { %1070 = vmatmul.msk.f32.gmra.mxu1 %vm709_vm2, %v706_v39 }
 0x221   : > { %1071 = vmatmul.msk.f32.gmra.mxu1 %vm709_vm2, %v707_v46 }
 0x229   : > { %1072 = vmatmul.msk.f32.gmra.mxu1 %vm709_vm2, %v708_v51 }
 0x26c   : > { %v739_v1 = vpop.f32.mrf.mxu2  ;;  %v748_v23 = vpop.f32.mrf.mxu3 }
 0x274   : > { %v742_v10 = vpop.f32.mrf.mxu2 }
 0x27c   : > { %v745_v26 = vpop.f32.mrf.mxu2 }
 0x28e   : > { %v768_v2 = vpop.f32.mrf.mxu1 }
 0x28f   : > { %v784_v3 = vmul.f32 %v780_v0, %v768_v2 }
 0x291   : > { %802 = vperm.xlu2 %1131, %v784_v3   ;;  %v792_v4 = vmul.f32 %v784_v3, %v739_v1 }
 0x293   : > { %v796_v11 = vsub.f32 %v788_v6, %v792_v4 }
 0x296   : > { %v771_v9 = vpop.f32.mrf.mxu1 }
 0x297   : > { %v785_v12 = vmul.f32 %v781_v7, %v771_v9 }
 0x299   : > { %v793_v15 = vmul.f32 %v785_v12, %v742_v10  ;;  %826 = vperm.xlu2 %1131, %v796_v11   ;;  %807 = vperm.xlu0 %1132, %v785_v12  }
 0x29b   : > { %v797_v16 = vsub.f32 %v789_v13, %v793_v15 }
 0x29d   : > { %831 = vperm.xlu1 %1133, %v797_v16  }
 0x29e   : > { %v774_v18 = vpop.f32.mrf.mxu1 }
 0x29f   : > { %v786_v20 = vmul.f32 %v782_v19, %v774_v18 }
 0x2a1   : > { %v794_v29 = vmul.f32 %v786_v20, %v745_v26 }
 0x2a3   : > { %v798_v31 = vsub.f32 %v790_v30, %v794_v29 }
 0x2a5   : > { %812 = vperm.xlu1 %1133, %v786_v20  }
 0x2a6   : > { %v777_v22 = vpop.f32.mrf.mxu1 }
 0x2a7   : > { %v787_v24 = vmul.f32 %v783_v21, %v777_v22 }
 0x2a9   : > { %v795_v27 = vmul.f32 %v787_v24, %v748_v23  ;;  %817 = vperm.xlu2 %1131, %v787_v24  }
 0x2ab   : > { %v799_v28 = vsub.f32 %v791_v25, %v795_v27 }
 0x2ad   : > { %841 = vperm.xlu1 %1133, %v799_v28  }
 0x2b1   : > { %836 = vperm.xlu2 %1131, %v798_v31  }
 0x2eb   : > { %v803_v32 = vpop.permute.xlu2 %802 }
 0x2ec   : > { %v820_v33 = vmul.f32 %v803_v32, %v1294_v17 }
 0x2f3   : > { %v827_v34 = vpop.permute.xlu2 %826 }
 0x2f4   : > { %v844_v35 = vadd.f32 %v827_v34, %v820_v33 }
 0x2f6   : > { %v848_v36 = vmax.f32 %v844_v35, 0.0 }
 0x2f8   : > { %852 = vst [vmem:[%s251_s24] sm:$0xff] %v848_v36 }
 0x303   : > { %v818_v39 = vpop.permute.xlu2 %817 }
 0x304   : > { %v823_v47 = vmul.f32 %v818_v39, %v1279_v5 }
 0x30b   : > { %v808_v37 = vpop.permute.xlu0 %807  ;;  %v837_v44 = vpop.permute.xlu2 %836 }
 0x30c   : > { %v821_v38 = vmul.f32 %v808_v37, %v1289_v14 }
 0x30f   : > { %v832_v40 = vpop.permute.xlu1 %831 }
 0x310   : > { %v845_v41 = vadd.f32 %v832_v40, %v821_v38 }
 0x312   : > { %v849_v42 = vmax.f32 %v845_v41, 0.0 }
 0x314   : > { %853 = vst [vmem:[%s251_s24 + $0x8] sm:$0xff] %v849_v42 }
 0x317   : > { %v813_v43 = vpop.permute.xlu1 %812 }
 0x318   : > { %v822_v17 = vmul.f32 %v813_v43, %v1284_v8 }
 0x31a   : > { %v846_v45 = vadd.f32 %v837_v44, %v822_v17 }
 0x31c   : > { %v850_v46 = vmax.f32 %v846_v45, 0.0 }
 0x31e   : > { %854 = vst [vmem:[%s251_s24 + $0x10] sm:$0xff] %v850_v46 }
 0x31f   : > { %v842_v48 = vpop.permute.xlu1 %841 }
 0x320   : > { %v847_v49 = vadd.f32 %v842_v48, %v823_v47 }
 0x322   : > { %v851_v50 = vmax.f32 %v847_v49, 0.0 }
 0x324   : > { %855 = vst [vmem:[%s251_s24 + $0x18] sm:$0xff] %v851_v50 }
 0x325 PF: > { %s16_s21 = sadd.s32 1, %s1144_s21  }
 0x326   : > { %p13_p4 = scmp.ge.s32.totalorder %s16_s21, 4  }
 0x328   :  { %15 = sbr.rel (!%p13_p4) target bundleno = 1 (0x1), region = 74 }

// kernel: _lambda_.14
= control target key start
LH: loop header
LB: loop body
LE: loop exit
PB: predicated region body
PF: predicated region fallthrough
CT: control target
= control target key end

     0   :  { %s711_s21 = smov 0   ;;  %s814_s0 = inlined_call_operand.vmem [shape: bf16[2,16,128], index: 0, kind: input, shape index: {}]   ;;  %s815_s1 = inlined_call_operand.vmem [shape: bf16[32,16], index: 1, kind: input, shape index: {}]   ;;  %s816_s2 = inlined_call_operand.vmem [shape: f32[32,1], index: 2, kind: input, shape index: {}]   ;;  %s817_s3 = inlined_call_operand.vmem [shape: f32[32,1], index: 3, kind: input, shape index: {}]   ;;  %s818_s4 = inlined_call_operand.vmem [shape: f32[16,32], index: 4, kind: input, shape index: {}]   ;;  %s819_s5 = inlined_call_operand.vmem [shape: f32[32,16], index: 5, kind: input, shape index: {}]   ;;  %s820_s6 = inlined_call_operand.vmem [shape: f32[2,32,128], index: 6, kind: output, shape index: {}]  }
   0x1 LB: > { %s609_s22 = sadd.s32 4294967295, %s673_s21   ;;  %p613_p0 = scmp.ge.s32.totalorder %s673_s21, 1  ;;  %s673_s21 = sphi %s711_s21, %s16_s21  }
   0x2   : > { %p212_p1 = scmp.lt.s32.totalorder %s673_s21, 3 }
   0x4   : > { %p213_p2 = pnand %p613_p0, %p212_p1 }
   0x5   : > { %p242_p3 = scmp.lt.s32.totalorder (!%p213_p2), %s609_s22, 1 }
   0x6   : > { %216 = sbr.rel (%p213_p2) target bundleno = 756 (0x2f4), region = 44 }
   0xb   : > { %s822_s22 = smov (!%p242_p3, %s609_s22), 1  ;;  %v648_v1 = vld [vmem:[%s815_s1] sm:$0xff]  ;;  %vm275_vm0 = vcmask 130048   ;;  %v649_v2 = vld [vmem:[%s815_s1 + $0x8] sm:$0xff]  ;;  %vm323_vm1 = vcmask 261120   ;;  %v410_v38 = vld [vmem:[%s819_s5 + $0x10] sm:$0xff] }
   0xc   : > { %s646_s23 = sshll.u32 %s822_s22, 3  ;;  %v321_v16 = vld [vmem:[%s818_s4] sm:$0xff]  ;;  %v322_v19 = vld [vmem:[%s818_s4 + $0x8] sm:$0xff]  ;;  %v411_v43 = vld [vmem:[%s819_s5 + $0x18] sm:$0xff]  ;;  %v675_v55 = vmov 0   ;;  %s647_s13 = sshll.u32 %s822_s22, 5 }
   0xd   : > { %s246_s26 = scalar_lea.vmem %s814_s0, %s646_s23  ;;  %v408_v25 = vld [vmem:[%s819_s5] sm:$0xff]  ;;  %v409_v31 = vld [vmem:[%s819_s5 + $0x8] sm:$0xff]  ;;  %660 = vset.pattern.permute.xlu2 %v675_v55  ;;  %661 = vset.pattern.permute.xlu0 %v675_v55  ;;  %s251_s16 = scalar_lea.vmem %s820_s6, %s647_s13 }
   0xe   : > { %v650_v0 = vld [vmem:[%s246_s26] sm:$0xff]  ;;  %662 = vset.pattern.permute.xlu1 %v675_v55  ;;  %v483_v63 = vld [vmem:[%s816_s2 + $0x8] sm:$0xff] }
   0xf   : > { %289 = vmatpush.bf16.msra.mxu0 %v650_v0  ;;  %v482_v57 = vld [vmem:[%s816_s2] sm:$0xff] }
  0x10   : > { %v490_v62 = vld [vmem:[%s817_s3] sm:$0xff] }
  0x12   : > { %630 = vmatmul.msk.bf16.vlgmr.msra.gmra.mxu0 %vm275_vm0, %v648_v1 }
  0x22   : > { %631 = vmatmul.msk.bf16.gmra.mxu0 %vm275_vm0, %v649_v2 }
  0x8f   : > { %v733_v3 = vpop.f32.mrf.mxu0 }
  0x90   : > { %v309_v6 = vmul.f32 %v733_v3, %v733_v3 }
  0x97   : > { %v735_v4 = vpop.f32.mrf.mxu0 }
  0x98   : > { %303 = vadd.xlane.f32.xlu1 %v735_v4  ;;  %v310_v10 = vmul.f32 %v735_v4, %v735_v4 }
  0x9f   : > { %v738_v5 = vpop.f32.mrf.mxu0 }
  0xa0   : > { %301 = vadd.xlane.f32.xlu1 %v733_v3  ;;  %v311_v9 = vmul.f32 %v738_v5, %v738_v5 }
  0xa7   : > { %v743_v7 = vpop.f32.mrf.mxu0 }
  0xa8   : > { %313 = vadd.xlane.f32.xlu1 %v309_v6  ;;  %307 = vadd.xlane.f32.xlu0 %v743_v7  ;;  %v312_v8 = vmul.f32 %v743_v7, %v743_v7  ;;  %v491_v6 = vld [vmem:[%s817_s3 + $0x8] sm:$0xff] }
  0xaa   : > { %319 = vadd.xlane.f32.xlu2 %v312_v8 }
  0xb0   : > { %305 = vadd.xlane.f32.xlu0 %v738_v5 }
  0xb2   : > { %317 = vadd.xlane.f32.xlu2 %v311_v9 }
  0xb8   : > { %315 = vadd.xlane.f32.xlu0 %v310_v10 }
 0x10b   : > { %v304_v11 = vpop.xlane.xlu1 %303 }
 0x113   : > { %v302_v15 = vpop.xlane.xlu1 %301 }
 0x11b   : > { %v308_v12 = vpop.xlane.xlu0 %307  ;;  %v314_v20 = vpop.xlane.xlu1 %313 }
 0x11c   : > { %342 = vmatpush.msra.mxu2 %v308_v12  ;;  %v484_v12 = vld [vmem:[%s816_s2 + $0x10] sm:$0xff] }
 0x11d   : > { %v320_v13 = vpop.xlane.xlu2 %319 }
 0x123   : > { %v306_v14 = vpop.xlane.xlu0 %305 }
 0x124   : > { %343 = vmatpush.msra.mxu2 %v306_v14  ;;  %v485_v14 = vld [vmem:[%s816_s2 + $0x18] sm:$0xff] }
 0x125   : > { %v318_v17 = vpop.xlane.xlu2 %317 }
 0x126   : > { %344 = vmatpush.msra.mxu2 %v304_v11 }
 0x128   : > { %345 = vmatpush.msra.mxu2 %v302_v15 }
 0x129   : > { %632 = vmatmul.msk.f32.vlgmr.msra.gmra.mxu2 %vm323_vm1, %v321_v16 }
 0x12a   : > { %367 = vmatpush.msrb.mxu2 %v320_v13 }
 0x12b   : > { %v316_v18 = vpop.xlane.xlu0 %315 }
 0x12c   : > { %368 = vmatpush.msrb.mxu2 %v318_v17 }
 0x12e   : > { %369 = vmatpush.msrb.mxu2 %v316_v18  ;;  %v493_v18 = vld [vmem:[%s817_s3 + $0x18] sm:$0xff] }
 0x130   : > { %370 = vmatpush.msrb.mxu2 %v314_v20 }
 0x131   : > { %633 = vmatmul.msk.f32.gmra.mxu2 %vm323_vm1, %v322_v19 }
 0x139   : > { %634 = vmatmul.msk.f32.vlgmr.msrb.gmra.mxu2 %vm323_vm1, %v321_v16 }
 0x141   : > { %635 = vmatmul.msk.f32.gmra.mxu2 %vm323_vm1, %v322_v19 }
 0x1ac   : > { %v347_v21 = vpop.f32.mrf.mxu2 }
 0x1ad   : > { %v353_v24 = vmul.f32 0.00390625, %v347_v21 }
 0x1af   : > { %v380_v27 = vmul.f32 %v353_v24, %v353_v24 }
 0x1b4   : > { %v350_v22 = vpop.f32.mrf.mxu2 }
 0x1b5   : > { %v354_v23 = vmul.f32 0.00390625, %v350_v22  ;;  %v492_v22 = vld [vmem:[%s817_s3 + $0x10] sm:$0xff] }
 0x1b7   : > { %438 = vmatpush.msra.mxu3 %v354_v23  ;;  %v381_v34 = vmul.f32 %v354_v23, %v354_v23 }
 0x1b9   : > { %439 = vmatpush.msra.mxu3 %v353_v24 }
 0x1ba   : > { %636 = vmatmul.msk.f32.vlgmr.msra.gmra.mxu3 %vm275_vm0, %v408_v25 }
 0x1bc   : > { %v372_v26 = vpop.f32.mrf.mxu2 }
 0x1bd   : > { %v378_v28 = vmul.f32 0.00390625, %v372_v26 }
 0x1bf   : > { %v382_v29 = vsub.f32 %v378_v28, %v380_v27 }
 0x1c1   : > { %v384_v30 = vmax.f32 %v382_v29, 0.0 }
 0x1c2   : > { %637 = vmatmul.msk.f32.gmra.mxu3 %vm275_vm0, %v409_v31 }
 0x1c3   : > { %v386_v32 = vadd.f32 1e-05, %v384_v30 }
 0x1c4   : > { %v375_v33 = vpop.f32.mrf.mxu2 }
 0x1c5   : > { %663 = vrsqrt.f32 %v386_v32  ;;  %v379_v35 = vmul.f32 0.00390625, %v375_v33  ;;  %vm394_vm6 = vweird.f32 %v386_v32 }
 0x1c7   : > { %v383_v36 = vsub.f32 %v379_v35, %v381_v34 }
 0x1c9   : > { %v385_v37 = vmax.f32 %v383_v36, 0.0 }
 0x1ca   : > { %638 = vmatmul.msk.f32.gmra.mxu3 %vm275_vm0, %v410_v38 }
 0x1cb   : > { %v664_v39 = vpop.eup %663  ;;  %v387_v40 = vadd.f32 1e-05, %v385_v37 }
 0x1cc   : > { %v389_v41 = vmul.f32 %v664_v39, %v386_v32  ;;  %vm395_vm4 = vweird.f32 %v664_v39 }
 0x1cd   : > { %665 = vrsqrt.f32 %v387_v40  ;;  %vm404_vm3 = vweird.f32 %v387_v40  ;;  %vm396_vm7 = vmor %vm394_vm6, %vm395_vm4 }
 0x1ce   : > { %v390_v42 = vmul.f32 %v664_v39, %v389_v41 }
 0x1d0   : > { %v391_v46 = vmul.f32 0.5, %v390_v42 }
 0x1d2   : > { %639 = vmatmul.msk.f32.gmra.mxu3 %vm275_vm0, %v411_v43  ;;  %v392_v49 = vsub.f32 1.5, %v391_v46 }
 0x1d3   : > { %v666_v44 = vpop.eup %665 }
 0x1d4   : > { %v399_v45 = vmul.f32 %v666_v44, %v387_v40  ;;  %vm405_vm2 = vweird.f32 %v666_v44  ;;  %v393_v52 = vmul.f32 %v664_v39, %v392_v49 }
 0x1d5   : > { %vm406_vm5 = vmor %vm404_vm3, %vm405_vm2 }
 0x1d6   : > { %v400_v47 = vmul.f32 %v666_v44, %v399_v45  ;;  %v397_v54 = vsel %vm396_vm7, %v664_v39, %v393_v52 }
 0x1d8   : > { %v401_v48 = vmul.f32 0.5, %v400_v47 }
 0x1da   : > { %v402_v50 = vsub.f32 1.5, %v401_v48 }
 0x1dc   : > { %v403_v51 = vmul.f32 %v666_v44, %v402_v50 }
 0x1de   : > { %v407_v53 = vsel %vm406_vm5, %v666_v44, %v403_v51 }
 0x1df   : > { %467 = vmatpush.msra.mxu1 %v407_v53 }
 0x1e1   : > { %468 = vmatpush.msra.mxu1 %v397_v54 }
 0x1e2   : > { %640 = vmatmul.msk.f32.vlgmr.msra.gmra.mxu1 %vm275_vm0, %v408_v25 }
 0x1ea   : > { %641 = vmatmul.msk.f32.gmra.mxu1 %vm275_vm0, %v409_v31 }
 0x1f2   : > { %642 = vmatmul.msk.f32.gmra.mxu1 %vm275_vm0, %v410_v38 }
 0x1fa   : > { %643 = vmatmul.msk.f32.gmra.mxu1 %vm275_vm0, %v411_v43 }
 0x23d   : > { %v441_v56 = vpop.f32.mrf.mxu3 }
 0x245   : > { %v444_v60 = vpop.f32.mrf.mxu3 }
 0x24d   : > { %v447_v10 = vpop.f32.mrf.mxu3 }
 0x255   : > { %v450_v16 = vpop.f32.mrf.mxu3 }
 0x25f   : > { %v470_v58 = vpop.f32.mrf.mxu1 }
 0x260   : > { %v486_v59 = vmul.f32 %v482_v57, %v470_v58 }
 0x262   : > { %504 = vperm.xlu2 %660, %v486_v59   ;;  %v494_v61 = vmul.f32 %v486_v59, %v441_v56 }
 0x264   : > { %v498_v1 = vsub.f32 %v490_v62, %v494_v61 }
 0x267   : > { %v473_v0 = vpop.f32.mrf.mxu1 }
 0x268   : > { %v487_v2 = vmul.f32 %v483_v63, %v473_v0 }
 0x26a   : > { %v495_v8 = vmul.f32 %v487_v2, %v444_v60  ;;  %528 = vperm.xlu2 %660, %v498_v1   ;;  %509 = vperm.xlu0 %661, %v487_v2  }
 0x26c   : > { %v499_v9 = vsub.f32 %v491_v6, %v495_v8 }
 0x26e   : > { %533 = vperm.xlu1 %662, %v499_v9  }
 0x26f   : > { %v476_v11 = vpop.f32.mrf.mxu1 }
 0x270   : > { %v488_v13 = vmul.f32 %v484_v12, %v476_v11 }
 0x272   : > { %v496_v20 = vmul.f32 %v488_v13, %v447_v10 }
 0x274   : > { %v500_v23 = vsub.f32 %v492_v22, %v496_v20 }
 0x276   : > { %514 = vperm.xlu1 %662, %v488_v13  }
 0x277   : > { %v479_v15 = vpop.f32.mrf.mxu1 }
 0x278   : > { %v489_v17 = vmul.f32 %v485_v14, %v479_v15 }
 0x27a   : > { %v497_v19 = vmul.f32 %v489_v17, %v450_v16  ;;  %519 = vperm.xlu2 %660, %v489_v17  }
 0x27c   : > { %v501_v21 = vsub.f32 %v493_v18, %v497_v19 }
 0x27e   : > { %543 = vperm.xlu1 %662, %v501_v21  }
 0x282   : > { %538 = vperm.xlu2 %660, %v500_v23  }
 0x2bc   : > { %v505_v24 = vpop.permute.xlu2 %504 }
 0x2bd   : > { %v522_v25 = vmul.f32 %v505_v24, %v733_v3 }
 0x2c4   : > { %v529_v26 = vpop.permute.xlu2 %528 }
 0x2c5   : > { %v546_v27 = vadd.f32 %v529_v26, %v522_v25 }
 0x2c7   : > { %550 = vst [vmem:[%s251_s16] sm:$0xff] %v546_v27 }
 0x2d4   : > { %v520_v30 = vpop.permute.xlu2 %519 }
 0x2d5   : > { %v525_v3 = vmul.f32 %v520_v30, %v743_v7 }
 0x2dc   : > { %v510_v28 = vpop.permute.xlu0 %509  ;;  %v539_v35 = vpop.permute.xlu2 %538 }
 0x2dd   : > { %v523_v29 = vmul.f32 %v510_v28, %v735_v4 }
 0x2e0   : > { %v534_v31 = vpop.permute.xlu1 %533 }
 0x2e1   : > { %v547_v32 = vadd.f32 %v534_v31, %v523_v29 }
 0x2e3   : > { %551 = vst [vmem:[%s251_s16 + $0x8] sm:$0xff] %v547_v32 }
 0x2e8   : > { %v515_v33 = vpop.permute.xlu1 %514 }
 0x2e9   : > { %v524_v34 = vmul.f32 %v515_v33, %v738_v5 }
 0x2eb   : > { %v548_v36 = vadd.f32 %v539_v35, %v524_v34 }
 0x2ed   : > { %552 = vst [vmem:[%s251_s16 + $0x10] sm:$0xff] %v548_v36 }
 0x2f0   : > { %v544_v37 = vpop.permute.xlu1 %543 }
 0x2f1   : > { %v549_v38 = vadd.f32 %v544_v37, %v525_v3 }
 0x2f3   : > { %553 = vst [vmem:[%s251_s16 + $0x18] sm:$0xff] %v549_v38 }
 0x2f4 PF: > { %s16_s21 = sadd.s32 1, %s673_s21  }
 0x2f5   : > { %p13_p4 = scmp.ge.s32.totalorder %s16_s21, 4  }
 0x2f7   :  { %15 = sbr.rel (!%p13_p4) target bundleno = 1 (0x1), region = 74 }

// kernel: _lambda_.15
= control target key start
LH: loop header
LB: loop body
LE: loop exit
PB: predicated region body
PF: predicated region fallthrough
CT: control target
= control target key end

     0   :  { %s1735_s24 = smov 0   ;;  %s1973_s0 = inlined_call_operand.vmem [shape: bf16[2,864,128], index: 0, kind: input, shape index: {}]   ;;  %s1974_s1 = inlined_call_operand.vmem [shape: bf16[32,864], index: 1, kind: input, shape index: {}]   ;;  %s1975_s2 = inlined_call_operand.vmem [shape: f32[32,1], index: 2, kind: input, shape index: {}]   ;;  %s1976_s3 = inlined_call_operand.vmem [shape: f32[32,1], index: 3, kind: input, shape index: {}]   ;;  %s1977_s4 = inlined_call_operand.vmem [shape: f32[16,32], index: 4, kind: input, shape index: {}]   ;;  %s1978_s5 = inlined_call_operand.vmem [shape: f32[32,16], index: 5, kind: input, shape index: {}]   ;;  %s1979_s6 = inlined_call_operand.vmem [shape: f32[2,32,128], index: 6, kind: input, shape index: {}]   ;;  %s1980_s7 = inlined_call_operand.vmem [shape: f32[2,32,128], index: 7, kind: output, shape index: {}]  }
   0x1 LB: > { %s1291_s25 = sadd.s32 4294967295, %s1692_s24   ;;  %p1295_p0 = scmp.ge.s32.totalorder %s1692_s24, 1  ;;  %s1692_s24 = sphi %s1735_s24, %s17_s24  }
   0x2   : > { %p247_p1 = scmp.lt.s32.totalorder %s1692_s24, 3 }
   0x4   : > { %p248_p2 = pnand %p1295_p0, %p247_p1 }
   0x5   : > { %p284_p3 = scmp.lt.s32.totalorder (!%p248_p2), %s1291_s25, 1 }
   0x6   : > { %251 = sbr.rel (%p248_p2) target bundleno = 831 (0x33f), region = 48 }
   0xb   : > { %s1982_s25 = smov (!%p284_p3, %s1291_s25), 1  ;;  %v1303_v28 = vld [vmem:[%s1974_s1] sm:$0xf]  ;;  %v1594_v29 = vld [vmem:[%s1974_s1 + $0x18] sm:$0xf0]  ;;  %vm818_vm0 = vcmask 785408  }
   0xc   : > { %s1669_s26 = smul.u32 432, %s1982_s25  ;;  %v1591_v30 = vld [vmem:[%s1974_s1 + $0x4] sm:$0xf]  ;;  %v1305_v35 = vld [vmem:[%s1974_s1 + $0x1c] sm:$0xf0]  ;;  %v1304_v42 = vor.u32 %v1594_v29, %v1303_v28  ;;  %vm980_vm1 = vcmask 261120  }
   0xd   : > { %v1311_v36 = vld [vmem:[%s1974_s1 + $0x8] sm:$0xf]  ;;  %v1595_v37 = vld [vmem:[%s1974_s1 + $0x20] sm:$0xf0]  ;;  %v1592_v38 = vld [vmem:[%s1974_s1 + $0xc] sm:$0xf]  ;;  %v1308_v43 = vor.u32 %v1591_v30, %v1305_v35 }
   0xe   : > { %s1749_s29 = scalar_lea.vmem %s1973_s0, %s1669_s26  ;;  %v1313_v39 = vld [vmem:[%s1974_s1 + $0x24] sm:$0xf0]  ;;  %v1312_v44 = vor.u32 %v1595_v37, %v1311_v36  ;;  %v1331_v55 = vld [vmem:[%s1974_s1 + $0x38] sm:$0xf]  ;;  %v1601_v56 = vld [vmem:[%s1974_s1 + $0x50] sm:$0xf0] }
   0xf   : > { %v1612_v0 = vld [vmem:[%s1749_s29 + $0x38] sm:$0xff]  ;;  %v1611_v4 = vld [vmem:[%s1749_s29 + $0x30] sm:$0xff]  ;;  %v1610_v8 = vld [vmem:[%s1749_s29 + $0x28] sm:$0xff]  ;;  %v1316_v45 = vor.u32 %v1592_v38, %v1313_v39  ;;  %vm1069_vm2 = vcmask 130048  }
  0x10   : > { %v1620_v1 = vld [vmem:[%s1749_s29 + $0x78] sm:$0xff]  ;;  %825 = vmatpush.bf16.msra.mxu0 %v1612_v0  ;;  %v1619_v5 = vld [vmem:[%s1749_s29 + $0x70] sm:$0xff]  ;;  %v1618_v9 = vld [vmem:[%s1749_s29 + $0x68] sm:$0xff] }
  0x11   : > { %v1628_v2 = vld [vmem:[%s1749_s29 + $0xb8] sm:$0xff]  ;;  %844 = vmatpush.bf16.msra.mxu1 %v1620_v1  ;;  %v1627_v6 = vld [vmem:[%s1749_s29 + $0xb0] sm:$0xff]  ;;  %v1626_v10 = vld [vmem:[%s1749_s29 + $0xa8] sm:$0xff] }
  0x12   : > { %v1636_v3 = vld [vmem:[%s1749_s29 + $0xf8] sm:$0xff]  ;;  %863 = vmatpush.bf16.msra.mxu2 %v1628_v2  ;;  %v1635_v7 = vld [vmem:[%s1749_s29 + $0xf0] sm:$0xff]  ;;  %v1634_v11 = vld [vmem:[%s1749_s29 + $0xe8] sm:$0xff]  ;;  %v1332_v2 = vor.u32 %v1601_v56, %v1331_v55 }
  0x13   : > { %882 = vmatpush.bf16.msra.mxu3 %v1636_v3  ;;  %v1609_v12 = vld [vmem:[%s1749_s29 + $0x20] sm:$0xff]  ;;  %v1608_v16 = vld [vmem:[%s1749_s29 + $0x18] sm:$0xff]  ;;  %v1607_v20 = vld [vmem:[%s1749_s29 + $0x10] sm:$0xff] }
  0x14   : > { %826 = vmatpush.bf16.msra.mxu0 %v1611_v4  ;;  %v1617_v13 = vld [vmem:[%s1749_s29 + $0x60] sm:$0xff]  ;;  %v1616_v17 = vld [vmem:[%s1749_s29 + $0x58] sm:$0xff]  ;;  %v1615_v21 = vld [vmem:[%s1749_s29 + $0x50] sm:$0xff] }
  0x15   : > { %845 = vmatpush.bf16.msra.mxu1 %v1619_v5  ;;  %v1625_v14 = vld [vmem:[%s1749_s29 + $0xa0] sm:$0xff]  ;;  %v1624_v18 = vld [vmem:[%s1749_s29 + $0x98] sm:$0xff]  ;;  %v1623_v22 = vld [vmem:[%s1749_s29 + $0x90] sm:$0xff] }
  0x16   : > { %864 = vmatpush.bf16.msra.mxu2 %v1627_v6  ;;  %v1633_v15 = vld [vmem:[%s1749_s29 + $0xe0] sm:$0xff]  ;;  %v1632_v19 = vld [vmem:[%s1749_s29 + $0xd8] sm:$0xff]  ;;  %v1631_v23 = vld [vmem:[%s1749_s29 + $0xd0] sm:$0xff] }
  0x17   : > { %883 = vmatpush.bf16.msra.mxu3 %v1635_v7  ;;  %v1606_v24 = vld [vmem:[%s1749_s29 + $0x8] sm:$0xff]  ;;  %v1605_v31 = vld [vmem:[%s1749_s29] sm:$0xff]  ;;  %v1644_v40 = vld [vmem:[%s1749_s29 + $0x138] sm:$0xff] }
  0x18   : > { %827 = vmatpush.bf16.msra.mxu0 %v1610_v8  ;;  %v1614_v25 = vld [vmem:[%s1749_s29 + $0x48] sm:$0xff]  ;;  %v1613_v32 = vld [vmem:[%s1749_s29 + $0x40] sm:$0xff]  ;;  %v1652_v41 = vld [vmem:[%s1749_s29 + $0x178] sm:$0xff] }
  0x19   : > { %846 = vmatpush.bf16.msra.mxu1 %v1618_v9  ;;  %v1622_v26 = vld [vmem:[%s1749_s29 + $0x88] sm:$0xff]  ;;  %v1621_v33 = vld [vmem:[%s1749_s29 + $0x80] sm:$0xff]  ;;  %v1643_v47 = vld [vmem:[%s1749_s29 + $0x130] sm:$0xff] }
  0x1a   : > { %865 = vmatpush.bf16.msra.mxu2 %v1626_v10  ;;  %v1630_v27 = vld [vmem:[%s1749_s29 + $0xc8] sm:$0xff]  ;;  %v1629_v34 = vld [vmem:[%s1749_s29 + $0xc0] sm:$0xff]  ;;  %v1651_v48 = vld [vmem:[%s1749_s29 + $0x170] sm:$0xff] }
  0x1b   : > { %884 = vmatpush.bf16.msra.mxu3 %v1634_v11  ;;  %v1658_v46 = vld [vmem:[%s1749_s29 + $0x1a8] sm:$0xff]  ;;  %v1657_v49 = vld [vmem:[%s1749_s29 + $0x1a0] sm:$0xff]  ;;  %v1656_v52 = vld [vmem:[%s1749_s29 + $0x198] sm:$0xff] }
  0x1c   : > { %828 = vmatpush.bf16.msra.mxu0 %v1609_v12  ;;  %v1642_v50 = vld [vmem:[%s1749_s29 + $0x128] sm:$0xff]  ;;  %v1641_v53 = vld [vmem:[%s1749_s29 + $0x120] sm:$0xff]  ;;  %v1598_v57 = vld [vmem:[%s1974_s1 + $0x3c] sm:$0xf] }
  0x1d   : > { %847 = vmatpush.bf16.msra.mxu1 %v1617_v13  ;;  %v1650_v51 = vld [vmem:[%s1749_s29 + $0x168] sm:$0xff]  ;;  %v1649_v54 = vld [vmem:[%s1749_s29 + $0x160] sm:$0xff]  ;;  %v1333_v58 = vld [vmem:[%s1974_s1 + $0x54] sm:$0xf0] }
  0x1e   : > { %866 = vmatpush.bf16.msra.mxu2 %v1625_v14  ;;  %v1339_v59 = vld [vmem:[%s1974_s1 + $0x40] sm:$0xf]  ;;  %v1602_v60 = vld [vmem:[%s1974_s1 + $0x58] sm:$0xf0]  ;;  %v1599_v61 = vld [vmem:[%s1974_s1 + $0x44] sm:$0xf]  ;;  %v1336_v3 = vor.u32 %v1598_v57, %v1333_v58 }
  0x1f   : > { %885 = vmatpush.bf16.msra.mxu3 %v1633_v15  ;;  %v1341_v62 = vld [vmem:[%s1974_s1 + $0x5c] sm:$0xf0]  ;;  %v1655_v63 = vld [vmem:[%s1749_s29 + $0x190] sm:$0xff]  ;;  %v1640_v0 = vld [vmem:[%s1749_s29 + $0x118] sm:$0xff]  ;;  %v1340_v4 = vor.u32 %v1602_v60, %v1339_v59 }
  0x20   : > { %829 = vmatpush.bf16.msra.mxu0 %v1608_v16  ;;  %v1648_v1 = vld [vmem:[%s1749_s29 + $0x158] sm:$0xff]  ;;  %v1344_v5 = vor.u32 %v1599_v61, %v1341_v62  ;;  %v1654_v6 = vld [vmem:[%s1749_s29 + $0x188] sm:$0xff]  ;;  %v1639_v7 = vld [vmem:[%s1749_s29 + $0x110] sm:$0xff] }
  0x21   : > { %848 = vmatpush.bf16.msra.mxu1 %v1616_v17  ;;  %v1647_v8 = vld [vmem:[%s1749_s29 + $0x150] sm:$0xff]  ;;  %v1653_v9 = vld [vmem:[%s1749_s29 + $0x180] sm:$0xff]  ;;  %v1638_v10 = vld [vmem:[%s1749_s29 + $0x108] sm:$0xff] }
  0x22   : > { %867 = vmatpush.bf16.msra.mxu2 %v1624_v18  ;;  %v1646_v11 = vld [vmem:[%s1749_s29 + $0x148] sm:$0xff]  ;;  %v1637_v12 = vld [vmem:[%s1749_s29 + $0x100] sm:$0xff]  ;;  %v1319_v14 = vld [vmem:[%s1974_s1 + $0x10] sm:$0xf] }
  0x23   : > { %886 = vmatpush.bf16.msra.mxu3 %v1632_v19  ;;  %v1645_v13 = vld [vmem:[%s1749_s29 + $0x140] sm:$0xff]  ;;  %v1596_v15 = vld [vmem:[%s1974_s1 + $0x28] sm:$0xf0]  ;;  %v1327_v16 = vld [vmem:[%s1974_s1 + $0x18] sm:$0xf]  ;;  %s1589_s29 = sshll.u32 %s1982_s25, 5 }
  0x24   : > { %830 = vmatpush.bf16.msra.mxu0 %v1607_v20  ;;  %v1593_v17 = vld [vmem:[%s1974_s1 + $0x14] sm:$0xf]  ;;  %v1321_v18 = vld [vmem:[%s1974_s1 + $0x2c] sm:$0xf0]  ;;  %v1600_v20 = vld [vmem:[%s1974_s1 + $0x4c] sm:$0xf]  ;;  %s293_s11 = scalar_lea.vmem %s1979_s6, %s1589_s29  ;;  %s298_s14 = scalar_lea.vmem %s1980_s7, %s1589_s29 }
  0x25   : > { %849 = vmatpush.bf16.msra.mxu1 %v1615_v21  ;;  %v1597_v19 = vld [vmem:[%s1974_s1 + $0x30] sm:$0xf0]  ;;  %v1349_v21 = vld [vmem:[%s1974_s1 + $0x64] sm:$0xf0]  ;;  %v1355_v28 = vld [vmem:[%s1974_s1 + $0x50] sm:$0xf] }
  0x26   : > { %868 = vmatpush.bf16.msra.mxu2 %v1623_v22  ;;  %v1320_v22 = vor.u32 %v1596_v15, %v1319_v14  ;;  %v1604_v29 = vld [vmem:[%s1974_s1 + $0x68] sm:$0xf0] }
  0x27   : > { %887 = vmatpush.bf16.msra.mxu3 %v1631_v23  ;;  %v1324_v23 = vor.u32 %v1593_v17, %v1321_v18 }
  0x28   : > { %831 = vmatpush.bf16.msra.mxu0 %v1606_v24  ;;  %v1328_v24 = vor.u32 %v1597_v19, %v1327_v16 }
  0x29   : > { %850 = vmatpush.bf16.msra.mxu1 %v1614_v25  ;;  %v1352_v25 = vor.u32 %v1600_v20, %v1349_v21 }
  0x2a   : > { %869 = vmatpush.bf16.msra.mxu2 %v1622_v26  ;;  %v1347_v26 = vld [vmem:[%s1974_s1 + $0x48] sm:$0xf] }
  0x2b   : > { %888 = vmatpush.bf16.msra.mxu3 %v1630_v27  ;;  %v1603_v27 = vld [vmem:[%s1974_s1 + $0x60] sm:$0xf0] }
  0x2c   : > { %832 = vmatpush.bf16.msra.mxu0 %v1605_v31  ;;  %v1348_v30 = vor.u32 %v1603_v27, %v1347_v26  ;;  %v1356_v31 = vor.u32 %v1604_v29, %v1355_v28  ;;  %v978_v29 = vld [vmem:[%s1977_s4] sm:$0xff] }
  0x2d   : > { %851 = vmatpush.bf16.msra.mxu1 %v1613_v32 }
  0x2e   : > { %870 = vmatpush.bf16.msra.mxu2 %v1621_v33 }
  0x2f   : > { %889 = vmatpush.bf16.msra.mxu3 %v1629_v34  ;;  %833 = vmatmul.bf16.vlgmr.msra.gmra.mxu0 %v1304_v42 }
  0x30   : > { %901 = vmatpush.bf16.msrb.mxu0 %v1644_v40  ;;  %852 = vmatmul.bf16.vlgmr.msra.gmra.mxu1 %v1308_v43 }
  0x31   : > { %920 = vmatpush.bf16.msrb.mxu1 %v1652_v41  ;;  %871 = vmatmul.bf16.vlgmr.msra.gmra.mxu2 %v1312_v44 }
  0x32   : > { %890 = vmatmul.bf16.vlgmr.msra.gmra.mxu3 %v1316_v45  ;;  %941 = vmatpush.bf16.msrb.mxu2 %v1658_v46 }
  0x33   : > { %1659 = vmatpush.bf16.msrb.mxu3 %v1652_v41 }
  0x34   : > { %902 = vmatpush.bf16.msrb.mxu0 %v1643_v47 }
  0x35   : > { %921 = vmatpush.bf16.msrb.mxu1 %v1651_v48 }
  0x36   : > { %942 = vmatpush.bf16.msrb.mxu2 %v1657_v49 }
  0x37   : > { %1660 = vmatpush.bf16.msrb.mxu3 %v1651_v48 }
  0x38   : > { %903 = vmatpush.bf16.msrb.mxu0 %v1642_v50 }
  0x39   : > { %922 = vmatpush.bf16.msrb.mxu1 %v1650_v51 }
  0x3a   : > { %943 = vmatpush.bf16.msrb.mxu2 %v1656_v52 }
  0x3b   : > { %1661 = vmatpush.bf16.msrb.mxu3 %v1650_v51 }
  0x3c   : > { %904 = vmatpush.bf16.msrb.mxu0 %v1641_v53 }
  0x3d   : > { %923 = vmatpush.bf16.msrb.mxu1 %v1649_v54 }
  0x3e   : > { %944 = vmatpush.bf16.msrb.mxu2 %v1655_v63 }
  0x3f   : > { %1662 = vmatpush.bf16.msrb.mxu3 %v1649_v54  ;;  %838 = vmatmul.bf16.gmra.mxu0 %v1332_v2 }
  0x40   : > { %905 = vmatpush.bf16.msrb.mxu0 %v1640_v0  ;;  %857 = vmatmul.bf16.gmra.mxu1 %v1336_v3 }
  0x41   : > { %924 = vmatpush.bf16.msrb.mxu1 %v1648_v1  ;;  %876 = vmatmul.bf16.gmra.mxu2 %v1340_v4 }
  0x42   : > { %895 = vmatmul.bf16.gmra.mxu3 %v1344_v5  ;;  %945 = vmatpush.bf16.msrb.mxu2 %v1654_v6 }
  0x43   : > { %1663 = vmatpush.bf16.msrb.mxu3 %v1648_v1 }
  0x44   : > { %906 = vmatpush.bf16.msrb.mxu0 %v1639_v7 }
  0x45   : > { %925 = vmatpush.bf16.msrb.mxu1 %v1647_v8 }
  0x46   : > { %946 = vmatpush.bf16.msrb.mxu2 %v1653_v9 }
  0x47   : > { %1664 = vmatpush.bf16.msrb.mxu3 %v1647_v8 }
  0x48   : > { %907 = vmatpush.bf16.msrb.mxu0 %v1638_v10 }
  0x49   : > { %926 = vmatpush.bf16.msrb.mxu1 %v1646_v11 }
  0x4b   : > { %1665 = vmatpush.bf16.msrb.mxu3 %v1646_v11 }
  0x4c   : > { %908 = vmatpush.bf16.msrb.mxu0 %v1637_v12 }
  0x4d   : > { %927 = vmatpush.bf16.msrb.mxu1 %v1645_v13 }
  0x4f   : > { %1666 = vmatpush.bf16.msrb.mxu3 %v1645_v13  ;;  %909 = vmatmul.bf16.vlgmr.msrb.gmra.mxu0 %v1320_v22 }
  0x50   : > { %928 = vmatmul.bf16.vlgmr.msrb.gmra.mxu1 %v1324_v23 }
  0x51   : > { %1573 = vmatmul.msk.bf16.vlgmr.msrb.gmra.mxu2 %vm818_vm0, %v1328_v24 }
  0x52   : > { %933 = vmatmul.bf16.vlgmr.msrb.gmra.mxu3 %v1352_v25 }
  0x5f   : > { %914 = vmatmul.bf16.gmra.mxu0 %v1348_v30 }
  0x61   : > { %1574 = vmatmul.msk.bf16.gmra.mxu2 %vm818_vm0, %v1356_v31 }
  0xac   : > { %v834_v32 = vpop.f32.mrf.mxu0 }
  0xad   : > { %v853_v33 = vpop.f32.mrf.mxu1 }
  0xae   : > { %v854_v54 = vadd.f32 %v853_v33, %v834_v32  ;;  %v979_v32 = vld [vmem:[%s1977_s4 + $0x8] sm:$0xff] }
  0xb4   : > { %v872_v34 = vpop.f32.mrf.mxu2  ;;  %v836_v35 = vpop.f32.mrf.mxu0 }
  0xb5   : > { %v855_v36 = vpop.f32.mrf.mxu1  ;;  %v891_v37 = vpop.f32.mrf.mxu3  ;;  %v873_v58 = vadd.f32 %v872_v34, %v854_v54 }
  0xb6   : > { %v856_v49 = vadd.f32 %v855_v36, %v836_v35 }
  0xb7   : > { %v892_v61 = vadd.f32 %v891_v37, %v873_v58 }
  0xbc   : > { %v874_v38 = vpop.f32.mrf.mxu2  ;;  %v839_v39 = vpop.f32.mrf.mxu0 }
  0xbd   : > { %v858_v40 = vpop.f32.mrf.mxu1  ;;  %v893_v41 = vpop.f32.mrf.mxu3  ;;  %v875_v50 = vadd.f32 %v874_v38, %v856_v49 }
  0xbe   : > { %v859_v6 = vadd.f32 %v858_v40, %v839_v39 }
  0xbf   : > { %v894_v52 = vadd.f32 %v893_v41, %v875_v50  ;;  %v1066_v50 = vld [vmem:[%s1978_s5 + $0x8] sm:$0xff] }
  0xc4   : > { %v877_v42 = vpop.f32.mrf.mxu2  ;;  %v841_v43 = vpop.f32.mrf.mxu0 }
  0xc5   : > { %v860_v44 = vpop.f32.mrf.mxu1  ;;  %v896_v47 = vpop.f32.mrf.mxu3  ;;  %v878_v10 = vadd.f32 %v877_v42, %v859_v6  ;;  %v1140_v6 = vld [vmem:[%s1975_s2] sm:$0xff] }
  0xc6   : > { %v861_v0 = vadd.f32 %v860_v44, %v841_v43  ;;  %v1065_v43 = vld [vmem:[%s1978_s5] sm:$0xff] }
  0xc7   : > { %v897_v13 = vadd.f32 %v896_v47, %v878_v10 }
  0xcc   : > { %v879_v45 = vpop.f32.mrf.mxu2  ;;  %v910_v46 = vpop.f32.mrf.mxu0 }
  0xcd   : > { %v929_v48 = vpop.f32.mrf.mxu1  ;;  %v898_v56 = vpop.f32.mrf.mxu3  ;;  %v911_v1 = vadd.f32 %v910_v46, %v892_v61  ;;  %v880_v3 = vadd.f32 %v879_v45, %v861_v0 }
  0xcf   : > { %v930_v4 = vadd.f32 %v929_v48, %v911_v1  ;;  %v899_v7 = vadd.f32 %v898_v56, %v880_v3  ;;  %v1068_v56 = vld [vmem:[%s1978_s5 + $0x18] sm:$0xff] }
  0xd4   : > { %v948_v51 = vpop.f32.mrf.mxu2  ;;  %v912_v53 = vpop.f32.mrf.mxu0 }
  0xd5   : > { %v913_v55 = vadd.f32 %v912_v53, %v894_v52  ;;  %v931_v57 = vpop.f32.mrf.mxu1  ;;  %v934_v2 = vpop.f32.mrf.mxu3  ;;  %v1892_v8 = vadd.f32 %v948_v51, %v930_v4  ;;  %v1067_v51 = vld [vmem:[%s1978_s5 + $0x10] sm:$0xff] }
  0xd7   : > { %v932_v59 = vadd.f32 %v931_v57, %v913_v55  ;;  %v966_v18 = vmul.f32 %v1892_v8, %v1892_v8 }
  0xdc   : > { %v950_v60 = vpop.f32.mrf.mxu2  ;;  %v915_v63 = vpop.f32.mrf.mxu0 }
  0xdd   : > { %v1889_v62 = vadd.f32 %v950_v60, %v932_v59  ;;  %v936_v12 = vpop.f32.mrf.mxu3  ;;  %v916_v16 = vadd.f32 %v915_v63, %v897_v13  ;;  %v1141_v13 = vld [vmem:[%s1975_s2 + $0x8] sm:$0xff] }
  0xdf   : > { %960 = vadd.xlane.f32.xlu1 %v1889_v62  ;;  %v935_v20 = vadd.f32 %v934_v2, %v916_v16  ;;  %v967_v23 = vmul.f32 %v1889_v62, %v1889_v62 }
  0xe4   : > { %v953_v5 = vpop.f32.mrf.mxu2  ;;  %v917_v9 = vpop.f32.mrf.mxu0 }
  0xe5   : > { %v918_v11 = vadd.f32 %v917_v9, %v899_v7  ;;  %v1902_v21 = vadd.f32 %v953_v5, %v935_v20  ;;  %v1694_v5 = vmov 0  }
  0xe6   : > { %1679 = vset.pattern.permute.xlu2 %v1694_v5  ;;  %1680 = vset.pattern.permute.xlu0 %v1694_v5 }
  0xe7   : > { %958 = vadd.xlane.f32.xlu1 %v1892_v8  ;;  %v937_v14 = vadd.f32 %v936_v12, %v918_v11  ;;  %v968_v22 = vmul.f32 %v1902_v21, %v1902_v21  ;;  %v1148_v12 = vld [vmem:[%s1976_s3] sm:$0xff] }
  0xe8   : > { %1681 = vset.pattern.permute.xlu1 %v1694_v5 }
  0xec   : > { %v955_v15 = vpop.f32.mrf.mxu2 }
  0xed   : > { %v1895_v17 = vadd.f32 %v955_v15, %v937_v14 }
  0xef   : > { %970 = vadd.xlane.f32.xlu1 %v966_v18  ;;  %964 = vadd.xlane.f32.xlu0 %v1895_v17  ;;  %v969_v19 = vmul.f32 %v1895_v17, %v1895_v17 }
  0xf1   : > { %976 = vadd.xlane.f32.xlu2 %v969_v19  ;;  %v1149_v19 = vld [vmem:[%s1976_s3 + $0x8] sm:$0xff] }
  0xf7   : > { %962 = vadd.xlane.f32.xlu0 %v1902_v21 }
  0xf9   : > { %974 = vadd.xlane.f32.xlu2 %v968_v22 }
  0xff   : > { %972 = vadd.xlane.f32.xlu0 %v967_v23 }
 0x152   : > { %v961_v24 = vpop.xlane.xlu1 %960 }
 0x15a   : > { %v959_v28 = vpop.xlane.xlu1 %958 }
 0x162   : > { %v965_v25 = vpop.xlane.xlu0 %964  ;;  %v971_v33 = vpop.xlane.xlu1 %970 }
 0x163   : > { %999 = vmatpush.msra.mxu3 %v965_v25  ;;  %v1142_v25 = vld [vmem:[%s1975_s2 + $0x10] sm:$0xff] }
 0x164   : > { %v977_v26 = vpop.xlane.xlu2 %976 }
 0x16a   : > { %v963_v27 = vpop.xlane.xlu0 %962 }
 0x16b   : > { %1000 = vmatpush.msra.mxu3 %v963_v27  ;;  %v1143_v27 = vld [vmem:[%s1975_s2 + $0x18] sm:$0xff] }
 0x16c   : > { %v975_v30 = vpop.xlane.xlu2 %974 }
 0x16d   : > { %1001 = vmatpush.msra.mxu3 %v961_v24 }
 0x16f   : > { %1002 = vmatpush.msra.mxu3 %v959_v28 }
 0x170   : > { %1575 = vmatmul.msk.f32.vlgmr.msra.gmra.mxu3 %vm980_vm1, %v978_v29 }
 0x171   : > { %1024 = vmatpush.msrb.mxu3 %v977_v26 }
 0x172   : > { %v973_v31 = vpop.xlane.xlu0 %972 }
 0x173   : > { %1025 = vmatpush.msrb.mxu3 %v975_v30 }
 0x175   : > { %1026 = vmatpush.msrb.mxu3 %v973_v31  ;;  %v1151_v31 = vld [vmem:[%s1976_s3 + $0x18] sm:$0xff] }
 0x177   : > { %1027 = vmatpush.msrb.mxu3 %v971_v33 }
 0x178   : > { %1576 = vmatmul.msk.f32.gmra.mxu3 %vm980_vm1, %v979_v32 }
 0x180   : > { %1577 = vmatmul.msk.f32.vlgmr.msrb.gmra.mxu3 %vm980_vm1, %v978_v29 }
 0x188   : > { %1578 = vmatmul.msk.f32.gmra.mxu3 %vm980_vm1, %v979_v32 }
 0x1f3   : > { %v1004_v34 = vpop.f32.mrf.mxu3 }
 0x1f4   : > { %v1010_v37 = vmul.f32 0.00390625, %v1004_v34 }
 0x1f6   : > { %v1037_v40 = vmul.f32 %v1010_v37, %v1010_v37 }
 0x1fb   : > { %v1007_v35 = vpop.f32.mrf.mxu3 }
 0x1fc   : > { %v1011_v36 = vmul.f32 0.00390625, %v1007_v35  ;;  %v1150_v35 = vld [vmem:[%s1976_s3 + $0x10] sm:$0xff] }
 0x1fe   : > { %1096 = vmatpush.msra.mxu0 %v1011_v36  ;;  %1667 = vmatpush.msra.mxu2 %v1011_v36  ;;  %v1038_v47 = vmul.f32 %v1011_v36, %v1011_v36 }
 0x200   : > { %1097 = vmatpush.msra.mxu0 %v1010_v37  ;;  %1668 = vmatpush.msra.mxu2 %v1010_v37 }
 0x201   : > { %1579 = vmatmul.msk.f32.vlgmr.msra.gmra.mxu0 %vm1069_vm2, %v1065_v43  ;;  %1581 = vmatmul.msk.f32.vlgmr.msra.gmra.mxu2 %vm1069_vm2, %v1067_v51 }
 0x203   : > { %v1029_v38 = vpop.f32.mrf.mxu3 }
 0x204   : > { %v1035_v39 = vmul.f32 0.00390625, %v1029_v38 }
 0x206   : > { %v1039_v41 = vsub.f32 %v1035_v39, %v1037_v40  ;;  %v1208_v39 = vld [vmem:[%s293_s11] sm:$0xff] }
 0x208   : > { %v1041_v42 = vmax.f32 %v1039_v41, 0.0 }
 0x209   : > { %1580 = vmatmul.msk.f32.gmra.mxu0 %vm1069_vm2, %v1066_v50  ;;  %1582 = vmatmul.msk.f32.gmra.mxu2 %vm1069_vm2, %v1068_v56 }
 0x20a   : > { %v1043_v44 = vadd.f32 1e-05, %v1041_v42 }
 0x20b   : > { %v1032_v45 = vpop.f32.mrf.mxu3 }
 0x20c   : > { %1682 = vrsqrt.f32 %v1043_v44  ;;  %v1036_v46 = vmul.f32 0.00390625, %v1032_v45  ;;  %vm1051_vm7 = vweird.f32 %v1043_v44 }
 0x20e   : > { %v1040_v48 = vsub.f32 %v1036_v46, %v1038_v47  ;;  %v1209_v47 = vld [vmem:[%s293_s11 + $0x8] sm:$0xff] }
 0x210   : > { %v1042_v49 = vmax.f32 %v1040_v48, 0.0 }
 0x212   : > { %v1683_v52 = vpop.eup %1682  ;;  %v1044_v53 = vadd.f32 1e-05, %v1042_v49 }
 0x213   : > { %v1046_v54 = vmul.f32 %v1683_v52, %v1043_v44  ;;  %vm1052_vm5 = vweird.f32 %v1683_v52 }
 0x214   : > { %1684 = vrsqrt.f32 %v1044_v53  ;;  %vm1061_vm4 = vweird.f32 %v1044_v53  ;;  %vm1053_vm8 = vmor %vm1051_vm7, %vm1052_vm5 }
 0x215   : > { %v1047_v55 = vmul.f32 %v1683_v52, %v1046_v54  ;;  %v1210_v54 = vld [vmem:[%s293_s11 + $0x10] sm:$0xff] }
 0x217   : > { %v1048_v59 = vmul.f32 0.5, %v1047_v55 }
 0x219   : > { %v1049_v63 = vsub.f32 1.5, %v1048_v59  ;;  %v1211_v59 = vld [vmem:[%s293_s11 + $0x18] sm:$0xff] }
 0x21a   : > { %v1685_v57 = vpop.eup %1684 }
 0x21b   : > { %v1056_v58 = vmul.f32 %v1685_v57, %v1044_v53  ;;  %vm1062_vm3 = vweird.f32 %v1685_v57  ;;  %v1050_v2 = vmul.f32 %v1683_v52, %v1049_v63 }
 0x21c   : > { %vm1063_vm6 = vmor %vm1061_vm4, %vm1062_vm3 }
 0x21d   : > { %v1057_v60 = vmul.f32 %v1685_v57, %v1056_v58  ;;  %v1054_v4 = vsel %vm1053_vm8, %v1683_v52, %v1050_v2 }
 0x21f   : > { %v1058_v61 = vmul.f32 0.5, %v1057_v60 }
 0x221   : > { %v1059_v0 = vsub.f32 1.5, %v1058_v61 }
 0x223   : > { %v1060_v1 = vmul.f32 %v1685_v57, %v1059_v0 }
 0x225   : > { %v1064_v3 = vsel %vm1063_vm6, %v1685_v57, %v1060_v1 }
 0x226   : > { %1125 = vmatpush.msra.mxu1 %v1064_v3 }
 0x228   : > { %1126 = vmatpush.msra.mxu1 %v1054_v4 }
 0x229   : > { %1583 = vmatmul.msk.f32.vlgmr.msra.gmra.mxu1 %vm1069_vm2, %v1065_v43 }
 0x231   : > { %1584 = vmatmul.msk.f32.gmra.mxu1 %vm1069_vm2, %v1066_v50 }
 0x239   : > { %1585 = vmatmul.msk.f32.gmra.mxu1 %vm1069_vm2, %v1067_v51 }
 0x241   : > { %1586 = vmatmul.msk.f32.gmra.mxu1 %vm1069_vm2, %v1068_v56 }
 0x27e   : > { %v1099_v7 = vpop.f32.mrf.mxu0 }
 0x284   : > { %v1105_v23 = vpop.f32.mrf.mxu2 }
 0x286   : > { %v1102_v15 = vpop.f32.mrf.mxu0 }
 0x28c   : > { %v1108_v29 = vpop.f32.mrf.mxu2 }
 0x2a6   : > { %v1128_v9 = vpop.f32.mrf.mxu1 }
 0x2a7   : > { %v1144_v10 = vmul.f32 %v1140_v6, %v1128_v9 }
 0x2a9   : > { %1162 = vperm.xlu2 %1679, %v1144_v10   ;;  %v1152_v11 = vmul.f32 %v1144_v10, %v1099_v7 }
 0x2ab   : > { %v1156_v16 = vsub.f32 %v1148_v12, %v1152_v11 }
 0x2ae   : > { %v1131_v14 = vpop.f32.mrf.mxu1 }
 0x2af   : > { %v1145_v18 = vmul.f32 %v1141_v13, %v1131_v14 }
 0x2b1   : > { %v1153_v20 = vmul.f32 %v1145_v18, %v1102_v15  ;;  %1186 = vperm.xlu2 %1679, %v1156_v16   ;;  %1167 = vperm.xlu0 %1680, %v1145_v18  }
 0x2b3   : > { %v1157_v22 = vsub.f32 %v1149_v19, %v1153_v20 }
 0x2b5   : > { %1191 = vperm.xlu1 %1681, %v1157_v22  }
 0x2b6   : > { %v1134_v24 = vpop.f32.mrf.mxu1 }
 0x2b7   : > { %v1146_v26 = vmul.f32 %v1142_v25, %v1134_v24 }
 0x2b9   : > { %v1154_v33 = vmul.f32 %v1146_v26, %v1105_v23 }
 0x2bb   : > { %v1158_v36 = vsub.f32 %v1150_v35, %v1154_v33 }
 0x2bd   : > { %1172 = vperm.xlu1 %1681, %v1146_v26  }
 0x2be   : > { %v1137_v28 = vpop.f32.mrf.mxu1 }
 0x2bf   : > { %v1147_v30 = vmul.f32 %v1143_v27, %v1137_v28 }
 0x2c1   : > { %v1155_v32 = vmul.f32 %v1147_v30, %v1108_v29  ;;  %1177 = vperm.xlu2 %1679, %v1147_v30  }
 0x2c3   : > { %v1159_v34 = vsub.f32 %v1151_v31, %v1155_v32 }
 0x2c5   : > { %1201 = vperm.xlu1 %1681, %v1159_v34  }
 0x2c9   : > { %1196 = vperm.xlu2 %1679, %v1158_v36  }
 0x303   : > { %v1163_v37 = vpop.permute.xlu2 %1162 }
 0x304   : > { %v1180_v38 = vmul.f32 %v1163_v37, %v1892_v8 }
 0x30b   : > { %v1187_v40 = vpop.permute.xlu2 %1186 }
 0x30c   : > { %v1204_v41 = vadd.f32 %v1187_v40, %v1180_v38 }
 0x30e   : > { %v1212_v42 = vadd.f32 %v1208_v39, %v1204_v41 }
 0x310   : > { %v1216_v43 = vmax.f32 %v1212_v42, 0.0 }
 0x312   : > { %1220 = vst [vmem:[%s298_s14] sm:$0xff] %v1216_v43 }
 0x31b   : > { %v1178_v46 = vpop.permute.xlu2 %1177 }
 0x31c   : > { %v1183_v57 = vmul.f32 %v1178_v46, %v1895_v17 }
 0x323   : > { %v1168_v44 = vpop.permute.xlu0 %1167  ;;  %v1197_v53 = vpop.permute.xlu2 %1196 }
 0x324   : > { %v1181_v45 = vmul.f32 %v1168_v44, %v1889_v62 }
 0x327   : > { %v1192_v48 = vpop.permute.xlu1 %1191 }
 0x328   : > { %v1205_v49 = vadd.f32 %v1192_v48, %v1181_v45 }
 0x32a   : > { %v1213_v50 = vadd.f32 %v1209_v47, %v1205_v49 }
 0x32c   : > { %v1217_v51 = vmax.f32 %v1213_v50, 0.0 }
 0x32e   : > { %1221 = vst [vmem:[%s298_s14 + $0x8] sm:$0xff] %v1217_v51 }
 0x32f   : > { %v1173_v8 = vpop.permute.xlu1 %1172 }
 0x330   : > { %v1182_v52 = vmul.f32 %v1173_v8, %v1902_v21 }
 0x332   : > { %v1206_v55 = vadd.f32 %v1197_v53, %v1182_v52 }
 0x334   : > { %v1214_v56 = vadd.f32 %v1210_v54, %v1206_v55 }
 0x336   : > { %v1218_v58 = vmax.f32 %v1214_v56, 0.0 }
 0x337   : > { %v1202_v60 = vpop.permute.xlu1 %1201 }
 0x338   : > { %1222 = vst [vmem:[%s298_s14 + $0x10] sm:$0xff] %v1218_v58  ;;  %v1207_v62 = vadd.f32 %v1202_v60, %v1183_v57 }
 0x33a   : > { %v1215_v61 = vadd.f32 %v1211_v59, %v1207_v62 }
 0x33c   : > { %v1219_v63 = vmax.f32 %v1215_v61, 0.0 }
 0x33e   : > { %1223 = vst [vmem:[%s298_s14 + $0x18] sm:$0xff] %v1219_v63 }
 0x33f PF: > { %s17_s24 = sadd.s32 1, %s1692_s24  }
 0x340   : > { %p14_p4 = scmp.ge.s32.totalorder %s17_s24, 4  }
 0x342   :  { %16 = sbr.rel (!%p14_p4) target bundleno = 1 (0x1), region = 81 }

// kernel: _lambda_.16
= control target key start
LH: loop header
LB: loop body
LE: loop exit
PB: predicated region body
PF: predicated region fallthrough
CT: control target
= control target key end

     0   :  { %s1668_s21 = smov 0   ;;  %s1915_s0 = inlined_call_operand.vmem [shape: bf16[2,864,16], index: 0, kind: input, shape index: {}]   ;;  %s1916_s1 = inlined_call_operand.vmem [shape: bf16[32,864], index: 1, kind: input, shape index: {}]   ;;  %s1917_s2 = inlined_call_operand.vmem [shape: f32[32,1], index: 2, kind: input, shape index: {}]   ;;  %s1918_s3 = inlined_call_operand.vmem [shape: f32[32,1], index: 3, kind: input, shape index: {}]   ;;  %s1919_s4 = inlined_call_operand.vmem [shape: f32[16,32], index: 4, kind: input, shape index: {}]   ;;  %s1920_s5 = inlined_call_operand.vmem [shape: f32[32,16], index: 5, kind: input, shape index: {}]   ;;  %s1921_s6 = inlined_call_operand.vmem [shape: f32[2,32,16], index: 6, kind: output, shape index: {}]  }
   0x1 LB: > { %s1232_s22 = sadd.s32 4294967295, %s1630_s21   ;;  %p1236_p0 = scmp.ge.s32.totalorder %s1630_s21, 1  ;;  %s1630_s21 = sphi %s1668_s21, %s16_s21  }
   0x2   : > { %p212_p1 = scmp.lt.s32.totalorder %s1630_s21, 3 }
   0x4   : > { %p213_p2 = pnand %p1236_p0, %p212_p1 }
   0x5   : > { %p242_p3 = scmp.lt.s32.totalorder (!%p213_p2), %s1232_s22, 1 }
   0x6   : > { %216 = sbr.rel (%p213_p2) target bundleno = 830 (0x33e), region = 44 }
   0xb   : > { %s1923_s22 = smov (!%p242_p3, %s1232_s22), 1  ;;  %v1242_v28 = vld [vmem:[%s1916_s1] sm:$0xf]  ;;  %v1532_v29 = vld [vmem:[%s1916_s1 + $0x18] sm:$0xf0]  ;;  %vm771_vm0 = vcmask 785408  }
   0xc   : > { %s1607_s23 = smul.u32 432, %s1923_s22  ;;  %v1529_v30 = vld [vmem:[%s1916_s1 + $0x4] sm:$0xf]  ;;  %v1244_v35 = vld [vmem:[%s1916_s1 + $0x1c] sm:$0xf0]  ;;  %v1243_v42 = vor.u32 %v1532_v29, %v1242_v28  ;;  %vm911_vm1 = vcmask 130048  }
   0xd   : > { %v1250_v36 = vld [vmem:[%s1916_s1 + $0x8] sm:$0xf]  ;;  %v1533_v37 = vld [vmem:[%s1916_s1 + $0x20] sm:$0xf0]  ;;  %v1530_v38 = vld [vmem:[%s1916_s1 + $0xc] sm:$0xf]  ;;  %v1247_v43 = vor.u32 %v1529_v30, %v1244_v35 }
   0xe   : > { %s1682_s26 = scalar_lea.vmem %s1915_s0, %s1607_s23  ;;  %v1252_v39 = vld [vmem:[%s1916_s1 + $0x24] sm:$0xf0]  ;;  %v1251_v44 = vor.u32 %v1533_v37, %v1250_v36  ;;  %v1270_v55 = vld [vmem:[%s1916_s1 + $0x38] sm:$0xf]  ;;  %v1539_v56 = vld [vmem:[%s1916_s1 + $0x50] sm:$0xf0] }
   0xf   : > { %v1550_v0 = vld [vmem:[%s1682_s26 + $0x38] sm:$0xff]  ;;  %v1549_v4 = vld [vmem:[%s1682_s26 + $0x30] sm:$0xff]  ;;  %v1548_v8 = vld [vmem:[%s1682_s26 + $0x28] sm:$0xff]  ;;  %v1255_v45 = vor.u32 %v1530_v38, %v1252_v39  ;;  %vm942_vm2 = vcmask 261120   ;;  %s1528_s24 = sshll.u32 %s1923_s22, 5 }
  0x10   : > { %v1558_v1 = vld [vmem:[%s1682_s26 + $0x78] sm:$0xff]  ;;  %778 = vmatpush.bf16.msra.mxu0 %v1550_v0  ;;  %v1557_v5 = vld [vmem:[%s1682_s26 + $0x70] sm:$0xff]  ;;  %v1556_v9 = vld [vmem:[%s1682_s26 + $0x68] sm:$0xff]  ;;  %s251_s27 = scalar_lea.vmem %s1921_s6, %s1528_s24 }
  0x11   : > { %v1566_v2 = vld [vmem:[%s1682_s26 + $0xb8] sm:$0xff]  ;;  %797 = vmatpush.bf16.msra.mxu1 %v1558_v1  ;;  %v1565_v6 = vld [vmem:[%s1682_s26 + $0xb0] sm:$0xff]  ;;  %v1564_v10 = vld [vmem:[%s1682_s26 + $0xa8] sm:$0xff] }
  0x12   : > { %v1574_v3 = vld [vmem:[%s1682_s26 + $0xf8] sm:$0xff]  ;;  %816 = vmatpush.bf16.msra.mxu2 %v1566_v2  ;;  %v1573_v7 = vld [vmem:[%s1682_s26 + $0xf0] sm:$0xff]  ;;  %v1572_v11 = vld [vmem:[%s1682_s26 + $0xe8] sm:$0xff]  ;;  %v1271_v2 = vor.u32 %v1539_v56, %v1270_v55 }
  0x13   : > { %835 = vmatpush.bf16.msra.mxu3 %v1574_v3  ;;  %v1547_v12 = vld [vmem:[%s1682_s26 + $0x20] sm:$0xff]  ;;  %v1546_v16 = vld [vmem:[%s1682_s26 + $0x18] sm:$0xff]  ;;  %v1545_v20 = vld [vmem:[%s1682_s26 + $0x10] sm:$0xff] }
  0x14   : > { %779 = vmatpush.bf16.msra.mxu0 %v1549_v4  ;;  %v1555_v13 = vld [vmem:[%s1682_s26 + $0x60] sm:$0xff]  ;;  %v1554_v17 = vld [vmem:[%s1682_s26 + $0x58] sm:$0xff]  ;;  %v1553_v21 = vld [vmem:[%s1682_s26 + $0x50] sm:$0xff] }
  0x15   : > { %798 = vmatpush.bf16.msra.mxu1 %v1557_v5  ;;  %v1563_v14 = vld [vmem:[%s1682_s26 + $0xa0] sm:$0xff]  ;;  %v1562_v18 = vld [vmem:[%s1682_s26 + $0x98] sm:$0xff]  ;;  %v1561_v22 = vld [vmem:[%s1682_s26 + $0x90] sm:$0xff] }
  0x16   : > { %817 = vmatpush.bf16.msra.mxu2 %v1565_v6  ;;  %v1571_v15 = vld [vmem:[%s1682_s26 + $0xe0] sm:$0xff]  ;;  %v1570_v19 = vld [vmem:[%s1682_s26 + $0xd8] sm:$0xff]  ;;  %v1569_v23 = vld [vmem:[%s1682_s26 + $0xd0] sm:$0xff] }
  0x17   : > { %836 = vmatpush.bf16.msra.mxu3 %v1573_v7  ;;  %v1544_v24 = vld [vmem:[%s1682_s26 + $0x8] sm:$0xff]  ;;  %v1543_v31 = vld [vmem:[%s1682_s26] sm:$0xff]  ;;  %v1582_v40 = vld [vmem:[%s1682_s26 + $0x138] sm:$0xff] }
  0x18   : > { %780 = vmatpush.bf16.msra.mxu0 %v1548_v8  ;;  %v1552_v25 = vld [vmem:[%s1682_s26 + $0x48] sm:$0xff]  ;;  %v1551_v32 = vld [vmem:[%s1682_s26 + $0x40] sm:$0xff]  ;;  %v1590_v41 = vld [vmem:[%s1682_s26 + $0x178] sm:$0xff] }
  0x19   : > { %799 = vmatpush.bf16.msra.mxu1 %v1556_v9  ;;  %v1560_v26 = vld [vmem:[%s1682_s26 + $0x88] sm:$0xff]  ;;  %v1559_v33 = vld [vmem:[%s1682_s26 + $0x80] sm:$0xff]  ;;  %v1581_v47 = vld [vmem:[%s1682_s26 + $0x130] sm:$0xff] }
  0x1a   : > { %818 = vmatpush.bf16.msra.mxu2 %v1564_v10  ;;  %v1568_v27 = vld [vmem:[%s1682_s26 + $0xc8] sm:$0xff]  ;;  %v1567_v34 = vld [vmem:[%s1682_s26 + $0xc0] sm:$0xff]  ;;  %v1589_v48 = vld [vmem:[%s1682_s26 + $0x170] sm:$0xff] }
  0x1b   : > { %837 = vmatpush.bf16.msra.mxu3 %v1572_v11  ;;  %v1596_v46 = vld [vmem:[%s1682_s26 + $0x1a8] sm:$0xff]  ;;  %v1595_v49 = vld [vmem:[%s1682_s26 + $0x1a0] sm:$0xff]  ;;  %v1594_v52 = vld [vmem:[%s1682_s26 + $0x198] sm:$0xff] }
  0x1c   : > { %781 = vmatpush.bf16.msra.mxu0 %v1547_v12  ;;  %v1580_v50 = vld [vmem:[%s1682_s26 + $0x128] sm:$0xff]  ;;  %v1579_v53 = vld [vmem:[%s1682_s26 + $0x120] sm:$0xff]  ;;  %v1536_v57 = vld [vmem:[%s1916_s1 + $0x3c] sm:$0xf] }
  0x1d   : > { %800 = vmatpush.bf16.msra.mxu1 %v1555_v13  ;;  %v1588_v51 = vld [vmem:[%s1682_s26 + $0x168] sm:$0xff]  ;;  %v1587_v54 = vld [vmem:[%s1682_s26 + $0x160] sm:$0xff]  ;;  %v1272_v58 = vld [vmem:[%s1916_s1 + $0x54] sm:$0xf0] }
  0x1e   : > { %819 = vmatpush.bf16.msra.mxu2 %v1563_v14  ;;  %v1278_v59 = vld [vmem:[%s1916_s1 + $0x40] sm:$0xf]  ;;  %v1540_v60 = vld [vmem:[%s1916_s1 + $0x58] sm:$0xf0]  ;;  %v1537_v61 = vld [vmem:[%s1916_s1 + $0x44] sm:$0xf]  ;;  %v1275_v3 = vor.u32 %v1536_v57, %v1272_v58 }
  0x1f   : > { %838 = vmatpush.bf16.msra.mxu3 %v1571_v15  ;;  %v1280_v62 = vld [vmem:[%s1916_s1 + $0x5c] sm:$0xf0]  ;;  %v1593_v63 = vld [vmem:[%s1682_s26 + $0x190] sm:$0xff]  ;;  %v1578_v0 = vld [vmem:[%s1682_s26 + $0x118] sm:$0xff]  ;;  %v1279_v4 = vor.u32 %v1540_v60, %v1278_v59 }
  0x20   : > { %782 = vmatpush.bf16.msra.mxu0 %v1546_v16  ;;  %v1586_v1 = vld [vmem:[%s1682_s26 + $0x158] sm:$0xff]  ;;  %v1283_v5 = vor.u32 %v1537_v61, %v1280_v62  ;;  %v1592_v6 = vld [vmem:[%s1682_s26 + $0x188] sm:$0xff]  ;;  %v1577_v7 = vld [vmem:[%s1682_s26 + $0x110] sm:$0xff] }
  0x21   : > { %801 = vmatpush.bf16.msra.mxu1 %v1554_v17  ;;  %v1585_v8 = vld [vmem:[%s1682_s26 + $0x150] sm:$0xff]  ;;  %v1591_v9 = vld [vmem:[%s1682_s26 + $0x180] sm:$0xff]  ;;  %v1576_v10 = vld [vmem:[%s1682_s26 + $0x108] sm:$0xff] }
  0x22   : > { %820 = vmatpush.bf16.msra.mxu2 %v1562_v18  ;;  %v1584_v11 = vld [vmem:[%s1682_s26 + $0x148] sm:$0xff]  ;;  %v1575_v12 = vld [vmem:[%s1682_s26 + $0x100] sm:$0xff]  ;;  %v1258_v14 = vld [vmem:[%s1916_s1 + $0x10] sm:$0xf] }
  0x23   : > { %839 = vmatpush.bf16.msra.mxu3 %v1570_v19  ;;  %v1583_v13 = vld [vmem:[%s1682_s26 + $0x140] sm:$0xff]  ;;  %v1534_v15 = vld [vmem:[%s1916_s1 + $0x28] sm:$0xf0]  ;;  %v1266_v16 = vld [vmem:[%s1916_s1 + $0x18] sm:$0xf] }
  0x24   : > { %783 = vmatpush.bf16.msra.mxu0 %v1545_v20  ;;  %v1531_v17 = vld [vmem:[%s1916_s1 + $0x14] sm:$0xf]  ;;  %v1260_v18 = vld [vmem:[%s1916_s1 + $0x2c] sm:$0xf0]  ;;  %v1538_v20 = vld [vmem:[%s1916_s1 + $0x4c] sm:$0xf] }
  0x25   : > { %802 = vmatpush.bf16.msra.mxu1 %v1553_v21  ;;  %v1535_v19 = vld [vmem:[%s1916_s1 + $0x30] sm:$0xf0]  ;;  %v1288_v21 = vld [vmem:[%s1916_s1 + $0x64] sm:$0xf0]  ;;  %v1294_v28 = vld [vmem:[%s1916_s1 + $0x50] sm:$0xf] }
  0x26   : > { %821 = vmatpush.bf16.msra.mxu2 %v1561_v22  ;;  %v1259_v22 = vor.u32 %v1534_v15, %v1258_v14  ;;  %v1542_v29 = vld [vmem:[%s1916_s1 + $0x68] sm:$0xf0] }
  0x27   : > { %840 = vmatpush.bf16.msra.mxu3 %v1569_v23  ;;  %v1263_v23 = vor.u32 %v1531_v17, %v1260_v18 }
  0x28   : > { %784 = vmatpush.bf16.msra.mxu0 %v1544_v24  ;;  %v1267_v24 = vor.u32 %v1535_v19, %v1266_v16 }
  0x29   : > { %803 = vmatpush.bf16.msra.mxu1 %v1552_v25  ;;  %v1291_v25 = vor.u32 %v1538_v20, %v1288_v21 }
  0x2a   : > { %822 = vmatpush.bf16.msra.mxu2 %v1560_v26  ;;  %v1286_v26 = vld [vmem:[%s1916_s1 + $0x48] sm:$0xf] }
  0x2b   : > { %841 = vmatpush.bf16.msra.mxu3 %v1568_v27  ;;  %v1541_v27 = vld [vmem:[%s1916_s1 + $0x60] sm:$0xf0] }
  0x2c   : > { %785 = vmatpush.bf16.msra.mxu0 %v1543_v31  ;;  %v1287_v30 = vor.u32 %v1541_v27, %v1286_v26  ;;  %v1295_v31 = vor.u32 %v1542_v29, %v1294_v28 }
  0x2d   : > { %804 = vmatpush.bf16.msra.mxu1 %v1551_v32 }
  0x2e   : > { %823 = vmatpush.bf16.msra.mxu2 %v1559_v33 }
  0x2f   : > { %842 = vmatpush.bf16.msra.mxu3 %v1567_v34  ;;  %786 = vmatmul.bf16.vlgmr.msra.gmra.mxu0 %v1243_v42 }
  0x30   : > { %854 = vmatpush.bf16.msrb.mxu0 %v1582_v40  ;;  %805 = vmatmul.bf16.vlgmr.msra.gmra.mxu1 %v1247_v43 }
  0x31   : > { %873 = vmatpush.bf16.msrb.mxu1 %v1590_v41  ;;  %824 = vmatmul.bf16.vlgmr.msra.gmra.mxu2 %v1251_v44 }
  0x32   : > { %843 = vmatmul.bf16.vlgmr.msra.gmra.mxu3 %v1255_v45  ;;  %894 = vmatpush.bf16.msrb.mxu2 %v1596_v46 }
  0x33   : > { %1597 = vmatpush.bf16.msrb.mxu3 %v1590_v41 }
  0x34   : > { %855 = vmatpush.bf16.msrb.mxu0 %v1581_v47 }
  0x35   : > { %874 = vmatpush.bf16.msrb.mxu1 %v1589_v48 }
  0x36   : > { %895 = vmatpush.bf16.msrb.mxu2 %v1595_v49 }
  0x37   : > { %1598 = vmatpush.bf16.msrb.mxu3 %v1589_v48 }
  0x38   : > { %856 = vmatpush.bf16.msrb.mxu0 %v1580_v50 }
  0x39   : > { %875 = vmatpush.bf16.msrb.mxu1 %v1588_v51 }
  0x3a   : > { %896 = vmatpush.bf16.msrb.mxu2 %v1594_v52 }
  0x3b   : > { %1599 = vmatpush.bf16.msrb.mxu3 %v1588_v51 }
  0x3c   : > { %857 = vmatpush.bf16.msrb.mxu0 %v1579_v53 }
  0x3d   : > { %876 = vmatpush.bf16.msrb.mxu1 %v1587_v54 }
  0x3e   : > { %897 = vmatpush.bf16.msrb.mxu2 %v1593_v63 }
  0x3f   : > { %1600 = vmatpush.bf16.msrb.mxu3 %v1587_v54  ;;  %791 = vmatmul.bf16.gmra.mxu0 %v1271_v2 }
  0x40   : > { %858 = vmatpush.bf16.msrb.mxu0 %v1578_v0  ;;  %810 = vmatmul.bf16.gmra.mxu1 %v1275_v3 }
  0x41   : > { %877 = vmatpush.bf16.msrb.mxu1 %v1586_v1  ;;  %829 = vmatmul.bf16.gmra.mxu2 %v1279_v4 }
  0x42   : > { %848 = vmatmul.bf16.gmra.mxu3 %v1283_v5  ;;  %898 = vmatpush.bf16.msrb.mxu2 %v1592_v6 }
  0x43   : > { %1601 = vmatpush.bf16.msrb.mxu3 %v1586_v1 }
  0x44   : > { %859 = vmatpush.bf16.msrb.mxu0 %v1577_v7 }
  0x45   : > { %878 = vmatpush.bf16.msrb.mxu1 %v1585_v8 }
  0x46   : > { %899 = vmatpush.bf16.msrb.mxu2 %v1591_v9 }
  0x47   : > { %1602 = vmatpush.bf16.msrb.mxu3 %v1585_v8 }
  0x48   : > { %860 = vmatpush.bf16.msrb.mxu0 %v1576_v10 }
  0x49   : > { %879 = vmatpush.bf16.msrb.mxu1 %v1584_v11 }
  0x4b   : > { %1603 = vmatpush.bf16.msrb.mxu3 %v1584_v11 }
  0x4c   : > { %861 = vmatpush.bf16.msrb.mxu0 %v1575_v12 }
  0x4d   : > { %880 = vmatpush.bf16.msrb.mxu1 %v1583_v13 }
  0x4f   : > { %1604 = vmatpush.bf16.msrb.mxu3 %v1583_v13  ;;  %862 = vmatmul.bf16.vlgmr.msrb.gmra.mxu0 %v1259_v22 }
  0x50   : > { %881 = vmatmul.bf16.vlgmr.msrb.gmra.mxu1 %v1263_v23 }
  0x51   : > { %1512 = vmatmul.msk.bf16.vlgmr.msrb.gmra.mxu2 %vm771_vm0, %v1267_v24 }
  0x52   : > { %886 = vmatmul.bf16.vlgmr.msrb.gmra.mxu3 %v1291_v25 }
  0x5f   : > { %867 = vmatmul.bf16.gmra.mxu0 %v1287_v30 }
  0x61   : > { %1513 = vmatmul.msk.bf16.gmra.mxu2 %vm771_vm0, %v1295_v31 }
  0xac   : > { %v787_v32 = vpop.f32.mrf.mxu0 }
  0xad   : > { %v806_v33 = vpop.f32.mrf.mxu1 }
  0xae   : > { %v807_v52 = vadd.f32 %v806_v33, %v787_v32 }
  0xb4   : > { %v825_v34 = vpop.f32.mrf.mxu2  ;;  %v789_v35 = vpop.f32.mrf.mxu0 }
  0xb5   : > { %v808_v36 = vpop.f32.mrf.mxu1  ;;  %v844_v37 = vpop.f32.mrf.mxu3  ;;  %v826_v55 = vadd.f32 %v825_v34, %v807_v52 }
  0xb6   : > { %v809_v49 = vadd.f32 %v808_v36, %v789_v35 }
  0xb7   : > { %v845_v59 = vadd.f32 %v844_v37, %v826_v55  ;;  %v940_v37 = vld [vmem:[%s1919_s4] sm:$0xff] }
  0xbc   : > { %v827_v38 = vpop.f32.mrf.mxu2  ;;  %v792_v39 = vpop.f32.mrf.mxu0 }
  0xbd   : > { %v811_v40 = vpop.f32.mrf.mxu1  ;;  %v846_v41 = vpop.f32.mrf.mxu3  ;;  %v828_v50 = vadd.f32 %v827_v38, %v809_v49 }
  0xbe   : > { %v812_v6 = vadd.f32 %v811_v40, %v792_v39  ;;  %v941_v40 = vld [vmem:[%s1919_s4 + $0x8] sm:$0xff] }
  0xbf   : > { %v847_v53 = vadd.f32 %v846_v41, %v828_v50 }
  0xc4   : > { %v830_v42 = vpop.f32.mrf.mxu2  ;;  %v794_v43 = vpop.f32.mrf.mxu0 }
  0xc5   : > { %v813_v44 = vpop.f32.mrf.mxu1  ;;  %v849_v47 = vpop.f32.mrf.mxu3  ;;  %v831_v9 = vadd.f32 %v830_v42, %v812_v6 }
  0xc6   : > { %v814_v1 = vadd.f32 %v813_v44, %v794_v43 }
  0xc7   : > { %v850_v14 = vadd.f32 %v849_v47, %v831_v9 }
  0xcc   : > { %v832_v45 = vpop.f32.mrf.mxu2  ;;  %v863_v46 = vpop.f32.mrf.mxu0 }
  0xcd   : > { %v882_v48 = vpop.f32.mrf.mxu1  ;;  %v851_v57 = vpop.f32.mrf.mxu3  ;;  %v864_v62 = vadd.f32 %v863_v46, %v845_v59  ;;  %v833_v4 = vadd.f32 %v832_v45, %v814_v1  ;;  %v1029_v59 = vld [vmem:[%s1920_s5 + $0x10] sm:$0xff]  ;;  %v1030_v1 = vld [vmem:[%s1920_s5 + $0x18] sm:$0xff] }
  0xcf   : > { %v883_v5 = vadd.f32 %v882_v48, %v864_v62  ;;  %v852_v10 = vadd.f32 %v851_v57, %v833_v4 }
  0xd4   : > { %v901_v51 = vpop.f32.mrf.mxu2  ;;  %v865_v54 = vpop.f32.mrf.mxu0 }
  0xd5   : > { %v866_v56 = vadd.f32 %v865_v54, %v847_v53  ;;  %v884_v58 = vpop.f32.mrf.mxu1  ;;  %v887_v3 = vpop.f32.mrf.mxu3  ;;  %v1826_v7 = vadd.f32 %v901_v51, %v883_v5  ;;  %v1027_v51 = vld [vmem:[%s1920_s5] sm:$0xff] }
  0xd7   : > { %v885_v60 = vadd.f32 %v884_v58, %v866_v56  ;;  %v912_v13 = vsel %vm911_vm1, %v1826_v7, 0.0  ;;  %v924_v18 = vmul.f32 %v1826_v7, %v1826_v7  ;;  %v1028_v58 = vld [vmem:[%s1920_s5 + $0x8] sm:$0xff] }
  0xd9   : > { %v928_v22 = vsel %vm911_vm1, %v924_v18, 0.0 }
  0xdc   : > { %v903_v61 = vpop.f32.mrf.mxu2  ;;  %v868_v0 = vpop.f32.mrf.mxu0 }
  0xdd   : > { %v1822_v63 = vadd.f32 %v903_v61, %v885_v60  ;;  %v889_v15 = vpop.f32.mrf.mxu3  ;;  %v869_v16 = vadd.f32 %v868_v0, %v850_v14  ;;  %v1632_v14 = vmov 0  }
  0xde   : > { %1617 = vset.pattern.permute.xlu2 %v1632_v14  ;;  %1618 = vset.pattern.permute.xlu0 %v1632_v14 }
  0xdf   : > { %v915_v2 = vsel %vm911_vm1, %v1822_v63, 0.0  ;;  %v888_v21 = vadd.f32 %v887_v3, %v869_v16  ;;  %v925_v30 = vmul.f32 %v1822_v63, %v1822_v63  ;;  %1619 = vset.pattern.permute.xlu1 %v1632_v14 }
  0xe0   : > { %916 = vadd.xlane.f32.xlu1 %v915_v2 }
  0xe1   : > { %v931_v31 = vsel %vm911_vm1, %v925_v30, 0.0 }
  0xe4   : > { %v906_v8 = vpop.f32.mrf.mxu2  ;;  %v870_v11 = vpop.f32.mrf.mxu0 }
  0xe5   : > { %v871_v12 = vadd.f32 %v870_v11, %v852_v10  ;;  %v1839_v25 = vadd.f32 %v906_v8, %v888_v21  ;;  %v1109_v21 = vld [vmem:[%s1918_s3] sm:$0xff] }
  0xe7   : > { %v890_v17 = vadd.f32 %v889_v15, %v871_v12  ;;  %v926_v27 = vmul.f32 %v1839_v25, %v1839_v25  ;;  %v918_v28 = vsel %vm911_vm1, %v1839_v25, 0.0  ;;  %v1101_v15 = vld [vmem:[%s1917_s2] sm:$0xff] }
  0xe8   : > { %913 = vadd.xlane.f32.xlu1 %v912_v13 }
  0xe9   : > { %v934_v29 = vsel %vm911_vm1, %v926_v27, 0.0 }
  0xec   : > { %v908_v19 = vpop.f32.mrf.mxu2 }
  0xed   : > { %v1832_v20 = vadd.f32 %v908_v19, %v890_v17 }
  0xef   : > { %v921_v23 = vsel %vm911_vm1, %v1832_v20, 0.0  ;;  %v927_v24 = vmul.f32 %v1832_v20, %v1832_v20 }
  0xf0   : > { %929 = vadd.xlane.f32.xlu1 %v928_v22  ;;  %922 = vadd.xlane.f32.xlu0 %v921_v23  ;;  %v1102_v22 = vld [vmem:[%s1917_s2 + $0x8] sm:$0xff] }
  0xf1   : > { %v937_v26 = vsel %vm911_vm1, %v927_v24, 0.0 }
  0xf2   : > { %938 = vadd.xlane.f32.xlu2 %v937_v26 }
  0xf8   : > { %919 = vadd.xlane.f32.xlu0 %v918_v28  ;;  %v1110_v28 = vld [vmem:[%s1918_s3 + $0x8] sm:$0xff] }
  0xfa   : > { %935 = vadd.xlane.f32.xlu2 %v934_v29 }
 0x100   : > { %932 = vadd.xlane.f32.xlu0 %v931_v31 }
 0x153   : > { %v917_v32 = vpop.xlane.xlu1 %916 }
 0x15b   : > { %v914_v36 = vpop.xlane.xlu1 %913 }
 0x163   : > { %v923_v33 = vpop.xlane.xlu0 %922  ;;  %v930_v41 = vpop.xlane.xlu1 %929 }
 0x164   : > { %961 = vmatpush.msra.mxu3 %v923_v33  ;;  %v1103_v33 = vld [vmem:[%s1917_s2 + $0x10] sm:$0xff] }
 0x165   : > { %v939_v34 = vpop.xlane.xlu2 %938 }
 0x16b   : > { %v920_v35 = vpop.xlane.xlu0 %919 }
 0x16c   : > { %962 = vmatpush.msra.mxu3 %v920_v35  ;;  %v1104_v35 = vld [vmem:[%s1917_s2 + $0x18] sm:$0xff] }
 0x16d   : > { %v936_v38 = vpop.xlane.xlu2 %935 }
 0x16e   : > { %963 = vmatpush.msra.mxu3 %v917_v32 }
 0x170   : > { %964 = vmatpush.msra.mxu3 %v914_v36 }
 0x171   : > { %1514 = vmatmul.msk.f32.vlgmr.msra.gmra.mxu3 %vm942_vm2, %v940_v37 }
 0x172   : > { %986 = vmatpush.msrb.mxu3 %v939_v34 }
 0x173   : > { %v933_v39 = vpop.xlane.xlu0 %932 }
 0x174   : > { %987 = vmatpush.msrb.mxu3 %v936_v38 }
 0x176   : > { %988 = vmatpush.msrb.mxu3 %v933_v39  ;;  %v1112_v39 = vld [vmem:[%s1918_s3 + $0x18] sm:$0xff] }
 0x178   : > { %989 = vmatpush.msrb.mxu3 %v930_v41 }
 0x179   : > { %1515 = vmatmul.msk.f32.gmra.mxu3 %vm942_vm2, %v941_v40 }
 0x181   : > { %1516 = vmatmul.msk.f32.vlgmr.msrb.gmra.mxu3 %vm942_vm2, %v940_v37 }
 0x189   : > { %1517 = vmatmul.msk.f32.gmra.mxu3 %vm942_vm2, %v941_v40 }
 0x1f4   : > { %v966_v42 = vpop.f32.mrf.mxu3 }
 0x1f5   : > { %v972_v45 = vmul.f32 0.03125, %v966_v42 }
 0x1f7   : > { %v999_v48 = vmul.f32 %v972_v45, %v972_v45 }
 0x1fc   : > { %v969_v43 = vpop.f32.mrf.mxu3 }
 0x1fd   : > { %v973_v44 = vmul.f32 0.03125, %v969_v43  ;;  %v1111_v43 = vld [vmem:[%s1918_s3 + $0x10] sm:$0xff] }
 0x1ff   : > { %1057 = vmatpush.msra.mxu0 %v973_v44  ;;  %1605 = vmatpush.msra.mxu2 %v973_v44  ;;  %v1000_v55 = vmul.f32 %v973_v44, %v973_v44 }
 0x201   : > { %1058 = vmatpush.msra.mxu0 %v972_v45  ;;  %1606 = vmatpush.msra.mxu2 %v972_v45 }
 0x202   : > { %1518 = vmatmul.msk.f32.vlgmr.msra.gmra.mxu0 %vm911_vm1, %v1027_v51  ;;  %1520 = vmatmul.msk.f32.vlgmr.msra.gmra.mxu2 %vm911_vm1, %v1029_v59 }
 0x204   : > { %v991_v46 = vpop.f32.mrf.mxu3 }
 0x205   : > { %v997_v47 = vmul.f32 0.03125, %v991_v46 }
 0x207   : > { %v1001_v49 = vsub.f32 %v997_v47, %v999_v48 }
 0x209   : > { %v1003_v50 = vmax.f32 %v1001_v49, 0.0 }
 0x20a   : > { %1519 = vmatmul.msk.f32.gmra.mxu0 %vm911_vm1, %v1028_v58  ;;  %1521 = vmatmul.msk.f32.gmra.mxu2 %vm911_vm1, %v1030_v1 }
 0x20b   : > { %v1005_v52 = vadd.f32 1e-05, %v1003_v50 }
 0x20c   : > { %v994_v53 = vpop.f32.mrf.mxu3 }
 0x20d   : > { %1620 = vrsqrt.f32 %v1005_v52  ;;  %v998_v54 = vmul.f32 0.03125, %v994_v53  ;;  %vm1013_vm7 = vweird.f32 %v1005_v52 }
 0x20f   : > { %v1002_v56 = vsub.f32 %v998_v54, %v1000_v55 }
 0x211   : > { %v1004_v57 = vmax.f32 %v1002_v56, 0.0 }
 0x213   : > { %v1621_v60 = vpop.eup %1620  ;;  %v1006_v61 = vadd.f32 1e-05, %v1004_v57 }
 0x214   : > { %v1008_v62 = vmul.f32 %v1621_v60, %v1005_v52  ;;  %vm1014_vm5 = vweird.f32 %v1621_v60 }
 0x215   : > { %1622 = vrsqrt.f32 %v1006_v61  ;;  %vm1023_vm4 = vweird.f32 %v1006_v61  ;;  %vm1015_vm8 = vmor %vm1013_vm7, %vm1014_vm5 }
 0x216   : > { %v1009_v0 = vmul.f32 %v1621_v60, %v1008_v62 }
 0x218   : > { %v1010_v4 = vmul.f32 0.5, %v1009_v0 }
 0x21a   : > { %v1011_v8 = vsub.f32 1.5, %v1010_v4 }
 0x21b   : > { %v1623_v2 = vpop.eup %1622 }
 0x21c   : > { %v1018_v3 = vmul.f32 %v1623_v2, %v1006_v61  ;;  %vm1024_vm3 = vweird.f32 %v1623_v2  ;;  %v1012_v11 = vmul.f32 %v1621_v60, %v1011_v8 }
 0x21d   : > { %vm1025_vm6 = vmor %vm1023_vm4, %vm1024_vm3 }
 0x21e   : > { %v1019_v5 = vmul.f32 %v1623_v2, %v1018_v3  ;;  %v1016_v13 = vsel %vm1015_vm8, %v1621_v60, %v1012_v11 }
 0x220   : > { %v1020_v6 = vmul.f32 0.5, %v1019_v5 }
 0x222   : > { %v1021_v9 = vsub.f32 1.5, %v1020_v6 }
 0x224   : > { %v1022_v10 = vmul.f32 %v1623_v2, %v1021_v9 }
 0x226   : > { %v1026_v12 = vsel %vm1025_vm6, %v1623_v2, %v1022_v10 }
 0x227   : > { %1086 = vmatpush.msra.mxu1 %v1026_v12 }
 0x229   : > { %1087 = vmatpush.msra.mxu1 %v1016_v13 }
 0x22a   : > { %1522 = vmatmul.msk.f32.vlgmr.msra.gmra.mxu1 %vm911_vm1, %v1027_v51 }
 0x232   : > { %1523 = vmatmul.msk.f32.gmra.mxu1 %vm911_vm1, %v1028_v58 }
 0x23a   : > { %1524 = vmatmul.msk.f32.gmra.mxu1 %vm911_vm1, %v1029_v59 }
 0x242   : > { %1525 = vmatmul.msk.f32.gmra.mxu1 %vm911_vm1, %v1030_v1 }
 0x27f   : > { %v1060_v16 = vpop.f32.mrf.mxu0 }
 0x285   : > { %v1066_v31 = vpop.f32.mrf.mxu2 }
 0x287   : > { %v1063_v24 = vpop.f32.mrf.mxu0 }
 0x28d   : > { %v1069_v37 = vpop.f32.mrf.mxu2 }
 0x2a7   : > { %v1089_v17 = vpop.f32.mrf.mxu1 }
 0x2a8   : > { %v1105_v18 = vmul.f32 %v1101_v15, %v1089_v17 }
 0x2aa   : > { %1123 = vperm.xlu2 %1617, %v1105_v18   ;;  %v1113_v19 = vmul.f32 %v1105_v18, %v1060_v16 }
 0x2ac   : > { %v1117_v26 = vsub.f32 %v1109_v21, %v1113_v19 }
 0x2af   : > { %v1092_v23 = vpop.f32.mrf.mxu1 }
 0x2b0   : > { %v1106_v27 = vmul.f32 %v1102_v22, %v1092_v23 }
 0x2b2   : > { %v1114_v29 = vmul.f32 %v1106_v27, %v1063_v24  ;;  %1147 = vperm.xlu2 %1617, %v1117_v26   ;;  %1128 = vperm.xlu0 %1618, %v1106_v27  }
 0x2b4   : > { %v1118_v30 = vsub.f32 %v1110_v28, %v1114_v29 }
 0x2b6   : > { %1152 = vperm.xlu1 %1619, %v1118_v30  }
 0x2b7   : > { %v1095_v32 = vpop.f32.mrf.mxu1 }
 0x2b8   : > { %v1107_v34 = vmul.f32 %v1103_v33, %v1095_v32 }
 0x2ba   : > { %v1115_v41 = vmul.f32 %v1107_v34, %v1066_v31 }
 0x2bc   : > { %v1119_v44 = vsub.f32 %v1111_v43, %v1115_v41 }
 0x2be   : > { %1133 = vperm.xlu1 %1619, %v1107_v34  }
 0x2bf   : > { %v1098_v36 = vpop.f32.mrf.mxu1 }
 0x2c0   : > { %v1108_v38 = vmul.f32 %v1104_v35, %v1098_v36 }
 0x2c2   : > { %v1116_v40 = vmul.f32 %v1108_v38, %v1069_v37  ;;  %1138 = vperm.xlu2 %1617, %v1108_v38  }
 0x2c4   : > { %v1120_v42 = vsub.f32 %v1112_v39, %v1116_v40 }
 0x2c6   : > { %1162 = vperm.xlu1 %1619, %v1120_v42  }
 0x2ca   : > { %1157 = vperm.xlu2 %1617, %v1119_v44  }
 0x304   : > { %v1124_v45 = vpop.permute.xlu2 %1123 }
 0x305   : > { %v1141_v46 = vmul.f32 %v1124_v45, %v1826_v7 }
 0x30c   : > { %v1148_v47 = vpop.permute.xlu2 %1147 }
 0x30d   : > { %v1165_v48 = vadd.f32 %v1148_v47, %v1141_v46 }
 0x30f   : > { %v1169_v49 = vmax.f32 %v1165_v48, 0.0 }
 0x311   : > { %1173 = vst.msk [vmem:[%s251_s27] sm:$0xff] %vm911_vm1, %v1169_v49 }
 0x31c   : > { %v1139_v52 = vpop.permute.xlu2 %1138 }
 0x31d   : > { %v1144_v60 = vmul.f32 %v1139_v52, %v1832_v20 }
 0x324   : > { %v1129_v50 = vpop.permute.xlu0 %1128  ;;  %v1158_v57 = vpop.permute.xlu2 %1157 }
 0x325   : > { %v1142_v51 = vmul.f32 %v1129_v50, %v1822_v63 }
 0x328   : > { %v1153_v53 = vpop.permute.xlu1 %1152 }
 0x329   : > { %v1166_v54 = vadd.f32 %v1153_v53, %v1142_v51 }
 0x32b   : > { %v1170_v55 = vmax.f32 %v1166_v54, 0.0 }
 0x32d   : > { %1174 = vst.msk [vmem:[%s251_s27 + $0x8] sm:$0xff] %vm911_vm1, %v1170_v55 }
 0x330   : > { %v1134_v7 = vpop.permute.xlu1 %1133 }
 0x331   : > { %v1143_v56 = vmul.f32 %v1134_v7, %v1839_v25 }
 0x333   : > { %v1167_v58 = vadd.f32 %v1158_v57, %v1143_v56 }
 0x335   : > { %v1171_v59 = vmax.f32 %v1167_v58, 0.0 }
 0x337   : > { %1175 = vst.msk [vmem:[%s251_s27 + $0x10] sm:$0xff] %vm911_vm1, %v1171_v59 }
 0x338   : > { %v1163_v61 = vpop.permute.xlu1 %1162 }
 0x339   : > { %v1168_v62 = vadd.f32 %v1163_v61, %v1144_v60 }
 0x33b   : > { %v1172_v0 = vmax.f32 %v1168_v62, 0.0 }
 0x33d   : > { %1176 = vst.msk [vmem:[%s251_s27 + $0x18] sm:$0xff] %vm911_vm1, %v1172_v0 }
 0x33e PF: > { %s16_s21 = sadd.s32 1, %s1630_s21  }
 0x33f   : > { %p13_p4 = scmp.ge.s32.totalorder %s16_s21, 4  }
 0x341   :  { %15 = sbr.rel (!%p13_p4) target bundleno = 1 (0x1), region = 74 }

// kernel: _lambda_.17
= control target key start
LH: loop header
LB: loop body
LE: loop exit
PB: predicated region body
PF: predicated region fallthrough
CT: control target
= control target key end

     0   :  { %s732_s21 = smov 0   ;;  %s851_s0 = inlined_call_operand.vmem [shape: bf16[2,32,16], index: 0, kind: input, shape index: {}]   ;;  %s852_s1 = inlined_call_operand.vmem [shape: bf16[32,32], index: 1, kind: input, shape index: {}]   ;;  %s853_s2 = inlined_call_operand.vmem [shape: f32[32,1], index: 2, kind: input, shape index: {}]   ;;  %s854_s3 = inlined_call_operand.vmem [shape: f32[32,1], index: 3, kind: input, shape index: {}]   ;;  %s855_s4 = inlined_call_operand.vmem [shape: f32[16,32], index: 4, kind: input, shape index: {}]   ;;  %s856_s5 = inlined_call_operand.vmem [shape: f32[32,16], index: 5, kind: input, shape index: {}]   ;;  %s857_s6 = inlined_call_operand.vmem [shape: f32[2,32,16], index: 6, kind: output, shape index: {}]  }
   0x1 LB: > { %s625_s22 = sadd.s32 4294967295, %s694_s21   ;;  %p629_p0 = scmp.ge.s32.totalorder %s694_s21, 1  ;;  %s694_s21 = sphi %s732_s21, %s16_s21  }
   0x2   : > { %p212_p1 = scmp.lt.s32.totalorder %s694_s21, 3 }
   0x4   : > { %p213_p2 = pnand %p629_p0, %p212_p1 }
   0x5   : > { %p242_p3 = scmp.lt.s32.totalorder (!%p213_p2), %s625_s22, 1 }
   0x6   : > { %216 = sbr.rel (%p213_p2) target bundleno = 761 (0x2f9), region = 44 }
   0xb   : > { %s859_s22 = smov (!%p242_p3, %s625_s22), 1  ;;  %v668_v2 = vld [vmem:[%s852_s1] sm:$0xff]  ;;  %vm283_vm0 = vcmask 261120   ;;  %v669_v3 = vld [vmem:[%s852_s1 + $0x8] sm:$0xff]  ;;  %vm309_vm1 = vcmask 130048   ;;  %v426_v47 = vld [vmem:[%s856_s5 + $0x10] sm:$0xff] }
   0xc   : > { %s666_s23 = sshll.u32 %s859_s22, 4  ;;  %v338_v25 = vld [vmem:[%s855_s4] sm:$0xff]  ;;  %v339_v28 = vld [vmem:[%s855_s4 + $0x8] sm:$0xff]  ;;  %v427_v52 = vld [vmem:[%s856_s5 + $0x18] sm:$0xff]  ;;  %s667_s13 = sshll.u32 %s859_s22, 5 }
   0xd   : > { %s246_s26 = scalar_lea.vmem %s851_s0, %s666_s23  ;;  %v424_v34 = vld [vmem:[%s856_s5] sm:$0xff]  ;;  %v425_v40 = vld [vmem:[%s856_s5 + $0x8] sm:$0xff]  ;;  %s251_s16 = scalar_lea.vmem %s857_s6, %s667_s13 }
   0xe   : > { %v671_v0 = vld [vmem:[%s246_s26 + $0x8] sm:$0xff]  ;;  %v670_v1 = vld [vmem:[%s246_s26] sm:$0xff] }
   0xf   : > { %296 = vmatpush.bf16.msra.mxu0 %v671_v0  ;;  %v696_v0 = vmov 0  }
  0x10   : > { %681 = vset.pattern.permute.xlu2 %v696_v0  ;;  %682 = vset.pattern.permute.xlu0 %v696_v0 }
  0x11   : > { %683 = vset.pattern.permute.xlu1 %v696_v0 }
  0x13   : > { %297 = vmatpush.bf16.msra.mxu0 %v670_v1 }
  0x16   : > { %650 = vmatmul.msk.bf16.vlgmr.msra.gmra.mxu0 %vm283_vm0, %v668_v2  ;;  %v498_v2 = vld [vmem:[%s853_s2] sm:$0xff] }
  0x26   : > { %651 = vmatmul.msk.bf16.gmra.mxu0 %vm283_vm0, %v669_v3 }
  0x93   : > { %v754_v4 = vpop.f32.mrf.mxu0 }
  0x94   : > { %v310_v8 = vsel %vm309_vm1, %v754_v4, 0.0  ;;  %v322_v9 = vmul.f32 %v754_v4, %v754_v4 }
  0x96   : > { %v326_v11 = vsel %vm309_vm1, %v322_v9, 0.0 }
  0x9b   : > { %v756_v5 = vpop.f32.mrf.mxu0 }
  0x9c   : > { %v313_v6 = vsel %vm309_vm1, %v756_v5, 0.0  ;;  %v323_v18 = vmul.f32 %v756_v5, %v756_v5 }
  0x9d   : > { %314 = vadd.xlane.f32.xlu1 %v313_v6 }
  0x9e   : > { %v329_v19 = vsel %vm309_vm1, %v323_v18, 0.0 }
  0xa3   : > { %v760_v7 = vpop.f32.mrf.mxu0 }
  0xa4   : > { %v324_v15 = vmul.f32 %v760_v7, %v760_v7  ;;  %v316_v16 = vsel %vm309_vm1, %v760_v7, 0.0 }
  0xa5   : > { %311 = vadd.xlane.f32.xlu1 %v310_v8 }
  0xa6   : > { %v332_v17 = vsel %vm309_vm1, %v324_v15, 0.0 }
  0xab   : > { %v766_v10 = vpop.f32.mrf.mxu0 }
  0xac   : > { %v319_v12 = vsel %vm309_vm1, %v766_v10, 0.0  ;;  %v325_v13 = vmul.f32 %v766_v10, %v766_v10 }
  0xad   : > { %327 = vadd.xlane.f32.xlu1 %v326_v11  ;;  %320 = vadd.xlane.f32.xlu0 %v319_v12  ;;  %v506_v11 = vld [vmem:[%s854_s3] sm:$0xff]  ;;  %v499_v12 = vld [vmem:[%s853_s2 + $0x8] sm:$0xff] }
  0xae   : > { %v335_v14 = vsel %vm309_vm1, %v325_v13, 0.0 }
  0xaf   : > { %336 = vadd.xlane.f32.xlu2 %v335_v14 }
  0xb5   : > { %317 = vadd.xlane.f32.xlu0 %v316_v16  ;;  %v507_v16 = vld [vmem:[%s854_s3 + $0x8] sm:$0xff] }
  0xb7   : > { %333 = vadd.xlane.f32.xlu2 %v332_v17 }
  0xbd   : > { %330 = vadd.xlane.f32.xlu0 %v329_v19 }
 0x110   : > { %v315_v20 = vpop.xlane.xlu1 %314 }
 0x118   : > { %v312_v24 = vpop.xlane.xlu1 %311 }
 0x120   : > { %v321_v21 = vpop.xlane.xlu0 %320  ;;  %v328_v29 = vpop.xlane.xlu1 %327 }
 0x121   : > { %358 = vmatpush.msra.mxu2 %v321_v21  ;;  %v500_v21 = vld [vmem:[%s853_s2 + $0x10] sm:$0xff] }
 0x122   : > { %v337_v22 = vpop.xlane.xlu2 %336 }
 0x128   : > { %v318_v23 = vpop.xlane.xlu0 %317 }
 0x129   : > { %359 = vmatpush.msra.mxu2 %v318_v23  ;;  %v501_v23 = vld [vmem:[%s853_s2 + $0x18] sm:$0xff] }
 0x12a   : > { %v334_v26 = vpop.xlane.xlu2 %333 }
 0x12b   : > { %360 = vmatpush.msra.mxu2 %v315_v20 }
 0x12d   : > { %361 = vmatpush.msra.mxu2 %v312_v24 }
 0x12e   : > { %652 = vmatmul.msk.f32.vlgmr.msra.gmra.mxu2 %vm283_vm0, %v338_v25 }
 0x12f   : > { %383 = vmatpush.msrb.mxu2 %v337_v22 }
 0x130   : > { %v331_v27 = vpop.xlane.xlu0 %330 }
 0x131   : > { %384 = vmatpush.msrb.mxu2 %v334_v26 }
 0x133   : > { %385 = vmatpush.msrb.mxu2 %v331_v27  ;;  %v509_v27 = vld [vmem:[%s854_s3 + $0x18] sm:$0xff] }
 0x135   : > { %386 = vmatpush.msrb.mxu2 %v328_v29 }
 0x136   : > { %653 = vmatmul.msk.f32.gmra.mxu2 %vm283_vm0, %v339_v28 }
 0x13e   : > { %654 = vmatmul.msk.f32.vlgmr.msrb.gmra.mxu2 %vm283_vm0, %v338_v25 }
 0x146   : > { %655 = vmatmul.msk.f32.gmra.mxu2 %vm283_vm0, %v339_v28 }
 0x1b1   : > { %v363_v30 = vpop.f32.mrf.mxu2 }
 0x1b2   : > { %v369_v33 = vmul.f32 0.03125, %v363_v30 }
 0x1b4   : > { %v396_v36 = vmul.f32 %v369_v33, %v369_v33 }
 0x1b9   : > { %v366_v31 = vpop.f32.mrf.mxu2 }
 0x1ba   : > { %v370_v32 = vmul.f32 0.03125, %v366_v31  ;;  %v508_v31 = vld [vmem:[%s854_s3 + $0x10] sm:$0xff] }
 0x1bc   : > { %454 = vmatpush.msra.mxu3 %v370_v32  ;;  %v397_v43 = vmul.f32 %v370_v32, %v370_v32 }
 0x1be   : > { %455 = vmatpush.msra.mxu3 %v369_v33 }
 0x1bf   : > { %656 = vmatmul.msk.f32.vlgmr.msra.gmra.mxu3 %vm309_vm1, %v424_v34 }
 0x1c1   : > { %v388_v35 = vpop.f32.mrf.mxu2 }
 0x1c2   : > { %v394_v37 = vmul.f32 0.03125, %v388_v35 }
 0x1c4   : > { %v398_v38 = vsub.f32 %v394_v37, %v396_v36 }
 0x1c6   : > { %v400_v39 = vmax.f32 %v398_v38, 0.0 }
 0x1c7   : > { %657 = vmatmul.msk.f32.gmra.mxu3 %vm309_vm1, %v425_v40 }
 0x1c8   : > { %v402_v41 = vadd.f32 1e-05, %v400_v39 }
 0x1c9   : > { %v391_v42 = vpop.f32.mrf.mxu2 }
 0x1ca   : > { %684 = vrsqrt.f32 %v402_v41  ;;  %v395_v44 = vmul.f32 0.03125, %v391_v42  ;;  %vm410_vm6 = vweird.f32 %v402_v41 }
 0x1cc   : > { %v399_v45 = vsub.f32 %v395_v44, %v397_v43 }
 0x1ce   : > { %v401_v46 = vmax.f32 %v399_v45, 0.0 }
 0x1cf   : > { %658 = vmatmul.msk.f32.gmra.mxu3 %vm309_vm1, %v426_v47 }
 0x1d0   : > { %v685_v48 = vpop.eup %684  ;;  %v403_v49 = vadd.f32 1e-05, %v401_v46 }
 0x1d1   : > { %v405_v50 = vmul.f32 %v685_v48, %v402_v41  ;;  %vm411_vm4 = vweird.f32 %v685_v48 }
 0x1d2   : > { %686 = vrsqrt.f32 %v403_v49  ;;  %vm420_vm3 = vweird.f32 %v403_v49  ;;  %vm412_vm7 = vmor %vm410_vm6, %vm411_vm4 }
 0x1d3   : > { %v406_v51 = vmul.f32 %v685_v48, %v405_v50 }
 0x1d5   : > { %v407_v55 = vmul.f32 0.5, %v406_v51 }
 0x1d7   : > { %659 = vmatmul.msk.f32.gmra.mxu3 %vm309_vm1, %v427_v52  ;;  %v408_v58 = vsub.f32 1.5, %v407_v55 }
 0x1d8   : > { %v687_v53 = vpop.eup %686 }
 0x1d9   : > { %v415_v54 = vmul.f32 %v687_v53, %v403_v49  ;;  %vm421_vm2 = vweird.f32 %v687_v53  ;;  %v409_v61 = vmul.f32 %v685_v48, %v408_v58 }
 0x1da   : > { %vm422_vm5 = vmor %vm420_vm3, %vm421_vm2 }
 0x1db   : > { %v416_v56 = vmul.f32 %v687_v53, %v415_v54  ;;  %v413_v63 = vsel %vm412_vm7, %v685_v48, %v409_v61 }
 0x1dd   : > { %v417_v57 = vmul.f32 0.5, %v416_v56 }
 0x1df   : > { %v418_v59 = vsub.f32 1.5, %v417_v57 }
 0x1e1   : > { %v419_v60 = vmul.f32 %v687_v53, %v418_v59 }
 0x1e3   : > { %v423_v62 = vsel %vm422_vm5, %v687_v53, %v419_v60 }
 0x1e4   : > { %483 = vmatpush.msra.mxu1 %v423_v62 }
 0x1e6   : > { %484 = vmatpush.msra.mxu1 %v413_v63 }
 0x1e7   : > { %660 = vmatmul.msk.f32.vlgmr.msra.gmra.mxu1 %vm309_vm1, %v424_v34 }
 0x1ef   : > { %661 = vmatmul.msk.f32.gmra.mxu1 %vm309_vm1, %v425_v40 }
 0x1f7   : > { %662 = vmatmul.msk.f32.gmra.mxu1 %vm309_vm1, %v426_v47 }
 0x1ff   : > { %663 = vmatmul.msk.f32.gmra.mxu1 %vm309_vm1, %v427_v52 }
 0x242   : > { %v457_v1 = vpop.f32.mrf.mxu3 }
 0x24a   : > { %v460_v8 = vpop.f32.mrf.mxu3 }
 0x252   : > { %v463_v19 = vpop.f32.mrf.mxu3 }
 0x25a   : > { %v466_v25 = vpop.f32.mrf.mxu3 }
 0x264   : > { %v486_v3 = vpop.f32.mrf.mxu1 }
 0x265   : > { %v502_v6 = vmul.f32 %v498_v2, %v486_v3 }
 0x267   : > { %520 = vperm.xlu2 %681, %v502_v6   ;;  %v510_v9 = vmul.f32 %v502_v6, %v457_v1 }
 0x269   : > { %v514_v14 = vsub.f32 %v506_v11, %v510_v9 }
 0x26c   : > { %v489_v13 = vpop.f32.mrf.mxu1 }
 0x26d   : > { %v503_v15 = vmul.f32 %v499_v12, %v489_v13 }
 0x26f   : > { %v511_v17 = vmul.f32 %v503_v15, %v460_v8  ;;  %544 = vperm.xlu2 %681, %v514_v14   ;;  %525 = vperm.xlu0 %682, %v503_v15  }
 0x271   : > { %v515_v18 = vsub.f32 %v507_v16, %v511_v17 }
 0x273   : > { %549 = vperm.xlu1 %683, %v515_v18  }
 0x274   : > { %v492_v20 = vpop.f32.mrf.mxu1 }
 0x275   : > { %v504_v22 = vmul.f32 %v500_v21, %v492_v20 }
 0x277   : > { %v512_v29 = vmul.f32 %v504_v22, %v463_v19 }
 0x279   : > { %v516_v32 = vsub.f32 %v508_v31, %v512_v29 }
 0x27b   : > { %530 = vperm.xlu1 %683, %v504_v22  }
 0x27c   : > { %v495_v24 = vpop.f32.mrf.mxu1 }
 0x27d   : > { %v505_v26 = vmul.f32 %v501_v23, %v495_v24 }
 0x27f   : > { %v513_v28 = vmul.f32 %v505_v26, %v466_v25  ;;  %535 = vperm.xlu2 %681, %v505_v26  }
 0x281   : > { %v517_v30 = vsub.f32 %v509_v27, %v513_v28 }
 0x283   : > { %559 = vperm.xlu1 %683, %v517_v30  }
 0x287   : > { %554 = vperm.xlu2 %681, %v516_v32  }
 0x2c1   : > { %v521_v33 = vpop.permute.xlu2 %520 }
 0x2c2   : > { %v538_v34 = vmul.f32 %v521_v33, %v754_v4 }
 0x2c9   : > { %v545_v35 = vpop.permute.xlu2 %544 }
 0x2ca   : > { %v562_v36 = vadd.f32 %v545_v35, %v538_v34 }
 0x2cc   : > { %566 = vst.msk [vmem:[%s251_s16] sm:$0xff] %vm309_vm1, %v562_v36 }
 0x2d9   : > { %v536_v39 = vpop.permute.xlu2 %535 }
 0x2da   : > { %v541_v45 = vmul.f32 %v536_v39, %v766_v10 }
 0x2e1   : > { %v526_v37 = vpop.permute.xlu0 %525  ;;  %v555_v4 = vpop.permute.xlu2 %554 }
 0x2e2   : > { %v539_v38 = vmul.f32 %v526_v37, %v756_v5 }
 0x2e5   : > { %v550_v40 = vpop.permute.xlu1 %549 }
 0x2e6   : > { %v563_v41 = vadd.f32 %v550_v40, %v539_v38 }
 0x2e8   : > { %567 = vst.msk [vmem:[%s251_s16 + $0x8] sm:$0xff] %vm309_vm1, %v563_v41 }
 0x2ed   : > { %v531_v42 = vpop.permute.xlu1 %530 }
 0x2ee   : > { %v540_v43 = vmul.f32 %v531_v42, %v760_v7 }
 0x2f0   : > { %v564_v44 = vadd.f32 %v555_v4, %v540_v43 }
 0x2f2   : > { %568 = vst.msk [vmem:[%s251_s16 + $0x10] sm:$0xff] %vm309_vm1, %v564_v44 }
 0x2f5   : > { %v560_v46 = vpop.permute.xlu1 %559 }
 0x2f6   : > { %v565_v47 = vadd.f32 %v560_v46, %v541_v45 }
 0x2f8   : > { %569 = vst.msk [vmem:[%s251_s16 + $0x18] sm:$0xff] %vm309_vm1, %v565_v47 }
 0x2f9 PF: > { %s16_s21 = sadd.s32 1, %s694_s21  }
 0x2fa   : > { %p13_p4 = scmp.ge.s32.totalorder %s16_s21, 4  }
 0x2fc   :  { %15 = sbr.rel (!%p13_p4) target bundleno = 1 (0x1), region = 74 }

// kernel: _lambda_.19
= control target key start
LH: loop header
LB: loop body
LE: loop exit
PB: predicated region body
PF: predicated region fallthrough
CT: control target
= control target key end

     0   :  { %14 = vsyncpa [#allocation3], 0  ;;  %s1396_s0 = inlined_call_operand.vmem [shape: bf16[2,512], index: 0, kind: input, shape index: {}]   ;;  %s1397_s1 = inlined_call_operand.vmem [shape: bf16[512,16], index: 1, kind: input, shape index: {}]   ;;  %s1398_s2 = inlined_call_operand.vmem [shape: bf16[512,16], index: 2, kind: input, shape index: {}]   ;;  %s1399_s3 = inlined_call_operand.vmem [shape: f32[1,16], index: 3, kind: input, shape index: {}]   ;;  %s1400_s4 = inlined_call_operand.vmem [shape: f32[1,16], index: 4, kind: input, shape index: {}]   ;;  %s1401_s5 = inlined_call_operand.vmem [shape: f32[2,16], index: 5, kind: input, shape index: {}]   ;;  %s1402_s6 = inlined_call_operand.hbm [shape: f32[2,16], index: 6, kind: output, shape index: {0}]   ;;  %s1403_s7 = inlined_call_operand.hbm [shape: f32[2,16], index: 7, kind: output, shape index: {1}]   ;;  %s1404_s8 = inlined_call_operand.hbm [shape: f32[2,16], index: 8, kind: output, shape index: {2}]  }
   0x1   :  { %v992_v0 = vld [vmem:[%s1397_s1 + $0x38] sm:$0xff]  ;;  %v991_v4 = vld [vmem:[%s1397_s1 + $0x30] sm:$0xff]  ;;  %v990_v8 = vld [vmem:[%s1397_s1 + $0x28] sm:$0xff] }
   0x2   :  { %v1000_v1 = vld [vmem:[%s1397_s1 + $0x78] sm:$0xff]  ;;  %299 = vmatpush.bf16.msra.mxu0 %v992_v0  ;;  %v999_v5 = vld [vmem:[%s1397_s1 + $0x70] sm:$0xff]  ;;  %v998_v9 = vld [vmem:[%s1397_s1 + $0x68] sm:$0xff] }
   0x3   :  { %v1008_v2 = vld [vmem:[%s1397_s1 + $0xb8] sm:$0xff]  ;;  %312 = vmatpush.bf16.msra.mxu1 %v1000_v1  ;;  %v1007_v6 = vld [vmem:[%s1397_s1 + $0xb0] sm:$0xff]  ;;  %v1006_v10 = vld [vmem:[%s1397_s1 + $0xa8] sm:$0xff] }
   0x4   :  { %v1016_v3 = vld [vmem:[%s1397_s1 + $0xf8] sm:$0xff]  ;;  %325 = vmatpush.bf16.msra.mxu2 %v1008_v2  ;;  %v1015_v7 = vld [vmem:[%s1397_s1 + $0xf0] sm:$0xff]  ;;  %v1014_v11 = vld [vmem:[%s1397_s1 + $0xe8] sm:$0xff] }
   0x5   :  { %338 = vmatpush.bf16.msra.mxu3 %v1016_v3  ;;  %v989_v12 = vld [vmem:[%s1397_s1 + $0x20] sm:$0xff]  ;;  %v988_v17 = vld [vmem:[%s1397_s1 + $0x18] sm:$0xff]  ;;  %v987_v21 = vld [vmem:[%s1397_s1 + $0x10] sm:$0xff] }
   0x6   :  { %300 = vmatpush.bf16.msra.mxu0 %v991_v4  ;;  %v997_v13 = vld [vmem:[%s1397_s1 + $0x60] sm:$0xff]  ;;  %v996_v18 = vld [vmem:[%s1397_s1 + $0x58] sm:$0xff]  ;;  %v995_v22 = vld [vmem:[%s1397_s1 + $0x50] sm:$0xff] }
   0x7   :  { %313 = vmatpush.bf16.msra.mxu1 %v999_v5  ;;  %v1005_v14 = vld [vmem:[%s1397_s1 + $0xa0] sm:$0xff]  ;;  %v1004_v19 = vld [vmem:[%s1397_s1 + $0x98] sm:$0xff] }
   0x8   :  { %326 = vmatpush.bf16.msra.mxu2 %v1007_v6  ;;  %v1013_v15 = vld [vmem:[%s1397_s1 + $0xe0] sm:$0xff]  ;;  %v1012_v20 = vld [vmem:[%s1397_s1 + $0xd8] sm:$0xff] }
   0x9   :  { %339 = vmatpush.bf16.msra.mxu3 %v1015_v7  ;;  %v28_v16 = vld [vmem:[%s1396_s0] sm:$0xf] }
   0xa   :  { %301 = vmatpush.bf16.msra.mxu0 %v990_v8  ;;  %98 = vst [vmem:[#allocation1] ss:$9 sm:$0xff] %v28_v16 }
   0xb   :  { %314 = vmatpush.bf16.msra.mxu1 %v998_v9 }
   0xc   :  { %327 = vmatpush.bf16.msra.mxu2 %v1006_v10 }
   0xd   :  { %340 = vmatpush.bf16.msra.mxu3 %v1014_v11 }
   0xe   :  { %302 = vmatpush.bf16.msra.mxu0 %v989_v12 }
   0xf   :  { %315 = vmatpush.bf16.msra.mxu1 %v997_v13 }
  0x10   :  { %328 = vmatpush.bf16.msra.mxu2 %v1005_v14 }
  0x11   :  { %341 = vmatpush.bf16.msra.mxu3 %v1013_v15 }
  0x12   :  { %303 = vmatpush.bf16.msra.mxu0 %v988_v17 }
  0x13   :  { %316 = vmatpush.bf16.msra.mxu1 %v996_v18 }
  0x14   :  { %15 = vsyncpa [#allocation5], 0  ;;  %329 = vmatpush.bf16.msra.mxu2 %v1004_v19  ;;  %v1003_v23 = vld [vmem:[%s1397_s1 + $0x90] sm:$0xff]  ;;  %v986_v25 = vld [vmem:[%s1397_s1 + $0x8] sm:$0xff]  ;;  %s700_s23 = sshll.u32 %s1403_s7, 4  ;;  %vm678_vm0 = vcmask 123904   ;;  %s701_s23 = int_to_ptr.hbm [resolvable:$true] %s700_s23 }
  0x15   :  { %342 = vmatpush.bf16.msra.mxu3 %v1012_v20  ;;  %v1011_v24 = vld [vmem:[%s1397_s1 + $0xd0] sm:$0xff]  ;;  %v994_v26 = vld [vmem:[%s1397_s1 + $0x48] sm:$0xff]  ;;  %v99_v28 = vld [vmem:[#allocation1] sm:$0xff]  ;;  %s1133_s7 = smov [#allocation6]   ;;  %s711_s27 = sshll.u32 %s1404_s8, 4  ;;  %s712_s27 = int_to_ptr.hbm [resolvable:$true] %s711_s27 }
  0x16   :  { %v101_v27 = vld [vmem:[#allocation1 + $0x12] sm:$0xff]  ;;  %304 = vmatpush.bf16.msra.mxu0 %v987_v21  ;;  %v102_v29 = vld [vmem:[#allocation1 + $0x1b] sm:$0xff]  ;;  %v100_v30 = vld [vmem:[#allocation1 + $0x9] sm:$0xff]  ;;  %s709_s0 = sshll.u32 %s1133_s7, 4  ;;  %s1134_s8 = smov [#allocation2]   ;;  %s710_s0 = int_to_ptr.vmem [resolvable:$true] %s709_s0 }
  0x17   :  { %317 = vmatpush.bf16.msra.mxu1 %v995_v22  ;;  %v1002_v31 = vld [vmem:[%s1397_s1 + $0x88] sm:$0xff]  ;;  %419 = vst [vmem:[#allocation1] ss:$9 sm:$0xff] %v28_v16  ;;  %v985_v33 = vld [vmem:[%s1397_s1] sm:$0xff]  ;;  %v1024_v37 = vld [vmem:[%s1398_s2 + $0x38] sm:$0xff]  ;;  %s687_s29 = sshll.u32 %s1134_s8, 4  ;;  %s688_s29 = int_to_ptr.vmem [resolvable:$true] %s687_s29 }
  0x18   :  { %330 = vmatpush.bf16.msra.mxu2 %v1003_v23  ;;  %v1010_v32 = vld [vmem:[%s1397_s1 + $0xc8] sm:$0xff]  ;;  %v993_v34 = vld [vmem:[%s1397_s1 + $0x40] sm:$0xff]  ;;  %v1032_v38 = vld [vmem:[%s1398_s2 + $0x78] sm:$0xff]  ;;  %s689_s10 = sshll.u32 %s1402_s6, 4  ;;  %s690_s10 = int_to_ptr.hbm [resolvable:$true] %s689_s10 }
  0x19   :  { %343 = vmatpush.bf16.msra.mxu3 %v1011_v24  ;;  %v1001_v35 = vld [vmem:[%s1397_s1 + $0x80] sm:$0xff]  ;;  %v1040_v39 = vld [vmem:[%s1398_s2 + $0xb8] sm:$0xff]  ;;  %v1023_v41 = vld [vmem:[%s1398_s2 + $0x30] sm:$0xff] }
  0x1a   :  { %305 = vmatpush.bf16.msra.mxu0 %v986_v25  ;;  %v1009_v36 = vld [vmem:[%s1397_s1 + $0xc0] sm:$0xff]  ;;  %v1048_v40 = vld [vmem:[%s1398_s2 + $0xf8] sm:$0xff]  ;;  %v1031_v42 = vld [vmem:[%s1398_s2 + $0x70] sm:$0xff] }
  0x1b   :  { %318 = vmatpush.bf16.msra.mxu1 %v994_v26  ;;  %v1039_v43 = vld [vmem:[%s1398_s2 + $0xb0] sm:$0xff]  ;;  %v1022_v45 = vld [vmem:[%s1398_s2 + $0x28] sm:$0xff]  ;;  %v1021_v49 = vld [vmem:[%s1398_s2 + $0x20] sm:$0xff] }
  0x1c   :  { %331 = vmatpush.bf16.msra.mxu2 %v1002_v31  ;;  %v1047_v44 = vld [vmem:[%s1398_s2 + $0xf0] sm:$0xff]  ;;  %v1030_v46 = vld [vmem:[%s1398_s2 + $0x68] sm:$0xff]  ;;  %v1029_v50 = vld [vmem:[%s1398_s2 + $0x60] sm:$0xff] }
  0x1d   :  { %344 = vmatpush.bf16.msra.mxu3 %v1010_v32  ;;  %v1038_v47 = vld [vmem:[%s1398_s2 + $0xa8] sm:$0xff]  ;;  %v1037_v51 = vld [vmem:[%s1398_s2 + $0xa0] sm:$0xff]  ;;  %v1020_v53 = vld [vmem:[%s1398_s2 + $0x18] sm:$0xff] }
  0x1e   :  { %306 = vmatpush.bf16.msra.mxu0 %v985_v33  ;;  %v1046_v48 = vld [vmem:[%s1398_s2 + $0xe8] sm:$0xff]  ;;  %v1045_v52 = vld [vmem:[%s1398_s2 + $0xe0] sm:$0xff]  ;;  %v1028_v54 = vld [vmem:[%s1398_s2 + $0x58] sm:$0xff] }
  0x1f   :  { %319 = vmatpush.bf16.msra.mxu1 %v993_v34  ;;  %v1036_v55 = vld [vmem:[%s1398_s2 + $0x98] sm:$0xff]  ;;  %v1019_v57 = vld [vmem:[%s1398_s2 + $0x10] sm:$0xff]  ;;  %v1018_v61 = vld [vmem:[%s1398_s2 + $0x8] sm:$0xff] }
  0x20   :  { %332 = vmatpush.bf16.msra.mxu2 %v1001_v35  ;;  %v1044_v56 = vld [vmem:[%s1398_s2 + $0xd8] sm:$0xff]  ;;  %v1027_v58 = vld [vmem:[%s1398_s2 + $0x50] sm:$0xff]  ;;  %v1026_v62 = vld [vmem:[%s1398_s2 + $0x48] sm:$0xff] }
  0x21   :  { %345 = vmatpush.bf16.msra.mxu3 %v1009_v36  ;;  %307 = vmatmul.bf16.vlgmr.msra.gmra.mxu0 %v99_v28  ;;  %v1035_v59 = vld [vmem:[%s1398_s2 + $0x90] sm:$0xff]  ;;  %v1034_v63 = vld [vmem:[%s1398_s2 + $0x88] sm:$0xff]  ;;  %v1017_v1 = vld [vmem:[%s1398_s2] sm:$0xff] }
  0x22   :  { %620 = vmatpush.bf16.msrb.mxu0 %v1024_v37  ;;  %320 = vmatmul.bf16.vlgmr.msra.gmra.mxu1 %v100_v30  ;;  %v1043_v60 = vld [vmem:[%s1398_s2 + $0xd0] sm:$0xff]  ;;  %v1042_v0 = vld [vmem:[%s1398_s2 + $0xc8] sm:$0xff]  ;;  %v1025_v2 = vld [vmem:[%s1398_s2 + $0x40] sm:$0xff] }
  0x23   :  { %633 = vmatpush.bf16.msrb.mxu1 %v1032_v38  ;;  %333 = vmatmul.bf16.vlgmr.msra.gmra.mxu2 %v101_v27  ;;  %v1033_v3 = vld [vmem:[%s1398_s2 + $0x80] sm:$0xff]  ;;  %v421_v6 = vld [vmem:[#allocation1 + $0x9] sm:$0xff]  ;;  %v422_v7 = vld [vmem:[#allocation1 + $0x12] sm:$0xff] }
  0x24   :  { %646 = vmatpush.bf16.msrb.mxu2 %v1040_v39  ;;  %346 = vmatmul.bf16.vlgmr.msra.gmra.mxu3 %v102_v29  ;;  %v1041_v4 = vld [vmem:[%s1398_s2 + $0xc0] sm:$0xff]  ;;  %s1132_s2 = smov [#allocation4]  }
  0x25   :  { %659 = vmatpush.bf16.msrb.mxu3 %v1048_v40  ;;  %v420_v5 = vld [vmem:[#allocation1] sm:$0xff]  ;;  %s698_s20 = sshll.u32 %s1132_s2, 4  ;;  %s699_s20 = int_to_ptr.vmem [resolvable:$true] %s698_s20 }
  0x26   :  { %621 = vmatpush.bf16.msrb.mxu0 %v1023_v41  ;;  %v423_v8 = vld [vmem:[#allocation1 + $0x1b] sm:$0xff] }
  0x27   :  { %634 = vmatpush.bf16.msrb.mxu1 %v1031_v42  ;;  %v1052_v9 = vld [vmem:[%s1399_s3] ss:$0 sm:$0xff] }
  0x28   :  { %647 = vmatpush.bf16.msrb.mxu2 %v1039_v43  ;;  %v1053_v22 = vld [vmem:[%s1400_s4] ss:$0 sm:$0xff] }
  0x29   :  { %660 = vmatpush.bf16.msrb.mxu3 %v1047_v44  ;;  %v672_v37 = vld [vmem:[%s1401_s5] sm:$0x3] }
  0x2a   :  { %622 = vmatpush.bf16.msrb.mxu0 %v1022_v45 }
  0x2b   :  { %635 = vmatpush.bf16.msrb.mxu1 %v1030_v46 }
  0x2c   :  { %648 = vmatpush.bf16.msrb.mxu2 %v1038_v47 }
  0x2d   :  { %661 = vmatpush.bf16.msrb.mxu3 %v1046_v48 }
  0x2e   :  { %623 = vmatpush.bf16.msrb.mxu0 %v1021_v49 }
  0x2f   :  { %636 = vmatpush.bf16.msrb.mxu1 %v1029_v50 }
  0x30   :  { %649 = vmatpush.bf16.msrb.mxu2 %v1037_v51 }
  0x31   :  { %662 = vmatpush.bf16.msrb.mxu3 %v1045_v52 }
  0x32   :  { %624 = vmatpush.bf16.msrb.mxu0 %v1020_v53 }
  0x33   :  { %637 = vmatpush.bf16.msrb.mxu1 %v1028_v54 }
  0x34   :  { %650 = vmatpush.bf16.msrb.mxu2 %v1036_v55 }
  0x35   :  { %663 = vmatpush.bf16.msrb.mxu3 %v1044_v56 }
  0x36   :  { %625 = vmatpush.bf16.msrb.mxu0 %v1019_v57 }
  0x37   :  { %638 = vmatpush.bf16.msrb.mxu1 %v1027_v58 }
  0x38   :  { %651 = vmatpush.bf16.msrb.mxu2 %v1035_v59 }
  0x39   :  { %664 = vmatpush.bf16.msrb.mxu3 %v1043_v60 }
  0x3a   :  { %626 = vmatpush.bf16.msrb.mxu0 %v1018_v61 }
  0x3b   :  { %639 = vmatpush.bf16.msrb.mxu1 %v1026_v62 }
  0x3c   :  { %652 = vmatpush.bf16.msrb.mxu2 %v1034_v63 }
  0x3d   :  { %665 = vmatpush.bf16.msrb.mxu3 %v1042_v0 }
  0x3e   :  { %627 = vmatpush.bf16.msrb.mxu0 %v1017_v1 }
  0x3f   :  { %640 = vmatpush.bf16.msrb.mxu1 %v1025_v2 }
  0x40   :  { %653 = vmatpush.bf16.msrb.mxu2 %v1033_v3 }
  0x41   :  { %666 = vmatpush.bf16.msrb.mxu3 %v1041_v4  ;;  %628 = vmatmul.bf16.vlgmr.msrb.gmra.mxu0 %v420_v5 }
  0x42   :  { %641 = vmatmul.bf16.vlgmr.msrb.gmra.mxu1 %v421_v6 }
  0x43   :  { %654 = vmatmul.bf16.vlgmr.msrb.gmra.mxu2 %v422_v7 }
  0x44   :  { %667 = vmatmul.bf16.vlgmr.msrb.gmra.mxu3 %v423_v8 }
  0x9e   :  { %v308_v10 = vpop.f32.mrf.mxu0 }
  0x9f   :  { %v309_v11 = vadd.f32 %v1052_v9, %v308_v10  ;;  %v321_v12 = vpop.f32.mrf.mxu1 }
  0xa1   :  { %v322_v13 = vadd.f32 %v321_v12, %v309_v11 }
  0xa6   :  { %v334_v14 = vpop.f32.mrf.mxu2  ;;  %v310_v17 = vpop.f32.mrf.mxu0 }
  0xa7   :  { %v335_v15 = vadd.f32 %v334_v14, %v322_v13  ;;  %v347_v16 = vpop.f32.mrf.mxu3  ;;  %v323_v19 = vpop.f32.mrf.mxu1 }
  0xa9   :  { %v348_v18 = vadd.f32 %v347_v16, %v335_v15 }
  0xab   :  { %680 = vst.msk [vmem:[#allocation4] sm:$0x3] %vm678_vm0, %v348_v18 }
  0xac   :  { %703 = dma.vmem_to_hbm [thread:$0]  %s699_s20, 32, %s701_s23, [#allocation5]  }
  0xae   :  { %v336_v20 = vpop.f32.mrf.mxu2 }
  0xaf   :  { %v349_v21 = vpop.f32.mrf.mxu3 }
  0xbe   :  { %v629_v23 = vpop.f32.mrf.mxu0 }
  0xbf   :  { %v642_v24 = vpop.f32.mrf.mxu1  ;;  %v630_v25 = vadd.f32 %v1053_v22, %v629_v23 }
  0xc1   :  { %v643_v26 = vadd.f32 %v642_v24, %v630_v25 }
  0xc6   :  { %v655_v27 = vpop.f32.mrf.mxu2  ;;  %v631_v30 = vpop.f32.mrf.mxu0 }
  0xc7   :  { %v668_v28 = vpop.f32.mrf.mxu3  ;;  %v656_v29 = vadd.f32 %v655_v27, %v643_v26  ;;  %v644_v31 = vpop.f32.mrf.mxu1 }
  0xc9   :  { %v669_v32 = vadd.f32 %v668_v28, %v656_v29 }
  0xcb   :  { %v673_v33 = vmul.f32 0.5, %v669_v32  ;;  %681 = vst.msk [vmem:[#allocation6] sm:$0x3] %vm678_vm0, %v669_v32 }
  0xcc   :  { %714 = dma.vmem_to_hbm [thread:$0]  %s710_s0, 32, %s712_s27, [#allocation5]  }
  0xcd   :  { %v674_v34 = vmul.f32 1.442695, %v673_v33 }
  0xce   :  { %v657_v35 = vpop.f32.mrf.mxu2 }
  0xcf   :  { %v670_v36 = vpop.f32.mrf.mxu3  ;;  %1054 = vpow2.f32 %v674_v34 }
  0xd5   :  { %v1055_v38 = vpop.eup %1054 }
  0xd6   :  { %v676_v39 = vmul.f32 %v1055_v38, %v672_v37 }
  0xd8   :  { %v677_v40 = vadd.f32 %v676_v39, %v348_v18 }
  0xda   :  { %679 = vst.msk [vmem:[#allocation2] sm:$0x3] %vm678_vm0, %v677_v40 }
  0xdb   :  { %692 = dma.vmem_to_hbm [thread:$0]  %s688_s29, 32, %s690_s10, [#allocation3]  }
  0xdc   :  { %1128 = dma.done.wait [#allocation3], 32  }
  0xdd   :  { %1129 = vsyncadd [#allocation3], 4294967264 }
  0xde   :  { %1130 = dma.done.wait [#allocation5], 64  }
  0xdf   :  { %1131 = vsyncadd [#allocation5], 4294967232 }
  0xe0   :  { %727 = vsyncpa [#allocation3], 1 }
  0xe1   :  { %728 = vsyncpa [#allocation5], 1 }

// kernel: _lambda_.18
= control target key start
LH: loop header
LB: loop body
LE: loop exit
PB: predicated region body
PF: predicated region fallthrough
CT: control target
= control target key end

     0   :  { %s1743_s24 = smov 0   ;;  %s1993_s0 = inlined_call_operand.vmem [shape: bf16[2,864,16], index: 0, kind: input, shape index: {}]   ;;  %s1994_s1 = inlined_call_operand.vmem [shape: bf16[32,864], index: 1, kind: input, shape index: {}]   ;;  %s1995_s2 = inlined_call_operand.vmem [shape: f32[32,1], index: 2, kind: input, shape index: {}]   ;;  %s1996_s3 = inlined_call_operand.vmem [shape: f32[32,1], index: 3, kind: input, shape index: {}]   ;;  %s1997_s4 = inlined_call_operand.vmem [shape: f32[16,32], index: 4, kind: input, shape index: {}]   ;;  %s1998_s5 = inlined_call_operand.vmem [shape: f32[32,16], index: 5, kind: input, shape index: {}]   ;;  %s1999_s6 = inlined_call_operand.vmem [shape: f32[2,32,16], index: 6, kind: input, shape index: {}]   ;;  %s2000_s7 = inlined_call_operand.vmem [shape: f32[2,32,16], index: 7, kind: output, shape index: {}]  }
   0x1 LB: > { %s1299_s25 = sadd.s32 4294967295, %s1700_s24   ;;  %p1303_p0 = scmp.ge.s32.totalorder %s1700_s24, 1  ;;  %s1700_s24 = sphi %s1743_s24, %s17_s24  }
   0x2   : > { %p247_p1 = scmp.lt.s32.totalorder %s1700_s24, 3 }
   0x4   : > { %p248_p2 = pnand %p1303_p0, %p247_p1 }
   0x5   : > { %p284_p3 = scmp.lt.s32.totalorder (!%p248_p2), %s1299_s25, 1 }
   0x6   : > { %251 = sbr.rel (%p248_p2) target bundleno = 832 (0x340), region = 48 }
   0xb   : > { %s2002_s25 = smov (!%p284_p3, %s1299_s25), 1  ;;  %v1311_v28 = vld [vmem:[%s1994_s1] sm:$0xf]  ;;  %v1602_v29 = vld [vmem:[%s1994_s1 + $0x18] sm:$0xf0]  ;;  %vm818_vm0 = vcmask 785408  }
   0xc   : > { %s1677_s26 = smul.u32 432, %s2002_s25  ;;  %v1599_v30 = vld [vmem:[%s1994_s1 + $0x4] sm:$0xf]  ;;  %v1313_v35 = vld [vmem:[%s1994_s1 + $0x1c] sm:$0xf0]  ;;  %v1312_v42 = vor.u32 %v1602_v29, %v1311_v28  ;;  %vm958_vm1 = vcmask 130048  }
   0xd   : > { %v1319_v36 = vld [vmem:[%s1994_s1 + $0x8] sm:$0xf]  ;;  %v1603_v37 = vld [vmem:[%s1994_s1 + $0x20] sm:$0xf0]  ;;  %v1600_v38 = vld [vmem:[%s1994_s1 + $0xc] sm:$0xf]  ;;  %v1316_v43 = vor.u32 %v1599_v30, %v1313_v35 }
   0xe   : > { %s1757_s29 = scalar_lea.vmem %s1993_s0, %s1677_s26  ;;  %v1321_v39 = vld [vmem:[%s1994_s1 + $0x24] sm:$0xf0]  ;;  %v1320_v44 = vor.u32 %v1603_v37, %v1319_v36  ;;  %v1339_v55 = vld [vmem:[%s1994_s1 + $0x38] sm:$0xf]  ;;  %v1609_v56 = vld [vmem:[%s1994_s1 + $0x50] sm:$0xf0] }
   0xf   : > { %v1620_v0 = vld [vmem:[%s1757_s29 + $0x38] sm:$0xff]  ;;  %v1619_v4 = vld [vmem:[%s1757_s29 + $0x30] sm:$0xff]  ;;  %v1618_v8 = vld [vmem:[%s1757_s29 + $0x28] sm:$0xff]  ;;  %v1324_v45 = vor.u32 %v1600_v38, %v1321_v39  ;;  %vm989_vm2 = vcmask 261120  }
  0x10   : > { %v1628_v1 = vld [vmem:[%s1757_s29 + $0x78] sm:$0xff]  ;;  %825 = vmatpush.bf16.msra.mxu0 %v1620_v0  ;;  %v1627_v5 = vld [vmem:[%s1757_s29 + $0x70] sm:$0xff]  ;;  %v1626_v9 = vld [vmem:[%s1757_s29 + $0x68] sm:$0xff] }
  0x11   : > { %v1636_v2 = vld [vmem:[%s1757_s29 + $0xb8] sm:$0xff]  ;;  %844 = vmatpush.bf16.msra.mxu1 %v1628_v1  ;;  %v1635_v6 = vld [vmem:[%s1757_s29 + $0xb0] sm:$0xff]  ;;  %v1634_v10 = vld [vmem:[%s1757_s29 + $0xa8] sm:$0xff] }
  0x12   : > { %v1644_v3 = vld [vmem:[%s1757_s29 + $0xf8] sm:$0xff]  ;;  %863 = vmatpush.bf16.msra.mxu2 %v1636_v2  ;;  %v1643_v7 = vld [vmem:[%s1757_s29 + $0xf0] sm:$0xff]  ;;  %v1642_v11 = vld [vmem:[%s1757_s29 + $0xe8] sm:$0xff]  ;;  %v1340_v2 = vor.u32 %v1609_v56, %v1339_v55 }
  0x13   : > { %882 = vmatpush.bf16.msra.mxu3 %v1644_v3  ;;  %v1617_v12 = vld [vmem:[%s1757_s29 + $0x20] sm:$0xff]  ;;  %v1616_v16 = vld [vmem:[%s1757_s29 + $0x18] sm:$0xff]  ;;  %v1615_v20 = vld [vmem:[%s1757_s29 + $0x10] sm:$0xff] }
  0x14   : > { %826 = vmatpush.bf16.msra.mxu0 %v1619_v4  ;;  %v1625_v13 = vld [vmem:[%s1757_s29 + $0x60] sm:$0xff]  ;;  %v1624_v17 = vld [vmem:[%s1757_s29 + $0x58] sm:$0xff]  ;;  %v1623_v21 = vld [vmem:[%s1757_s29 + $0x50] sm:$0xff] }
  0x15   : > { %845 = vmatpush.bf16.msra.mxu1 %v1627_v5  ;;  %v1633_v14 = vld [vmem:[%s1757_s29 + $0xa0] sm:$0xff]  ;;  %v1632_v18 = vld [vmem:[%s1757_s29 + $0x98] sm:$0xff]  ;;  %v1631_v22 = vld [vmem:[%s1757_s29 + $0x90] sm:$0xff] }
  0x16   : > { %864 = vmatpush.bf16.msra.mxu2 %v1635_v6  ;;  %v1641_v15 = vld [vmem:[%s1757_s29 + $0xe0] sm:$0xff]  ;;  %v1640_v19 = vld [vmem:[%s1757_s29 + $0xd8] sm:$0xff]  ;;  %v1639_v23 = vld [vmem:[%s1757_s29 + $0xd0] sm:$0xff] }
  0x17   : > { %883 = vmatpush.bf16.msra.mxu3 %v1643_v7  ;;  %v1614_v24 = vld [vmem:[%s1757_s29 + $0x8] sm:$0xff]  ;;  %v1613_v31 = vld [vmem:[%s1757_s29] sm:$0xff]  ;;  %v1652_v40 = vld [vmem:[%s1757_s29 + $0x138] sm:$0xff] }
  0x18   : > { %827 = vmatpush.bf16.msra.mxu0 %v1618_v8  ;;  %v1622_v25 = vld [vmem:[%s1757_s29 + $0x48] sm:$0xff]  ;;  %v1621_v32 = vld [vmem:[%s1757_s29 + $0x40] sm:$0xff]  ;;  %v1660_v41 = vld [vmem:[%s1757_s29 + $0x178] sm:$0xff] }
  0x19   : > { %846 = vmatpush.bf16.msra.mxu1 %v1626_v9  ;;  %v1630_v26 = vld [vmem:[%s1757_s29 + $0x88] sm:$0xff]  ;;  %v1629_v33 = vld [vmem:[%s1757_s29 + $0x80] sm:$0xff]  ;;  %v1651_v47 = vld [vmem:[%s1757_s29 + $0x130] sm:$0xff] }
  0x1a   : > { %865 = vmatpush.bf16.msra.mxu2 %v1634_v10  ;;  %v1638_v27 = vld [vmem:[%s1757_s29 + $0xc8] sm:$0xff]  ;;  %v1637_v34 = vld [vmem:[%s1757_s29 + $0xc0] sm:$0xff]  ;;  %v1659_v48 = vld [vmem:[%s1757_s29 + $0x170] sm:$0xff] }
  0x1b   : > { %884 = vmatpush.bf16.msra.mxu3 %v1642_v11  ;;  %v1666_v46 = vld [vmem:[%s1757_s29 + $0x1a8] sm:$0xff]  ;;  %v1665_v49 = vld [vmem:[%s1757_s29 + $0x1a0] sm:$0xff]  ;;  %v1664_v52 = vld [vmem:[%s1757_s29 + $0x198] sm:$0xff] }
  0x1c   : > { %828 = vmatpush.bf16.msra.mxu0 %v1617_v12  ;;  %v1650_v50 = vld [vmem:[%s1757_s29 + $0x128] sm:$0xff]  ;;  %v1649_v53 = vld [vmem:[%s1757_s29 + $0x120] sm:$0xff]  ;;  %v1606_v57 = vld [vmem:[%s1994_s1 + $0x3c] sm:$0xf] }
  0x1d   : > { %847 = vmatpush.bf16.msra.mxu1 %v1625_v13  ;;  %v1658_v51 = vld [vmem:[%s1757_s29 + $0x168] sm:$0xff]  ;;  %v1657_v54 = vld [vmem:[%s1757_s29 + $0x160] sm:$0xff]  ;;  %v1341_v58 = vld [vmem:[%s1994_s1 + $0x54] sm:$0xf0] }
  0x1e   : > { %866 = vmatpush.bf16.msra.mxu2 %v1633_v14  ;;  %v1347_v59 = vld [vmem:[%s1994_s1 + $0x40] sm:$0xf]  ;;  %v1610_v60 = vld [vmem:[%s1994_s1 + $0x58] sm:$0xf0]  ;;  %v1607_v61 = vld [vmem:[%s1994_s1 + $0x44] sm:$0xf]  ;;  %v1344_v3 = vor.u32 %v1606_v57, %v1341_v58 }
  0x1f   : > { %885 = vmatpush.bf16.msra.mxu3 %v1641_v15  ;;  %v1349_v62 = vld [vmem:[%s1994_s1 + $0x5c] sm:$0xf0]  ;;  %v1663_v63 = vld [vmem:[%s1757_s29 + $0x190] sm:$0xff]  ;;  %v1648_v0 = vld [vmem:[%s1757_s29 + $0x118] sm:$0xff]  ;;  %v1348_v4 = vor.u32 %v1610_v60, %v1347_v59 }
  0x20   : > { %829 = vmatpush.bf16.msra.mxu0 %v1616_v16  ;;  %v1656_v1 = vld [vmem:[%s1757_s29 + $0x158] sm:$0xff]  ;;  %v1352_v5 = vor.u32 %v1607_v61, %v1349_v62  ;;  %v1662_v6 = vld [vmem:[%s1757_s29 + $0x188] sm:$0xff]  ;;  %v1647_v7 = vld [vmem:[%s1757_s29 + $0x110] sm:$0xff] }
  0x21   : > { %848 = vmatpush.bf16.msra.mxu1 %v1624_v17  ;;  %v1655_v8 = vld [vmem:[%s1757_s29 + $0x150] sm:$0xff]  ;;  %v1661_v9 = vld [vmem:[%s1757_s29 + $0x180] sm:$0xff]  ;;  %v1646_v10 = vld [vmem:[%s1757_s29 + $0x108] sm:$0xff] }
  0x22   : > { %867 = vmatpush.bf16.msra.mxu2 %v1632_v18  ;;  %v1654_v11 = vld [vmem:[%s1757_s29 + $0x148] sm:$0xff]  ;;  %v1645_v12 = vld [vmem:[%s1757_s29 + $0x100] sm:$0xff]  ;;  %v1327_v14 = vld [vmem:[%s1994_s1 + $0x10] sm:$0xf] }
  0x23   : > { %886 = vmatpush.bf16.msra.mxu3 %v1640_v19  ;;  %v1653_v13 = vld [vmem:[%s1757_s29 + $0x140] sm:$0xff]  ;;  %v1604_v15 = vld [vmem:[%s1994_s1 + $0x28] sm:$0xf0]  ;;  %v1335_v16 = vld [vmem:[%s1994_s1 + $0x18] sm:$0xf]  ;;  %s1597_s29 = sshll.u32 %s2002_s25, 5 }
  0x24   : > { %830 = vmatpush.bf16.msra.mxu0 %v1615_v20  ;;  %v1601_v17 = vld [vmem:[%s1994_s1 + $0x14] sm:$0xf]  ;;  %v1329_v18 = vld [vmem:[%s1994_s1 + $0x2c] sm:$0xf0]  ;;  %v1608_v20 = vld [vmem:[%s1994_s1 + $0x4c] sm:$0xf]  ;;  %s293_s11 = scalar_lea.vmem %s1999_s6, %s1597_s29  ;;  %s298_s14 = scalar_lea.vmem %s2000_s7, %s1597_s29 }
  0x25   : > { %849 = vmatpush.bf16.msra.mxu1 %v1623_v21  ;;  %v1605_v19 = vld [vmem:[%s1994_s1 + $0x30] sm:$0xf0]  ;;  %v1357_v21 = vld [vmem:[%s1994_s1 + $0x64] sm:$0xf0]  ;;  %v1363_v28 = vld [vmem:[%s1994_s1 + $0x50] sm:$0xf] }
  0x26   : > { %868 = vmatpush.bf16.msra.mxu2 %v1631_v22  ;;  %v1328_v22 = vor.u32 %v1604_v15, %v1327_v14  ;;  %v1612_v29 = vld [vmem:[%s1994_s1 + $0x68] sm:$0xf0] }
  0x27   : > { %887 = vmatpush.bf16.msra.mxu3 %v1639_v23  ;;  %v1332_v23 = vor.u32 %v1601_v17, %v1329_v18 }
  0x28   : > { %831 = vmatpush.bf16.msra.mxu0 %v1614_v24  ;;  %v1336_v24 = vor.u32 %v1605_v19, %v1335_v16 }
  0x29   : > { %850 = vmatpush.bf16.msra.mxu1 %v1622_v25  ;;  %v1360_v25 = vor.u32 %v1608_v20, %v1357_v21 }
  0x2a   : > { %869 = vmatpush.bf16.msra.mxu2 %v1630_v26  ;;  %v1355_v26 = vld [vmem:[%s1994_s1 + $0x48] sm:$0xf] }
  0x2b   : > { %888 = vmatpush.bf16.msra.mxu3 %v1638_v27  ;;  %v1611_v27 = vld [vmem:[%s1994_s1 + $0x60] sm:$0xf0] }
  0x2c   : > { %832 = vmatpush.bf16.msra.mxu0 %v1613_v31  ;;  %v1356_v30 = vor.u32 %v1611_v27, %v1355_v26  ;;  %v1364_v31 = vor.u32 %v1612_v29, %v1363_v28 }
  0x2d   : > { %851 = vmatpush.bf16.msra.mxu1 %v1621_v32 }
  0x2e   : > { %870 = vmatpush.bf16.msra.mxu2 %v1629_v33 }
  0x2f   : > { %889 = vmatpush.bf16.msra.mxu3 %v1637_v34  ;;  %833 = vmatmul.bf16.vlgmr.msra.gmra.mxu0 %v1312_v42 }
  0x30   : > { %901 = vmatpush.bf16.msrb.mxu0 %v1652_v40  ;;  %852 = vmatmul.bf16.vlgmr.msra.gmra.mxu1 %v1316_v43 }
  0x31   : > { %920 = vmatpush.bf16.msrb.mxu1 %v1660_v41  ;;  %871 = vmatmul.bf16.vlgmr.msra.gmra.mxu2 %v1320_v44 }
  0x32   : > { %890 = vmatmul.bf16.vlgmr.msra.gmra.mxu3 %v1324_v45  ;;  %941 = vmatpush.bf16.msrb.mxu2 %v1666_v46 }
  0x33   : > { %1667 = vmatpush.bf16.msrb.mxu3 %v1660_v41 }
  0x34   : > { %902 = vmatpush.bf16.msrb.mxu0 %v1651_v47 }
  0x35   : > { %921 = vmatpush.bf16.msrb.mxu1 %v1659_v48 }
  0x36   : > { %942 = vmatpush.bf16.msrb.mxu2 %v1665_v49 }
  0x37   : > { %1668 = vmatpush.bf16.msrb.mxu3 %v1659_v48 }
  0x38   : > { %903 = vmatpush.bf16.msrb.mxu0 %v1650_v50 }
  0x39   : > { %922 = vmatpush.bf16.msrb.mxu1 %v1658_v51 }
  0x3a   : > { %943 = vmatpush.bf16.msrb.mxu2 %v1664_v52 }
  0x3b   : > { %1669 = vmatpush.bf16.msrb.mxu3 %v1658_v51 }
  0x3c   : > { %904 = vmatpush.bf16.msrb.mxu0 %v1649_v53 }
  0x3d   : > { %923 = vmatpush.bf16.msrb.mxu1 %v1657_v54 }
  0x3e   : > { %944 = vmatpush.bf16.msrb.mxu2 %v1663_v63 }
  0x3f   : > { %1670 = vmatpush.bf16.msrb.mxu3 %v1657_v54  ;;  %838 = vmatmul.bf16.gmra.mxu0 %v1340_v2 }
  0x40   : > { %905 = vmatpush.bf16.msrb.mxu0 %v1648_v0  ;;  %857 = vmatmul.bf16.gmra.mxu1 %v1344_v3 }
  0x41   : > { %924 = vmatpush.bf16.msrb.mxu1 %v1656_v1  ;;  %876 = vmatmul.bf16.gmra.mxu2 %v1348_v4 }
  0x42   : > { %895 = vmatmul.bf16.gmra.mxu3 %v1352_v5  ;;  %945 = vmatpush.bf16.msrb.mxu2 %v1662_v6 }
  0x43   : > { %1671 = vmatpush.bf16.msrb.mxu3 %v1656_v1 }
  0x44   : > { %906 = vmatpush.bf16.msrb.mxu0 %v1647_v7 }
  0x45   : > { %925 = vmatpush.bf16.msrb.mxu1 %v1655_v8 }
  0x46   : > { %946 = vmatpush.bf16.msrb.mxu2 %v1661_v9 }
  0x47   : > { %1672 = vmatpush.bf16.msrb.mxu3 %v1655_v8 }
  0x48   : > { %907 = vmatpush.bf16.msrb.mxu0 %v1646_v10 }
  0x49   : > { %926 = vmatpush.bf16.msrb.mxu1 %v1654_v11 }
  0x4b   : > { %1673 = vmatpush.bf16.msrb.mxu3 %v1654_v11 }
  0x4c   : > { %908 = vmatpush.bf16.msrb.mxu0 %v1645_v12 }
  0x4d   : > { %927 = vmatpush.bf16.msrb.mxu1 %v1653_v13 }
  0x4f   : > { %1674 = vmatpush.bf16.msrb.mxu3 %v1653_v13  ;;  %909 = vmatmul.bf16.vlgmr.msrb.gmra.mxu0 %v1328_v22 }
  0x50   : > { %928 = vmatmul.bf16.vlgmr.msrb.gmra.mxu1 %v1332_v23 }
  0x51   : > { %1581 = vmatmul.msk.bf16.vlgmr.msrb.gmra.mxu2 %vm818_vm0, %v1336_v24 }
  0x52   : > { %933 = vmatmul.bf16.vlgmr.msrb.gmra.mxu3 %v1360_v25 }
  0x5f   : > { %914 = vmatmul.bf16.gmra.mxu0 %v1356_v30 }
  0x61   : > { %1582 = vmatmul.msk.bf16.gmra.mxu2 %vm818_vm0, %v1364_v31 }
  0xac   : > { %v834_v32 = vpop.f32.mrf.mxu0 }
  0xad   : > { %v853_v33 = vpop.f32.mrf.mxu1 }
  0xae   : > { %v854_v52 = vadd.f32 %v853_v33, %v834_v32 }
  0xb4   : > { %v872_v34 = vpop.f32.mrf.mxu2  ;;  %v836_v35 = vpop.f32.mrf.mxu0 }
  0xb5   : > { %v855_v36 = vpop.f32.mrf.mxu1  ;;  %v891_v37 = vpop.f32.mrf.mxu3  ;;  %v873_v55 = vadd.f32 %v872_v34, %v854_v52 }
  0xb6   : > { %v856_v49 = vadd.f32 %v855_v36, %v836_v35 }
  0xb7   : > { %v892_v59 = vadd.f32 %v891_v37, %v873_v55  ;;  %v987_v37 = vld [vmem:[%s1997_s4] sm:$0xff] }
  0xbc   : > { %v874_v38 = vpop.f32.mrf.mxu2  ;;  %v839_v39 = vpop.f32.mrf.mxu0 }
  0xbd   : > { %v858_v40 = vpop.f32.mrf.mxu1  ;;  %v893_v41 = vpop.f32.mrf.mxu3  ;;  %v875_v50 = vadd.f32 %v874_v38, %v856_v49 }
  0xbe   : > { %v859_v6 = vadd.f32 %v858_v40, %v839_v39  ;;  %v988_v40 = vld [vmem:[%s1997_s4 + $0x8] sm:$0xff] }
  0xbf   : > { %v894_v53 = vadd.f32 %v893_v41, %v875_v50 }
  0xc4   : > { %v877_v42 = vpop.f32.mrf.mxu2  ;;  %v841_v43 = vpop.f32.mrf.mxu0 }
  0xc5   : > { %v860_v44 = vpop.f32.mrf.mxu1  ;;  %v896_v47 = vpop.f32.mrf.mxu3  ;;  %v878_v9 = vadd.f32 %v877_v42, %v859_v6 }
  0xc6   : > { %v861_v1 = vadd.f32 %v860_v44, %v841_v43 }
  0xc7   : > { %v897_v14 = vadd.f32 %v896_v47, %v878_v9 }
  0xcc   : > { %v879_v45 = vpop.f32.mrf.mxu2  ;;  %v910_v46 = vpop.f32.mrf.mxu0 }
  0xcd   : > { %v929_v48 = vpop.f32.mrf.mxu1  ;;  %v898_v57 = vpop.f32.mrf.mxu3  ;;  %v911_v62 = vadd.f32 %v910_v46, %v892_v59  ;;  %v880_v4 = vadd.f32 %v879_v45, %v861_v1  ;;  %v1076_v59 = vld [vmem:[%s1998_s5 + $0x10] sm:$0xff]  ;;  %v1077_v1 = vld [vmem:[%s1998_s5 + $0x18] sm:$0xff] }
  0xcf   : > { %v930_v5 = vadd.f32 %v929_v48, %v911_v62  ;;  %v899_v10 = vadd.f32 %v898_v57, %v880_v4 }
  0xd4   : > { %v948_v51 = vpop.f32.mrf.mxu2  ;;  %v912_v54 = vpop.f32.mrf.mxu0 }
  0xd5   : > { %v913_v56 = vadd.f32 %v912_v54, %v894_v53  ;;  %v931_v58 = vpop.f32.mrf.mxu1  ;;  %v934_v3 = vpop.f32.mrf.mxu3  ;;  %v1901_v7 = vadd.f32 %v948_v51, %v930_v5  ;;  %v1074_v51 = vld [vmem:[%s1998_s5] sm:$0xff] }
  0xd7   : > { %v932_v60 = vadd.f32 %v931_v58, %v913_v56  ;;  %v959_v13 = vsel %vm958_vm1, %v1901_v7, 0.0  ;;  %v971_v18 = vmul.f32 %v1901_v7, %v1901_v7  ;;  %v1075_v58 = vld [vmem:[%s1998_s5 + $0x8] sm:$0xff] }
  0xd9   : > { %v975_v22 = vsel %vm958_vm1, %v971_v18, 0.0 }
  0xdc   : > { %v950_v61 = vpop.f32.mrf.mxu2  ;;  %v915_v0 = vpop.f32.mrf.mxu0 }
  0xdd   : > { %v1897_v63 = vadd.f32 %v950_v61, %v932_v60  ;;  %v936_v15 = vpop.f32.mrf.mxu3  ;;  %v916_v16 = vadd.f32 %v915_v0, %v897_v14  ;;  %v1702_v14 = vmov 0  }
  0xde   : > { %1687 = vset.pattern.permute.xlu2 %v1702_v14  ;;  %1688 = vset.pattern.permute.xlu0 %v1702_v14 }
  0xdf   : > { %v962_v2 = vsel %vm958_vm1, %v1897_v63, 0.0  ;;  %v935_v21 = vadd.f32 %v934_v3, %v916_v16  ;;  %v972_v30 = vmul.f32 %v1897_v63, %v1897_v63  ;;  %1689 = vset.pattern.permute.xlu1 %v1702_v14 }
  0xe0   : > { %963 = vadd.xlane.f32.xlu1 %v962_v2 }
  0xe1   : > { %v978_v31 = vsel %vm958_vm1, %v972_v30, 0.0 }
  0xe4   : > { %v953_v8 = vpop.f32.mrf.mxu2  ;;  %v917_v11 = vpop.f32.mrf.mxu0 }
  0xe5   : > { %v918_v12 = vadd.f32 %v917_v11, %v899_v10  ;;  %v1914_v25 = vadd.f32 %v953_v8, %v935_v21  ;;  %v1156_v21 = vld [vmem:[%s1996_s3] sm:$0xff] }
  0xe7   : > { %v937_v17 = vadd.f32 %v936_v15, %v918_v12  ;;  %v973_v27 = vmul.f32 %v1914_v25, %v1914_v25  ;;  %v965_v28 = vsel %vm958_vm1, %v1914_v25, 0.0  ;;  %v1148_v15 = vld [vmem:[%s1995_s2] sm:$0xff] }
  0xe8   : > { %960 = vadd.xlane.f32.xlu1 %v959_v13 }
  0xe9   : > { %v981_v29 = vsel %vm958_vm1, %v973_v27, 0.0 }
  0xec   : > { %v955_v19 = vpop.f32.mrf.mxu2 }
  0xed   : > { %v1907_v20 = vadd.f32 %v955_v19, %v937_v17 }
  0xef   : > { %v968_v23 = vsel %vm958_vm1, %v1907_v20, 0.0  ;;  %v974_v24 = vmul.f32 %v1907_v20, %v1907_v20 }
  0xf0   : > { %976 = vadd.xlane.f32.xlu1 %v975_v22  ;;  %969 = vadd.xlane.f32.xlu0 %v968_v23  ;;  %v1149_v22 = vld [vmem:[%s1995_s2 + $0x8] sm:$0xff] }
  0xf1   : > { %v984_v26 = vsel %vm958_vm1, %v974_v24, 0.0 }
  0xf2   : > { %985 = vadd.xlane.f32.xlu2 %v984_v26 }
  0xf8   : > { %966 = vadd.xlane.f32.xlu0 %v965_v28  ;;  %v1157_v28 = vld [vmem:[%s1996_s3 + $0x8] sm:$0xff] }
  0xfa   : > { %982 = vadd.xlane.f32.xlu2 %v981_v29 }
 0x100   : > { %979 = vadd.xlane.f32.xlu0 %v978_v31 }
 0x153   : > { %v964_v32 = vpop.xlane.xlu1 %963 }
 0x15b   : > { %v961_v36 = vpop.xlane.xlu1 %960 }
 0x163   : > { %v970_v33 = vpop.xlane.xlu0 %969  ;;  %v977_v41 = vpop.xlane.xlu1 %976 }
 0x164   : > { %1008 = vmatpush.msra.mxu3 %v970_v33  ;;  %v1150_v33 = vld [vmem:[%s1995_s2 + $0x10] sm:$0xff] }
 0x165   : > { %v986_v34 = vpop.xlane.xlu2 %985 }
 0x16b   : > { %v967_v35 = vpop.xlane.xlu0 %966 }
 0x16c   : > { %1009 = vmatpush.msra.mxu3 %v967_v35  ;;  %v1151_v35 = vld [vmem:[%s1995_s2 + $0x18] sm:$0xff] }
 0x16d   : > { %v983_v38 = vpop.xlane.xlu2 %982 }
 0x16e   : > { %1010 = vmatpush.msra.mxu3 %v964_v32 }
 0x170   : > { %1011 = vmatpush.msra.mxu3 %v961_v36 }
 0x171   : > { %1583 = vmatmul.msk.f32.vlgmr.msra.gmra.mxu3 %vm989_vm2, %v987_v37 }
 0x172   : > { %1033 = vmatpush.msrb.mxu3 %v986_v34 }
 0x173   : > { %v980_v39 = vpop.xlane.xlu0 %979 }
 0x174   : > { %1034 = vmatpush.msrb.mxu3 %v983_v38 }
 0x176   : > { %1035 = vmatpush.msrb.mxu3 %v980_v39  ;;  %v1159_v39 = vld [vmem:[%s1996_s3 + $0x18] sm:$0xff] }
 0x178   : > { %1036 = vmatpush.msrb.mxu3 %v977_v41 }
 0x179   : > { %1584 = vmatmul.msk.f32.gmra.mxu3 %vm989_vm2, %v988_v40 }
 0x181   : > { %1585 = vmatmul.msk.f32.vlgmr.msrb.gmra.mxu3 %vm989_vm2, %v987_v37 }
 0x189   : > { %1586 = vmatmul.msk.f32.gmra.mxu3 %vm989_vm2, %v988_v40 }
 0x1f4   : > { %v1013_v42 = vpop.f32.mrf.mxu3 }
 0x1f5   : > { %v1019_v45 = vmul.f32 0.03125, %v1013_v42 }
 0x1f7   : > { %v1046_v48 = vmul.f32 %v1019_v45, %v1019_v45 }
 0x1fc   : > { %v1016_v43 = vpop.f32.mrf.mxu3 }
 0x1fd   : > { %v1020_v44 = vmul.f32 0.03125, %v1016_v43  ;;  %v1158_v43 = vld [vmem:[%s1996_s3 + $0x10] sm:$0xff] }
 0x1ff   : > { %1104 = vmatpush.msra.mxu0 %v1020_v44  ;;  %1675 = vmatpush.msra.mxu2 %v1020_v44  ;;  %v1047_v55 = vmul.f32 %v1020_v44, %v1020_v44 }
 0x201   : > { %1105 = vmatpush.msra.mxu0 %v1019_v45  ;;  %1676 = vmatpush.msra.mxu2 %v1019_v45 }
 0x202   : > { %1587 = vmatmul.msk.f32.vlgmr.msra.gmra.mxu0 %vm958_vm1, %v1074_v51  ;;  %1589 = vmatmul.msk.f32.vlgmr.msra.gmra.mxu2 %vm958_vm1, %v1076_v59 }
 0x204   : > { %v1038_v46 = vpop.f32.mrf.mxu3 }
 0x205   : > { %v1044_v47 = vmul.f32 0.03125, %v1038_v46 }
 0x207   : > { %v1048_v49 = vsub.f32 %v1044_v47, %v1046_v48  ;;  %v1216_v47 = vld [vmem:[%s293_s11] sm:$0xff] }
 0x209   : > { %v1050_v50 = vmax.f32 %v1048_v49, 0.0 }
 0x20a   : > { %1588 = vmatmul.msk.f32.gmra.mxu0 %vm958_vm1, %v1075_v58  ;;  %1590 = vmatmul.msk.f32.gmra.mxu2 %vm958_vm1, %v1077_v1 }
 0x20b   : > { %v1052_v52 = vadd.f32 1e-05, %v1050_v50 }
 0x20c   : > { %v1041_v53 = vpop.f32.mrf.mxu3 }
 0x20d   : > { %1690 = vrsqrt.f32 %v1052_v52  ;;  %v1045_v54 = vmul.f32 0.03125, %v1041_v53  ;;  %vm1060_vm7 = vweird.f32 %v1052_v52 }
 0x20f   : > { %v1049_v56 = vsub.f32 %v1045_v54, %v1047_v55  ;;  %v1217_v55 = vld [vmem:[%s293_s11 + $0x8] sm:$0xff] }
 0x211   : > { %v1051_v57 = vmax.f32 %v1049_v56, 0.0 }
 0x213   : > { %v1691_v60 = vpop.eup %1690  ;;  %v1053_v61 = vadd.f32 1e-05, %v1051_v57 }
 0x214   : > { %v1055_v62 = vmul.f32 %v1691_v60, %v1052_v52  ;;  %vm1061_vm5 = vweird.f32 %v1691_v60 }
 0x215   : > { %1692 = vrsqrt.f32 %v1053_v61  ;;  %vm1070_vm4 = vweird.f32 %v1053_v61  ;;  %vm1062_vm8 = vmor %vm1060_vm7, %vm1061_vm5 }
 0x216   : > { %v1056_v0 = vmul.f32 %v1691_v60, %v1055_v62  ;;  %v1218_v62 = vld [vmem:[%s293_s11 + $0x10] sm:$0xff] }
 0x218   : > { %v1057_v4 = vmul.f32 0.5, %v1056_v0 }
 0x21a   : > { %v1058_v8 = vsub.f32 1.5, %v1057_v4  ;;  %v1219_v4 = vld [vmem:[%s293_s11 + $0x18] sm:$0xff] }
 0x21b   : > { %v1693_v2 = vpop.eup %1692 }
 0x21c   : > { %v1065_v3 = vmul.f32 %v1693_v2, %v1053_v61  ;;  %vm1071_vm3 = vweird.f32 %v1693_v2  ;;  %v1059_v11 = vmul.f32 %v1691_v60, %v1058_v8 }
 0x21d   : > { %vm1072_vm6 = vmor %vm1070_vm4, %vm1071_vm3 }
 0x21e   : > { %v1066_v5 = vmul.f32 %v1693_v2, %v1065_v3  ;;  %v1063_v13 = vsel %vm1062_vm8, %v1691_v60, %v1059_v11 }
 0x220   : > { %v1067_v6 = vmul.f32 0.5, %v1066_v5 }
 0x222   : > { %v1068_v9 = vsub.f32 1.5, %v1067_v6 }
 0x224   : > { %v1069_v10 = vmul.f32 %v1693_v2, %v1068_v9 }
 0x226   : > { %v1073_v12 = vsel %vm1072_vm6, %v1693_v2, %v1069_v10 }
 0x227   : > { %1133 = vmatpush.msra.mxu1 %v1073_v12 }
 0x229   : > { %1134 = vmatpush.msra.mxu1 %v1063_v13 }
 0x22a   : > { %1591 = vmatmul.msk.f32.vlgmr.msra.gmra.mxu1 %vm958_vm1, %v1074_v51 }
 0x232   : > { %1592 = vmatmul.msk.f32.gmra.mxu1 %vm958_vm1, %v1075_v58 }
 0x23a   : > { %1593 = vmatmul.msk.f32.gmra.mxu1 %vm958_vm1, %v1076_v59 }
 0x242   : > { %1594 = vmatmul.msk.f32.gmra.mxu1 %vm958_vm1, %v1077_v1 }
 0x27f   : > { %v1107_v16 = vpop.f32.mrf.mxu0 }
 0x285   : > { %v1113_v31 = vpop.f32.mrf.mxu2 }
 0x287   : > { %v1110_v24 = vpop.f32.mrf.mxu0 }
 0x28d   : > { %v1116_v37 = vpop.f32.mrf.mxu2 }
 0x2a7   : > { %v1136_v17 = vpop.f32.mrf.mxu1 }
 0x2a8   : > { %v1152_v18 = vmul.f32 %v1148_v15, %v1136_v17 }
 0x2aa   : > { %1170 = vperm.xlu2 %1687, %v1152_v18   ;;  %v1160_v19 = vmul.f32 %v1152_v18, %v1107_v16 }
 0x2ac   : > { %v1164_v26 = vsub.f32 %v1156_v21, %v1160_v19 }
 0x2af   : > { %v1139_v23 = vpop.f32.mrf.mxu1 }
 0x2b0   : > { %v1153_v27 = vmul.f32 %v1149_v22, %v1139_v23 }
 0x2b2   : > { %v1161_v29 = vmul.f32 %v1153_v27, %v1110_v24  ;;  %1194 = vperm.xlu2 %1687, %v1164_v26   ;;  %1175 = vperm.xlu0 %1688, %v1153_v27  }
 0x2b4   : > { %v1165_v30 = vsub.f32 %v1157_v28, %v1161_v29 }
 0x2b6   : > { %1199 = vperm.xlu1 %1689, %v1165_v30  }
 0x2b7   : > { %v1142_v32 = vpop.f32.mrf.mxu1 }
 0x2b8   : > { %v1154_v34 = vmul.f32 %v1150_v33, %v1142_v32 }
 0x2ba   : > { %v1162_v41 = vmul.f32 %v1154_v34, %v1113_v31 }
 0x2bc   : > { %v1166_v44 = vsub.f32 %v1158_v43, %v1162_v41 }
 0x2be   : > { %1180 = vperm.xlu1 %1689, %v1154_v34  }
 0x2bf   : > { %v1145_v36 = vpop.f32.mrf.mxu1 }
 0x2c0   : > { %v1155_v38 = vmul.f32 %v1151_v35, %v1145_v36 }
 0x2c2   : > { %v1163_v40 = vmul.f32 %v1155_v38, %v1116_v37  ;;  %1185 = vperm.xlu2 %1687, %v1155_v38  }
 0x2c4   : > { %v1167_v42 = vsub.f32 %v1159_v39, %v1163_v40 }
 0x2c6   : > { %1209 = vperm.xlu1 %1689, %v1167_v42  }
 0x2ca   : > { %1204 = vperm.xlu2 %1687, %v1166_v44  }
 0x304   : > { %v1171_v45 = vpop.permute.xlu2 %1170 }
 0x305   : > { %v1188_v46 = vmul.f32 %v1171_v45, %v1901_v7 }
 0x30c   : > { %v1195_v48 = vpop.permute.xlu2 %1194 }
 0x30d   : > { %v1212_v49 = vadd.f32 %v1195_v48, %v1188_v46 }
 0x30f   : > { %v1220_v50 = vadd.f32 %v1216_v47, %v1212_v49 }
 0x311   : > { %v1224_v51 = vmax.f32 %v1220_v50, 0.0 }
 0x313   : > { %1228 = vst.msk [vmem:[%s298_s14] sm:$0xff] %vm958_vm1, %v1224_v51 }
 0x31c   : > { %v1186_v54 = vpop.permute.xlu2 %1185 }
 0x31d   : > { %v1191_v2 = vmul.f32 %v1186_v54, %v1907_v20 }
 0x324   : > { %v1176_v52 = vpop.permute.xlu0 %1175  ;;  %v1205_v61 = vpop.permute.xlu2 %1204 }
 0x325   : > { %v1189_v53 = vmul.f32 %v1176_v52, %v1897_v63 }
 0x328   : > { %v1200_v56 = vpop.permute.xlu1 %1199 }
 0x329   : > { %v1213_v57 = vadd.f32 %v1200_v56, %v1189_v53 }
 0x32b   : > { %v1221_v58 = vadd.f32 %v1217_v55, %v1213_v57 }
 0x32d   : > { %v1225_v7 = vmax.f32 %v1221_v58, 0.0 }
 0x32f   : > { %1229 = vst.msk [vmem:[%s298_s14 + $0x8] sm:$0xff] %vm958_vm1, %v1225_v7 }
 0x330   : > { %v1181_v59 = vpop.permute.xlu1 %1180 }
 0x331   : > { %v1190_v60 = vmul.f32 %v1181_v59, %v1914_v25 }
 0x333   : > { %v1214_v0 = vadd.f32 %v1205_v61, %v1190_v60 }
 0x335   : > { %v1222_v1 = vadd.f32 %v1218_v62, %v1214_v0 }
 0x337   : > { %v1226_v3 = vmax.f32 %v1222_v1, 0.0 }
 0x338   : > { %v1210_v63 = vpop.permute.xlu1 %1209 }
 0x339   : > { %1230 = vst.msk [vmem:[%s298_s14 + $0x10] sm:$0xff] %vm958_vm1, %v1226_v3  ;;  %v1215_v5 = vadd.f32 %v1210_v63, %v1191_v2 }
 0x33b   : > { %v1223_v6 = vadd.f32 %v1219_v4, %v1215_v5 }
 0x33d   : > { %v1227_v8 = vmax.f32 %v1223_v6, 0.0 }
 0x33f   : > { %1231 = vst.msk [vmem:[%s298_s14 + $0x18] sm:$0xff] %vm958_vm1, %v1227_v8 }
 0x340 PF: > { %s17_s24 = sadd.s32 1, %s1700_s24  }
 0x341   : > { %p14_p4 = scmp.ge.s32.totalorder %s17_s24, 4  }
 0x343   :  { %16 = sbr.rel (!%p14_p4) target bundleno = 1 (0x1), region = 81 }

</bundles_post_ra>
